<compile_context>
chip_gen: v6e
topology: v6e:2x2x1
jax: 0.10.0
libtpu: 0.0.40
codegen_flags: <defaults>
</compile_context>

<pallas_src>
import functools

import jax
import jax.numpy as jnp
from jax import lax
from jax.experimental import pallas as pl
from jax.experimental.pallas import tpu as pltpu


# ----------------------------------------------------------------------------
# Dense (Linear) kernel: y = x @ W + b, optional tanh. Tiled over (M, N).
# ----------------------------------------------------------------------------
def linear_kernel(x_ref, w_ref, b_ref, o_ref, *, use_tanh):
    w = w_ref[...]
    x = x_ref[...].astype(w.dtype)        # bf16 matmul inputs, f32 accumulate
    y = jnp.dot(x, w, preferred_element_type=jnp.float32) + b_ref[...]
    if use_tanh:
        y = jnp.tanh(y)
    o_ref[...] = y.astype(o_ref.dtype)


def _pick_block(dim, target, quantum):
    """Largest block <= target that divides dim and is a multiple of quantum."""
    if dim <= target:
        return dim
    for b in range(target, quantum - 1, -quantum):
        if dim % b == 0:
            return b
    return target


def linear(x, w, b, use_tanh=False):
    M, K = x.shape
    _, N = w.shape
    bm = _pick_block(M, 256, 8)
    bn = _pick_block(N, 512, 128)
    grid = (pl.cdiv(M, bm), pl.cdiv(N, bn))
    return pl.pallas_call(
        functools.partial(linear_kernel, use_tanh=use_tanh),
        out_shape=jax.ShapeDtypeStruct((M, N), jnp.float32),
        grid=grid,
        in_specs=[
            pl.BlockSpec((bm, K), lambda i, j: (i, 0)),
            pl.BlockSpec((K, bn), lambda i, j: (0, j)),
            pl.BlockSpec((1, bn), lambda i, j: (0, j)),
        ],
        out_specs=pl.BlockSpec((bm, bn), lambda i, j: (i, j)),
        compiler_params=pltpu.CompilerParams(
            dimension_semantics=("parallel", "parallel")),
    )(x, w, b.reshape(1, N))


# ----------------------------------------------------------------------------
# Fused GRU recurrence kernel.
#   gi_ref : [S, B, 3*DH]  precomputed x @ W_ih with b_ih (+ b_hr, b_hz) folded in,
#            gate-major columns [r | z | n] (each DH wide, directions interleaved).
#   h0_ref : [B, DH]       initial hidden (DH = num_directions * H).
#   whh_ref: [DH, 3*DH]    block-diagonal-over-directions hidden weights (bf16).
#   bhn_ref: [1, DH]       hidden bias of the n gate only (must stay inside r * (...)).
#   out_ref: [S, B, DH]    hidden state at every step.
# Gate math (PyTorch nn.GRU semantics, f32):
#   r = sigmoid(gi_r + h W_hr)        (b_ir + b_hr folded into gi_r)
#   z = sigmoid(gi_z + h W_hz)
#   n = tanh  (gi_n + r * (h W_hn + b_hn))
#   h' = (1 - z) * n + z * h
# ----------------------------------------------------------------------------
def gru_kernel(gi_ref, h0_ref, whh_ref, bhn_ref, out_ref, *, seq_len):
    dh = h0_ref.shape[-1]
    whh = whh_ref[...]
    bhn = bhn_ref[...]

    def step(t, h):
        gi = gi_ref[t]                                             # [B, 3*DH]
        gh = jnp.dot(h.astype(whh.dtype), whh,
                     preferred_element_type=jnp.float32)           # [B, 3*DH]
        r = jax.nn.sigmoid(gi[:, 0:dh] + gh[:, 0:dh])
        z = jax.nn.sigmoid(gi[:, dh:2 * dh] + gh[:, dh:2 * dh])
        n = jnp.tanh(gi[:, 2 * dh:3 * dh] + r * (gh[:, 2 * dh:3 * dh] + bhn))
        h_new = (1.0 - z) * n + z * h
        out_ref[t] = h_new.astype(out_ref.dtype)
        return h_new

    lax.fori_loop(0, seq_len, step, h0_ref[...].astype(jnp.float32), unroll=True)


def gru_fused(gi, h0, whh, bhn):
    S, B, G = gi.shape
    DH = h0.shape[-1]
    assert G == 3 * DH
    return pl.pallas_call(
        functools.partial(gru_kernel, seq_len=S),
        out_shape=jax.ShapeDtypeStruct((S, B, DH), jnp.float32),
        grid=(1,),
        in_specs=[
            pl.BlockSpec((S, B, G), lambda i: (0, 0, 0)),
            pl.BlockSpec((B, DH), lambda i: (0, 0)),
            pl.BlockSpec((DH, G), lambda i: (0, 0)),
            pl.BlockSpec((1, DH), lambda i: (0, 0)),
        ],
        out_specs=pl.BlockSpec((S, B, DH), lambda i: (0, 0, 0)),
        compiler_params=pltpu.CompilerParams(dimension_semantics=("arbitrary",)),
    )(gi, h0, whh, bhn)


# ----------------------------------------------------------------------------
# Full Seq2SeqModel forward (use_attention=False path).
# ----------------------------------------------------------------------------
def seq2seq_forward(params, x_tok, y_tok):
    emb = params["embed"]                                   # [V, E]  (f32)
    H = params["dec_whh"].shape[0]
    B, S_enc = x_tok.shape
    S_dec = y_tok.shape[1]
    E = emb.shape[-1]
    V = params["dec_lin_w"].shape[-1]

    # ---------------- Encoder (bidirectional GRU, directions fused) ----------------
    xe = jnp.take(emb, x_tok, axis=0).transpose(1, 0, 2)    # [S, B, E]  (gather = glue)
    proj = linear(xe.reshape(S_enc * B, E),
                  params["enc_wih_cat"], params["enc_bih_cat"])       # [S*B, 6H]
    proj = proj.reshape(S_enc, B, 6 * H)                    # cols: [f: r z n | b: r z n]
    proj_rev = proj[::-1]                                   # backward dir reads reversed time
    # gate-major interleave across directions: [r_f r_b | z_f z_b | n_f n_b]
    gi_enc = jnp.concatenate(
        [proj[..., 0:H],         proj_rev[..., 3 * H:4 * H],
         proj[..., H:2 * H],     proj_rev[..., 4 * H:5 * H],
         proj[..., 2 * H:3 * H], proj_rev[..., 5 * H:6 * H]], axis=-1)  # [S, B, 6H]

    h0 = jnp.zeros((B, 2 * H), jnp.float32)
    enc_out = gru_fused(gi_enc, h0, params["enc_whh_blk"], params["enc_bhn"])  # [S,B,2H]

    # final hidden of both directions == reshape(permute(h[-2:], (1,0,2)), (B, -1))
    h_cat = enc_out[-1]                                     # [B, 2H] = [h_fwd | h_bwd]
    context = linear(h_cat, params["enc_lin_w"], params["enc_lin_b"],
                     use_tanh=True)                         # [B, H]

    # ---------------- Decoder (no attention) ----------------
    ye = jnp.take(emb, y_tok, axis=0).transpose(1, 0, 2)    # [S_dec, B, E]
    gi_dec = linear(ye.reshape(S_dec * B, E),
                    params["dec_wih"], params["dec_bih"]).reshape(S_dec, B, 3 * H)
    dec_out = gru_fused(gi_dec, context, params["dec_whh"], params["dec_bhn"])  # [S,B,H]

    logits = linear(dec_out.reshape(S_dec * B, H),
                    params["dec_lin_w"], params["dec_lin_b"])          # [S*B, V]
    return logits.reshape(S_dec, B, V).transpose(1, 0, 2)              # [B, S_dec, V]
    # TODO(synk): use_attention=True branch (per-step Attention + bmm) not implemented;
    # Seq2SeqModel defaults to use_attention=False.


# ----------------------------------------------------------------------------
# Parameter init (PyTorch-like per-gate layout) and fused-layout preparation.
# ----------------------------------------------------------------------------
def init_raw_params(key, V, E, H):
    ks = jax.random.split(key, 16)
    u = lambda k, s: jax.random.uniform(k, s, jnp.float32, -0.1, 0.1)
    return {
        "embed": u(ks[0], (V, E)),
        # encoder bi-GRU, per-direction weights (gate order r, z, n along columns)
        "enc_wih_f": u(ks[1], (E, 3 * H)), "enc_whh_f": u(ks[2], (H, 3 * H)),
        "enc_bih_f": u(ks[3], (3 * H,)),   "enc_bhh_f": u(ks[4], (3 * H,)),
        "enc_wih_b": u(ks[5], (E, 3 * H)), "enc_whh_b": u(ks[6], (H, 3 * H)),
        "enc_bih_b": u(ks[7], (3 * H,)),   "enc_bhh_b": u(ks[8], (3 * H,)),
        # encoder context projection: Linear(2H -> H) + tanh
        "enc_lin_w": u(ks[9], (2 * H, H)), "enc_lin_b": u(ks[10], (H,)),
        # decoder GRU
        "dec_wih": u(ks[11], (E, 3 * H)), "dec_whh": u(ks[12], (H, 3 * H)),
        "dec_bih": u(ks[13], (3 * H,)),   "dec_bhh": u(ks[14], (3 * H,)),
        # decoder output projection: Linear(H -> V)
        "dec_lin_w": u(ks[15], (H, V)),
        "dec_lin_b": jnp.zeros((V,), jnp.float32),
    }


def build_whh_block(whh_list, H):
    """Block-diagonal [D*H, 3*D*H] with gate-major columns [r_0..r_D | z_0.. | n_0..]."""
    D = len(whh_list)
    blk = jnp.zeros((D * H, 3 * D * H), jnp.float32)
    for g in range(3):
        for d in range(D):
            blk = blk.at[d * H:(d + 1) * H,
                         (g * D + d) * H:(g * D + d + 1) * H].set(
                             whh_list[d][:, g * H:(g + 1) * H])
    return blk


def prepare_params(raw, H, matmul_dtype=jnp.bfloat16):
    def fold_bias(bih, bhh):
        # fold b_hr, b_hz into the precomputed input projection; b_hn must stay separate
        mask = jnp.concatenate([jnp.ones((2 * H,)), jnp.zeros((H,))]).astype(bhh.dtype)
        return bih + bhh * mask

    p = {"embed": raw["embed"]}
    # encoder: both directions share one [E, 6H] input-projection matmul
    p["enc_wih_cat"] = jnp.concatenate(
        [raw["enc_wih_f"], raw["enc_wih_b"]], axis=1).astype(matmul_dtype)
    p["enc_bih_cat"] = jnp.concatenate(
        [fold_bias(raw["enc_bih_f"], raw["enc_bhh_f"]),
         fold_bias(raw["enc_bih_b"], raw["enc_bhh_b"])])
    p["enc_whh_blk"] = build_whh_block(
        [raw["enc_whh_f"], raw["enc_whh_b"]], H).astype(matmul_dtype)   # [2H, 6H]
    p["enc_bhn"] = jnp.concatenate(
        [raw["enc_bhh_f"][2 * H:], raw["enc_bhh_b"][2 * H:]]).reshape(1, 2 * H)
    # decoder
    p["dec_wih"] = raw["dec_wih"].astype(matmul_dtype)                  # [E, 3H]
    p["dec_bih"] = fold_bias(raw["dec_bih"], raw["dec_bhh"])
    p["dec_whh"] = raw["dec_whh"].astype(matmul_dtype)                  # [H, 3H]
    p["dec_bhn"] = raw["dec_bhh"][2 * H:].reshape(1, H)
    # dense projections
    p["enc_lin_w"] = raw["enc_lin_w"].astype(matmul_dtype)
    p["enc_lin_b"] = raw["enc_lin_b"]
    p["dec_lin_w"] = raw["dec_lin_w"].astype(matmul_dtype)
    p["dec_lin_b"] = raw["dec_lin_b"]
    return p


if __name__ == "__main__":
    B, S_ENC, S_DEC = 8, 8, 8
    V, E, H = 256, 128, 128      # small but lane-dense (multiples of 128)

    key = jax.random.PRNGKey(0)
    kp, kx, ky = jax.random.split(key, 3)
    raw = init_raw_params(kp, V, E, H)
    params = prepare_params(raw, H)

    x_tok = jax.random.randint(kx, (B, S_ENC), 0, V, dtype=jnp.int32)
    y_tok = jax.random.randint(ky, (B, S_DEC), 0, V, dtype=jnp.int32)

    fwd = jax.jit(functools.partial(seq2seq_forward, params))
    out = jax.block_until_ready(fwd(x_tok, y_tok))
    assert out.shape == (B, S_DEC, V) and out.dtype == jnp.float32
    print("KERNEL_OK")
</pallas_src>

<mosaic_0001>
module attributes {stable_mosaic.version = 11 : i64} {
  func.func @linear_kernel(%arg0: i32, %arg1: i32, %arg2: memref<64x128xf32, #tpu.memory_space<vmem>>, %arg3: memref<128x384xbf16, #tpu.memory_space<vmem>>, %arg4: memref<1x384xf32, #tpu.memory_space<vmem>>, %arg5: memref<64x384xf32, #tpu.memory_space<vmem>>) attributes {dimension_semantics = [#tpu.dimension_semantics<parallel>, #tpu.dimension_semantics<parallel>], iteration_bounds = array<i64: 1, 2>, scalar_prefetch = 0 : i64, scratch_operands = 0 : i64, tpu.core_type = #tpu.core_type<tc>, window_params = [{transform_indices = @transform_0, window_bounds = array<i64: 64, 128>}, {transform_indices = @transform_1, window_bounds = array<i64: 128, 384>}, {transform_indices = @transform_2, window_bounds = array<i64: 1, 384>}, {transform_indices = @transform_3, window_bounds = array<i64: 64, 384>}]} {
    %c0 = arith.constant 0 : index
    %c0_0 = arith.constant 0 : index
    %0 = vector.load %arg3[%c0, %c0_0] : memref<128x384xbf16, #tpu.memory_space<vmem>>, vector<128x384xbf16>
    %c0_1 = arith.constant 0 : index
    %c0_2 = arith.constant 0 : index
    %1 = vector.load %arg2[%c0_1, %c0_2] : memref<64x128xf32, #tpu.memory_space<vmem>>, vector<64x128xf32>
    %2 = arith.truncf %1 : vector<64x128xf32> to vector<64x128xbf16>
    %cst = arith.constant dense<0.000000e+00> : vector<64x384xf32>
    %3 = tpu.matmul %2, %0, %cst {dimension_numbers = #tpu.dot_dimension_numbers<[1], [0], [0], [1], [0, 0, 1, 1], [], []>} : vector<64x128xbf16>, vector<128x384xbf16>, vector<64x384xf32> -> vector<64x384xf32>
    %c0_3 = arith.constant 0 : index
    %c0_4 = arith.constant 0 : index
    %4 = vector.load %arg4[%c0_3, %c0_4] : memref<1x384xf32, #tpu.memory_space<vmem>>, vector<1x384xf32>
    %5 = vector.broadcast %4 : vector<1x384xf32> to vector<64x384xf32>
    %6 = arith.addf %3, %5 : vector<64x384xf32>
    %c0_5 = arith.constant 0 : index
    %c0_6 = arith.constant 0 : index
    %7 = vector.load %arg5[%c0_5, %c0_6] : memref<64x384xf32, #tpu.memory_space<vmem>>, vector<64x384xf32>
    tpu.vector_store %arg5[%c0_5, %c0_6], %6 {strides = array<i32>} : memref<64x384xf32, #tpu.memory_space<vmem>>, vector<64x384xf32>,
    return
  }
  func.func @transform_0(%arg0: i32, %arg1: i32) -> (i32, i32) {
    %c0_i32 = arith.constant 0 : i32
    %c0_i32_0 = arith.constant 0 : i32
    return %arg0, %c0_i32 : i32, i32
  }
  func.func @transform_1(%arg0: i32, %arg1: i32) -> (i32, i32) {
    %c0_i32 = arith.constant 0 : i32
    %c0_i32_0 = arith.constant 0 : i32
    return %c0_i32, %arg1 : i32, i32
  }
  func.func @transform_2(%arg0: i32, %arg1: i32) -> (i32, i32) {
    %c0_i32 = arith.constant 0 : i32
    %c0_i32_0 = arith.constant 0 : i32
    return %c0_i32, %arg1 : i32, i32
  }
  func.func @transform_3(%arg0: i32, %arg1: i32) -> (i32, i32) {
    %c0_i32 = arith.constant 0 : i32
    return %arg0, %arg1 : i32, i32
  }
}

module attributes {stable_mosaic.version = 11 : i64} {
  func.func @gru_kernel(%arg0: i32, %arg1: memref<8x8x768xf32, #tpu.memory_space<vmem>>, %arg2: memref<8x256xf32, #tpu.memory_space<vmem>>, %arg3: memref<256x768xbf16, #tpu.memory_space<vmem>>, %arg4: memref<1x256xf32, #tpu.memory_space<vmem>>, %arg5: memref<8x8x256xf32, #tpu.memory_space<vmem>>) attributes {dimension_semantics = [#tpu.dimension_semantics<arbitrary>], iteration_bounds = array<i64: 1>, scalar_prefetch = 0 : i64, scratch_operands = 0 : i64, tpu.core_type = #tpu.core_type<tc>, window_params = [{pipeline_mode = #tpu.pipeline_mode<synchronous>, transform_indices = @transform_0, window_bounds = array<i64: 8, 8, 768>}, {pipeline_mode = #tpu.pipeline_mode<synchronous>, transform_indices = @transform_1, window_bounds = array<i64: 8, 256>}, {pipeline_mode = #tpu.pipeline_mode<synchronous>, transform_indices = @transform_2, window_bounds = array<i64: 256, 768>}, {pipeline_mode = #tpu.pipeline_mode<synchronous>, transform_indices = @transform_3, window_bounds = array<i64: 1, 256>}, {pipeline_mode = #tpu.pipeline_mode<synchronous>, transform_indices = @transform_4, window_bounds = array<i64: 8, 8, 256>}]} {
    %c0 = arith.constant 0 : index
    %c0_0 = arith.constant 0 : index
    %0 = vector.load %arg3[%c0, %c0_0] : memref<256x768xbf16, #tpu.memory_space<vmem>>, vector<256x768xbf16>
    %c0_1 = arith.constant 0 : index
    %c0_2 = arith.constant 0 : index
    %1 = vector.load %arg4[%c0_1, %c0_2] : memref<1x256xf32, #tpu.memory_space<vmem>>, vector<1x256xf32>
    %c0_3 = arith.constant 0 : index
    %c0_4 = arith.constant 0 : index
    %2 = vector.load %arg2[%c0_3, %c0_4] : memref<8x256xf32, #tpu.memory_space<vmem>>, vector<8x256xf32>
    %c0_i32 = arith.constant 0 : i32
    %3 = arith.index_cast %c0_i32 : i32 to index
    %c0_5 = arith.constant 0 : index
    %c0_6 = arith.constant 0 : index
    %4 = vector.load %arg1[%3, %c0_5, %c0_6] : memref<8x8x768xf32, #tpu.memory_space<vmem>>, vector<1x8x768xf32>
    %5 = vector.shape_cast %4 : vector<1x8x768xf32> to vector<8x768xf32>
    %6 = arith.truncf %2 : vector<8x256xf32> to vector<8x256xbf16>
    %cst = arith.constant dense<0.000000e+00> : vector<8x768xf32>
    %7 = tpu.matmul %6, %0, %cst {dimension_numbers = #tpu.dot_dimension_numbers<[1], [0], [0], [1], [0, 0, 1, 1], [], []>} : vector<8x256xbf16>, vector<256x768xbf16>, vector<8x768xf32> -> vector<8x768xf32>
    %8 = vector.extract_strided_slice %5 {offsets = [0, 0], sizes = [8, 256], strides = [1, 1]} : vector<8x768xf32> to vector<8x256xf32>
    %9 = vector.extract_strided_slice %7 {offsets = [0, 0], sizes = [8, 256], strides = [1, 1]} : vector<8x768xf32> to vector<8x256xf32>
    %10 = arith.addf %8, %9 : vector<8x256xf32>
    %11 = arith.negf %10 : vector<8x256xf32>
    %12 = math.exp %11 : vector<8x256xf32>
    %cst_7 = arith.constant 1.000000e+00 : f32
    %13 = vector.broadcast %cst_7 : f32 to vector<8x256xf32>
    %14 = arith.addf %13, %12 : vector<8x256xf32>
    %15 = arith.divf %13, %14 : vector<8x256xf32>
    %16 = vector.extract_strided_slice %5 {offsets = [0, 256], sizes = [8, 256], strides = [1, 1]} : vector<8x768xf32> to vector<8x256xf32>
    %17 = vector.extract_strided_slice %7 {offsets = [0, 256], sizes = [8, 256], strides = [1, 1]} : vector<8x768xf32> to vector<8x256xf32>
    %18 = arith.addf %16, %17 : vector<8x256xf32>
    %19 = arith.negf %18 : vector<8x256xf32>
    %20 = math.exp %19 : vector<8x256xf32>
    %cst_8 = arith.constant 1.000000e+00 : f32
    %21 = vector.broadcast %cst_8 : f32 to vector<8x256xf32>
    %22 = arith.addf %21, %20 : vector<8x256xf32>
    %23 = arith.divf %21, %22 : vector<8x256xf32>
    %24 = vector.extract_strided_slice %5 {offsets = [0, 512], sizes = [8, 256], strides = [1, 1]} : vector<8x768xf32> to vector<8x256xf32>
    %25 = vector.extract_strided_slice %7 {offsets = [0, 512], sizes = [8, 256], strides = [1, 1]} : vector<8x768xf32> to vector<8x256xf32>
    %26 = vector.broadcast %1 : vector<1x256xf32> to vector<8x256xf32>
    %27 = arith.addf %25, %26 : vector<8x256xf32>
    %28 = arith.mulf %15, %27 : vector<8x256xf32>
    %29 = arith.addf %24, %28 : vector<8x256xf32>
    %30 = math.tanh %29 : vector<8x256xf32>
    %cst_9 = arith.constant 1.000000e+00 : f32
    %31 = vector.broadcast %cst_9 : f32 to vector<8x256xf32>
    %32 = arith.subf %31, %23 : vector<8x256xf32>
    %33 = arith.mulf %32, %30 : vector<8x256xf32>
    %34 = arith.mulf %23, %2 : vector<8x256xf32>
    %35 = arith.addf %33, %34 : vector<8x256xf32>
    %36 = arith.index_cast %c0_i32 : i32 to index
    %c0_10 = arith.constant 0 : index
    %c0_11 = arith.constant 0 : index
    %37 = vector.load %arg5[%36, %c0_10, %c0_11] : memref<8x8x256xf32, #tpu.memory_space<vmem>>, vector<1x8x256xf32>
    %38 = vector.shape_cast %37 : vector<1x8x256xf32> to vector<8x256xf32>
    %39 = vector.shape_cast %35 : vector<8x256xf32> to vector<1x8x256xf32>
    tpu.vector_store %arg5[%36, %c0_10, %c0_11], %39 {strides = array<i32>} : memref<8x8x256xf32, #tpu.memory_space<vmem>>, vector<1x8x256xf32>,
    %c1_i32 = arith.constant 1 : i32
    %40 = arith.index_cast %c1_i32 : i32 to index
    %c0_12 = arith.constant 0 : index
    %c0_13 = arith.constant 0 : index
    %41 = vector.load %arg1[%40, %c0_12, %c0_13] : memref<8x8x768xf32, #tpu.memory_space<vmem>>, vector<1x8x768xf32>
    %42 = vector.shape_cast %41 : vector<1x8x768xf32> to vector<8x768xf32>
    %43 = arith.truncf %35 : vector<8x256xf32> to vector<8x256xbf16>
    %cst_14 = arith.constant dense<0.000000e+00> : vector<8x768xf32>
    %44 = tpu.matmul %43, %0, %cst_14 {dimension_numbers = #tpu.dot_dimension_numbers<[1], [0], [0], [1], [0, 0, 1, 1], [], []>} : vector<8x256xbf16>, vector<256x768xbf16>, vector<8x768xf32> -> vector<8x768xf32>
    %45 = vector.extract_strided_slice %42 {offsets = [0, 0], sizes = [8, 256], strides = [1, 1]} : vector<8x768xf32> to vector<8x256xf32>
    %46 = vector.extract_strided_slice %44 {offsets = [0, 0], sizes = [8, 256], strides = [1, 1]} : vector<8x768xf32> to vector<8x256xf32>
    %47 = arith.addf %45, %46 : vector<8x256xf32>
    %48 = arith.negf %47 : vector<8x256xf32>
    %49 = math.exp %48 : vector<8x256xf32>
    %cst_15 = arith.constant 1.000000e+00 : f32
    %50 = vector.broadcast %cst_15 : f32 to vector<8x256xf32>
    %51 = arith.addf %50, %49 : vector<8x256xf32>
    %52 = arith.divf %50, %51 : vector<8x256xf32>
    %53 = vector.extract_strided_slice %42 {offsets = [0, 256], sizes = [8, 256], strides = [1, 1]} : vector<8x768xf32> to vector<8x256xf32>
    %54 = vector.extract_strided_slice %44 {offsets = [0, 256], sizes = [8, 256], strides = [1, 1]} : vector<8x768xf32> to vector<8x256xf32>
    %55 = arith.addf %53, %54 : vector<8x256xf32>
    %56 = arith.negf %55 : vector<8x256xf32>
    %57 = math.exp %56 : vector<8x256xf32>
    %cst_16 = arith.constant 1.000000e+00 : f32
    %58 = vector.broadcast %cst_16 : f32 to vector<8x256xf32>
    %59 = arith.addf %58, %57 : vector<8x256xf32>
    %60 = arith.divf %58, %59 : vector<8x256xf32>
    %61 = vector.extract_strided_slice %42 {offsets = [0, 512], sizes = [8, 256], strides = [1, 1]} : vector<8x768xf32> to vector<8x256xf32>
    %62 = vector.extract_strided_slice %44 {offsets = [0, 512], sizes = [8, 256], strides = [1, 1]} : vector<8x768xf32> to vector<8x256xf32>
    %63 = vector.broadcast %1 : vector<1x256xf32> to vector<8x256xf32>
    %64 = arith.addf %62, %63 : vector<8x256xf32>
    %65 = arith.mulf %52, %64 : vector<8x256xf32>
    %66 = arith.addf %61, %65 : vector<8x256xf32>
    %67 = math.tanh %66 : vector<8x256xf32>
    %cst_17 = arith.constant 1.000000e+00 : f32
    %68 = vector.broadcast %cst_17 : f32 to vector<8x256xf32>
    %69 = arith.subf %68, %60 : vector<8x256xf32>
    %70 = arith.mulf %69, %67 : vector<8x256xf32>
    %71 = arith.mulf %60, %35 : vector<8x256xf32>
    %72 = arith.addf %70, %71 : vector<8x256xf32>
    %73 = arith.index_cast %c1_i32 : i32 to index
    %c0_18 = arith.constant 0 : index
    %c0_19 = arith.constant 0 : index
    %74 = vector.load %arg5[%73, %c0_18, %c0_19] : memref<8x8x256xf32, #tpu.memory_space<vmem>>, vector<1x8x256xf32>
    %75 = vector.shape_cast %74 : vector<1x8x256xf32> to vector<8x256xf32>
    %76 = vector.shape_cast %72 : vector<8x256xf32> to vector<1x8x256xf32>
    tpu.vector_store %arg5[%73, %c0_18, %c0_19], %76 {strides = array<i32>} : memref<8x8x256xf32, #tpu.memory_space<vmem>>, vector<1x8x256xf32>,
    %c2_i32 = arith.constant 2 : i32
    %77 = arith.index_cast %c2_i32 : i32 to index
    %c0_20 = arith.constant 0 : index
    %c0_21 = arith.constant 0 : index
    %78 = vector.load %arg1[%77, %c0_20, %c0_21] : memref<8x8x768xf32, #tpu.memory_space<vmem>>, vector<1x8x768xf32>
    %79 = vector.shape_cast %78 : vector<1x8x768xf32> to vector<8x768xf32>
    %80 = arith.truncf %72 : vector<8x256xf32> to vector<8x256xbf16>
    %cst_22 = arith.constant dense<0.000000e+00> : vector<8x768xf32>
    %81 = tpu.matmul %80, %0, %cst_22 {dimension_numbers = #tpu.dot_dimension_numbers<[1], [0], [0], [1], [0, 0, 1, 1], [], []>} : vector<8x256xbf16>, vector<256x768xbf16>, vector<8x768xf32> -> vector<8x768xf32>
    %82 = vector.extract_strided_slice %79 {offsets = [0, 0], sizes = [8, 256], strides = [1, 1]} : vector<8x768xf32> to vector<8x256xf32>
    %83 = vector.extract_strided_slice %81 {offsets = [0, 0], sizes = [8, 256], strides = [1, 1]} : vector<8x768xf32> to vector<8x256xf32>
    %84 = arith.addf %82, %83 : vector<8x256xf32>
    %85 = arith.negf %84 : vector<8x256xf32>
    %86 = math.exp %85 : vector<8x256xf32>
    %cst_23 = arith.constant 1.000000e+00 : f32
    %87 = vector.broadcast %cst_23 : f32 to vector<8x256xf32>
    %88 = arith.addf %87, %86 : vector<8x256xf32>
    %89 = arith.divf %87, %88 : vector<8x256xf32>
    %90 = vector.extract_strided_slice %79 {offsets = [0, 256], sizes = [8, 256], strides = [1, 1]} : vector<8x768xf32> to vector<8x256xf32>
    %91 = vector.extract_strided_slice %81 {offsets = [0, 256], sizes = [8, 256], strides = [1, 1]} : vector<8x768xf32> to vector<8x256xf32>
    %92 = arith.addf %90, %91 : vector<8x256xf32>
    %93 = arith.negf %92 : vector<8x256xf32>
    %94 = math.exp %93 : vector<8x256xf32>
    %cst_24 = arith.constant 1.000000e+00 : f32
    %95 = vector.broadcast %cst_24 : f32 to vector<8x256xf32>
    %96 = arith.addf %95, %94 : vector<8x256xf32>
    %97 = arith.divf %95, %96 : vector<8x256xf32>
    %98 = vector.extract_strided_slice %79 {offsets = [0, 512], sizes = [8, 256], strides = [1, 1]} : vector<8x768xf32> to vector<8x256xf32>
    %99 = vector.extract_strided_slice %81 {offsets = [0, 512], sizes = [8, 256], strides = [1, 1]} : vector<8x768xf32> to vector<8x256xf32>
    %100 = vector.broadcast %1 : vector<1x256xf32> to vector<8x256xf32>
    %101 = arith.addf %99, %100 : vector<8x256xf32>
    %102 = arith.mulf %89, %101 : vector<8x256xf32>
    %103 = arith.addf %98, %102 : vector<8x256xf32>
    %104 = math.tanh %103 : vector<8x256xf32>
    %cst_25 = arith.constant 1.000000e+00 : f32
    %105 = vector.broadcast %cst_25 : f32 to vector<8x256xf32>
    %106 = arith.subf %105, %97 : vector<8x256xf32>
    %107 = arith.mulf %106, %104 : vector<8x256xf32>
    %108 = arith.mulf %97, %72 : vector<8x256xf32>
    %109 = arith.addf %107, %108 : vector<8x256xf32>
    %110 = arith.index_cast %c2_i32 : i32 to index
    %c0_26 = arith.constant 0 : index
    %c0_27 = arith.constant 0 : index
    %111 = vector.load %arg5[%110, %c0_26, %c0_27] : memref<8x8x256xf32, #tpu.memory_space<vmem>>, vector<1x8x256xf32>
    %112 = vector.shape_cast %111 : vector<1x8x256xf32> to vector<8x256xf32>
    %113 = vector.shape_cast %109 : vector<8x256xf32> to vector<1x8x256xf32>
    tpu.vector_store %arg5[%110, %c0_26, %c0_27], %113 {strides = array<i32>} : memref<8x8x256xf32, #tpu.memory_space<vmem>>, vector<1x8x256xf32>,
    %c3_i32 = arith.constant 3 : i32
    %114 = arith.index_cast %c3_i32 : i32 to index
    %c0_28 = arith.constant 0 : index
    %c0_29 = arith.constant 0 : index
    %115 = vector.load %arg1[%114, %c0_28, %c0_29] : memref<8x8x768xf32, #tpu.memory_space<vmem>>, vector<1x8x768xf32>
    %116 = vector.shape_cast %115 : vector<1x8x768xf32> to vector<8x768xf32>
    %117 = arith.truncf %109 : vector<8x256xf32> to vector<8x256xbf16>
    %cst_30 = arith.constant dense<0.000000e+00> : vector<8x768xf32>
    %118 = tpu.matmul %117, %0, %cst_30 {dimension_numbers = #tpu.dot_dimension_numbers<[1], [0], [0], [1], [0, 0, 1, 1], [], []>} : vector<8x256xbf16>, vector<256x768xbf16>, vector<8x768xf32> -> vector<8x768xf32>
    %119 = vector.extract_strided_slice %116 {offsets = [0, 0], sizes = [8, 256], strides = [1, 1]} : vector<8x768xf32> to vector<8x256xf32>
    %120 = vector.extract_strided_slice %118 {offsets = [0, 0], sizes = [8, 256], strides = [1, 1]} : vector<8x768xf32> to vector<8x256xf32>
    %121 = arith.addf %119, %120 : vector<8x256xf32>
    %122 = arith.negf %121 : vector<8x256xf32>
    %123 = math.exp %122 : vector<8x256xf32>
    %cst_31 = arith.constant 1.000000e+00 : f32
    %124 = vector.broadcast %cst_31 : f32 to vector<8x256xf32>
    %125 = arith.addf %124, %123 : vector<8x256xf32>
    %126 = arith.divf %124, %125 : vector<8x256xf32>
    %127 = vector.extract_strided_slice %116 {offsets = [0, 256], sizes = [8, 256], strides = [1, 1]} : vector<8x768xf32> to vector<8x256xf32>
    %128 = vector.extract_strided_slice %118 {offsets = [0, 256], sizes = [8, 256], strides = [1, 1]} : vector<8x768xf32> to vector<8x256xf32>
    %129 = arith.addf %127, %128 : vector<8x256xf32>
    %130 = arith.negf %129 : vector<8x256xf32>
    %131 = math.exp %130 : vector<8x256xf32>
    %cst_32 = arith.constant 1.000000e+00 : f32
    %132 = vector.broadcast %cst_32 : f32 to vector<8x256xf32>
    %133 = arith.addf %132, %131 : vector<8x256xf32>
    %134 = arith.divf %132, %133 : vector<8x256xf32>
    %135 = vector.extract_strided_slice %116 {offsets = [0, 512], sizes = [8, 256], strides = [1, 1]} : vector<8x768xf32> to vector<8x256xf32>
    %136 = vector.extract_strided_slice %118 {offsets = [0, 512], sizes = [8, 256], strides = [1, 1]} : vector<8x768xf32> to vector<8x256xf32>
    %137 = vector.broadcast %1 : vector<1x256xf32> to vector<8x256xf32>
    %138 = arith.addf %136, %137 : vector<8x256xf32>
    %139 = arith.mulf %126, %138 : vector<8x256xf32>
    %140 = arith.addf %135, %139 : vector<8x256xf32>
    %141 = math.tanh %140 : vector<8x256xf32>
    %cst_33 = arith.constant 1.000000e+00 : f32
    %142 = vector.broadcast %cst_33 : f32 to vector<8x256xf32>
    %143 = arith.subf %142, %134 : vector<8x256xf32>
    %144 = arith.mulf %143, %141 : vector<8x256xf32>
    %145 = arith.mulf %134, %109 : vector<8x256xf32>
    %146 = arith.addf %144, %145 : vector<8x256xf32>
    %147 = arith.index_cast %c3_i32 : i32 to index
    %c0_34 = arith.constant 0 : index
    %c0_35 = arith.constant 0 : index
    %148 = vector.load %arg5[%147, %c0_34, %c0_35] : memref<8x8x256xf32, #tpu.memory_space<vmem>>, vector<1x8x256xf32>
    %149 = vector.shape_cast %148 : vector<1x8x256xf32> to vector<8x256xf32>
    %150 = vector.shape_cast %146 : vector<8x256xf32> to vector<1x8x256xf32>
    tpu.vector_store %arg5[%147, %c0_34, %c0_35], %150 {strides = array<i32>} : memref<8x8x256xf32, #tpu.memory_space<vmem>>, vector<1x8x256xf32>,
    %c4_i32 = arith.constant 4 : i32
    %151 = arith.index_cast %c4_i32 : i32 to index
    %c0_36 = arith.constant 0 : index
    %c0_37 = arith.constant 0 : index
    %152 = vector.load %arg1[%151, %c0_36, %c0_37] : memref<8x8x768xf32, #tpu.memory_space<vmem>>, vector<1x8x768xf32>
    %153 = vector.shape_cast %152 : vector<1x8x768xf32> to vector<8x768xf32>
    %154 = arith.truncf %146 : vector<8x256xf32> to vector<8x256xbf16>
    %cst_38 = arith.constant dense<0.000000e+00> : vector<8x768xf32>
    %155 = tpu.matmul %154, %0, %cst_38 {dimension_numbers = #tpu.dot_dimension_numbers<[1], [0], [0], [1], [0, 0, 1, 1], [], []>} : vector<8x256xbf16>, vector<256x768xbf16>, vector<8x768xf32> -> vector<8x768xf32>
    %156 = vector.extract_strided_slice %153 {offsets = [0, 0], sizes = [8, 256], strides = [1, 1]} : vector<8x768xf32> to vector<8x256xf32>
    %157 = vector.extract_strided_slice %155 {offsets = [0, 0], sizes = [8, 256], strides = [1, 1]} : vector<8x768xf32> to vector<8x256xf32>
    %158 = arith.addf %156, %157 : vector<8x256xf32>
    %159 = arith.negf %158 : vector<8x256xf32>
    %160 = math.exp %159 : vector<8x256xf32>
    %cst_39 = arith.constant 1.000000e+00 : f32
    %161 = vector.broadcast %cst_39 : f32 to vector<8x256xf32>
    %162 = arith.addf %161, %160 : vector<8x256xf32>
    %163 = arith.divf %161, %162 : vector<8x256xf32>
    %164 = vector.extract_strided_slice %153 {offsets = [0, 256], sizes = [8, 256], strides = [1, 1]} : vector<8x768xf32> to vector<8x256xf32>
    %165 = vector.extract_strided_slice %155 {offsets = [0, 256], sizes = [8, 256], strides = [1, 1]} : vector<8x768xf32> to vector<8x256xf32>
    %166 = arith.addf %164, %165 : vector<8x256xf32>
    %167 = arith.negf %166 : vector<8x256xf32>
    %168 = math.exp %167 : vector<8x256xf32>
    %cst_40 = arith.constant 1.000000e+00 : f32
    %169 = vector.broadcast %cst_40 : f32 to vector<8x256xf32>
    %170 = arith.addf %169, %168 : vector<8x256xf32>
    %171 = arith.divf %169, %170 : vector<8x256xf32>
    %172 = vector.extract_strided_slice %153 {offsets = [0, 512], sizes = [8, 256], strides = [1, 1]} : vector<8x768xf32> to vector<8x256xf32>
    %173 = vector.extract_strided_slice %155 {offsets = [0, 512], sizes = [8, 256], strides = [1, 1]} : vector<8x768xf32> to vector<8x256xf32>
    %174 = vector.broadcast %1 : vector<1x256xf32> to vector<8x256xf32>
    %175 = arith.addf %173, %174 : vector<8x256xf32>
    %176 = arith.mulf %163, %175 : vector<8x256xf32>
    %177 = arith.addf %172, %176 : vector<8x256xf32>
    %178 = math.tanh %177 : vector<8x256xf32>
    %cst_41 = arith.constant 1.000000e+00 : f32
    %179 = vector.broadcast %cst_41 : f32 to vector<8x256xf32>
    %180 = arith.subf %179, %171 : vector<8x256xf32>
    %181 = arith.mulf %180, %178 : vector<8x256xf32>
    %182 = arith.mulf %171, %146 : vector<8x256xf32>
    %183 = arith.addf %181, %182 : vector<8x256xf32>
    %184 = arith.index_cast %c4_i32 : i32 to index
    %c0_42 = arith.constant 0 : index
    %c0_43 = arith.constant 0 : index
    %185 = vector.load %arg5[%184, %c0_42, %c0_43] : memref<8x8x256xf32, #tpu.memory_space<vmem>>, vector<1x8x256xf32>
    %186 = vector.shape_cast %185 : vector<1x8x256xf32> to vector<8x256xf32>
    %187 = vector.shape_cast %183 : vector<8x256xf32> to vector<1x8x256xf32>
    tpu.vector_store %arg5[%184, %c0_42, %c0_43], %187 {strides = array<i32>} : memref<8x8x256xf32, #tpu.memory_space<vmem>>, vector<1x8x256xf32>,
    %c5_i32 = arith.constant 5 : i32
    %188 = arith.index_cast %c5_i32 : i32 to index
    %c0_44 = arith.constant 0 : index
    %c0_45 = arith.constant 0 : index
    %189 = vector.load %arg1[%188, %c0_44, %c0_45] : memref<8x8x768xf32, #tpu.memory_space<vmem>>, vector<1x8x768xf32>
    %190 = vector.shape_cast %189 : vector<1x8x768xf32> to vector<8x768xf32>
    %191 = arith.truncf %183 : vector<8x256xf32> to vector<8x256xbf16>
    %cst_46 = arith.constant dense<0.000000e+00> : vector<8x768xf32>
    %192 = tpu.matmul %191, %0, %cst_46 {dimension_numbers = #tpu.dot_dimension_numbers<[1], [0], [0], [1], [0, 0, 1, 1], [], []>} : vector<8x256xbf16>, vector<256x768xbf16>, vector<8x768xf32> -> vector<8x768xf32>
    %193 = vector.extract_strided_slice %190 {offsets = [0, 0], sizes = [8, 256], strides = [1, 1]} : vector<8x768xf32> to vector<8x256xf32>
    %194 = vector.extract_strided_slice %192 {offsets = [0, 0], sizes = [8, 256], strides = [1, 1]} : vector<8x768xf32> to vector<8x256xf32>
    %195 = arith.addf %193, %194 : vector<8x256xf32>
    %196 = arith.negf %195 : vector<8x256xf32>
    %197 = math.exp %196 : vector<8x256xf32>
    %cst_47 = arith.constant 1.000000e+00 : f32
    %198 = vector.broadcast %cst_47 : f32 to vector<8x256xf32>
    %199 = arith.addf %198, %197 : vector<8x256xf32>
    %200 = arith.divf %198, %199 : vector<8x256xf32>
    %201 = vector.extract_strided_slice %190 {offsets = [0, 256], sizes = [8, 256], strides = [1, 1]} : vector<8x768xf32> to vector<8x256xf32>
    %202 = vector.extract_strided_slice %192 {offsets = [0, 256], sizes = [8, 256], strides = [1, 1]} : vector<8x768xf32> to vector<8x256xf32>
    %203 = arith.addf %201, %202 : vector<8x256xf32>
    %204 = arith.negf %203 : vector<8x256xf32>
    %205 = math.exp %204 : vector<8x256xf32>
    %cst_48 = arith.constant 1.000000e+00 : f32
    %206 = vector.broadcast %cst_48 : f32 to vector<8x256xf32>
    %207 = arith.addf %206, %205 : vector<8x256xf32>
    %208 = arith.divf %206, %207 : vector<8x256xf32>
    %209 = vector.extract_strided_slice %190 {offsets = [0, 512], sizes = [8, 256], strides = [1, 1]} : vector<8x768xf32> to vector<8x256xf32>
    %210 = vector.extract_strided_slice %192 {offsets = [0, 512], sizes = [8, 256], strides = [1, 1]} : vector<8x768xf32> to vector<8x256xf32>
    %211 = vector.broadcast %1 : vector<1x256xf32> to vector<8x256xf32>
    %212 = arith.addf %210, %211 : vector<8x256xf32>
    %213 = arith.mulf %200, %212 : vector<8x256xf32>
    %214 = arith.addf %209, %213 : vector<8x256xf32>
    %215 = math.tanh %214 : vector<8x256xf32>
    %cst_49 = arith.constant 1.000000e+00 : f32
    %216 = vector.broadcast %cst_49 : f32 to vector<8x256xf32>
    %217 = arith.subf %216, %208 : vector<8x256xf32>
    %218 = arith.mulf %217, %215 : vector<8x256xf32>
    %219 = arith.mulf %208, %183 : vector<8x256xf32>
    %220 = arith.addf %218, %219 : vector<8x256xf32>
    %221 = arith.index_cast %c5_i32 : i32 to index
    %c0_50 = arith.constant 0 : index
    %c0_51 = arith.constant 0 : index
    %222 = vector.load %arg5[%221, %c0_50, %c0_51] : memref<8x8x256xf32, #tpu.memory_space<vmem>>, vector<1x8x256xf32>
    %223 = vector.shape_cast %222 : vector<1x8x256xf32> to vector<8x256xf32>
    %224 = vector.shape_cast %220 : vector<8x256xf32> to vector<1x8x256xf32>
    tpu.vector_store %arg5[%221, %c0_50, %c0_51], %224 {strides = array<i32>} : memref<8x8x256xf32, #tpu.memory_space<vmem>>, vector<1x8x256xf32>,
    %c6_i32 = arith.constant 6 : i32
    %225 = arith.index_cast %c6_i32 : i32 to index
    %c0_52 = arith.constant 0 : index
    %c0_53 = arith.constant 0 : index
    %226 = vector.load %arg1[%225, %c0_52, %c0_53] : memref<8x8x768xf32, #tpu.memory_space<vmem>>, vector<1x8x768xf32>
    %227 = vector.shape_cast %226 : vector<1x8x768xf32> to vector<8x768xf32>
    %228 = arith.truncf %220 : vector<8x256xf32> to vector<8x256xbf16>
    %cst_54 = arith.constant dense<0.000000e+00> : vector<8x768xf32>
    %229 = tpu.matmul %228, %0, %cst_54 {dimension_numbers = #tpu.dot_dimension_numbers<[1], [0], [0], [1], [0, 0, 1, 1], [], []>} : vector<8x256xbf16>, vector<256x768xbf16>, vector<8x768xf32> -> vector<8x768xf32>
    %230 = vector.extract_strided_slice %227 {offsets = [0, 0], sizes = [8, 256], strides = [1, 1]} : vector<8x768xf32> to vector<8x256xf32>
    %231 = vector.extract_strided_slice %229 {offsets = [0, 0], sizes = [8, 256], strides = [1, 1]} : vector<8x768xf32> to vector<8x256xf32>
    %232 = arith.addf %230, %231 : vector<8x256xf32>
    %233 = arith.negf %232 : vector<8x256xf32>
    %234 = math.exp %233 : vector<8x256xf32>
    %cst_55 = arith.constant 1.000000e+00 : f32
    %235 = vector.broadcast %cst_55 : f32 to vector<8x256xf32>
    %236 = arith.addf %235, %234 : vector<8x256xf32>
    %237 = arith.divf %235, %236 : vector<8x256xf32>
    %238 = vector.extract_strided_slice %227 {offsets = [0, 256], sizes = [8, 256], strides = [1, 1]} : vector<8x768xf32> to vector<8x256xf32>
    %239 = vector.extract_strided_slice %229 {offsets = [0, 256], sizes = [8, 256], strides = [1, 1]} : vector<8x768xf32> to vector<8x256xf32>
    %240 = arith.addf %238, %239 : vector<8x256xf32>
    %241 = arith.negf %240 : vector<8x256xf32>
    %242 = math.exp %241 : vector<8x256xf32>
    %cst_56 = arith.constant 1.000000e+00 : f32
    %243 = vector.broadcast %cst_56 : f32 to vector<8x256xf32>
    %244 = arith.addf %243, %242 : vector<8x256xf32>
    %245 = arith.divf %243, %244 : vector<8x256xf32>
    %246 = vector.extract_strided_slice %227 {offsets = [0, 512], sizes = [8, 256], strides = [1, 1]} : vector<8x768xf32> to vector<8x256xf32>
    %247 = vector.extract_strided_slice %229 {offsets = [0, 512], sizes = [8, 256], strides = [1, 1]} : vector<8x768xf32> to vector<8x256xf32>
    %248 = vector.broadcast %1 : vector<1x256xf32> to vector<8x256xf32>
    %249 = arith.addf %247, %248 : vector<8x256xf32>
    %250 = arith.mulf %237, %249 : vector<8x256xf32>
    %251 = arith.addf %246, %250 : vector<8x256xf32>
    %252 = math.tanh %251 : vector<8x256xf32>
    %cst_57 = arith.constant 1.000000e+00 : f32
    %253 = vector.broadcast %cst_57 : f32 to vector<8x256xf32>
    %254 = arith.subf %253, %245 : vector<8x256xf32>
    %255 = arith.mulf %254, %252 : vector<8x256xf32>
    %256 = arith.mulf %245, %220 : vector<8x256xf32>
    %257 = arith.addf %255, %256 : vector<8x256xf32>
    %258 = arith.index_cast %c6_i32 : i32 to index
    %c0_58 = arith.constant 0 : index
    %c0_59 = arith.constant 0 : index
    %259 = vector.load %arg5[%258, %c0_58, %c0_59] : memref<8x8x256xf32, #tpu.memory_space<vmem>>, vector<1x8x256xf32>
    %260 = vector.shape_cast %259 : vector<1x8x256xf32> to vector<8x256xf32>
    %261 = vector.shape_cast %257 : vector<8x256xf32> to vector<1x8x256xf32>
    tpu.vector_store %arg5[%258, %c0_58, %c0_59], %261 {strides = array<i32>} : memref<8x8x256xf32, #tpu.memory_space<vmem>>, vector<1x8x256xf32>,
    %c7_i32 = arith.constant 7 : i32
    %262 = arith.index_cast %c7_i32 : i32 to index
    %c0_60 = arith.constant 0 : index
    %c0_61 = arith.constant 0 : index
    %263 = vector.load %arg1[%262, %c0_60, %c0_61] : memref<8x8x768xf32, #tpu.memory_space<vmem>>, vector<1x8x768xf32>
    %264 = vector.shape_cast %263 : vector<1x8x768xf32> to vector<8x768xf32>
    %265 = arith.truncf %257 : vector<8x256xf32> to vector<8x256xbf16>
    %cst_62 = arith.constant dense<0.000000e+00> : vector<8x768xf32>
    %266 = tpu.matmul %265, %0, %cst_62 {dimension_numbers = #tpu.dot_dimension_numbers<[1], [0], [0], [1], [0, 0, 1, 1], [], []>} : vector<8x256xbf16>, vector<256x768xbf16>, vector<8x768xf32> -> vector<8x768xf32>
    %267 = vector.extract_strided_slice %264 {offsets = [0, 0], sizes = [8, 256], strides = [1, 1]} : vector<8x768xf32> to vector<8x256xf32>
    %268 = vector.extract_strided_slice %266 {offsets = [0, 0], sizes = [8, 256], strides = [1, 1]} : vector<8x768xf32> to vector<8x256xf32>
    %269 = arith.addf %267, %268 : vector<8x256xf32>
    %270 = arith.negf %269 : vector<8x256xf32>
    %271 = math.exp %270 : vector<8x256xf32>
    %cst_63 = arith.constant 1.000000e+00 : f32
    %272 = vector.broadcast %cst_63 : f32 to vector<8x256xf32>
    %273 = arith.addf %272, %271 : vector<8x256xf32>
    %274 = arith.divf %272, %273 : vector<8x256xf32>
    %275 = vector.extract_strided_slice %264 {offsets = [0, 256], sizes = [8, 256], strides = [1, 1]} : vector<8x768xf32> to vector<8x256xf32>
    %276 = vector.extract_strided_slice %266 {offsets = [0, 256], sizes = [8, 256], strides = [1, 1]} : vector<8x768xf32> to vector<8x256xf32>
    %277 = arith.addf %275, %276 : vector<8x256xf32>
    %278 = arith.negf %277 : vector<8x256xf32>
    %279 = math.exp %278 : vector<8x256xf32>
    %cst_64 = arith.constant 1.000000e+00 : f32
    %280 = vector.broadcast %cst_64 : f32 to vector<8x256xf32>
    %281 = arith.addf %280, %279 : vector<8x256xf32>
    %282 = arith.divf %280, %281 : vector<8x256xf32>
    %283 = vector.extract_strided_slice %264 {offsets = [0, 512], sizes = [8, 256], strides = [1, 1]} : vector<8x768xf32> to vector<8x256xf32>
    %284 = vector.extract_strided_slice %266 {offsets = [0, 512], sizes = [8, 256], strides = [1, 1]} : vector<8x768xf32> to vector<8x256xf32>
    %285 = vector.broadcast %1 : vector<1x256xf32> to vector<8x256xf32>
    %286 = arith.addf %284, %285 : vector<8x256xf32>
    %287 = arith.mulf %274, %286 : vector<8x256xf32>
    %288 = arith.addf %283, %287 : vector<8x256xf32>
    %289 = math.tanh %288 : vector<8x256xf32>
    %cst_65 = arith.constant 1.000000e+00 : f32
    %290 = vector.broadcast %cst_65 : f32 to vector<8x256xf32>
    %291 = arith.subf %290, %282 : vector<8x256xf32>
    %292 = arith.mulf %291, %289 : vector<8x256xf32>
    %293 = arith.mulf %282, %257 : vector<8x256xf32>
    %294 = arith.addf %292, %293 : vector<8x256xf32>
    %295 = arith.index_cast %c7_i32 : i32 to index
    %c0_66 = arith.constant 0 : index
    %c0_67 = arith.constant 0 : index
    %296 = vector.load %arg5[%295, %c0_66, %c0_67] : memref<8x8x256xf32, #tpu.memory_space<vmem>>, vector<1x8x256xf32>
    %297 = vector.shape_cast %296 : vector<1x8x256xf32> to vector<8x256xf32>
    %298 = vector.shape_cast %294 : vector<8x256xf32> to vector<1x8x256xf32>
    tpu.vector_store %arg5[%295, %c0_66, %c0_67], %298 {strides = array<i32>} : memref<8x8x256xf32, #tpu.memory_space<vmem>>, vector<1x8x256xf32>,
    %c8_i32 = arith.constant 8 : i32
    return
  }
  func.func @transform_0(%arg0: i32) -> (i32, i32, i32) {
    %c0_i32 = arith.constant 0 : i32
    %c0_i32_0 = arith.constant 0 : i32
    %c0_i32_1 = arith.constant 0 : i32
    %c0_i32_2 = arith.constant 0 : i32
    return %c0_i32, %c0_i32_0, %c0_i32_1 : i32, i32, i32
  }
  func.func @transform_1(%arg0: i32) -> (i32, i32) {
    %c0_i32 = arith.constant 0 : i32
    %c0_i32_0 = arith.constant 0 : i32
    %c0_i32_1 = arith.constant 0 : i32
    return %c0_i32, %c0_i32_0 : i32, i32
  }
  func.func @transform_2(%arg0: i32) -> (i32, i32) {
    %c0_i32 = arith.constant 0 : i32
    %c0_i32_0 = arith.constant 0 : i32
    %c0_i32_1 = arith.constant 0 : i32
    return %c0_i32, %c0_i32_0 : i32, i32
  }
  func.func @transform_3(%arg0: i32) -> (i32, i32) {
    %c0_i32 = arith.constant 0 : i32
    %c0_i32_0 = arith.constant 0 : i32
    %c0_i32_1 = arith.constant 0 : i32
    return %c0_i32, %c0_i32_0 : i32, i32
  }
  func.func @transform_4(%arg0: i32) -> (i32, i32, i32) {
    %c0_i32 = arith.constant 0 : i32
    %c0_i32_0 = arith.constant 0 : i32
    %c0_i32_1 = arith.constant 0 : i32
    %c0_i32_2 = arith.constant 0 : i32
    return %c0_i32, %c0_i32_0, %c0_i32_1 : i32, i32, i32
  }
}

module attributes {stable_mosaic.version = 11 : i64} {
  func.func @linear_kernel(%arg0: i32, %arg1: i32, %arg2: memref<8x256xf32, #tpu.memory_space<vmem>>, %arg3: memref<256x128xbf16, #tpu.memory_space<vmem>>, %arg4: memref<1x128xf32, #tpu.memory_space<vmem>>, %arg5: memref<8x128xf32, #tpu.memory_space<vmem>>) attributes {dimension_semantics = [#tpu.dimension_semantics<parallel>, #tpu.dimension_semantics<parallel>], iteration_bounds = array<i64: 1, 1>, scalar_prefetch = 0 : i64, scratch_operands = 0 : i64, tpu.core_type = #tpu.core_type<tc>, window_params = [{transform_indices = @transform_0, window_bounds = array<i64: 8, 256>}, {transform_indices = @transform_1, window_bounds = array<i64: 256, 128>}, {transform_indices = @transform_2, window_bounds = array<i64: 1, 128>}, {transform_indices = @transform_3, window_bounds = array<i64: 8, 128>}]} {
    %c0 = arith.constant 0 : index
    %c0_0 = arith.constant 0 : index
    %0 = vector.load %arg3[%c0, %c0_0] : memref<256x128xbf16, #tpu.memory_space<vmem>>, vector<256x128xbf16>
    %c0_1 = arith.constant 0 : index
    %c0_2 = arith.constant 0 : index
    %1 = vector.load %arg2[%c0_1, %c0_2] : memref<8x256xf32, #tpu.memory_space<vmem>>, vector<8x256xf32>
    %2 = arith.truncf %1 : vector<8x256xf32> to vector<8x256xbf16>
    %cst = arith.constant dense<0.000000e+00> : vector<8x128xf32>
    %3 = tpu.matmul %2, %0, %cst {dimension_numbers = #tpu.dot_dimension_numbers<[1], [0], [0], [1], [0, 0, 1, 1], [], []>} : vector<8x256xbf16>, vector<256x128xbf16>, vector<8x128xf32> -> vector<8x128xf32>
    %c0_3 = arith.constant 0 : index
    %c0_4 = arith.constant 0 : index
    %4 = vector.load %arg4[%c0_3, %c0_4] : memref<1x128xf32, #tpu.memory_space<vmem>>, vector<1x128xf32>
    %5 = vector.broadcast %4 : vector<1x128xf32> to vector<8x128xf32>
    %6 = arith.addf %3, %5 : vector<8x128xf32>
    %7 = math.tanh %6 : vector<8x128xf32>
    %c0_5 = arith.constant 0 : index
    %c0_6 = arith.constant 0 : index
    %8 = vector.load %arg5[%c0_5, %c0_6] : memref<8x128xf32, #tpu.memory_space<vmem>>, vector<8x128xf32>
    tpu.vector_store %arg5[%c0_5, %c0_6], %7 {strides = array<i32>} : memref<8x128xf32, #tpu.memory_space<vmem>>, vector<8x128xf32>,
    return
  }
  func.func @transform_0(%arg0: i32, %arg1: i32) -> (i32, i32) {
    %c0_i32 = arith.constant 0 : i32
    %c0_i32_0 = arith.constant 0 : i32
    return %arg0, %c0_i32 : i32, i32
  }
  func.func @transform_1(%arg0: i32, %arg1: i32) -> (i32, i32) {
    %c0_i32 = arith.constant 0 : i32
    %c0_i32_0 = arith.constant 0 : i32
    return %c0_i32, %arg1 : i32, i32
  }
  func.func @transform_2(%arg0: i32, %arg1: i32) -> (i32, i32) {
    %c0_i32 = arith.constant 0 : i32
    %c0_i32_0 = arith.constant 0 : i32
    return %c0_i32, %arg1 : i32, i32
  }
  func.func @transform_3(%arg0: i32, %arg1: i32) -> (i32, i32) {
    %c0_i32 = arith.constant 0 : i32
    return %arg0, %arg1 : i32, i32
  }
}

module attributes {stable_mosaic.version = 11 : i64} {
  func.func @linear_kernel(%arg0: i32, %arg1: i32, %arg2: memref<64x128xf32, #tpu.memory_space<vmem>>, %arg3: memref<128x384xbf16, #tpu.memory_space<vmem>>, %arg4: memref<1x384xf32, #tpu.memory_space<vmem>>, %arg5: memref<64x384xf32, #tpu.memory_space<vmem>>) attributes {dimension_semantics = [#tpu.dimension_semantics<parallel>, #tpu.dimension_semantics<parallel>], iteration_bounds = array<i64: 1, 1>, scalar_prefetch = 0 : i64, scratch_operands = 0 : i64, tpu.core_type = #tpu.core_type<tc>, window_params = [{transform_indices = @transform_0, window_bounds = array<i64: 64, 128>}, {transform_indices = @transform_1, window_bounds = array<i64: 128, 384>}, {transform_indices = @transform_2, window_bounds = array<i64: 1, 384>}, {transform_indices = @transform_3, window_bounds = array<i64: 64, 384>}]} {
    %c0 = arith.constant 0 : index
    %c0_0 = arith.constant 0 : index
    %0 = vector.load %arg3[%c0, %c0_0] : memref<128x384xbf16, #tpu.memory_space<vmem>>, vector<128x384xbf16>
    %c0_1 = arith.constant 0 : index
    %c0_2 = arith.constant 0 : index
    %1 = vector.load %arg2[%c0_1, %c0_2] : memref<64x128xf32, #tpu.memory_space<vmem>>, vector<64x128xf32>
    %2 = arith.truncf %1 : vector<64x128xf32> to vector<64x128xbf16>
    %cst = arith.constant dense<0.000000e+00> : vector<64x384xf32>
    %3 = tpu.matmul %2, %0, %cst {dimension_numbers = #tpu.dot_dimension_numbers<[1], [0], [0], [1], [0, 0, 1, 1], [], []>} : vector<64x128xbf16>, vector<128x384xbf16>, vector<64x384xf32> -> vector<64x384xf32>
    %c0_3 = arith.constant 0 : index
    %c0_4 = arith.constant 0 : index
    %4 = vector.load %arg4[%c0_3, %c0_4] : memref<1x384xf32, #tpu.memory_space<vmem>>, vector<1x384xf32>
    %5 = vector.broadcast %4 : vector<1x384xf32> to vector<64x384xf32>
    %6 = arith.addf %3, %5 : vector<64x384xf32>
    %c0_5 = arith.constant 0 : index
    %c0_6 = arith.constant 0 : index
    %7 = vector.load %arg5[%c0_5, %c0_6] : memref<64x384xf32, #tpu.memory_space<vmem>>, vector<64x384xf32>
    tpu.vector_store %arg5[%c0_5, %c0_6], %6 {strides = array<i32>} : memref<64x384xf32, #tpu.memory_space<vmem>>, vector<64x384xf32>,
    return
  }
  func.func @transform_0(%arg0: i32, %arg1: i32) -> (i32, i32) {
    %c0_i32 = arith.constant 0 : i32
    %c0_i32_0 = arith.constant 0 : i32
    return %arg0, %c0_i32 : i32, i32
  }
  func.func @transform_1(%arg0: i32, %arg1: i32) -> (i32, i32) {
    %c0_i32 = arith.constant 0 : i32
    %c0_i32_0 = arith.constant 0 : i32
    return %c0_i32, %arg1 : i32, i32
  }
  func.func @transform_2(%arg0: i32, %arg1: i32) -> (i32, i32) {
    %c0_i32 = arith.constant 0 : i32
    %c0_i32_0 = arith.constant 0 : i32
    return %c0_i32, %arg1 : i32, i32
  }
  func.func @transform_3(%arg0: i32, %arg1: i32) -> (i32, i32) {
    %c0_i32 = arith.constant 0 : i32
    return %arg0, %arg1 : i32, i32
  }
}

module attributes {stable_mosaic.version = 11 : i64} {
  func.func @gru_kernel(%arg0: i32, %arg1: memref<8x8x384xf32, #tpu.memory_space<vmem>>, %arg2: memref<8x128xf32, #tpu.memory_space<vmem>>, %arg3: memref<128x384xbf16, #tpu.memory_space<vmem>>, %arg4: memref<1x128xf32, #tpu.memory_space<vmem>>, %arg5: memref<8x8x128xf32, #tpu.memory_space<vmem>>) attributes {dimension_semantics = [#tpu.dimension_semantics<arbitrary>], iteration_bounds = array<i64: 1>, scalar_prefetch = 0 : i64, scratch_operands = 0 : i64, tpu.core_type = #tpu.core_type<tc>, window_params = [{pipeline_mode = #tpu.pipeline_mode<synchronous>, transform_indices = @transform_0, window_bounds = array<i64: 8, 8, 384>}, {pipeline_mode = #tpu.pipeline_mode<synchronous>, transform_indices = @transform_1, window_bounds = array<i64: 8, 128>}, {pipeline_mode = #tpu.pipeline_mode<synchronous>, transform_indices = @transform_2, window_bounds = array<i64: 128, 384>}, {pipeline_mode = #tpu.pipeline_mode<synchronous>, transform_indices = @transform_3, window_bounds = array<i64: 1, 128>}, {pipeline_mode = #tpu.pipeline_mode<synchronous>, transform_indices = @transform_4, window_bounds = array<i64: 8, 8, 128>}]} {
    %c0 = arith.constant 0 : index
    %c0_0 = arith.constant 0 : index
    %0 = vector.load %arg3[%c0, %c0_0] : memref<128x384xbf16, #tpu.memory_space<vmem>>, vector<128x384xbf16>
    %c0_1 = arith.constant 0 : index
    %c0_2 = arith.constant 0 : index
    %1 = vector.load %arg4[%c0_1, %c0_2] : memref<1x128xf32, #tpu.memory_space<vmem>>, vector<1x128xf32>
    %c0_3 = arith.constant 0 : index
    %c0_4 = arith.constant 0 : index
    %2 = vector.load %arg2[%c0_3, %c0_4] : memref<8x128xf32, #tpu.memory_space<vmem>>, vector<8x128xf32>
    %c0_i32 = arith.constant 0 : i32
    %3 = arith.index_cast %c0_i32 : i32 to index
    %c0_5 = arith.constant 0 : index
    %c0_6 = arith.constant 0 : index
    %4 = vector.load %arg1[%3, %c0_5, %c0_6] : memref<8x8x384xf32, #tpu.memory_space<vmem>>, vector<1x8x384xf32>
    %5 = vector.shape_cast %4 : vector<1x8x384xf32> to vector<8x384xf32>
    %6 = arith.truncf %2 : vector<8x128xf32> to vector<8x128xbf16>
    %cst = arith.constant dense<0.000000e+00> : vector<8x384xf32>
    %7 = tpu.matmul %6, %0, %cst {dimension_numbers = #tpu.dot_dimension_numbers<[1], [0], [0], [1], [0, 0, 1, 1], [], []>} : vector<8x128xbf16>, vector<128x384xbf16>, vector<8x384xf32> -> vector<8x384xf32>
    %8 = vector.extract_strided_slice %5 {offsets = [0, 0], sizes = [8, 128], strides = [1, 1]} : vector<8x384xf32> to vector<8x128xf32>
    %9 = vector.extract_strided_slice %7 {offsets = [0, 0], sizes = [8, 128], strides = [1, 1]} : vector<8x384xf32> to vector<8x128xf32>
    %10 = arith.addf %8, %9 : vector<8x128xf32>
    %11 = arith.negf %10 : vector<8x128xf32>
    %12 = math.exp %11 : vector<8x128xf32>
    %cst_7 = arith.constant 1.000000e+00 : f32
    %13 = vector.broadcast %cst_7 : f32 to vector<8x128xf32>
    %14 = arith.addf %13, %12 : vector<8x128xf32>
    %15 = arith.divf %13, %14 : vector<8x128xf32>
    %16 = vector.extract_strided_slice %5 {offsets = [0, 128], sizes = [8, 128], strides = [1, 1]} : vector<8x384xf32> to vector<8x128xf32>
    %17 = vector.extract_strided_slice %7 {offsets = [0, 128], sizes = [8, 128], strides = [1, 1]} : vector<8x384xf32> to vector<8x128xf32>
    %18 = arith.addf %16, %17 : vector<8x128xf32>
    %19 = arith.negf %18 : vector<8x128xf32>
    %20 = math.exp %19 : vector<8x128xf32>
    %cst_8 = arith.constant 1.000000e+00 : f32
    %21 = vector.broadcast %cst_8 : f32 to vector<8x128xf32>
    %22 = arith.addf %21, %20 : vector<8x128xf32>
    %23 = arith.divf %21, %22 : vector<8x128xf32>
    %24 = vector.extract_strided_slice %5 {offsets = [0, 256], sizes = [8, 128], strides = [1, 1]} : vector<8x384xf32> to vector<8x128xf32>
    %25 = vector.extract_strided_slice %7 {offsets = [0, 256], sizes = [8, 128], strides = [1, 1]} : vector<8x384xf32> to vector<8x128xf32>
    %26 = vector.broadcast %1 : vector<1x128xf32> to vector<8x128xf32>
    %27 = arith.addf %25, %26 : vector<8x128xf32>
    %28 = arith.mulf %15, %27 : vector<8x128xf32>
    %29 = arith.addf %24, %28 : vector<8x128xf32>
    %30 = math.tanh %29 : vector<8x128xf32>
    %cst_9 = arith.constant 1.000000e+00 : f32
    %31 = vector.broadcast %cst_9 : f32 to vector<8x128xf32>
    %32 = arith.subf %31, %23 : vector<8x128xf32>
    %33 = arith.mulf %32, %30 : vector<8x128xf32>
    %34 = arith.mulf %23, %2 : vector<8x128xf32>
    %35 = arith.addf %33, %34 : vector<8x128xf32>
    %36 = arith.index_cast %c0_i32 : i32 to index
    %c0_10 = arith.constant 0 : index
    %c0_11 = arith.constant 0 : index
    %37 = vector.load %arg5[%36, %c0_10, %c0_11] : memref<8x8x128xf32, #tpu.memory_space<vmem>>, vector<1x8x128xf32>
    %38 = vector.shape_cast %37 : vector<1x8x128xf32> to vector<8x128xf32>
    %39 = vector.shape_cast %35 : vector<8x128xf32> to vector<1x8x128xf32>
    tpu.vector_store %arg5[%36, %c0_10, %c0_11], %39 {strides = array<i32>} : memref<8x8x128xf32, #tpu.memory_space<vmem>>, vector<1x8x128xf32>,
    %c1_i32 = arith.constant 1 : i32
    %40 = arith.index_cast %c1_i32 : i32 to index
    %c0_12 = arith.constant 0 : index
    %c0_13 = arith.constant 0 : index
    %41 = vector.load %arg1[%40, %c0_12, %c0_13] : memref<8x8x384xf32, #tpu.memory_space<vmem>>, vector<1x8x384xf32>
    %42 = vector.shape_cast %41 : vector<1x8x384xf32> to vector<8x384xf32>
    %43 = arith.truncf %35 : vector<8x128xf32> to vector<8x128xbf16>
    %cst_14 = arith.constant dense<0.000000e+00> : vector<8x384xf32>
    %44 = tpu.matmul %43, %0, %cst_14 {dimension_numbers = #tpu.dot_dimension_numbers<[1], [0], [0], [1], [0, 0, 1, 1], [], []>} : vector<8x128xbf16>, vector<128x384xbf16>, vector<8x384xf32> -> vector<8x384xf32>
    %45 = vector.extract_strided_slice %42 {offsets = [0, 0], sizes = [8, 128], strides = [1, 1]} : vector<8x384xf32> to vector<8x128xf32>
    %46 = vector.extract_strided_slice %44 {offsets = [0, 0], sizes = [8, 128], strides = [1, 1]} : vector<8x384xf32> to vector<8x128xf32>
    %47 = arith.addf %45, %46 : vector<8x128xf32>
    %48 = arith.negf %47 : vector<8x128xf32>
    %49 = math.exp %48 : vector<8x128xf32>
    %cst_15 = arith.constant 1.000000e+00 : f32
    %50 = vector.broadcast %cst_15 : f32 to vector<8x128xf32>
    %51 = arith.addf %50, %49 : vector<8x128xf32>
    %52 = arith.divf %50, %51 : vector<8x128xf32>
    %53 = vector.extract_strided_slice %42 {offsets = [0, 128], sizes = [8, 128], strides = [1, 1]} : vector<8x384xf32> to vector<8x128xf32>
    %54 = vector.extract_strided_slice %44 {offsets = [0, 128], sizes = [8, 128], strides = [1, 1]} : vector<8x384xf32> to vector<8x128xf32>
    %55 = arith.addf %53, %54 : vector<8x128xf32>
    %56 = arith.negf %55 : vector<8x128xf32>
    %57 = math.exp %56 : vector<8x128xf32>
    %cst_16 = arith.constant 1.000000e+00 : f32
    %58 = vector.broadcast %cst_16 : f32 to vector<8x128xf32>
    %59 = arith.addf %58, %57 : vector<8x128xf32>
    %60 = arith.divf %58, %59 : vector<8x128xf32>
    %61 = vector.extract_strided_slice %42 {offsets = [0, 256], sizes = [8, 128], strides = [1, 1]} : vector<8x384xf32> to vector<8x128xf32>
    %62 = vector.extract_strided_slice %44 {offsets = [0, 256], sizes = [8, 128], strides = [1, 1]} : vector<8x384xf32> to vector<8x128xf32>
    %63 = vector.broadcast %1 : vector<1x128xf32> to vector<8x128xf32>
    %64 = arith.addf %62, %63 : vector<8x128xf32>
    %65 = arith.mulf %52, %64 : vector<8x128xf32>
    %66 = arith.addf %61, %65 : vector<8x128xf32>
    %67 = math.tanh %66 : vector<8x128xf32>
    %cst_17 = arith.constant 1.000000e+00 : f32
    %68 = vector.broadcast %cst_17 : f32 to vector<8x128xf32>
    %69 = arith.subf %68, %60 : vector<8x128xf32>
    %70 = arith.mulf %69, %67 : vector<8x128xf32>
    %71 = arith.mulf %60, %35 : vector<8x128xf32>
    %72 = arith.addf %70, %71 : vector<8x128xf32>
    %73 = arith.index_cast %c1_i32 : i32 to index
    %c0_18 = arith.constant 0 : index
    %c0_19 = arith.constant 0 : index
    %74 = vector.load %arg5[%73, %c0_18, %c0_19] : memref<8x8x128xf32, #tpu.memory_space<vmem>>, vector<1x8x128xf32>
    %75 = vector.shape_cast %74 : vector<1x8x128xf32> to vector<8x128xf32>
    %76 = vector.shape_cast %72 : vector<8x128xf32> to vector<1x8x128xf32>
    tpu.vector_store %arg5[%73, %c0_18, %c0_19], %76 {strides = array<i32>} : memref<8x8x128xf32, #tpu.memory_space<vmem>>, vector<1x8x128xf32>,
    %c2_i32 = arith.constant 2 : i32
    %77 = arith.index_cast %c2_i32 : i32 to index
    %c0_20 = arith.constant 0 : index
    %c0_21 = arith.constant 0 : index
    %78 = vector.load %arg1[%77, %c0_20, %c0_21] : memref<8x8x384xf32, #tpu.memory_space<vmem>>, vector<1x8x384xf32>
    %79 = vector.shape_cast %78 : vector<1x8x384xf32> to vector<8x384xf32>
    %80 = arith.truncf %72 : vector<8x128xf32> to vector<8x128xbf16>
    %cst_22 = arith.constant dense<0.000000e+00> : vector<8x384xf32>
    %81 = tpu.matmul %80, %0, %cst_22 {dimension_numbers = #tpu.dot_dimension_numbers<[1], [0], [0], [1], [0, 0, 1, 1], [], []>} : vector<8x128xbf16>, vector<128x384xbf16>, vector<8x384xf32> -> vector<8x384xf32>
    %82 = vector.extract_strided_slice %79 {offsets = [0, 0], sizes = [8, 128], strides = [1, 1]} : vector<8x384xf32> to vector<8x128xf32>
    %83 = vector.extract_strided_slice %81 {offsets = [0, 0], sizes = [8, 128], strides = [1, 1]} : vector<8x384xf32> to vector<8x128xf32>
    %84 = arith.addf %82, %83 : vector<8x128xf32>
    %85 = arith.negf %84 : vector<8x128xf32>
    %86 = math.exp %85 : vector<8x128xf32>
    %cst_23 = arith.constant 1.000000e+00 : f32
    %87 = vector.broadcast %cst_23 : f32 to vector<8x128xf32>
    %88 = arith.addf %87, %86 : vector<8x128xf32>
    %89 = arith.divf %87, %88 : vector<8x128xf32>
    %90 = vector.extract_strided_slice %79 {offsets = [0, 128], sizes = [8, 128], strides = [1, 1]} : vector<8x384xf32> to vector<8x128xf32>
    %91 = vector.extract_strided_slice %81 {offsets = [0, 128], sizes = [8, 128], strides = [1, 1]} : vector<8x384xf32> to vector<8x128xf32>
    %92 = arith.addf %90, %91 : vector<8x128xf32>
    %93 = arith.negf %92 : vector<8x128xf32>
    %94 = math.exp %93 : vector<8x128xf32>
    %cst_24 = arith.constant 1.000000e+00 : f32
    %95 = vector.broadcast %cst_24 : f32 to vector<8x128xf32>
    %96 = arith.addf %95, %94 : vector<8x128xf32>
    %97 = arith.divf %95, %96 : vector<8x128xf32>
    %98 = vector.extract_strided_slice %79 {offsets = [0, 256], sizes = [8, 128], strides = [1, 1]} : vector<8x384xf32> to vector<8x128xf32>
    %99 = vector.extract_strided_slice %81 {offsets = [0, 256], sizes = [8, 128], strides = [1, 1]} : vector<8x384xf32> to vector<8x128xf32>
    %100 = vector.broadcast %1 : vector<1x128xf32> to vector<8x128xf32>
    %101 = arith.addf %99, %100 : vector<8x128xf32>
    %102 = arith.mulf %89, %101 : vector<8x128xf32>
    %103 = arith.addf %98, %102 : vector<8x128xf32>
    %104 = math.tanh %103 : vector<8x128xf32>
    %cst_25 = arith.constant 1.000000e+00 : f32
    %105 = vector.broadcast %cst_25 : f32 to vector<8x128xf32>
    %106 = arith.subf %105, %97 : vector<8x128xf32>
    %107 = arith.mulf %106, %104 : vector<8x128xf32>
    %108 = arith.mulf %97, %72 : vector<8x128xf32>
    %109 = arith.addf %107, %108 : vector<8x128xf32>
    %110 = arith.index_cast %c2_i32 : i32 to index
    %c0_26 = arith.constant 0 : index
    %c0_27 = arith.constant 0 : index
    %111 = vector.load %arg5[%110, %c0_26, %c0_27] : memref<8x8x128xf32, #tpu.memory_space<vmem>>, vector<1x8x128xf32>
    %112 = vector.shape_cast %111 : vector<1x8x128xf32> to vector<8x128xf32>
    %113 = vector.shape_cast %109 : vector<8x128xf32> to vector<1x8x128xf32>
    tpu.vector_store %arg5[%110, %c0_26, %c0_27], %113 {strides = array<i32>} : memref<8x8x128xf32, #tpu.memory_space<vmem>>, vector<1x8x128xf32>,
    %c3_i32 = arith.constant 3 : i32
    %114 = arith.index_cast %c3_i32 : i32 to index
    %c0_28 = arith.constant 0 : index
    %c0_29 = arith.constant 0 : index
    %115 = vector.load %arg1[%114, %c0_28, %c0_29] : memref<8x8x384xf32, #tpu.memory_space<vmem>>, vector<1x8x384xf32>
    %116 = vector.shape_cast %115 : vector<1x8x384xf32> to vector<8x384xf32>
    %117 = arith.truncf %109 : vector<8x128xf32> to vector<8x128xbf16>
    %cst_30 = arith.constant dense<0.000000e+00> : vector<8x384xf32>
    %118 = tpu.matmul %117, %0, %cst_30 {dimension_numbers = #tpu.dot_dimension_numbers<[1], [0], [0], [1], [0, 0, 1, 1], [], []>} : vector<8x128xbf16>, vector<128x384xbf16>, vector<8x384xf32> -> vector<8x384xf32>
    %119 = vector.extract_strided_slice %116 {offsets = [0, 0], sizes = [8, 128], strides = [1, 1]} : vector<8x384xf32> to vector<8x128xf32>
    %120 = vector.extract_strided_slice %118 {offsets = [0, 0], sizes = [8, 128], strides = [1, 1]} : vector<8x384xf32> to vector<8x128xf32>
    %121 = arith.addf %119, %120 : vector<8x128xf32>
    %122 = arith.negf %121 : vector<8x128xf32>
    %123 = math.exp %122 : vector<8x128xf32>
    %cst_31 = arith.constant 1.000000e+00 : f32
    %124 = vector.broadcast %cst_31 : f32 to vector<8x128xf32>
    %125 = arith.addf %124, %123 : vector<8x128xf32>
    %126 = arith.divf %124, %125 : vector<8x128xf32>
    %127 = vector.extract_strided_slice %116 {offsets = [0, 128], sizes = [8, 128], strides = [1, 1]} : vector<8x384xf32> to vector<8x128xf32>
    %128 = vector.extract_strided_slice %118 {offsets = [0, 128], sizes = [8, 128], strides = [1, 1]} : vector<8x384xf32> to vector<8x128xf32>
    %129 = arith.addf %127, %128 : vector<8x128xf32>
    %130 = arith.negf %129 : vector<8x128xf32>
    %131 = math.exp %130 : vector<8x128xf32>
    %cst_32 = arith.constant 1.000000e+00 : f32
    %132 = vector.broadcast %cst_32 : f32 to vector<8x128xf32>
    %133 = arith.addf %132, %131 : vector<8x128xf32>
    %134 = arith.divf %132, %133 : vector<8x128xf32>
    %135 = vector.extract_strided_slice %116 {offsets = [0, 256], sizes = [8, 128], strides = [1, 1]} : vector<8x384xf32> to vector<8x128xf32>
    %136 = vector.extract_strided_slice %118 {offsets = [0, 256], sizes = [8, 128], strides = [1, 1]} : vector<8x384xf32> to vector<8x128xf32>
    %137 = vector.broadcast %1 : vector<1x128xf32> to vector<8x128xf32>
    %138 = arith.addf %136, %137 : vector<8x128xf32>
    %139 = arith.mulf %126, %138 : vector<8x128xf32>
    %140 = arith.addf %135, %139 : vector<8x128xf32>
    %141 = math.tanh %140 : vector<8x128xf32>
    %cst_33 = arith.constant 1.000000e+00 : f32
    %142 = vector.broadcast %cst_33 : f32 to vector<8x128xf32>
    %143 = arith.subf %142, %134 : vector<8x128xf32>
    %144 = arith.mulf %143, %141 : vector<8x128xf32>
    %145 = arith.mulf %134, %109 : vector<8x128xf32>
    %146 = arith.addf %144, %145 : vector<8x128xf32>
    %147 = arith.index_cast %c3_i32 : i32 to index
    %c0_34 = arith.constant 0 : index
    %c0_35 = arith.constant 0 : index
    %148 = vector.load %arg5[%147, %c0_34, %c0_35] : memref<8x8x128xf32, #tpu.memory_space<vmem>>, vector<1x8x128xf32>
    %149 = vector.shape_cast %148 : vector<1x8x128xf32> to vector<8x128xf32>
    %150 = vector.shape_cast %146 : vector<8x128xf32> to vector<1x8x128xf32>
    tpu.vector_store %arg5[%147, %c0_34, %c0_35], %150 {strides = array<i32>} : memref<8x8x128xf32, #tpu.memory_space<vmem>>, vector<1x8x128xf32>,
    %c4_i32 = arith.constant 4 : i32
    %151 = arith.index_cast %c4_i32 : i32 to index
    %c0_36 = arith.constant 0 : index
    %c0_37 = arith.constant 0 : index
    %152 = vector.load %arg1[%151, %c0_36, %c0_37] : memref<8x8x384xf32, #tpu.memory_space<vmem>>, vector<1x8x384xf32>
    %153 = vector.shape_cast %152 : vector<1x8x384xf32> to vector<8x384xf32>
    %154 = arith.truncf %146 : vector<8x128xf32> to vector<8x128xbf16>
    %cst_38 = arith.constant dense<0.000000e+00> : vector<8x384xf32>
    %155 = tpu.matmul %154, %0, %cst_38 {dimension_numbers = #tpu.dot_dimension_numbers<[1], [0], [0], [1], [0, 0, 1, 1], [], []>} : vector<8x128xbf16>, vector<128x384xbf16>, vector<8x384xf32> -> vector<8x384xf32>
    %156 = vector.extract_strided_slice %153 {offsets = [0, 0], sizes = [8, 128], strides = [1, 1]} : vector<8x384xf32> to vector<8x128xf32>
    %157 = vector.extract_strided_slice %155 {offsets = [0, 0], sizes = [8, 128], strides = [1, 1]} : vector<8x384xf32> to vector<8x128xf32>
    %158 = arith.addf %156, %157 : vector<8x128xf32>
    %159 = arith.negf %158 : vector<8x128xf32>
    %160 = math.exp %159 : vector<8x128xf32>
    %cst_39 = arith.constant 1.000000e+00 : f32
    %161 = vector.broadcast %cst_39 : f32 to vector<8x128xf32>
    %162 = arith.addf %161, %160 : vector<8x128xf32>
    %163 = arith.divf %161, %162 : vector<8x128xf32>
    %164 = vector.extract_strided_slice %153 {offsets = [0, 128], sizes = [8, 128], strides = [1, 1]} : vector<8x384xf32> to vector<8x128xf32>
    %165 = vector.extract_strided_slice %155 {offsets = [0, 128], sizes = [8, 128], strides = [1, 1]} : vector<8x384xf32> to vector<8x128xf32>
    %166 = arith.addf %164, %165 : vector<8x128xf32>
    %167 = arith.negf %166 : vector<8x128xf32>
    %168 = math.exp %167 : vector<8x128xf32>
    %cst_40 = arith.constant 1.000000e+00 : f32
    %169 = vector.broadcast %cst_40 : f32 to vector<8x128xf32>
    %170 = arith.addf %169, %168 : vector<8x128xf32>
    %171 = arith.divf %169, %170 : vector<8x128xf32>
    %172 = vector.extract_strided_slice %153 {offsets = [0, 256], sizes = [8, 128], strides = [1, 1]} : vector<8x384xf32> to vector<8x128xf32>
    %173 = vector.extract_strided_slice %155 {offsets = [0, 256], sizes = [8, 128], strides = [1, 1]} : vector<8x384xf32> to vector<8x128xf32>
    %174 = vector.broadcast %1 : vector<1x128xf32> to vector<8x128xf32>
    %175 = arith.addf %173, %174 : vector<8x128xf32>
    %176 = arith.mulf %163, %175 : vector<8x128xf32>
    %177 = arith.addf %172, %176 : vector<8x128xf32>
    %178 = math.tanh %177 : vector<8x128xf32>
    %cst_41 = arith.constant 1.000000e+00 : f32
    %179 = vector.broadcast %cst_41 : f32 to vector<8x128xf32>
    %180 = arith.subf %179, %171 : vector<8x128xf32>
    %181 = arith.mulf %180, %178 : vector<8x128xf32>
    %182 = arith.mulf %171, %146 : vector<8x128xf32>
    %183 = arith.addf %181, %182 : vector<8x128xf32>
    %184 = arith.index_cast %c4_i32 : i32 to index
    %c0_42 = arith.constant 0 : index
    %c0_43 = arith.constant 0 : index
    %185 = vector.load %arg5[%184, %c0_42, %c0_43] : memref<8x8x128xf32, #tpu.memory_space<vmem>>, vector<1x8x128xf32>
    %186 = vector.shape_cast %185 : vector<1x8x128xf32> to vector<8x128xf32>
    %187 = vector.shape_cast %183 : vector<8x128xf32> to vector<1x8x128xf32>
    tpu.vector_store %arg5[%184, %c0_42, %c0_43], %187 {strides = array<i32>} : memref<8x8x128xf32, #tpu.memory_space<vmem>>, vector<1x8x128xf32>,
    %c5_i32 = arith.constant 5 : i32
    %188 = arith.index_cast %c5_i32 : i32 to index
    %c0_44 = arith.constant 0 : index
    %c0_45 = arith.constant 0 : index
    %189 = vector.load %arg1[%188, %c0_44, %c0_45] : memref<8x8x384xf32, #tpu.memory_space<vmem>>, vector<1x8x384xf32>
    %190 = vector.shape_cast %189 : vector<1x8x384xf32> to vector<8x384xf32>
    %191 = arith.truncf %183 : vector<8x128xf32> to vector<8x128xbf16>
    %cst_46 = arith.constant dense<0.000000e+00> : vector<8x384xf32>
    %192 = tpu.matmul %191, %0, %cst_46 {dimension_numbers = #tpu.dot_dimension_numbers<[1], [0], [0], [1], [0, 0, 1, 1], [], []>} : vector<8x128xbf16>, vector<128x384xbf16>, vector<8x384xf32> -> vector<8x384xf32>
    %193 = vector.extract_strided_slice %190 {offsets = [0, 0], sizes = [8, 128], strides = [1, 1]} : vector<8x384xf32> to vector<8x128xf32>
    %194 = vector.extract_strided_slice %192 {offsets = [0, 0], sizes = [8, 128], strides = [1, 1]} : vector<8x384xf32> to vector<8x128xf32>
    %195 = arith.addf %193, %194 : vector<8x128xf32>
    %196 = arith.negf %195 : vector<8x128xf32>
    %197 = math.exp %196 : vector<8x128xf32>
    %cst_47 = arith.constant 1.000000e+00 : f32
    %198 = vector.broadcast %cst_47 : f32 to vector<8x128xf32>
    %199 = arith.addf %198, %197 : vector<8x128xf32>
    %200 = arith.divf %198, %199 : vector<8x128xf32>
    %201 = vector.extract_strided_slice %190 {offsets = [0, 128], sizes = [8, 128], strides = [1, 1]} : vector<8x384xf32> to vector<8x128xf32>
    %202 = vector.extract_strided_slice %192 {offsets = [0, 128], sizes = [8, 128], strides = [1, 1]} : vector<8x384xf32> to vector<8x128xf32>
    %203 = arith.addf %201, %202 : vector<8x128xf32>
    %204 = arith.negf %203 : vector<8x128xf32>
    %205 = math.exp %204 : vector<8x128xf32>
    %cst_48 = arith.constant 1.000000e+00 : f32
    %206 = vector.broadcast %cst_48 : f32 to vector<8x128xf32>
    %207 = arith.addf %206, %205 : vector<8x128xf32>
    %208 = arith.divf %206, %207 : vector<8x128xf32>
    %209 = vector.extract_strided_slice %190 {offsets = [0, 256], sizes = [8, 128], strides = [1, 1]} : vector<8x384xf32> to vector<8x128xf32>
    %210 = vector.extract_strided_slice %192 {offsets = [0, 256], sizes = [8, 128], strides = [1, 1]} : vector<8x384xf32> to vector<8x128xf32>
    %211 = vector.broadcast %1 : vector<1x128xf32> to vector<8x128xf32>
    %212 = arith.addf %210, %211 : vector<8x128xf32>
    %213 = arith.mulf %200, %212 : vector<8x128xf32>
    %214 = arith.addf %209, %213 : vector<8x128xf32>
    %215 = math.tanh %214 : vector<8x128xf32>
    %cst_49 = arith.constant 1.000000e+00 : f32
    %216 = vector.broadcast %cst_49 : f32 to vector<8x128xf32>
    %217 = arith.subf %216, %208 : vector<8x128xf32>
    %218 = arith.mulf %217, %215 : vector<8x128xf32>
    %219 = arith.mulf %208, %183 : vector<8x128xf32>
    %220 = arith.addf %218, %219 : vector<8x128xf32>
    %221 = arith.index_cast %c5_i32 : i32 to index
    %c0_50 = arith.constant 0 : index
    %c0_51 = arith.constant 0 : index
    %222 = vector.load %arg5[%221, %c0_50, %c0_51] : memref<8x8x128xf32, #tpu.memory_space<vmem>>, vector<1x8x128xf32>
    %223 = vector.shape_cast %222 : vector<1x8x128xf32> to vector<8x128xf32>
    %224 = vector.shape_cast %220 : vector<8x128xf32> to vector<1x8x128xf32>
    tpu.vector_store %arg5[%221, %c0_50, %c0_51], %224 {strides = array<i32>} : memref<8x8x128xf32, #tpu.memory_space<vmem>>, vector<1x8x128xf32>,
    %c6_i32 = arith.constant 6 : i32
    %225 = arith.index_cast %c6_i32 : i32 to index
    %c0_52 = arith.constant 0 : index
    %c0_53 = arith.constant 0 : index
    %226 = vector.load %arg1[%225, %c0_52, %c0_53] : memref<8x8x384xf32, #tpu.memory_space<vmem>>, vector<1x8x384xf32>
    %227 = vector.shape_cast %226 : vector<1x8x384xf32> to vector<8x384xf32>
    %228 = arith.truncf %220 : vector<8x128xf32> to vector<8x128xbf16>
    %cst_54 = arith.constant dense<0.000000e+00> : vector<8x384xf32>
    %229 = tpu.matmul %228, %0, %cst_54 {dimension_numbers = #tpu.dot_dimension_numbers<[1], [0], [0], [1], [0, 0, 1, 1], [], []>} : vector<8x128xbf16>, vector<128x384xbf16>, vector<8x384xf32> -> vector<8x384xf32>
    %230 = vector.extract_strided_slice %227 {offsets = [0, 0], sizes = [8, 128], strides = [1, 1]} : vector<8x384xf32> to vector<8x128xf32>
    %231 = vector.extract_strided_slice %229 {offsets = [0, 0], sizes = [8, 128], strides = [1, 1]} : vector<8x384xf32> to vector<8x128xf32>
    %232 = arith.addf %230, %231 : vector<8x128xf32>
    %233 = arith.negf %232 : vector<8x128xf32>
    %234 = math.exp %233 : vector<8x128xf32>
    %cst_55 = arith.constant 1.000000e+00 : f32
    %235 = vector.broadcast %cst_55 : f32 to vector<8x128xf32>
    %236 = arith.addf %235, %234 : vector<8x128xf32>
    %237 = arith.divf %235, %236 : vector<8x128xf32>
    %238 = vector.extract_strided_slice %227 {offsets = [0, 128], sizes = [8, 128], strides = [1, 1]} : vector<8x384xf32> to vector<8x128xf32>
    %239 = vector.extract_strided_slice %229 {offsets = [0, 128], sizes = [8, 128], strides = [1, 1]} : vector<8x384xf32> to vector<8x128xf32>
    %240 = arith.addf %238, %239 : vector<8x128xf32>
    %241 = arith.negf %240 : vector<8x128xf32>
    %242 = math.exp %241 : vector<8x128xf32>
    %cst_56 = arith.constant 1.000000e+00 : f32
    %243 = vector.broadcast %cst_56 : f32 to vector<8x128xf32>
    %244 = arith.addf %243, %242 : vector<8x128xf32>
    %245 = arith.divf %243, %244 : vector<8x128xf32>
    %246 = vector.extract_strided_slice %227 {offsets = [0, 256], sizes = [8, 128], strides = [1, 1]} : vector<8x384xf32> to vector<8x128xf32>
    %247 = vector.extract_strided_slice %229 {offsets = [0, 256], sizes = [8, 128], strides = [1, 1]} : vector<8x384xf32> to vector<8x128xf32>
    %248 = vector.broadcast %1 : vector<1x128xf32> to vector<8x128xf32>
    %249 = arith.addf %247, %248 : vector<8x128xf32>
    %250 = arith.mulf %237, %249 : vector<8x128xf32>
    %251 = arith.addf %246, %250 : vector<8x128xf32>
    %252 = math.tanh %251 : vector<8x128xf32>
    %cst_57 = arith.constant 1.000000e+00 : f32
    %253 = vector.broadcast %cst_57 : f32 to vector<8x128xf32>
    %254 = arith.subf %253, %245 : vector<8x128xf32>
    %255 = arith.mulf %254, %252 : vector<8x128xf32>
    %256 = arith.mulf %245, %220 : vector<8x128xf32>
    %257 = arith.addf %255, %256 : vector<8x128xf32>
    %258 = arith.index_cast %c6_i32 : i32 to index
    %c0_58 = arith.constant 0 : index
    %c0_59 = arith.constant 0 : index
    %259 = vector.load %arg5[%258, %c0_58, %c0_59] : memref<8x8x128xf32, #tpu.memory_space<vmem>>, vector<1x8x128xf32>
    %260 = vector.shape_cast %259 : vector<1x8x128xf32> to vector<8x128xf32>
    %261 = vector.shape_cast %257 : vector<8x128xf32> to vector<1x8x128xf32>
    tpu.vector_store %arg5[%258, %c0_58, %c0_59], %261 {strides = array<i32>} : memref<8x8x128xf32, #tpu.memory_space<vmem>>, vector<1x8x128xf32>,
    %c7_i32 = arith.constant 7 : i32
    %262 = arith.index_cast %c7_i32 : i32 to index
    %c0_60 = arith.constant 0 : index
    %c0_61 = arith.constant 0 : index
    %263 = vector.load %arg1[%262, %c0_60, %c0_61] : memref<8x8x384xf32, #tpu.memory_space<vmem>>, vector<1x8x384xf32>
    %264 = vector.shape_cast %263 : vector<1x8x384xf32> to vector<8x384xf32>
    %265 = arith.truncf %257 : vector<8x128xf32> to vector<8x128xbf16>
    %cst_62 = arith.constant dense<0.000000e+00> : vector<8x384xf32>
    %266 = tpu.matmul %265, %0, %cst_62 {dimension_numbers = #tpu.dot_dimension_numbers<[1], [0], [0], [1], [0, 0, 1, 1], [], []>} : vector<8x128xbf16>, vector<128x384xbf16>, vector<8x384xf32> -> vector<8x384xf32>
    %267 = vector.extract_strided_slice %264 {offsets = [0, 0], sizes = [8, 128], strides = [1, 1]} : vector<8x384xf32> to vector<8x128xf32>
    %268 = vector.extract_strided_slice %266 {offsets = [0, 0], sizes = [8, 128], strides = [1, 1]} : vector<8x384xf32> to vector<8x128xf32>
    %269 = arith.addf %267, %268 : vector<8x128xf32>
    %270 = arith.negf %269 : vector<8x128xf32>
    %271 = math.exp %270 : vector<8x128xf32>
    %cst_63 = arith.constant 1.000000e+00 : f32
    %272 = vector.broadcast %cst_63 : f32 to vector<8x128xf32>
    %273 = arith.addf %272, %271 : vector<8x128xf32>
    %274 = arith.divf %272, %273 : vector<8x128xf32>
    %275 = vector.extract_strided_slice %264 {offsets = [0, 128], sizes = [8, 128], strides = [1, 1]} : vector<8x384xf32> to vector<8x128xf32>
    %276 = vector.extract_strided_slice %266 {offsets = [0, 128], sizes = [8, 128], strides = [1, 1]} : vector<8x384xf32> to vector<8x128xf32>
    %277 = arith.addf %275, %276 : vector<8x128xf32>
    %278 = arith.negf %277 : vector<8x128xf32>
    %279 = math.exp %278 : vector<8x128xf32>
    %cst_64 = arith.constant 1.000000e+00 : f32
    %280 = vector.broadcast %cst_64 : f32 to vector<8x128xf32>
    %281 = arith.addf %280, %279 : vector<8x128xf32>
    %282 = arith.divf %280, %281 : vector<8x128xf32>
    %283 = vector.extract_strided_slice %264 {offsets = [0, 256], sizes = [8, 128], strides = [1, 1]} : vector<8x384xf32> to vector<8x128xf32>
    %284 = vector.extract_strided_slice %266 {offsets = [0, 256], sizes = [8, 128], strides = [1, 1]} : vector<8x384xf32> to vector<8x128xf32>
    %285 = vector.broadcast %1 : vector<1x128xf32> to vector<8x128xf32>
    %286 = arith.addf %284, %285 : vector<8x128xf32>
    %287 = arith.mulf %274, %286 : vector<8x128xf32>
    %288 = arith.addf %283, %287 : vector<8x128xf32>
    %289 = math.tanh %288 : vector<8x128xf32>
    %cst_65 = arith.constant 1.000000e+00 : f32
    %290 = vector.broadcast %cst_65 : f32 to vector<8x128xf32>
    %291 = arith.subf %290, %282 : vector<8x128xf32>
    %292 = arith.mulf %291, %289 : vector<8x128xf32>
    %293 = arith.mulf %282, %257 : vector<8x128xf32>
    %294 = arith.addf %292, %293 : vector<8x128xf32>
    %295 = arith.index_cast %c7_i32 : i32 to index
    %c0_66 = arith.constant 0 : index
    %c0_67 = arith.constant 0 : index
    %296 = vector.load %arg5[%295, %c0_66, %c0_67] : memref<8x8x128xf32, #tpu.memory_space<vmem>>, vector<1x8x128xf32>
    %297 = vector.shape_cast %296 : vector<1x8x128xf32> to vector<8x128xf32>
    %298 = vector.shape_cast %294 : vector<8x128xf32> to vector<1x8x128xf32>
    tpu.vector_store %arg5[%295, %c0_66, %c0_67], %298 {strides = array<i32>} : memref<8x8x128xf32, #tpu.memory_space<vmem>>, vector<1x8x128xf32>,
    %c8_i32 = arith.constant 8 : i32
    return
  }
  func.func @transform_0(%arg0: i32) -> (i32, i32, i32) {
    %c0_i32 = arith.constant 0 : i32
    %c0_i32_0 = arith.constant 0 : i32
    %c0_i32_1 = arith.constant 0 : i32
    %c0_i32_2 = arith.constant 0 : i32
    return %c0_i32, %c0_i32_0, %c0_i32_1 : i32, i32, i32
  }
  func.func @transform_1(%arg0: i32) -> (i32, i32) {
    %c0_i32 = arith.constant 0 : i32
    %c0_i32_0 = arith.constant 0 : i32
    %c0_i32_1 = arith.constant 0 : i32
    return %c0_i32, %c0_i32_0 : i32, i32
  }
  func.func @transform_2(%arg0: i32) -> (i32, i32) {
    %c0_i32 = arith.constant 0 : i32
    %c0_i32_0 = arith.constant 0 : i32
    %c0_i32_1 = arith.constant 0 : i32
    return %c0_i32, %c0_i32_0 : i32, i32
  }
  func.func @transform_3(%arg0: i32) -> (i32, i32) {
    %c0_i32 = arith.constant 0 : i32
    %c0_i32_0 = arith.constant 0 : i32
    %c0_i32_1 = arith.constant 0 : i32
    return %c0_i32, %c0_i32_0 : i32, i32
  }
  func.func @transform_4(%arg0: i32) -> (i32, i32, i32) {
    %c0_i32 = arith.constant 0 : i32
    %c0_i32_0 = arith.constant 0 : i32
    %c0_i32_1 = arith.constant 0 : i32
    %c0_i32_2 = arith.constant 0 : i32
    return %c0_i32, %c0_i32_0, %c0_i32_1 : i32, i32, i32
  }
}

module attributes {stable_mosaic.version = 11 : i64} {
  func.func @linear_kernel(%arg0: i32, %arg1: i32, %arg2: memref<64x128xf32, #tpu.memory_space<vmem>>, %arg3: memref<128x256xbf16, #tpu.memory_space<vmem>>, %arg4: memref<1x256xf32, #tpu.memory_space<vmem>>, %arg5: memref<64x256xf32, #tpu.memory_space<vmem>>) attributes {dimension_semantics = [#tpu.dimension_semantics<parallel>, #tpu.dimension_semantics<parallel>], iteration_bounds = array<i64: 1, 1>, scalar_prefetch = 0 : i64, scratch_operands = 0 : i64, tpu.core_type = #tpu.core_type<tc>, window_params = [{transform_indices = @transform_0, window_bounds = array<i64: 64, 128>}, {transform_indices = @transform_1, window_bounds = array<i64: 128, 256>}, {transform_indices = @transform_2, window_bounds = array<i64: 1, 256>}, {transform_indices = @transform_3, window_bounds = array<i64: 64, 256>}]} {
    %c0 = arith.constant 0 : index
    %c0_0 = arith.constant 0 : index
    %0 = vector.load %arg3[%c0, %c0_0] : memref<128x256xbf16, #tpu.memory_space<vmem>>, vector<128x256xbf16>
    %c0_1 = arith.constant 0 : index
    %c0_2 = arith.constant 0 : index
    %1 = vector.load %arg2[%c0_1, %c0_2] : memref<64x128xf32, #tpu.memory_space<vmem>>, vector<64x128xf32>
    %2 = arith.truncf %1 : vector<64x128xf32> to vector<64x128xbf16>
    %cst = arith.constant dense<0.000000e+00> : vector<64x256xf32>
    %3 = tpu.matmul %2, %0, %cst {dimension_numbers = #tpu.dot_dimension_numbers<[1], [0], [0], [1], [0, 0, 1, 1], [], []>} : vector<64x128xbf16>, vector<128x256xbf16>, vector<64x256xf32> -> vector<64x256xf32>
    %c0_3 = arith.constant 0 : index
    %c0_4 = arith.constant 0 : index
    %4 = vector.load %arg4[%c0_3, %c0_4] : memref<1x256xf32, #tpu.memory_space<vmem>>, vector<1x256xf32>
    %5 = vector.broadcast %4 : vector<1x256xf32> to vector<64x256xf32>
    %6 = arith.addf %3, %5 : vector<64x256xf32>
    %c0_5 = arith.constant 0 : index
    %c0_6 = arith.constant 0 : index
    %7 = vector.load %arg5[%c0_5, %c0_6] : memref<64x256xf32, #tpu.memory_space<vmem>>, vector<64x256xf32>
    tpu.vector_store %arg5[%c0_5, %c0_6], %6 {strides = array<i32>} : memref<64x256xf32, #tpu.memory_space<vmem>>, vector<64x256xf32>,
    return
  }
  func.func @transform_0(%arg0: i32, %arg1: i32) -> (i32, i32) {
    %c0_i32 = arith.constant 0 : i32
    %c0_i32_0 = arith.constant 0 : i32
    return %arg0, %c0_i32 : i32, i32
  }
  func.func @transform_1(%arg0: i32, %arg1: i32) -> (i32, i32) {
    %c0_i32 = arith.constant 0 : i32
    %c0_i32_0 = arith.constant 0 : i32
    return %c0_i32, %arg1 : i32, i32
  }
  func.func @transform_2(%arg0: i32, %arg1: i32) -> (i32, i32) {
    %c0_i32 = arith.constant 0 : i32
    %c0_i32_0 = arith.constant 0 : i32
    return %c0_i32, %arg1 : i32, i32
  }
  func.func @transform_3(%arg0: i32, %arg1: i32) -> (i32, i32) {
    %c0_i32 = arith.constant 0 : i32
    return %arg0, %arg1 : i32, i32
  }
}

</mosaic_0001>

<bundles_post_ra>
// kernel: seq2seq_forward.8
= control target key start
LH: loop header
LB: loop body
LE: loop exit
PB: predicated region body
PF: predicated region fallthrough
CT: control target
= control target key end

     0   :  { %s337_s1 = inlined_call_operand.vmem [shape: bf16[256,128], index: 1, kind: input, shape index: {}]   ;;  %s338_s0 = inlined_call_operand.vmem [shape: f32[8,256], index: 0, kind: input, shape index: {}]   ;;  %s339_s2 = inlined_call_operand.vmem [shape: f32[1,128], index: 2, kind: input, shape index: {}]   ;;  %s340_s3 = inlined_call_operand.vmem [shape: f32[8,128], index: 3, kind: output, shape index: {}]  }
   0x1   :  { %v239_v0 = vld [vmem:[%s337_s1 + $0x78] sm:$0xff]   ;;  %v241_v2 = vld [vmem:[%s337_s1 + $0x70] sm:$0xff]   ;;  %v243_v4 = vld [vmem:[%s337_s1 + $0x68] sm:$0xff]  }
   0x2   :  { %v240_v1 = vld [vmem:[%s337_s1 + $0x38] sm:$0xff]   ;;  %217 = vmatprep.subr.bf16.mxu0 %v239_v0  ;;  %v242_v3 = vld [vmem:[%s337_s1 + $0x30] sm:$0xff]   ;;  %v244_v5 = vld [vmem:[%s337_s1 + $0x28] sm:$0xff]  }
   0x3   :  { %218 = vmatpush3.bf16.msra.mxu0 %v240_v1  ;;  %v245_v6 = vld [vmem:[%s337_s1 + $0x60] sm:$0xff]   ;;  %v247_v8 = vld [vmem:[%s337_s1 + $0x58] sm:$0xff]   ;;  %v249_v10 = vld [vmem:[%s337_s1 + $0x50] sm:$0xff]  }
   0x4   :  { %219 = vmatprep.subr.bf16.mxu0 %v241_v2  ;;  %v246_v7 = vld [vmem:[%s337_s1 + $0x20] sm:$0xff]   ;;  %v248_v9 = vld [vmem:[%s337_s1 + $0x18] sm:$0xff]   ;;  %v48_v11 = vld [vmem:[%s338_s0 + $0x8] sm:$0xff] }
   0x5   :  { %v50_v12 = vpack.c.bf16 %v48_v11, %v48_v11  ;;  %v250_v13 = vld [vmem:[%s337_s1 + $0x10] sm:$0xff]   ;;  %v251_v14 = vld [vmem:[%s337_s1 + $0x48] sm:$0xff]   ;;  %v253_v16 = vld [vmem:[%s337_s1 + $0x40] sm:$0xff]  }
   0x6   :  { %v252_v15 = vld [vmem:[%s337_s1 + $0x8] sm:$0xff]   ;;  %v254_v17 = vld [vmem:[%s337_s1] sm:$0xff]  }
   0x7   :  { %220 = vmatpush3.bf16.msra.mxu0 %v242_v3  ;;  %186 = vmatprep.mubr.bf16.mxu0 %v50_v12  ;;  %v47_v18 = vld [vmem:[%s338_s0] sm:$0xff] }
   0x8   :  { %221 = vmatprep.subr.bf16.mxu0 %v243_v4  ;;  %v49_v19 = vpack.c.bf16 %v47_v18, %v47_v18  ;;  %v200_v21 = vld [vmem:[%s339_s2] ss:$0 sm:$0xff] }
   0xb   :  { %222 = vmatpush3.bf16.msra.mxu0 %v244_v5 }
   0xc   :  { %223 = vmatprep.subr.bf16.mxu0 %v245_v6 }
   0xf   :  { %224 = vmatpush3.bf16.msra.mxu0 %v246_v7 }
  0x10   :  { %225 = vmatprep.subr.bf16.mxu0 %v247_v8 }
  0x13   :  { %226 = vmatpush3.bf16.msra.mxu0 %v248_v9 }
  0x14   :  { %227 = vmatprep.subr.bf16.mxu0 %v249_v10 }
  0x17   :  { %228 = vmatpush3.bf16.msra.mxu0 %v250_v13 }
  0x18   :  { %229 = vmatprep.subr.bf16.mxu0 %v251_v14 }
  0x1b   :  { %230 = vmatpush3.bf16.msra.mxu0 %v252_v15 }
  0x1c   :  { %231 = vmatprep.subr.bf16.mxu0 %v253_v16 }
  0x1f   :  { %232 = vmatpush3.bf16.msra.mxu0 %v254_v17 }
  0x22   :  { %187 = vmatmul.mubr.bf16.vlgmr.msra.gmra.mxu0 %v49_v19 }
  0xe2   :  { %v233_v20 = vpop.f32.mrf.mxu0 }
  0xe4   :  { %v234_v22 = vpop.f32.mrf.mxu0 }
  0xe5   :  { %v235_v23 = vadd.f32 %v234_v22, %v233_v20 }
  0xe6   :  { %v236_v24 = vpop.f32.mrf.mxu0 }
  0xe7   :  { %v189_v25 = vadd.f32 %v235_v23, %v200_v21 }
  0xe8   :  { %v237_v26 = vpop.f32.mrf.mxu0 }
  0xe9   :  { %255 = vtanh.f32 %v189_v25 }
  0xf6   :  { %v256_v27 = vpop.eup %255 }
  0xf7   :  { %195 = vst [vmem:[%s340_s3] sm:$0xff] %v256_v27 }

// kernel: seq2seq_forward.6
= control target key start
LH: loop header
LB: loop body
LE: loop exit
PB: predicated region body
PF: predicated region fallthrough
CT: control target
= control target key end

     0   :  { %s1079_s12 = smov 0   ;;  %s1081_s13 = smov 0   ;;  %s1377_s0 = inlined_call_operand.vmem [shape: f32[64,128], index: 0, kind: input, shape index: {}]   ;;  %s1378_s1 = inlined_call_operand.vmem [shape: bf16[128,768], index: 1, kind: input, shape index: {}]   ;;  %s1379_s2 = inlined_call_operand.vmem [shape: f32[1,768], index: 2, kind: input, shape index: {}]   ;;  %s1380_s3 = inlined_call_operand.vmem [shape: f32[64,768], index: 3, kind: output, shape index: {}]  }
   0x1   :  { %s1083_s14 = smov 0   ;;  %s1085_s15 = smov 0  }
   0x2   :  { %s1087_s16 = smov 0  }
   0x3 LB: > { %s22_s17 = sadd.s32 1, %s1052_s15  ;;  %s839_s18 = sadd.s32 4294967295, %s1056_s16   ;;  %s1056_s16 = sphi %s1087_s16, %s13_s16   ;;  %s1052_s15 = sphi %s1085_s15, %s1385_s15   ;;  %s1048_s14 = sphi %s1083_s14, %s1384_s14   ;;  %s1044_s13 = sphi %s1081_s13, %s1383_s13   ;;  %s1040_s12 = sphi %s1079_s12, %s1382_s12  }
   0x4   : > { %p23_p0 = scmp.ge.s32.totalorder %s22_s17, 2  ;;  %p65_p1 = scmp.ne.s32.totalorder %s1044_s13, %s1040_s12 }
   0x5   : > { %p66_p2 = scmp.eq.s32.totalorder %s1056_s16, 0  ;;  %p123_p4 = scmp.eq.s32.totalorder %s839_s18, 1 }
   0x6   : > { %s1387_s17 = smov (%p23_p0, %s22_s17), 0  ;;  %s58_s20 = sadd.s32 1, %s1044_s13 }
   0x7   : > { %p67_p3 = por %p66_p2, %p65_p1  ;;  %s55_s19 = ssub.s32 %s1052_s15, %s1387_s17 }
   0x8   : > { %p56_p5 = scmp.eq.s32.totalorder %s55_s19, 0  ;;  %p1114_p6 = por %p123_p4, %p65_p1 }
   0x9   : > { %p843_p7 = scmp.ge.s32.totalorder %s1056_s16, 2 }
   0xa   : > { %s1119_s22 = scalar_select %p56_p5, %s1044_s13, %s58_s20  }
   0xb   : > { %154 = sbr.rel (%p843_p7) target bundleno = 39 (0x27), region = 20 }
  0x10   : > { %157 = sbr.rel (!%p67_p3) target bundleno = 39 (0x27), region = 24  ;;  %s159_s23 = sand.u32 (%p67_p3), 1, %s1044_s13  }
  0x11   : > { %s905_s24 = smul.u32 (%p67_p3), 12, %s1052_s15 }
  0x12   : > { %s943_s25 = smul.u32 (%p67_p3), 192, %s159_s23 }
  0x13   : > { %s1127_s28 = scalar_lea.vmem (%p67_p3), %s1378_s1, %s905_s24 }
  0x14   : > { %v179_v0 = vld [vmem:[%s1127_s28] sm:$0xff] (%p67_p3)  ;;  %v181_v1 = vld [vmem:[%s1127_s28 + $0x18] sm:$0xff] (%p67_p3)  ;;  %v183_v2 = vld [vmem:[%s1127_s28 + $0x30] sm:$0xff] (%p67_p3)  ;;  %s1132_s29 = scalar_lea.vmem (%p67_p3), [#allocation2], %s943_s25 }
  0x15   : > { %180 = vst [vmem:[%s1132_s29] sm:$0xff] %v179_v0  ;;  %182 = vst [vmem:[%s1132_s29 + $0xc] sm:$0xff] %v181_v1  ;;  %v185_v3 = vld [vmem:[%s1127_s28 + $0x48] sm:$0xff]  ;;  %v187_v4 = vld [vmem:[%s1127_s28 + $0x60] sm:$0xff] }
  0x16   : > { %184 = vst [vmem:[%s1132_s29 + $0x18] sm:$0xff] %v183_v2  ;;  %v189_v5 = vld [vmem:[%s1127_s28 + $0x78] sm:$0xff]  ;;  %186 = vst [vmem:[%s1132_s29 + $0x24] sm:$0xff] %v185_v3  ;;  %v191_v6 = vld [vmem:[%s1127_s28 + $0x90] sm:$0xff] }
  0x17   : > { %188 = vst [vmem:[%s1132_s29 + $0x30] sm:$0xff] %v187_v4  ;;  %190 = vst [vmem:[%s1132_s29 + $0x3c] sm:$0xff] %v189_v5  ;;  %v193_v7 = vld [vmem:[%s1127_s28 + $0xa8] sm:$0xff]  ;;  %v195_v8 = vld [vmem:[%s1127_s28 + $0xc0] sm:$0xff] }
  0x18   : > { %192 = vst [vmem:[%s1132_s29 + $0x48] sm:$0xff] %v191_v6  ;;  %194 = vst [vmem:[%s1132_s29 + $0x54] sm:$0xff] %v193_v7  ;;  %v197_v9 = vld [vmem:[%s1127_s28 + $0xd8] sm:$0xff]  ;;  %v199_v10 = vld [vmem:[%s1127_s28 + $0xf0] sm:$0xff] }
  0x19   : > { %196 = vst [vmem:[%s1132_s29 + $0x60] sm:$0xff] %v195_v8  ;;  %v201_v11 = vld [vmem:[%s1127_s28 + $0x108] sm:$0xff]  ;;  %198 = vst [vmem:[%s1132_s29 + $0x6c] sm:$0xff] %v197_v9  ;;  %v203_v12 = vld [vmem:[%s1127_s28 + $0x120] sm:$0xff] }
  0x1a   : > { %200 = vst [vmem:[%s1132_s29 + $0x78] sm:$0xff] %v199_v10  ;;  %202 = vst [vmem:[%s1132_s29 + $0x84] sm:$0xff] %v201_v11  ;;  %v205_v13 = vld [vmem:[%s1127_s28 + $0x138] sm:$0xff]  ;;  %v207_v14 = vld [vmem:[%s1127_s28 + $0x150] sm:$0xff] }
  0x1b   : > { %204 = vst [vmem:[%s1132_s29 + $0x90] sm:$0xff] %v203_v12  ;;  %206 = vst [vmem:[%s1132_s29 + $0x9c] sm:$0xff] %v205_v13  ;;  %v209_v15 = vld [vmem:[%s1127_s28 + $0x168] sm:$0xff]  ;;  %v847_v17 = vld [vmem:[%s1127_s28 + $0x20] sm:$0xf] }
  0x1c   : > { %208 = vst [vmem:[%s1132_s29 + $0xa8] sm:$0xff] %v207_v14  ;;  %v845_v16 = vld [vmem:[%s1127_s28 + $0x8] sm:$0xf]  ;;  %210 = vst [vmem:[%s1132_s29 + $0xb4] sm:$0xff] %v209_v15  ;;  %v849_v18 = vld [vmem:[%s1127_s28 + $0x38] sm:$0xf] }
  0x1d   : > { %846 = vst [vmem:[%s1132_s29 + $0x8] sm:$0xf] %v845_v16  ;;  %848 = vst [vmem:[%s1132_s29 + $0x14] sm:$0xf] %v847_v17  ;;  %v851_v19 = vld [vmem:[%s1127_s28 + $0x50] sm:$0xf] }
  0x1e   : > { %v853_v20 = vld [vmem:[%s1127_s28 + $0x68] sm:$0xf]  ;;  %850 = vst [vmem:[%s1132_s29 + $0x20] sm:$0xf] %v849_v18  ;;  %852 = vst [vmem:[%s1132_s29 + $0x2c] sm:$0xf] %v851_v19 }
  0x1f   : > { %854 = vst [vmem:[%s1132_s29 + $0x38] sm:$0xf] %v853_v20  ;;  %v855_v21 = vld [vmem:[%s1127_s28 + $0x80] sm:$0xf]  ;;  %v857_v22 = vld [vmem:[%s1127_s28 + $0x98] sm:$0xf] }
  0x20   : > { %v859_v23 = vld [vmem:[%s1127_s28 + $0xb0] sm:$0xf]  ;;  %856 = vst [vmem:[%s1132_s29 + $0x44] sm:$0xf] %v855_v21  ;;  %858 = vst [vmem:[%s1132_s29 + $0x50] sm:$0xf] %v857_v22 }
  0x21   : > { %860 = vst [vmem:[%s1132_s29 + $0x5c] sm:$0xf] %v859_v23  ;;  %v861_v24 = vld [vmem:[%s1127_s28 + $0xc8] sm:$0xf]  ;;  %v863_v25 = vld [vmem:[%s1127_s28 + $0xe0] sm:$0xf] }
  0x22   : > { %v865_v26 = vld [vmem:[%s1127_s28 + $0xf8] sm:$0xf]  ;;  %862 = vst [vmem:[%s1132_s29 + $0x68] sm:$0xf] %v861_v24  ;;  %864 = vst [vmem:[%s1132_s29 + $0x74] sm:$0xf] %v863_v25 }
  0x23   : > { %866 = vst [vmem:[%s1132_s29 + $0x80] sm:$0xf] %v865_v26  ;;  %v867_v27 = vld [vmem:[%s1127_s28 + $0x110] sm:$0xf]  ;;  %v869_v28 = vld [vmem:[%s1127_s28 + $0x128] sm:$0xf] }
  0x24   : > { %v871_v29 = vld [vmem:[%s1127_s28 + $0x140] sm:$0xf]  ;;  %868 = vst [vmem:[%s1132_s29 + $0x8c] sm:$0xf] %v867_v27  ;;  %870 = vst [vmem:[%s1132_s29 + $0x98] sm:$0xf] %v869_v28 }
  0x25   : > { %872 = vst [vmem:[%s1132_s29 + $0xa4] sm:$0xf] %v871_v29  ;;  %v873_v30 = vld [vmem:[%s1127_s28 + $0x158] sm:$0xf]  ;;  %v875_v31 = vld [vmem:[%s1127_s28 + $0x170] sm:$0xf] }
  0x26   : > { %874 = vst [vmem:[%s1132_s29 + $0xb0] sm:$0xf] %v873_v30  ;;  %876 = vst [vmem:[%s1132_s29 + $0xbc] sm:$0xf] %v875_v31 }
  0x27 PF: > { %p877_p8 = scmp.ge.s32.totalorder %s1056_s16, 1  ;;  %p263_p9 = scmp.lt.s32.totalorder %s1056_s16, 3 }
  0x29   : > { %p264_p10 = pnand %p877_p8, %p263_p9 }
  0x2a   : > { %s270_s30 = sand.u32 (!%p264_p10), 1, %s1040_s12   ;;  %s308_s29 = smul.u32 (!%p264_p10), 3, %s1048_s14 }
  0x2b   : > { %267 = sbr.rel (%p264_p10) target bundleno = 316 (0x13c), region = 54 }
  0x2c   : > { %s1204_s8 = smul.u32 (!%p264_p10), 192, %s270_s30  ;;  %p309_p11 = scmp.lt.s32.totalorder (!%p264_p10), %s308_s29, 5 }
  0x2e   : > { %s1208_s9 = scalar_lea.vmem (!%p264_p10), [#allocation2], %s1204_s8  ;;  %s1265_s6 = scalar_lea.vmem (!%p264_p10), [#allocation3], %s1204_s8 }
  0x30   : > { %v348_v32 = vld [vmem:[%s1377_s0] sm:$0xff]  ;;  %v349_v33 = vld [vmem:[%s1377_s0 + $0x8] sm:$0xff]  ;;  %v1058_v34 = vmov 0   ;;  %v991_v39 = vld [vmem:[%s1208_s9 + $0x90] ss:$12 sps:$4 sm:$0xff]   ;;  %v362_v5 = vlaneseq  ;;  %s1389_s29 = smov (!%p309_p11, %s308_s29), 5 }
  0x31   : > { %537 = vmatprep.mubr.bf16.mxu0 %v1058_v34  ;;  %v356_v35 = vpack.c.bf16 %v349_v33, %v348_v32  ;;  %v986_v36 = vld [vmem:[%s1208_s9 + $0xac] ss:$12 sps:$4 sm:$0xff]   ;;  %v988_v37 = vld [vmem:[%s1208_s9 + $0xa8] ss:$12 sps:$4 sm:$0xff]   ;;  %v995_v41 = vld [vmem:[%s1208_s9 + $0xb0] ss:$12 sps:$4 sm:$0xff]   ;;  %s311_s5 = scalar_lea.vmem %s1379_s2, %s1389_s29 }
  0x32   : > { %505 = vmatprep.subr.bf16.mxu0 %v986_v36  ;;  %v989_v38 = vld [vmem:[%s1208_s9 + $0x94] ss:$12 sps:$4 sm:$0xff]   ;;  %v992_v40 = vld [vmem:[%s1208_s9 + $0x7c] ss:$12 sps:$4 sm:$0xff]   ;;  %v994_v42 = vld [vmem:[%s1208_s9 + $0x78] ss:$12 sps:$4 sm:$0xff]   ;;  %919 = vmatprep.subr.bf16.mxu1 %v995_v41 }
  0x33   : > { %935 = vmatprep.mubr.bf16.mxu1 %v356_v35  ;;  %506 = vmatpush1.bf16.msra.mxu0 %v988_v37  ;;  %v999_v43 = vld [vmem:[%s1208_s9 + $0x98] ss:$12 sps:$4 sm:$0xff]   ;;  %v1003_v45 = vld [vmem:[%s1208_s9 + $0x80] ss:$12 sps:$4 sm:$0xff]   ;;  %v1007_v48 = vld [vmem:[%s1208_s9 + $0x68] ss:$12 sps:$4 sm:$0xff]  }
  0x34   : > { %507 = vmatprep.subr.bf16.mxu0 %v989_v38  ;;  %920 = vmatpush3.bf16.msra.mxu1 %v995_v41  ;;  %v996_v44 = vld [vmem:[%s1208_s9 + $0x64] ss:$12 sps:$4 sm:$0xff]   ;;  %v998_v46 = vld [vmem:[%s1208_s9 + $0x60] ss:$12 sps:$4 sm:$0xff]   ;;  %v1002_v49 = vld [vmem:[%s1208_s9 + $0x48] ss:$12 sps:$4 sm:$0xff]  }
  0x35   : > { %921 = vmatprep.subr.bf16.mxu1 %v999_v43  ;;  %v1000_v47 = vld [vmem:[%s1208_s9 + $0x4c] ss:$12 sps:$4 sm:$0xff]   ;;  %v1004_v50 = vld [vmem:[%s1208_s9 + $0x34] ss:$12 sps:$4 sm:$0xff]   ;;  %v1011_v51 = vld [vmem:[%s1208_s9 + $0x50] ss:$12 sps:$4 sm:$0xff]  }
  0x36   : > { %v1006_v52 = vld [vmem:[%s1208_s9 + $0x30] ss:$12 sps:$4 sm:$0xff]   ;;  %v1015_v54 = vld [vmem:[%s1208_s9 + $0x38] ss:$12 sps:$4 sm:$0xff]   ;;  %v1016_v57 = vld [vmem:[%s1208_s9 + $0x20] ss:$12 sps:$4 sm:$0xff]  }
  0x37   : > { %508 = vmatpush1.bf16.msra.mxu0 %v991_v39  ;;  %v1008_v53 = vld [vmem:[%s1208_s9 + $0x1c] ss:$12 sps:$4 sm:$0xff]   ;;  %v1010_v55 = vld [vmem:[%s1208_s9 + $0x18] ss:$12 sps:$4 sm:$0xff]   ;;  %v1014_v58 = vld [vmem:[%s1208_s9] ss:$12 sps:$4 sm:$0xff]  }
  0x38   : > { %509 = vmatprep.subr.bf16.mxu0 %v992_v40  ;;  %922 = vmatpush3.bf16.msra.mxu1 %v999_v43  ;;  %v1012_v56 = vld [vmem:[%s1208_s9 + $0x4] ss:$12 sps:$4 sm:$0xff]   ;;  %v1017_v59 = vld [vmem:[%s1208_s9 + $0x8] ss:$12 sps:$4 sm:$0xff]   ;;  %v351_v63 = vld [vmem:[%s1377_s0 + $0x18] sm:$0xff]  ;;  %v363_v6 = vshrl.u32 %v362_v5, 7 }
  0x39   : > { %923 = vmatprep.subr.bf16.mxu1 %v1003_v45  ;;  %v352_v60 = vld [vmem:[%s1377_s0 + $0x20] sm:$0xff]  ;;  %v353_v61 = vld [vmem:[%s1377_s0 + $0x28] sm:$0xff]  ;;  %v350_v62 = vld [vmem:[%s1377_s0 + $0x10] sm:$0xff]  ;;  %s906_s7 = smul.u32 (%p1114_p6), 24, %s1048_s14 }
  0x3a   : > { %v358_v0 = vpack.c.bf16 %v353_v61, %v352_v60  ;;  %v357_v1 = vpack.c.bf16 %v351_v63, %v350_v62  ;;  %v354_v2 = vld [vmem:[%s1377_s0 + $0x30] sm:$0xff]  ;;  %v355_v3 = vld [vmem:[%s1377_s0 + $0x38] sm:$0xff]  ;;  %v364_v7 = vsub.s32 0, %v363_v6  ;;  %v360_v8 = vld [vmem:[%s311_s5] sm:$0x7]  ;;  %v368_v9 = vsub.s32 1, %v363_v6 }
  0x3b   : > { %510 = vmatpush1.bf16.msra.mxu0 %v994_v42  ;;  %v359_v4 = vpack.c.bf16 %v355_v3, %v354_v2  ;;  %v372_v11 = vsub.s32 2, %v363_v6  ;;  %s1318_s9 = scalar_lea.vmem (%p1114_p6), %s1380_s3, %s906_s7 }
  0x3c   : > { %511 = vmatprep.subr.bf16.mxu0 %v996_v44  ;;  %924 = vmatpush3.bf16.msra.mxu1 %v1003_v45  ;;  %v1259_v10 = vrot.slane %v360_v8, %v364_v7  ;;  %v1261_v12 = vrot.slane %v360_v8, %v368_v9 }
  0x3d   : > { %925 = vmatprep.subr.bf16.mxu1 %v1007_v48  ;;  %v373_v15 = vrot.slane %v360_v8, %v372_v11 }
  0x3f   : > { %512 = vmatpush1.bf16.msra.mxu0 %v998_v46 }
  0x40   : > { %513 = vmatprep.subr.bf16.mxu0 %v1000_v47  ;;  %926 = vmatpush3.bf16.msra.mxu1 %v1007_v48 }
  0x41   : > { %927 = vmatprep.subr.bf16.mxu1 %v1011_v51 }
  0x43   : > { %514 = vmatpush1.bf16.msra.mxu0 %v1002_v49 }
  0x44   : > { %515 = vmatprep.subr.bf16.mxu0 %v1004_v50  ;;  %928 = vmatpush3.bf16.msra.mxu1 %v1011_v51 }
  0x45   : > { %929 = vmatprep.subr.bf16.mxu1 %v1015_v54 }
  0x47   : > { %516 = vmatpush1.bf16.msra.mxu0 %v1006_v52 }
  0x48   : > { %517 = vmatprep.subr.bf16.mxu0 %v1008_v53  ;;  %930 = vmatpush3.bf16.msra.mxu1 %v1015_v54 }
  0x49   : > { %931 = vmatprep.subr.bf16.mxu1 %v1016_v57 }
  0x4b   : > { %518 = vmatpush1.bf16.msra.mxu0 %v1010_v55 }
  0x4c   : > { %519 = vmatprep.subr.bf16.mxu0 %v1012_v56  ;;  %932 = vmatpush3.bf16.msra.mxu1 %v1016_v57 }
  0x4d   : > { %933 = vmatprep.subr.bf16.mxu1 %v1017_v59 }
  0x4f   : > { %520 = vmatpush1.bf16.msra.mxu0 %v1014_v58 }
  0x50   : > { %934 = vmatpush3.bf16.msra.mxu1 %v1017_v59 }
  0x52   : > { %538 = vmatmul.mubr.bf16.vlgmr.msra.gmra.mxu0 %v356_v35 }
  0x53   : > { %547 = vmatprep.mubr.bf16.mxu0 %v1058_v34  ;;  %936 = vmatmul.mubr.bf16.vlgmr.msra.gmra.mxu1 %v357_v1 }
  0x54   : > { %939 = vmatprep.mubr.bf16.mxu1 %v358_v0 }
  0x5a   : > { %548 = vmatmul.mubr.bf16.gmra.mxu0 %v357_v1 }
  0x5b   : > { %557 = vmatprep.mubr.bf16.mxu0 %v1058_v34  ;;  %940 = vmatmul.mubr.bf16.gmra.mxu1 %v359_v4 }
  0x62   : > { %558 = vmatmul.mubr.bf16.gmra.mxu0 %v358_v0 }
  0x63   : > { %567 = vmatprep.mubr.bf16.mxu0 %v1058_v34 }
  0x6a   : > { %568 = vmatmul.mubr.bf16.gmra.mxu0 %v359_v4 }
 0x112   : > { %v539_v13 = vpop.f32.mrf.mxu0 }
 0x113   : > { %v540_v14 = vadd.f32 %v539_v13, %v1259_v10  ;;  %v937_v19 = vpop.f32.mrf.mxu1 }
 0x114   : > { %v541_v16 = vpop.f32.mrf.mxu0  ;;  %v621_v21 = vadd.f32 %v937_v19, %v373_v15 }
 0x115   : > { %643 = vst [vmem:[%s1265_s6] sm:$0xff] %v540_v14  ;;  %v542_v17 = vadd.f32 %v541_v16, %v1261_v12  ;;  %v612_v23 = vpop.f32.mrf.mxu1 }
 0x116   : > { %v543_v18 = vpop.f32.mrf.mxu0  ;;  %651 = vst [vmem:[%s1265_s6 + $0x40] sm:$0xff] %v621_v21  ;;  %v613_v25 = vadd.f32 %v612_v23, %v373_v15 }
 0x117   : > { %644 = vst [vmem:[%s1265_s6 + $0x8] sm:$0xff] %v542_v17  ;;  %v544_v20 = vadd.f32 %v543_v18, %v1259_v10  ;;  %v938_v27 = vpop.f32.mrf.mxu1 }
 0x118   : > { %v545_v22 = vpop.f32.mrf.mxu0  ;;  %645 = vst [vmem:[%s1265_s6 + $0x10] sm:$0xff] %v613_v25  ;;  %v624_v29 = vadd.f32 %v938_v27, %v373_v15 }
 0x119   : > { %646 = vst [vmem:[%s1265_s6 + $0x18] sm:$0xff] %v544_v20  ;;  %v546_v24 = vadd.f32 %v545_v22, %v1261_v12  ;;  %v615_v31 = vpop.f32.mrf.mxu1 }
 0x11a   : > { %v549_v26 = vpop.f32.mrf.mxu0  ;;  %654 = vst [vmem:[%s1265_s6 + $0x58] sm:$0xff] %v624_v29  ;;  %v616_v33 = vadd.f32 %v615_v31, %v373_v15 }
 0x11b   : > { %647 = vst [vmem:[%s1265_s6 + $0x20] sm:$0xff] %v546_v24  ;;  %v550_v28 = vadd.f32 %v549_v26, %v1259_v10  ;;  %v941_v35 = vpop.f32.mrf.mxu1 }
 0x11c   : > { %v551_v30 = vpop.f32.mrf.mxu0  ;;  %648 = vst [vmem:[%s1265_s6 + $0x28] sm:$0xff] %v616_v33  ;;  %v637_v37 = vadd.f32 %v941_v35, %v373_v15  ;;  %v692_v62 = vld [vmem:[%s1265_s6] sm:$0xff] (%p1114_p6) }
 0x11d   : > { %649 = vst [vmem:[%s1265_s6 + $0x30] sm:$0xff] %v550_v28  ;;  %v552_v32 = vadd.f32 %v551_v30, %v1261_v12  ;;  %v628_v39 = vpop.f32.mrf.mxu1  ;;  %v708_v6 = vld [vmem:[%s1265_s6 + $0x40] sm:$0xff] (%p1114_p6)  ;;  %693 = vst [vmem:[%s1318_s9] sm:$0xff] (%p1114_p6), %v692_v62 }
 0x11e   : > { %v553_v34 = vpop.f32.mrf.mxu0  ;;  %663 = vst [vmem:[%s1265_s6 + $0xa0] sm:$0xff] %v637_v37  ;;  %v629_v41 = vadd.f32 %v628_v39, %v373_v15  ;;  %v694_v63 = vld [vmem:[%s1265_s6 + $0x8] sm:$0xff] (%p1114_p6)  ;;  %709 = vst [vmem:[%s1318_s9 + $0x70] sm:$0xff] (%p1114_p6), %v708_v6 }
 0x11f   : > { %650 = vst [vmem:[%s1265_s6 + $0x38] sm:$0xff] %v552_v32  ;;  %v554_v36 = vadd.f32 %v553_v34, %v1259_v10  ;;  %v942_v43 = vpop.f32.mrf.mxu1  ;;  %v696_v0 = vld [vmem:[%s1265_s6 + $0x10] sm:$0xff] (%p1114_p6)  ;;  %695 = vst [vmem:[%s1318_s9 + $0x8] sm:$0xff] (%p1114_p6), %v694_v63 }
 0x120   : > { %v555_v38 = vpop.f32.mrf.mxu0  ;;  %657 = vst [vmem:[%s1265_s6 + $0x70] sm:$0xff] %v629_v41  ;;  %v640_v45 = vadd.f32 %v942_v43, %v373_v15  ;;  %v698_v1 = vld [vmem:[%s1265_s6 + $0x18] sm:$0xff] (%p1114_p6)  ;;  %697 = vst [vmem:[%s1318_s9 + $0x10] sm:$0xff] (%p1114_p6), %v696_v0 }
 0x121   : > { %652 = vst [vmem:[%s1265_s6 + $0x48] sm:$0xff] %v554_v36  ;;  %v556_v40 = vadd.f32 %v555_v38, %v1261_v12  ;;  %v631_v47 = vpop.f32.mrf.mxu1  ;;  %699 = vst [vmem:[%s1318_s9 + $0x30] sm:$0xff] (%p1114_p6), %v698_v1  ;;  %v714_v9 = vld [vmem:[%s1265_s6 + $0x58] sm:$0xff] (%p1114_p6) }
 0x122   : > { %v559_v42 = vpop.f32.mrf.mxu0  ;;  %666 = vst [vmem:[%s1265_s6 + $0xb8] sm:$0xff] %v640_v45  ;;  %v632_v49 = vadd.f32 %v631_v47, %v373_v15  ;;  %v700_v2 = vld [vmem:[%s1265_s6 + $0x20] sm:$0xff] (%p1114_p6)  ;;  %715 = vst [vmem:[%s1318_s9 + $0xa0] sm:$0xff] (%p1114_p6), %v714_v9 }
 0x123   : > { %653 = vst [vmem:[%s1265_s6 + $0x50] sm:$0xff] %v556_v40  ;;  %v560_v44 = vadd.f32 %v559_v42, %v1259_v10  ;;  %v702_v3 = vld [vmem:[%s1265_s6 + $0x28] sm:$0xff] (%p1114_p6)  ;;  %701 = vst [vmem:[%s1318_s9 + $0x38] sm:$0xff] (%p1114_p6), %v700_v2 }
 0x124   : > { %v561_v46 = vpop.f32.mrf.mxu0  ;;  %660 = vst [vmem:[%s1265_s6 + $0x88] sm:$0xff] %v632_v49  ;;  %v704_v4 = vld [vmem:[%s1265_s6 + $0x30] sm:$0xff] (%p1114_p6)  ;;  %703 = vst [vmem:[%s1318_s9 + $0x40] sm:$0xff] (%p1114_p6), %v702_v3 }
 0x125   : > { %655 = vst [vmem:[%s1265_s6 + $0x60] sm:$0xff] %v560_v44  ;;  %v562_v48 = vadd.f32 %v561_v46, %v1261_v12  ;;  %705 = vst [vmem:[%s1318_s9 + $0x60] sm:$0xff] (%p1114_p6), %v704_v4  ;;  %v732_v18 = vld [vmem:[%s1265_s6 + $0xa0] sm:$0xff] (%p1114_p6) }
 0x126   : > { %v563_v50 = vpop.f32.mrf.mxu0  ;;  %v706_v5 = vld [vmem:[%s1265_s6 + $0x38] sm:$0xff] (%p1114_p6)  ;;  %733 = vst [vmem:[%s1318_s9 + $0x130] sm:$0xff] (%p1114_p6), %v732_v18 }
 0x127   : > { %656 = vst [vmem:[%s1265_s6 + $0x68] sm:$0xff] %v562_v48  ;;  %v564_v51 = vadd.f32 %v563_v50, %v1259_v10  ;;  %707 = vst [vmem:[%s1318_s9 + $0x68] sm:$0xff] (%p1114_p6), %v706_v5 }
 0x128   : > { %v565_v52 = vpop.f32.mrf.mxu0  ;;  %v710_v7 = vld [vmem:[%s1265_s6 + $0x48] sm:$0xff] (%p1114_p6) }
 0x129   : > { %658 = vst [vmem:[%s1265_s6 + $0x78] sm:$0xff] %v564_v51  ;;  %v566_v53 = vadd.f32 %v565_v52, %v1261_v12  ;;  %711 = vst [vmem:[%s1318_s9 + $0x90] sm:$0xff] (%p1114_p6), %v710_v7  ;;  %v738_v21 = vld [vmem:[%s1265_s6 + $0xb8] sm:$0xff] (%p1114_p6) }
 0x12a   : > { %v569_v54 = vpop.f32.mrf.mxu0  ;;  %v712_v8 = vld [vmem:[%s1265_s6 + $0x50] sm:$0xff] (%p1114_p6)  ;;  %739 = vst [vmem:[%s1318_s9 + $0x160] sm:$0xff] (%p1114_p6), %v738_v21 }
 0x12b   : > { %659 = vst [vmem:[%s1265_s6 + $0x80] sm:$0xff] %v566_v53  ;;  %v570_v55 = vadd.f32 %v569_v54, %v1259_v10  ;;  %713 = vst [vmem:[%s1318_s9 + $0x98] sm:$0xff] (%p1114_p6), %v712_v8  ;;  %v726_v15 = vld [vmem:[%s1265_s6 + $0x88] sm:$0xff] (%p1114_p6) }
 0x12c   : > { %v571_v56 = vpop.f32.mrf.mxu0  ;;  %727 = vst [vmem:[%s1318_s9 + $0x100] sm:$0xff] (%p1114_p6), %v726_v15 }
 0x12d   : > { %661 = vst [vmem:[%s1265_s6 + $0x90] sm:$0xff] %v570_v55  ;;  %v572_v57 = vadd.f32 %v571_v56, %v1261_v12 }
 0x12e   : > { %v573_v58 = vpop.f32.mrf.mxu0  ;;  %v718_v11 = vld [vmem:[%s1265_s6 + $0x68] sm:$0xff] (%p1114_p6) }
 0x12f   : > { %662 = vst [vmem:[%s1265_s6 + $0x98] sm:$0xff] %v572_v57  ;;  %v574_v59 = vadd.f32 %v573_v58, %v1259_v10  ;;  %673 = sbr.rel (!%p1114_p6) target bundleno = 316 (0x13c), region = 62  ;;  %v716_v10 = vld [vmem:[%s1265_s6 + $0x60] sm:$0xff] (%p1114_p6)  ;;  %719 = vst [vmem:[%s1318_s9 + $0xc8] sm:$0xff] (%p1114_p6), %v718_v11 }
 0x130   : > { %v575_v60 = vpop.f32.mrf.mxu0  ;;  %717 = vst [vmem:[%s1318_s9 + $0xc0] sm:$0xff] (%p1114_p6), %v716_v10  ;;  %v722_v13 = vld [vmem:[%s1265_s6 + $0x78] sm:$0xff] (%p1114_p6) }
 0x131   : > { %664 = vst [vmem:[%s1265_s6 + $0xa8] sm:$0xff] %v574_v59  ;;  %v576_v61 = vadd.f32 %v575_v60, %v1261_v12  ;;  %v720_v12 = vld [vmem:[%s1265_s6 + $0x70] sm:$0xff] (%p1114_p6)  ;;  %723 = vst [vmem:[%s1318_s9 + $0xf0] sm:$0xff] (%p1114_p6), %v722_v13 }
 0x132   : > { %721 = vst [vmem:[%s1318_s9 + $0xd0] sm:$0xff] (%p1114_p6), %v720_v12  ;;  %v724_v14 = vld [vmem:[%s1265_s6 + $0x80] sm:$0xff] (%p1114_p6) }
 0x133   : > { %665 = vst [vmem:[%s1265_s6 + $0xb0] sm:$0xff] %v576_v61  ;;  %725 = vst [vmem:[%s1318_s9 + $0xf8] sm:$0xff] (%p1114_p6), %v724_v14 }
 0x134   : > { %v728_v16 = vld [vmem:[%s1265_s6 + $0x90] sm:$0xff] }
 0x135   : > { %729 = vst [vmem:[%s1318_s9 + $0x120] sm:$0xff] %v728_v16 }
 0x136   : > { %v730_v17 = vld [vmem:[%s1265_s6 + $0x98] sm:$0xff] }
 0x137   : > { %731 = vst [vmem:[%s1318_s9 + $0x128] sm:$0xff] %v730_v17 }
 0x138   : > { %v734_v19 = vld [vmem:[%s1265_s6 + $0xa8] sm:$0xff] }
 0x139   : > { %735 = vst [vmem:[%s1318_s9 + $0x150] sm:$0xff] %v734_v19 }
 0x13a   : > { %v736_v20 = vld [vmem:[%s1265_s6 + $0xb0] sm:$0xff] }
 0x13b   : > { %737 = vst [vmem:[%s1318_s9 + $0x158] sm:$0xff] %v736_v20 }
 0x13c PF: > { %s13_s16 = sadd.s32 1, %s1056_s16   ;;  %s1382_s12 = smov %s1044_s13 }
 0x13d   : > { %p10_p12 = scmp.ge.s32.totalorder %s13_s16, 4   ;;  %s1383_s13 = smov %s1119_s22 }
 0x13e   : > { %s1384_s14 = smov %s1052_s15  ;;  %s1385_s15 = smov %s1387_s17 }
 0x13f   :  { %12 = sbr.rel (!%p10_p12) target bundleno = 3 (0x3), region = 128 }

// kernel: seq2seq_forward.9
= control target key start
LH: loop header
LB: loop body
LE: loop exit
PB: predicated region body
PF: predicated region fallthrough
CT: control target
= control target key end

     0   :  { %v463_v1 = vmov 0   ;;  %v61_v37 = vlaneseq  ;;  %s679_s1 = inlined_call_operand.vmem [shape: bf16[128,384], index: 1, kind: input, shape index: {}]   ;;  %s680_s0 = inlined_call_operand.vmem [shape: f32[64,128], index: 0, kind: input, shape index: {}]   ;;  %s681_s2 = inlined_call_operand.vmem [shape: f32[1,384], index: 2, kind: input, shape index: {}]   ;;  %s682_s3 = inlined_call_operand.vmem [shape: f32[64,384], index: 3, kind: output, shape index: {}]  }
   0x1   :  { %v431_v0 = vld [vmem:[%s679_s1 + $0xac] ss:$12 sps:$4 sm:$0xff]   ;;  %236 = vmatprep.mubr.bf16.mxu0 %v463_v1  ;;  %v433_v2 = vld [vmem:[%s679_s1 + $0xa8] ss:$12 sps:$4 sm:$0xff]   ;;  %v436_v4 = vld [vmem:[%s679_s1 + $0x90] ss:$12 sps:$4 sm:$0xff]  }
   0x2   :  { %204 = vmatprep.subr.bf16.mxu0 %v431_v0  ;;  %v434_v3 = vld [vmem:[%s679_s1 + $0x94] ss:$12 sps:$4 sm:$0xff]   ;;  %v437_v5 = vld [vmem:[%s679_s1 + $0x7c] ss:$12 sps:$4 sm:$0xff]   ;;  %v439_v7 = vld [vmem:[%s679_s1 + $0x78] ss:$12 sps:$4 sm:$0xff]  }
   0x3   :  { %205 = vmatpush1.bf16.msra.mxu0 %v433_v2  ;;  %v440_v6 = vld [vmem:[%s679_s1 + $0xb0] ss:$12 sps:$4 sm:$0xff]   ;;  %v444_v8 = vld [vmem:[%s679_s1 + $0x98] ss:$12 sps:$4 sm:$0xff]   ;;  %v448_v10 = vld [vmem:[%s679_s1 + $0x80] ss:$12 sps:$4 sm:$0xff]  }
   0x4   :  { %206 = vmatprep.subr.bf16.mxu0 %v434_v3  ;;  %406 = vmatprep.subr.bf16.mxu1 %v440_v6  ;;  %v441_v9 = vld [vmem:[%s679_s1 + $0x64] ss:$12 sps:$4 sm:$0xff]   ;;  %v443_v11 = vld [vmem:[%s679_s1 + $0x60] ss:$12 sps:$4 sm:$0xff]   ;;  %v452_v13 = vld [vmem:[%s679_s1 + $0x68] ss:$12 sps:$4 sm:$0xff]  }
   0x5   :  { %407 = vmatpush3.bf16.msra.mxu1 %v440_v6  ;;  %v445_v12 = vld [vmem:[%s679_s1 + $0x4c] ss:$12 sps:$4 sm:$0xff]   ;;  %v447_v14 = vld [vmem:[%s679_s1 + $0x48] ss:$12 sps:$4 sm:$0xff]   ;;  %v456_v16 = vld [vmem:[%s679_s1 + $0x50] ss:$12 sps:$4 sm:$0xff]  }
   0x6   :  { %408 = vmatprep.subr.bf16.mxu1 %v444_v8  ;;  %v449_v15 = vld [vmem:[%s679_s1 + $0x34] ss:$12 sps:$4 sm:$0xff]   ;;  %v48_v18 = vld [vmem:[%s680_s0 + $0x8] sm:$0xff]  ;;  %v451_v19 = vld [vmem:[%s679_s1 + $0x30] ss:$12 sps:$4 sm:$0xff]   ;;  %v62_v38 = vshrl.u32 %v61_v37, 7 }
   0x7   :  { %207 = vmatpush1.bf16.msra.mxu0 %v436_v4  ;;  %v47_v17 = vld [vmem:[%s680_s0] sm:$0xff]  ;;  %v453_v21 = vld [vmem:[%s679_s1 + $0x1c] ss:$12 sps:$4 sm:$0xff]   ;;  %v49_v30 = vld [vmem:[%s680_s0 + $0x10] sm:$0xff] }
   0x8   :  { %208 = vmatprep.subr.bf16.mxu0 %v437_v5  ;;  %v55_v20 = vpack.c.bf16 %v48_v18, %v47_v17  ;;  %v460_v22 = vld [vmem:[%s679_s1 + $0x38] ss:$12 sps:$4 sm:$0xff]   ;;  %v461_v25 = vld [vmem:[%s679_s1 + $0x20] ss:$12 sps:$4 sm:$0xff]   ;;  %v462_v27 = vld [vmem:[%s679_s1 + $0x8] ss:$12 sps:$4 sm:$0xff]  }
   0x9   :  { %409 = vmatpush3.bf16.msra.mxu1 %v444_v8  ;;  %v455_v23 = vld [vmem:[%s679_s1 + $0x18] ss:$12 sps:$4 sm:$0xff]   ;;  %v459_v26 = vld [vmem:[%s679_s1] ss:$12 sps:$4 sm:$0xff]   ;;  %v53_v34 = vld [vmem:[%s680_s0 + $0x30] sm:$0xff]  ;;  %v63_v39 = vsub.s32 0, %v62_v38 }
   0xa   :  { %410 = vmatprep.subr.bf16.mxu1 %v448_v10  ;;  %422 = vmatprep.mubr.bf16.mxu1 %v55_v20  ;;  %v457_v24 = vld [vmem:[%s679_s1 + $0x4] ss:$12 sps:$4 sm:$0xff]   ;;  %v52_v29 = vld [vmem:[%s680_s0 + $0x28] sm:$0xff]  ;;  %v50_v31 = vld [vmem:[%s680_s0 + $0x18] sm:$0xff]  ;;  %v67_v41 = vsub.s32 1, %v62_v38  ;;  %v71_v43 = vsub.s32 2, %v62_v38 }
   0xb   :  { %209 = vmatpush1.bf16.msra.mxu0 %v439_v7  ;;  %v51_v28 = vld [vmem:[%s680_s0 + $0x20] sm:$0xff]  ;;  %v56_v33 = vpack.c.bf16 %v50_v31, %v49_v30  ;;  %v54_v35 = vld [vmem:[%s680_s0 + $0x38] sm:$0xff] }
   0xc   :  { %210 = vmatprep.subr.bf16.mxu0 %v441_v9  ;;  %v57_v32 = vpack.c.bf16 %v52_v29, %v51_v28  ;;  %v58_v36 = vpack.c.bf16 %v54_v35, %v53_v34  ;;  %v59_v40 = vld [vmem:[%s681_s2] sm:$0x7] }
   0xd   :  { %411 = vmatpush3.bf16.msra.mxu1 %v448_v10  ;;  %v587_v42 = vrot.slane %v59_v40, %v63_v39  ;;  %v589_v44 = vrot.slane %v59_v40, %v67_v41  ;;  %v72_v47 = vrot.slane %v59_v40, %v71_v43 }
   0xe   :  { %412 = vmatprep.subr.bf16.mxu1 %v452_v13 }
   0xf   :  { %211 = vmatpush1.bf16.msra.mxu0 %v443_v11 }
  0x10   :  { %212 = vmatprep.subr.bf16.mxu0 %v445_v12 }
  0x11   :  { %413 = vmatpush3.bf16.msra.mxu1 %v452_v13 }
  0x12   :  { %414 = vmatprep.subr.bf16.mxu1 %v456_v16 }
  0x13   :  { %213 = vmatpush1.bf16.msra.mxu0 %v447_v14 }
  0x14   :  { %214 = vmatprep.subr.bf16.mxu0 %v449_v15 }
  0x15   :  { %415 = vmatpush3.bf16.msra.mxu1 %v456_v16 }
  0x16   :  { %416 = vmatprep.subr.bf16.mxu1 %v460_v22 }
  0x17   :  { %215 = vmatpush1.bf16.msra.mxu0 %v451_v19 }
  0x18   :  { %216 = vmatprep.subr.bf16.mxu0 %v453_v21 }
  0x19   :  { %417 = vmatpush3.bf16.msra.mxu1 %v460_v22 }
  0x1a   :  { %418 = vmatprep.subr.bf16.mxu1 %v461_v25 }
  0x1b   :  { %217 = vmatpush1.bf16.msra.mxu0 %v455_v23 }
  0x1c   :  { %218 = vmatprep.subr.bf16.mxu0 %v457_v24 }
  0x1d   :  { %419 = vmatpush3.bf16.msra.mxu1 %v461_v25 }
  0x1e   :  { %420 = vmatprep.subr.bf16.mxu1 %v462_v27 }
  0x1f   :  { %219 = vmatpush1.bf16.msra.mxu0 %v459_v26 }
  0x21   :  { %421 = vmatpush3.bf16.msra.mxu1 %v462_v27 }
  0x22   :  { %237 = vmatmul.mubr.bf16.vlgmr.msra.gmra.mxu0 %v55_v20 }
  0x23   :  { %246 = vmatprep.mubr.bf16.mxu0 %v463_v1 }
  0x24   :  { %423 = vmatmul.mubr.bf16.vlgmr.msra.gmra.mxu1 %v56_v33 }
  0x25   :  { %426 = vmatprep.mubr.bf16.mxu1 %v57_v32 }
  0x2a   :  { %247 = vmatmul.mubr.bf16.gmra.mxu0 %v56_v33 }
  0x2b   :  { %256 = vmatprep.mubr.bf16.mxu0 %v463_v1 }
  0x2c   :  { %427 = vmatmul.mubr.bf16.gmra.mxu1 %v58_v36 }
  0x32   :  { %257 = vmatmul.mubr.bf16.gmra.mxu0 %v57_v32 }
  0x33   :  { %266 = vmatprep.mubr.bf16.mxu0 %v463_v1 }
  0x3a   :  { %267 = vmatmul.mubr.bf16.gmra.mxu0 %v58_v36 }
  0xe2   :  { %v238_v45 = vpop.f32.mrf.mxu0 }
  0xe3   :  { %v239_v46 = vadd.f32 %v238_v45, %v587_v42 }
  0xe4   :  { %v240_v48 = vpop.f32.mrf.mxu0  ;;  %v424_v51 = vpop.f32.mrf.mxu1 }
  0xe5   :  { %342 = vst [vmem:[%s682_s3] sm:$0xff] %v239_v46  ;;  %v241_v49 = vadd.f32 %v240_v48, %v589_v44  ;;  %v320_v53 = vadd.f32 %v424_v51, %v72_v47 }
  0xe6   :  { %v242_v50 = vpop.f32.mrf.mxu0  ;;  %v311_v55 = vpop.f32.mrf.mxu1 }
  0xe7   :  { %343 = vst [vmem:[%s682_s3 + $0x8] sm:$0xff] %v241_v49  ;;  %v243_v52 = vadd.f32 %v242_v50, %v587_v42  ;;  %350 = vst [vmem:[%s682_s3 + $0x40] sm:$0xff] %v320_v53  ;;  %v312_v57 = vadd.f32 %v311_v55, %v72_v47 }
  0xe8   :  { %v244_v54 = vpop.f32.mrf.mxu0  ;;  %v425_v59 = vpop.f32.mrf.mxu1 }
  0xe9   :  { %345 = vst [vmem:[%s682_s3 + $0x18] sm:$0xff] %v243_v52  ;;  %v245_v56 = vadd.f32 %v244_v54, %v589_v44  ;;  %344 = vst [vmem:[%s682_s3 + $0x10] sm:$0xff] %v312_v57  ;;  %v323_v61 = vadd.f32 %v425_v59, %v72_v47 }
  0xea   :  { %v248_v58 = vpop.f32.mrf.mxu0  ;;  %v314_v63 = vpop.f32.mrf.mxu1 }
  0xeb   :  { %346 = vst [vmem:[%s682_s3 + $0x20] sm:$0xff] %v245_v56  ;;  %v249_v60 = vadd.f32 %v248_v58, %v587_v42  ;;  %353 = vst [vmem:[%s682_s3 + $0x58] sm:$0xff] %v323_v61  ;;  %v315_v1 = vadd.f32 %v314_v63, %v72_v47 }
  0xec   :  { %v250_v62 = vpop.f32.mrf.mxu0  ;;  %v428_v3 = vpop.f32.mrf.mxu1 }
  0xed   :  { %348 = vst [vmem:[%s682_s3 + $0x30] sm:$0xff] %v249_v60  ;;  %v251_v0 = vadd.f32 %v250_v62, %v589_v44  ;;  %347 = vst [vmem:[%s682_s3 + $0x28] sm:$0xff] %v315_v1  ;;  %v336_v5 = vadd.f32 %v428_v3, %v72_v47 }
  0xee   :  { %v252_v2 = vpop.f32.mrf.mxu0  ;;  %v327_v7 = vpop.f32.mrf.mxu1 }
  0xef   :  { %349 = vst [vmem:[%s682_s3 + $0x38] sm:$0xff] %v251_v0  ;;  %v253_v4 = vadd.f32 %v252_v2, %v587_v42  ;;  %362 = vst [vmem:[%s682_s3 + $0xa0] sm:$0xff] %v336_v5  ;;  %v328_v9 = vadd.f32 %v327_v7, %v72_v47 }
  0xf0   :  { %v254_v6 = vpop.f32.mrf.mxu0  ;;  %v429_v11 = vpop.f32.mrf.mxu1 }
  0xf1   :  { %351 = vst [vmem:[%s682_s3 + $0x48] sm:$0xff] %v253_v4  ;;  %v255_v8 = vadd.f32 %v254_v6, %v589_v44  ;;  %356 = vst [vmem:[%s682_s3 + $0x70] sm:$0xff] %v328_v9  ;;  %v339_v13 = vadd.f32 %v429_v11, %v72_v47 }
  0xf2   :  { %v258_v10 = vpop.f32.mrf.mxu0  ;;  %v330_v15 = vpop.f32.mrf.mxu1 }
  0xf3   :  { %352 = vst [vmem:[%s682_s3 + $0x50] sm:$0xff] %v255_v8  ;;  %v259_v12 = vadd.f32 %v258_v10, %v587_v42  ;;  %365 = vst [vmem:[%s682_s3 + $0xb8] sm:$0xff] %v339_v13  ;;  %v331_v17 = vadd.f32 %v330_v15, %v72_v47 }
  0xf4   :  { %v260_v14 = vpop.f32.mrf.mxu0 }
  0xf5   :  { %354 = vst [vmem:[%s682_s3 + $0x60] sm:$0xff] %v259_v12  ;;  %v261_v16 = vadd.f32 %v260_v14, %v589_v44  ;;  %359 = vst [vmem:[%s682_s3 + $0x88] sm:$0xff] %v331_v17 }
  0xf6   :  { %v262_v18 = vpop.f32.mrf.mxu0 }
  0xf7   :  { %355 = vst [vmem:[%s682_s3 + $0x68] sm:$0xff] %v261_v16  ;;  %v263_v19 = vadd.f32 %v262_v18, %v587_v42 }
  0xf8   :  { %v264_v20 = vpop.f32.mrf.mxu0 }
  0xf9   :  { %357 = vst [vmem:[%s682_s3 + $0x78] sm:$0xff] %v263_v19  ;;  %v265_v21 = vadd.f32 %v264_v20, %v589_v44 }
  0xfa   :  { %v268_v22 = vpop.f32.mrf.mxu0 }
  0xfb   :  { %358 = vst [vmem:[%s682_s3 + $0x80] sm:$0xff] %v265_v21  ;;  %v269_v23 = vadd.f32 %v268_v22, %v587_v42 }
  0xfc   :  { %v270_v24 = vpop.f32.mrf.mxu0 }
  0xfd   :  { %360 = vst [vmem:[%s682_s3 + $0x90] sm:$0xff] %v269_v23  ;;  %v271_v25 = vadd.f32 %v270_v24, %v589_v44 }
  0xfe   :  { %v272_v26 = vpop.f32.mrf.mxu0 }
  0xff   :  { %361 = vst [vmem:[%s682_s3 + $0x98] sm:$0xff] %v271_v25  ;;  %v273_v27 = vadd.f32 %v272_v26, %v587_v42 }
 0x100   :  { %v274_v28 = vpop.f32.mrf.mxu0 }
 0x101   :  { %363 = vst [vmem:[%s682_s3 + $0xa8] sm:$0xff] %v273_v27  ;;  %v275_v29 = vadd.f32 %v274_v28, %v589_v44 }
 0x103   :  { %364 = vst [vmem:[%s682_s3 + $0xb0] sm:$0xff] %v275_v29 }

// kernel: seq2seq_forward.11
= control target key start
LH: loop header
LB: loop body
LE: loop exit
PB: predicated region body
PF: predicated region fallthrough
CT: control target
= control target key end

     0   :  { %v285_v1 = vmov 0   ;;  %v45_v29 = vlaneseq  ;;  %s429_s1 = inlined_call_operand.vmem [shape: bf16[128,256], index: 1, kind: input, shape index: {}]   ;;  %s430_s0 = inlined_call_operand.vmem [shape: f32[64,128], index: 0, kind: input, shape index: {}]   ;;  %s431_s2 = inlined_call_operand.vmem [shape: f32[1,256], index: 2, kind: input, shape index: {}]   ;;  %s432_s3 = inlined_call_operand.vmem [shape: f32[64,256], index: 3, kind: output, shape index: {}]  }
   0x1   :  { %v261_v0 = vld [vmem:[%s429_s1 + $0x74] ss:$8 sps:$4 sm:$0xff]   ;;  %167 = vmatprep.mubr.bf16.mxu0 %v285_v1  ;;  %187 = vmatprep.mubr.bf16.mxu1 %v285_v1  ;;  %v263_v2 = vld [vmem:[%s429_s1 + $0x70] ss:$8 sps:$4 sm:$0xff]   ;;  %v264_v3 = vld [vmem:[%s429_s1 + $0x64] ss:$8 sps:$4 sm:$0xff]  }
   0x2   :  { %135 = vmatprep.subr.bf16.mxu0 %v261_v0  ;;  %244 = vmatprep.subr.bf16.mxu1 %v261_v0  ;;  %v266_v4 = vld [vmem:[%s429_s1 + $0x60] ss:$8 sps:$4 sm:$0xff]   ;;  %v267_v5 = vld [vmem:[%s429_s1 + $0x54] ss:$8 sps:$4 sm:$0xff]   ;;  %v269_v6 = vld [vmem:[%s429_s1 + $0x50] ss:$8 sps:$4 sm:$0xff]  }
   0x3   :  { %136 = vmatpush1.bf16.msra.mxu0 %v263_v2  ;;  %252 = vmatpush1.bf16.msra.mxu1 %v263_v2  ;;  %v270_v7 = vld [vmem:[%s429_s1 + $0x44] ss:$8 sps:$4 sm:$0xff]   ;;  %v272_v8 = vld [vmem:[%s429_s1 + $0x40] ss:$8 sps:$4 sm:$0xff]   ;;  %v273_v9 = vld [vmem:[%s429_s1 + $0x34] ss:$8 sps:$4 sm:$0xff]  }
   0x4   :  { %137 = vmatprep.subr.bf16.mxu0 %v264_v3  ;;  %245 = vmatprep.subr.bf16.mxu1 %v264_v3  ;;  %v275_v10 = vld [vmem:[%s429_s1 + $0x30] ss:$8 sps:$4 sm:$0xff]   ;;  %v276_v11 = vld [vmem:[%s429_s1 + $0x24] ss:$8 sps:$4 sm:$0xff]   ;;  %v278_v12 = vld [vmem:[%s429_s1 + $0x20] ss:$8 sps:$4 sm:$0xff]  }
   0x5   :  { %v279_v13 = vld [vmem:[%s429_s1 + $0x14] ss:$8 sps:$4 sm:$0xff]   ;;  %v281_v14 = vld [vmem:[%s429_s1 + $0x10] ss:$8 sps:$4 sm:$0xff]   ;;  %v282_v15 = vld [vmem:[%s429_s1 + $0x4] ss:$8 sps:$4 sm:$0xff]  }
   0x6   :  { %v284_v16 = vld [vmem:[%s429_s1] ss:$8 sps:$4 sm:$0xff]   ;;  %v33_v23 = vld [vmem:[%s430_s0 + $0x10] sm:$0xff]  ;;  %v34_v24 = vld [vmem:[%s430_s0 + $0x18] sm:$0xff]  ;;  %v46_v30 = vshrl.u32 %v45_v29, 7 }
   0x7   :  { %138 = vmatpush1.bf16.msra.mxu0 %v266_v4  ;;  %253 = vmatpush1.bf16.msra.mxu1 %v266_v4  ;;  %v31_v17 = vld [vmem:[%s430_s0] sm:$0xff]  ;;  %v32_v18 = vld [vmem:[%s430_s0 + $0x8] sm:$0xff]  ;;  %v37_v25 = vld [vmem:[%s430_s0 + $0x30] sm:$0xff]  ;;  %v40_v27 = vpack.c.bf16 %v34_v24, %v33_v23 }
   0x8   :  { %139 = vmatprep.subr.bf16.mxu0 %v267_v5  ;;  %246 = vmatprep.subr.bf16.mxu1 %v267_v5  ;;  %v35_v19 = vld [vmem:[%s430_s0 + $0x20] sm:$0xff]  ;;  %v36_v20 = vld [vmem:[%s430_s0 + $0x28] sm:$0xff]  ;;  %v39_v21 = vpack.c.bf16 %v32_v18, %v31_v17  ;;  %v38_v26 = vld [vmem:[%s430_s0 + $0x38] sm:$0xff]  ;;  %v47_v31 = vsub.s32 0, %v46_v30  ;;  %v51_v33 = vsub.s32 1, %v46_v30 }
   0x9   :  { %v41_v22 = vpack.c.bf16 %v36_v20, %v35_v19  ;;  %v42_v28 = vpack.c.bf16 %v38_v26, %v37_v25  ;;  %v43_v32 = vld [vmem:[%s431_s2] sm:$0x3] }
   0xa   :  { %v48_v34 = vrot.slane %v43_v32, %v47_v31  ;;  %v52_v35 = vrot.slane %v43_v32, %v51_v33 }
   0xb   :  { %140 = vmatpush1.bf16.msra.mxu0 %v269_v6  ;;  %254 = vmatpush1.bf16.msra.mxu1 %v269_v6 }
   0xc   :  { %141 = vmatprep.subr.bf16.mxu0 %v270_v7  ;;  %247 = vmatprep.subr.bf16.mxu1 %v270_v7 }
   0xf   :  { %142 = vmatpush1.bf16.msra.mxu0 %v272_v8  ;;  %255 = vmatpush1.bf16.msra.mxu1 %v272_v8 }
  0x10   :  { %143 = vmatprep.subr.bf16.mxu0 %v273_v9  ;;  %248 = vmatprep.subr.bf16.mxu1 %v273_v9 }
  0x13   :  { %144 = vmatpush1.bf16.msra.mxu0 %v275_v10  ;;  %256 = vmatpush1.bf16.msra.mxu1 %v275_v10 }
  0x14   :  { %145 = vmatprep.subr.bf16.mxu0 %v276_v11  ;;  %249 = vmatprep.subr.bf16.mxu1 %v276_v11 }
  0x17   :  { %146 = vmatpush1.bf16.msra.mxu0 %v278_v12  ;;  %257 = vmatpush1.bf16.msra.mxu1 %v278_v12 }
  0x18   :  { %147 = vmatprep.subr.bf16.mxu0 %v279_v13  ;;  %250 = vmatprep.subr.bf16.mxu1 %v279_v13 }
  0x1b   :  { %148 = vmatpush1.bf16.msra.mxu0 %v281_v14  ;;  %258 = vmatpush1.bf16.msra.mxu1 %v281_v14 }
  0x1c   :  { %149 = vmatprep.subr.bf16.mxu0 %v282_v15  ;;  %251 = vmatprep.subr.bf16.mxu1 %v282_v15 }
  0x1f   :  { %150 = vmatpush1.bf16.msra.mxu0 %v284_v16  ;;  %259 = vmatpush1.bf16.msra.mxu1 %v284_v16 }
  0x22   :  { %168 = vmatmul.mubr.bf16.vlgmr.msra.gmra.mxu0 %v39_v21  ;;  %188 = vmatmul.mubr.bf16.vlgmr.msra.gmra.mxu1 %v41_v22 }
  0x23   :  { %177 = vmatprep.mubr.bf16.mxu0 %v285_v1  ;;  %197 = vmatprep.mubr.bf16.mxu1 %v285_v1 }
  0x2a   :  { %178 = vmatmul.mubr.bf16.gmra.mxu0 %v40_v27  ;;  %198 = vmatmul.mubr.bf16.gmra.mxu1 %v42_v28 }
  0xe2   :  { %v169_v36 = vpop.f32.mrf.mxu0  ;;  %v189_v37 = vpop.f32.mrf.mxu1 }
  0xe3   :  { %v170_v38 = vadd.f32 %v169_v36, %v48_v34  ;;  %v190_v39 = vadd.f32 %v189_v37, %v48_v34 }
  0xe4   :  { %v171_v40 = vpop.f32.mrf.mxu0  ;;  %v191_v41 = vpop.f32.mrf.mxu1 }
  0xe5   :  { %208 = vst [vmem:[%s432_s3] sm:$0xff] %v170_v38  ;;  %216 = vst [vmem:[%s432_s3 + $0x40] sm:$0xff] %v190_v39  ;;  %v172_v42 = vadd.f32 %v171_v40, %v52_v35  ;;  %v192_v43 = vadd.f32 %v191_v41, %v52_v35 }
  0xe6   :  { %v173_v44 = vpop.f32.mrf.mxu0  ;;  %v193_v45 = vpop.f32.mrf.mxu1 }
  0xe7   :  { %209 = vst [vmem:[%s432_s3 + $0x8] sm:$0xff] %v172_v42  ;;  %217 = vst [vmem:[%s432_s3 + $0x48] sm:$0xff] %v192_v43  ;;  %v174_v46 = vadd.f32 %v173_v44, %v48_v34  ;;  %v194_v47 = vadd.f32 %v193_v45, %v48_v34 }
  0xe8   :  { %v175_v48 = vpop.f32.mrf.mxu0  ;;  %v195_v49 = vpop.f32.mrf.mxu1 }
  0xe9   :  { %210 = vst [vmem:[%s432_s3 + $0x10] sm:$0xff] %v174_v46  ;;  %218 = vst [vmem:[%s432_s3 + $0x50] sm:$0xff] %v194_v47  ;;  %v176_v50 = vadd.f32 %v175_v48, %v52_v35  ;;  %v196_v51 = vadd.f32 %v195_v49, %v52_v35 }
  0xea   :  { %v179_v52 = vpop.f32.mrf.mxu0  ;;  %v199_v53 = vpop.f32.mrf.mxu1 }
  0xeb   :  { %211 = vst [vmem:[%s432_s3 + $0x18] sm:$0xff] %v176_v50  ;;  %219 = vst [vmem:[%s432_s3 + $0x58] sm:$0xff] %v196_v51  ;;  %v180_v54 = vadd.f32 %v179_v52, %v48_v34  ;;  %v200_v55 = vadd.f32 %v199_v53, %v48_v34 }
  0xec   :  { %v181_v56 = vpop.f32.mrf.mxu0  ;;  %v201_v57 = vpop.f32.mrf.mxu1 }
  0xed   :  { %212 = vst [vmem:[%s432_s3 + $0x20] sm:$0xff] %v180_v54  ;;  %220 = vst [vmem:[%s432_s3 + $0x60] sm:$0xff] %v200_v55  ;;  %v182_v58 = vadd.f32 %v181_v56, %v52_v35  ;;  %v202_v59 = vadd.f32 %v201_v57, %v52_v35 }
  0xee   :  { %v183_v60 = vpop.f32.mrf.mxu0  ;;  %v203_v61 = vpop.f32.mrf.mxu1 }
  0xef   :  { %213 = vst [vmem:[%s432_s3 + $0x28] sm:$0xff] %v182_v58  ;;  %221 = vst [vmem:[%s432_s3 + $0x68] sm:$0xff] %v202_v59  ;;  %v184_v62 = vadd.f32 %v183_v60, %v48_v34  ;;  %v204_v63 = vadd.f32 %v203_v61, %v48_v34 }
  0xf0   :  { %v185_v0 = vpop.f32.mrf.mxu0  ;;  %v205_v1 = vpop.f32.mrf.mxu1 }
  0xf1   :  { %214 = vst [vmem:[%s432_s3 + $0x30] sm:$0xff] %v184_v62  ;;  %222 = vst [vmem:[%s432_s3 + $0x70] sm:$0xff] %v204_v63  ;;  %v186_v2 = vadd.f32 %v185_v0, %v52_v35  ;;  %v206_v3 = vadd.f32 %v205_v1, %v52_v35 }
  0xf3   :  { %215 = vst [vmem:[%s432_s3 + $0x38] sm:$0xff] %v186_v2  ;;  %223 = vst [vmem:[%s432_s3 + $0x78] sm:$0xff] %v206_v3 }

// kernel: seq2seq_forward.7
= control target key start
LH: loop header
LB: loop body
LE: loop exit
PB: predicated region body
PF: predicated region fallthrough
CT: control target
= control target key end

     0   :  { %s4978_s2 = inlined_call_operand.vmem [shape: bf16[256,768], index: 2, kind: input, shape index: {}]   ;;  %s4979_s1 = inlined_call_operand.vmem [shape: f32[8,256], index: 1, kind: input, shape index: {}]   ;;  %s4980_s0 = inlined_call_operand.vmem [shape: f32[8,8,768], index: 0, kind: input, shape index: {}]   ;;  %s4981_s3 = inlined_call_operand.vmem [shape: f32[1,256], index: 3, kind: input, shape index: {}]   ;;  %s4982_s4 = inlined_call_operand.vmem [shape: f32[8,8,256], index: 4, kind: output, shape index: {}]  }
   0x1   :  { %v2733_v0 = vld [vmem:[%s4978_s2 + $0x154] ss:$24 sps:$4 sm:$0xff]   ;;  %v2738_v1 = vld [vmem:[%s4978_s2 + $0x150] ss:$24 sps:$4 sm:$0xff]   ;;  %v2744_v2 = vld [vmem:[%s4978_s2 + $0x124] ss:$24 sps:$4 sm:$0xff]  }
   0x2   :  { %604 = vmatprep.subr.bf16.mxu0 %v2733_v0  ;;  %v2750_v3 = vld [vmem:[%s4978_s2 + $0x120] ss:$24 sps:$4 sm:$0xff]   ;;  %v2756_v4 = vld [vmem:[%s4978_s2 + $0xf4] ss:$24 sps:$4 sm:$0xff]   ;;  %v2762_v5 = vld [vmem:[%s4978_s2 + $0xf0] ss:$24 sps:$4 sm:$0xff]  }
   0x3   :  { %605 = vmatpush1.bf16.msra.mxu0 %v2738_v1  ;;  %v2768_v6 = vld [vmem:[%s4978_s2 + $0xc4] ss:$24 sps:$4 sm:$0xff]   ;;  %v2774_v7 = vld [vmem:[%s4978_s2 + $0xc0] ss:$24 sps:$4 sm:$0xff]   ;;  %v2780_v8 = vld [vmem:[%s4978_s2 + $0x94] ss:$24 sps:$4 sm:$0xff]  }
   0x4   :  { %606 = vmatprep.subr.bf16.mxu0 %v2744_v2  ;;  %v2785_v9 = vld [vmem:[%s4978_s2 + $0x90] ss:$24 sps:$4 sm:$0xff]   ;;  %v2791_v10 = vld [vmem:[%s4978_s2 + $0x15c] ss:$24 sps:$4 sm:$0xff]   ;;  %v2809_v13 = vld [vmem:[%s4978_s2 + $0x12c] ss:$24 sps:$4 sm:$0xff]  }
   0x5   :  { %v2796_v11 = vld [vmem:[%s4978_s2 + $0x158] ss:$24 sps:$4 sm:$0xff]   ;;  %v2802_v12 = vld [vmem:[%s4978_s2 + $0x64] ss:$24 sps:$4 sm:$0xff]   ;;  %645 = vmatprep.subr.bf16.mxu1 %v2791_v10  ;;  %v2814_v14 = vld [vmem:[%s4978_s2 + $0x128] ss:$24 sps:$4 sm:$0xff]  }
   0x6   :  { %646 = vmatpush1.bf16.msra.mxu1 %v2796_v11  ;;  %v2820_v15 = vld [vmem:[%s4978_s2 + $0x60] ss:$24 sps:$4 sm:$0xff]   ;;  %v2825_v16 = vld [vmem:[%s4978_s2 + $0x34] ss:$24 sps:$4 sm:$0xff]   ;;  %v2844_v19 = vld [vmem:[%s4978_s2 + $0x30] ss:$24 sps:$4 sm:$0xff]  }
   0x7   :  { %607 = vmatpush1.bf16.msra.mxu0 %v2750_v3  ;;  %647 = vmatprep.subr.bf16.mxu1 %v2809_v13  ;;  %v2832_v17 = vld [vmem:[%s4978_s2 + $0xfc] ss:$24 sps:$4 sm:$0xff]   ;;  %v2838_v18 = vld [vmem:[%s4978_s2 + $0xf8] ss:$24 sps:$4 sm:$0xff]   ;;  %v2850_v20 = vld [vmem:[%s4978_s2 + $0xcc] ss:$24 sps:$4 sm:$0xff]  }
   0x8   :  { %608 = vmatprep.subr.bf16.mxu0 %v2756_v4  ;;  %5196 = vst [vmem:[#allocation2_spill] sm:$0xff] %v2838_v18  ;;  %5197 = vst [vmem:[#allocation3_spill] sm:$0xff] %v2850_v20  ;;  %v2856_v21 = vld [vmem:[%s4978_s2 + $0x4] ss:$24 sps:$4 sm:$0xff]   ;;  %v2862_v22 = vld [vmem:[%s4978_s2 + $0xc8] ss:$24 sps:$4 sm:$0xff]  }
   0x9   :  { %5198 = vst [vmem:[#allocation4_spill] sm:$0xff] %v2862_v22  ;;  %v2868_v23 = vld [vmem:[%s4978_s2] ss:$24 sps:$4 sm:$0xff]   ;;  %v2874_v24 = vld [vmem:[%s4978_s2 + $0x9c] ss:$24 sps:$4 sm:$0xff]   ;;  %v2890_v27 = vld [vmem:[%s4979_s1 + $0x8] sm:$0xff] }
   0xa   :  { %648 = vmatpush1.bf16.msra.mxu1 %v2814_v14  ;;  %5199 = vst [vmem:[#allocation5_spill] sm:$0xff] %v2874_v24  ;;  %v2880_v25 = vld [vmem:[%s4978_s2 + $0x2d4] ss:$24 sps:$4 sm:$0xff]   ;;  %v2885_v26 = vld [vmem:[%s4978_s2 + $0x2d0] ss:$24 sps:$4 sm:$0xff]   ;;  %5200 = vst [vmem:[#allocation6_spill] sm:$0xff] %v2890_v27  ;;  %v2900_v29 = vpack.c.bf16 %v2890_v27, %v2890_v27 }
   0xb   :  { %609 = vmatpush1.bf16.msra.mxu0 %v2762_v5  ;;  %649 = vmatprep.subr.bf16.mxu1 %v2832_v17  ;;  %v2896_v28 = vld [vmem:[%s4978_s2 + $0x98] ss:$24 sps:$4 sm:$0xff]   ;;  %v2907_v30 = vld [vmem:[%s4978_s2 + $0x6c] ss:$24 sps:$4 sm:$0xff]   ;;  %v2926_v33 = vld [vmem:[%s4978_s2 + $0x68] ss:$24 sps:$4 sm:$0xff]  }
   0xc   :  { %610 = vmatprep.subr.bf16.mxu0 %v2768_v6  ;;  %5201 = vst [vmem:[#allocation7_spill] sm:$0xff] %v2896_v28  ;;  %5202 = vst [vmem:[#allocation8_spill] sm:$0xff] %v2907_v30  ;;  %v2913_v31 = vld [vmem:[%s4978_s2 + $0x2a4] ss:$24 sps:$4 sm:$0xff]   ;;  %636 = vmatprep.mubr.bf16.mxu0 %v2900_v29  ;;  %v2919_v32 = vld [vmem:[%s4978_s2 + $0x2a0] ss:$24 sps:$4 sm:$0xff]  }
   0xd   :  { %677 = vmatprep.mubr.bf16.mxu1 %v2900_v29  ;;  %5203 = vst [vmem:[#allocation9_spill] sm:$0xff] %v2926_v33  ;;  %v2933_v34 = vld [vmem:[%s4978_s2 + $0x3c] ss:$24 sps:$4 sm:$0xff]   ;;  %v2944_v36 = vld [vmem:[%s4978_s2 + $0x270] ss:$24 sps:$4 sm:$0xff]   ;;  %v3069_v57 = vld [vmem:[%s4979_s1] sm:$0xff] }
   0xe   :  { %650 = vmatpush1.bf16.msra.mxu1 %v2838_v18  ;;  %5204 = vst [vmem:[#allocation10_spill] sm:$0xff] %v2933_v34  ;;  %v2939_v35 = vld [vmem:[%s4978_s2 + $0x274] ss:$24 sps:$4 sm:$0xff]   ;;  %v2950_v37 = vld [vmem:[%s4978_s2 + $0x38] ss:$24 sps:$4 sm:$0xff]   ;;  %5215 = vst [vmem:[#allocation21_spill] sm:$0xff] %v3069_v57  ;;  %v3097_v62 = vpack.c.bf16 %v3069_v57, %v3069_v57 }
   0xf   :  { %611 = vmatpush1.bf16.msra.mxu0 %v2774_v7  ;;  %651 = vmatprep.subr.bf16.mxu1 %v2850_v20  ;;  %5205 = vst [vmem:[#allocation11_spill] sm:$0xff] %v2950_v37  ;;  %v2957_v38 = vld [vmem:[%s4978_s2 + $0xc] ss:$24 sps:$4 sm:$0xff]   ;;  %v2968_v40 = vld [vmem:[%s4978_s2 + $0x240] ss:$24 sps:$4 sm:$0xff]  }
  0x10   :  { %612 = vmatprep.subr.bf16.mxu0 %v2780_v8  ;;  %5206 = vst [vmem:[#allocation12_spill] sm:$0xff] %v2957_v38  ;;  %v2963_v39 = vld [vmem:[%s4978_s2 + $0x244] ss:$24 sps:$4 sm:$0xff]   ;;  %v2974_v41 = vld [vmem:[%s4978_s2 + $0x8] ss:$24 sps:$4 sm:$0xff]  }
  0x11   :  { %5207 = vst [vmem:[#allocation13_spill] sm:$0xff] %v2974_v41  ;;  %v2981_v42 = vld [vmem:[%s4978_s2 + $0x2dc] ss:$24 sps:$4 sm:$0xff]   ;;  %v2992_v44 = vld [vmem:[%s4978_s2 + $0x210] ss:$24 sps:$4 sm:$0xff]  }
  0x12   :  { %652 = vmatpush1.bf16.msra.mxu1 %v2862_v22  ;;  %5208 = vst [vmem:[#allocation14_spill] sm:$0xff] %v2981_v42  ;;  %v2987_v43 = vld [vmem:[%s4978_s2 + $0x214] ss:$24 sps:$4 sm:$0xff]   ;;  %v2998_v45 = vld [vmem:[%s4978_s2 + $0x2d8] ss:$24 sps:$4 sm:$0xff]  }
  0x13   :  { %613 = vmatpush1.bf16.msra.mxu0 %v2785_v9  ;;  %653 = vmatprep.subr.bf16.mxu1 %v2874_v24  ;;  %5209 = vst [vmem:[#allocation15_spill] sm:$0xff] %v2998_v45  ;;  %v3005_v46 = vld [vmem:[%s4978_s2 + $0x2ac] ss:$24 sps:$4 sm:$0xff]   ;;  %v3016_v48 = vld [vmem:[%s4978_s2 + $0x1e0] ss:$24 sps:$4 sm:$0xff]  }
  0x14   :  { %614 = vmatprep.subr.bf16.mxu0 %v2802_v12  ;;  %5210 = vst [vmem:[#allocation16_spill] sm:$0xff] %v3005_v46  ;;  %v3011_v47 = vld [vmem:[%s4978_s2 + $0x1e4] ss:$24 sps:$4 sm:$0xff]   ;;  %v3022_v49 = vld [vmem:[%s4978_s2 + $0x2a8] ss:$24 sps:$4 sm:$0xff]  }
  0x15   :  { %5211 = vst [vmem:[#allocation17_spill] sm:$0xff] %v3022_v49  ;;  %v3029_v50 = vld [vmem:[%s4978_s2 + $0x27c] ss:$24 sps:$4 sm:$0xff]   ;;  %v3040_v52 = vld [vmem:[%s4978_s2 + $0x1b0] ss:$24 sps:$4 sm:$0xff]  }
  0x16   :  { %654 = vmatpush1.bf16.msra.mxu1 %v2896_v28  ;;  %5212 = vst [vmem:[#allocation18_spill] sm:$0xff] %v3029_v50  ;;  %v3035_v51 = vld [vmem:[%s4978_s2 + $0x1b4] ss:$24 sps:$4 sm:$0xff]   ;;  %v3046_v53 = vld [vmem:[%s4978_s2 + $0x278] ss:$24 sps:$4 sm:$0xff]  }
  0x17   :  { %615 = vmatpush1.bf16.msra.mxu0 %v2820_v15  ;;  %655 = vmatprep.subr.bf16.mxu1 %v2907_v30  ;;  %5213 = vst [vmem:[#allocation19_spill] sm:$0xff] %v3046_v53  ;;  %v3053_v54 = vld [vmem:[%s4978_s2 + $0x24c] ss:$24 sps:$4 sm:$0xff]   ;;  %v3064_v56 = vld [vmem:[%s4978_s2 + $0x180] ss:$24 sps:$4 sm:$0xff]  }
  0x18   :  { %616 = vmatprep.subr.bf16.mxu0 %v2825_v16  ;;  %5214 = vst [vmem:[#allocation20_spill] sm:$0xff] %v3053_v54  ;;  %v3059_v55 = vld [vmem:[%s4978_s2 + $0x184] ss:$24 sps:$4 sm:$0xff]   ;;  %v3075_v58 = vld [vmem:[%s4978_s2 + $0x248] ss:$24 sps:$4 sm:$0xff]  }
  0x19   :  { %5216 = vst [vmem:[#allocation22_spill] sm:$0xff] %v3075_v58  ;;  %v3082_v59 = vld [vmem:[%s4978_s2 + $0x21c] ss:$24 sps:$4 sm:$0xff]   ;;  %v3093_v61 = vld [vmem:[%s4978_s2 + $0x160] ss:$24 sps:$4 sm:$0xff]  }
  0x1a   :  { %656 = vmatpush1.bf16.msra.mxu1 %v2926_v33  ;;  %5217 = vst [vmem:[#allocation23_spill] sm:$0xff] %v3082_v59  ;;  %v3088_v60 = vld [vmem:[%s4978_s2 + $0x164] ss:$24 sps:$4 sm:$0xff]   ;;  %5218 = vst [vmem:[#allocation24_spill] sm:$0xff] %v3093_v61  ;;  %v3103_v63 = vld [vmem:[%s4978_s2 + $0x218] ss:$24 sps:$4 sm:$0xff]  }
  0x1b   :  { %617 = vmatpush1.bf16.msra.mxu0 %v2844_v19  ;;  %657 = vmatprep.subr.bf16.mxu1 %v2933_v34  ;;  %5219 = vst [vmem:[#allocation25_spill] sm:$0xff] %v3103_v63  ;;  %v3110_v27 = vld [vmem:[%s4978_s2 + $0x1ec] ss:$24 sps:$4 sm:$0xff]  }
  0x1c   :  { %618 = vmatprep.subr.bf16.mxu0 %v2856_v21  ;;  %5220 = vst [vmem:[#allocation26_spill] sm:$0xff] %v3110_v27  ;;  %v3116_v57 = vld [vmem:[%s4978_s2 + $0x134] ss:$24 sps:$4 sm:$0xff]  }
  0x1d   :  { %5221 = vst [vmem:[#allocation27_spill] sm:$0xff] %v3116_v57 }
  0x1e   :  { %658 = vmatpush1.bf16.msra.mxu1 %v2950_v37 }
  0x1f   :  { %619 = vmatpush1.bf16.msra.mxu0 %v2868_v23  ;;  %659 = vmatprep.subr.bf16.mxu1 %v2957_v38 }
  0x20   :  { %620 = vmatprep.subr.bf16.mxu0 %v2880_v25 }
  0x22   :  { %660 = vmatpush1.bf16.msra.mxu1 %v2974_v41 }
  0x23   :  { %621 = vmatpush2.bf16.msra.mxu0 %v2885_v26  ;;  %661 = vmatprep.subr.bf16.mxu1 %v2981_v42 }
  0x24   :  { %622 = vmatprep.subr.bf16.mxu0 %v2913_v31 }
  0x26   :  { %662 = vmatpush2.bf16.msra.mxu1 %v2998_v45 }
  0x27   :  { %623 = vmatpush2.bf16.msra.mxu0 %v2919_v32  ;;  %663 = vmatprep.subr.bf16.mxu1 %v3005_v46 }
  0x28   :  { %624 = vmatprep.subr.bf16.mxu0 %v2939_v35 }
  0x2a   :  { %664 = vmatpush2.bf16.msra.mxu1 %v3022_v49 }
  0x2b   :  { %625 = vmatpush2.bf16.msra.mxu0 %v2944_v36  ;;  %665 = vmatprep.subr.bf16.mxu1 %v3029_v50 }
  0x2c   :  { %626 = vmatprep.subr.bf16.mxu0 %v2963_v39 }
  0x2e   :  { %666 = vmatpush2.bf16.msra.mxu1 %v3046_v53 }
  0x2f   :  { %627 = vmatpush2.bf16.msra.mxu0 %v2968_v40  ;;  %667 = vmatprep.subr.bf16.mxu1 %v3053_v54  ;;  %v3135_v54 = vld [vmem:[%s4978_s2 + $0x1bc] ss:$24 sps:$4 sm:$0xff]  }
  0x30   :  { %628 = vmatprep.subr.bf16.mxu0 %v2987_v43  ;;  %5224 = vst [vmem:[#allocation30_spill] sm:$0xff] %v3135_v54 }
  0x32   :  { %668 = vmatpush2.bf16.msra.mxu1 %v3075_v58  ;;  %v3129_v58 = vld [vmem:[%s4978_s2 + $0x130] ss:$24 sps:$4 sm:$0xff]  }
  0x33   :  { %629 = vmatpush2.bf16.msra.mxu0 %v2992_v44  ;;  %669 = vmatprep.subr.bf16.mxu1 %v3082_v59  ;;  %v3123_v59 = vld [vmem:[%s4978_s2 + $0x1e8] ss:$24 sps:$4 sm:$0xff]   ;;  %5223 = vst [vmem:[#allocation29_spill] sm:$0xff] %v3129_v58 }
  0x34   :  { %630 = vmatprep.subr.bf16.mxu0 %v3011_v47  ;;  %5222 = vst [vmem:[#allocation28_spill] sm:$0xff] %v3123_v59 }
  0x36   :  { %670 = vmatpush2.bf16.msra.mxu1 %v3103_v63  ;;  %v3141_v63 = vld [vmem:[%s4978_s2 + $0x104] ss:$24 sps:$4 sm:$0xff]  }
  0x37   :  { %631 = vmatpush2.bf16.msra.mxu0 %v3016_v48  ;;  %671 = vmatprep.subr.bf16.mxu1 %v3110_v27  ;;  %5225 = vst [vmem:[#allocation31_spill] sm:$0xff] %v3141_v63 }
  0x38   :  { %632 = vmatprep.subr.bf16.mxu0 %v3035_v51 }
  0x3a   :  { %672 = vmatpush2.bf16.msra.mxu1 %v3123_v59  ;;  %v3166_v59 = vld [vmem:[%s4978_s2 + $0xd4] ss:$24 sps:$4 sm:$0xff]  }
  0x3b   :  { %633 = vmatpush2.bf16.msra.mxu0 %v3040_v52  ;;  %673 = vmatprep.subr.bf16.mxu1 %v3135_v54  ;;  %5229 = vst [vmem:[#allocation35_spill] sm:$0xff] %v3166_v59  ;;  %v3178_v54 = vld [vmem:[%s4978_s2 + $0xd0] ss:$24 sps:$4 sm:$0xff]  }
  0x3c   :  { %634 = vmatprep.subr.bf16.mxu0 %v3059_v55  ;;  %5231 = vst [vmem:[#allocation37_spill] sm:$0xff] %v3178_v54 }
  0x3f   :  { %635 = vmatpush2.bf16.msra.mxu0 %v3064_v56 }
  0x40   :  { %686 = vmatprep.subr.bf16.mxu0 %v3088_v60 }
  0x42   :  { %637 = vmatmul.mubr.bf16.vlgmr.msra.gmra.mxu0 %v3097_v62 }
  0x43   :  { %687 = vmatpush1.bf16.msra.mxu0 %v3093_v61  ;;  %718 = vmatprep.mubr.bf16.mxu0 %v2900_v29  ;;  %v3148_v61 = vld [vmem:[%s4978_s2 + $0x1b8] ss:$24 sps:$4 sm:$0xff]   ;;  %v3160_v29 = vld [vmem:[%s4978_s2 + $0x18c] ss:$24 sps:$4 sm:$0xff]  }
  0x44   :  { %688 = vmatprep.subr.bf16.mxu0 %v3116_v57  ;;  %5226 = vst [vmem:[#allocation32_spill] sm:$0xff] %v3148_v61  ;;  %v3154_v57 = vld [vmem:[%s4978_s2 + $0x100] ss:$24 sps:$4 sm:$0xff]   ;;  %5228 = vst [vmem:[#allocation34_spill] sm:$0xff] %v3160_v29  ;;  %674 = vmatpush2.bf16.msra.mxu1 %v3148_v61 }
  0x45   :  { %5227 = vst [vmem:[#allocation33_spill] sm:$0xff] %v3154_v57  ;;  %675 = vmatprep.subr.bf16.mxu1 %v3160_v29 }
  0x47   :  { %689 = vmatpush1.bf16.msra.mxu0 %v3129_v58  ;;  %v3172_v58 = vld [vmem:[%s4978_s2 + $0x188] ss:$24 sps:$4 sm:$0xff]  }
  0x48   :  { %690 = vmatprep.subr.bf16.mxu0 %v3141_v63  ;;  %5230 = vst [vmem:[#allocation36_spill] sm:$0xff] %v3172_v58  ;;  %v3185_v63 = vld [vmem:[%s4978_s2 + $0xa4] ss:$24 sps:$4 sm:$0xff]   ;;  %676 = vmatpush2.bf16.msra.mxu1 %v3172_v58 }
  0x49   :  { %5232 = vst [vmem:[#allocation38_spill] sm:$0xff] %v3185_v63  ;;  %793 = vmatprep.subr.bf16.mxu1 %v2733_v0 }
  0x4b   :  { %691 = vmatpush1.bf16.msra.mxu0 %v3154_v57  ;;  %v3192_v57 = vld [vmem:[%s4978_s2 + $0xa0] ss:$24 sps:$4 sm:$0xff]   ;;  %678 = vmatmul.mubr.bf16.vlgmr.msra.gmra.mxu1 %v3097_v62 }
  0x4c   :  { %692 = vmatprep.subr.bf16.mxu0 %v3166_v59  ;;  %5233 = vst [vmem:[#allocation39_spill] sm:$0xff] %v3192_v57  ;;  %v3199_v59 = vld [vmem:[%s4978_s2 + $0x74] ss:$24 sps:$4 sm:$0xff]   ;;  %794 = vmatpush1.bf16.msra.mxu1 %v2738_v1 }
  0x4d   :  { %5234 = vst [vmem:[#allocation40_spill] sm:$0xff] %v3199_v59  ;;  %795 = vmatprep.subr.bf16.mxu1 %v2744_v2 }
  0x4f   :  { %693 = vmatpush1.bf16.msra.mxu0 %v3178_v54  ;;  %v3207_v54 = vld [vmem:[%s4978_s2 + $0x70] ss:$24 sps:$4 sm:$0xff]  }
  0x50   :  { %694 = vmatprep.subr.bf16.mxu0 %v3185_v63  ;;  %5235 = vst [vmem:[#allocation41_spill] sm:$0xff] %v3207_v54  ;;  %v3214_v63 = vld [vmem:[%s4978_s2 + $0x44] ss:$24 sps:$4 sm:$0xff]   ;;  %796 = vmatpush1.bf16.msra.mxu1 %v2750_v3 }
  0x51   :  { %5236 = vst [vmem:[#allocation42_spill] sm:$0xff] %v3214_v63  ;;  %797 = vmatprep.subr.bf16.mxu1 %v2756_v4 }
  0x53   :  { %695 = vmatpush1.bf16.msra.mxu0 %v3192_v57  ;;  %v3221_v57 = vld [vmem:[%s4978_s2 + $0x40] ss:$24 sps:$4 sm:$0xff]  }
  0x54   :  { %696 = vmatprep.subr.bf16.mxu0 %v3199_v59  ;;  %5237 = vst [vmem:[#allocation43_spill] sm:$0xff] %v3221_v57  ;;  %v3228_v59 = vld [vmem:[%s4978_s2 + $0x14] ss:$24 sps:$4 sm:$0xff]   ;;  %798 = vmatpush1.bf16.msra.mxu1 %v2762_v5 }
  0x55   :  { %5238 = vst [vmem:[#allocation44_spill] sm:$0xff] %v3228_v59  ;;  %799 = vmatprep.subr.bf16.mxu1 %v2768_v6 }
  0x57   :  { %697 = vmatpush1.bf16.msra.mxu0 %v3207_v54  ;;  %v3235_v54 = vld [vmem:[%s4978_s2 + $0x10] ss:$24 sps:$4 sm:$0xff]  }
  0x58   :  { %698 = vmatprep.subr.bf16.mxu0 %v3214_v63  ;;  %5239 = vst [vmem:[#allocation45_spill] sm:$0xff] %v3235_v54  ;;  %v3242_v63 = vld [vmem:[%s4978_s2 + $0x2e4] ss:$24 sps:$4 sm:$0xff]   ;;  %800 = vmatpush1.bf16.msra.mxu1 %v2774_v7 }
  0x59   :  { %5240 = vst [vmem:[#allocation46_spill] sm:$0xff] %v3242_v63  ;;  %801 = vmatprep.subr.bf16.mxu1 %v2780_v8 }
  0x5b   :  { %699 = vmatpush1.bf16.msra.mxu0 %v3221_v57  ;;  %v3249_v57 = vld [vmem:[%s4978_s2 + $0x2e0] ss:$24 sps:$4 sm:$0xff]  }
  0x5c   :  { %700 = vmatprep.subr.bf16.mxu0 %v3228_v59  ;;  %5241 = vst [vmem:[#allocation47_spill] sm:$0xff] %v3249_v57  ;;  %v3256_v59 = vld [vmem:[%s4978_s2 + $0x2b4] ss:$24 sps:$4 sm:$0xff]   ;;  %802 = vmatpush1.bf16.msra.mxu1 %v2785_v9 }
  0x5d   :  { %5242 = vst [vmem:[#allocation48_spill] sm:$0xff] %v3256_v59  ;;  %803 = vmatprep.subr.bf16.mxu1 %v2802_v12 }
  0x5f   :  { %701 = vmatpush1.bf16.msra.mxu0 %v3235_v54  ;;  %v3263_v54 = vld [vmem:[%s4978_s2 + $0x2b0] ss:$24 sps:$4 sm:$0xff]  }
  0x60   :  { %702 = vmatprep.subr.bf16.mxu0 %v3242_v63  ;;  %5243 = vst [vmem:[#allocation49_spill] sm:$0xff] %v3263_v54  ;;  %v3270_v63 = vld [vmem:[%s4978_s2 + $0x284] ss:$24 sps:$4 sm:$0xff]   ;;  %804 = vmatpush1.bf16.msra.mxu1 %v2820_v15 }
  0x61   :  { %5244 = vst [vmem:[#allocation50_spill] sm:$0xff] %v3270_v63  ;;  %805 = vmatprep.subr.bf16.mxu1 %v2825_v16 }
  0x63   :  { %703 = vmatpush2.bf16.msra.mxu0 %v3249_v57  ;;  %v3277_v57 = vld [vmem:[%s4978_s2 + $0x280] ss:$24 sps:$4 sm:$0xff]  }
  0x64   :  { %704 = vmatprep.subr.bf16.mxu0 %v3256_v59  ;;  %5245 = vst [vmem:[#allocation51_spill] sm:$0xff] %v3277_v57  ;;  %v3284_v59 = vld [vmem:[%s4978_s2 + $0x254] ss:$24 sps:$4 sm:$0xff]   ;;  %806 = vmatpush1.bf16.msra.mxu1 %v2844_v19 }
  0x65   :  { %5246 = vst [vmem:[#allocation52_spill] sm:$0xff] %v3284_v59  ;;  %807 = vmatprep.subr.bf16.mxu1 %v2856_v21 }
  0x67   :  { %705 = vmatpush2.bf16.msra.mxu0 %v3263_v54  ;;  %v3291_v54 = vld [vmem:[%s4978_s2 + $0x250] ss:$24 sps:$4 sm:$0xff]  }
  0x68   :  { %706 = vmatprep.subr.bf16.mxu0 %v3270_v63  ;;  %5247 = vst [vmem:[#allocation53_spill] sm:$0xff] %v3291_v54  ;;  %v3298_v63 = vld [vmem:[%s4978_s2 + $0x224] ss:$24 sps:$4 sm:$0xff]   ;;  %808 = vmatpush1.bf16.msra.mxu1 %v2868_v23 }
  0x69   :  { %5248 = vst [vmem:[#allocation54_spill] sm:$0xff] %v3298_v63  ;;  %809 = vmatprep.subr.bf16.mxu1 %v2880_v25 }
  0x6b   :  { %707 = vmatpush2.bf16.msra.mxu0 %v3277_v57  ;;  %v3305_v57 = vld [vmem:[%s4978_s2 + $0x220] ss:$24 sps:$4 sm:$0xff]  }
  0x6c   :  { %708 = vmatprep.subr.bf16.mxu0 %v3284_v59  ;;  %5249 = vst [vmem:[#allocation55_spill] sm:$0xff] %v3305_v57  ;;  %v3312_v59 = vld [vmem:[%s4978_s2 + $0x1f4] ss:$24 sps:$4 sm:$0xff]   ;;  %810 = vmatpush2.bf16.msra.mxu1 %v2885_v26 }
  0x6d   :  { %5250 = vst [vmem:[#allocation56_spill] sm:$0xff] %v3312_v59  ;;  %811 = vmatprep.subr.bf16.mxu1 %v2913_v31 }
  0x6f   :  { %709 = vmatpush2.bf16.msra.mxu0 %v3291_v54  ;;  %v3319_v54 = vld [vmem:[%s4978_s2 + $0x1f0] ss:$24 sps:$4 sm:$0xff]  }
  0x70   :  { %710 = vmatprep.subr.bf16.mxu0 %v3298_v63  ;;  %5251 = vst [vmem:[#allocation57_spill] sm:$0xff] %v3319_v54  ;;  %v3326_v63 = vld [vmem:[%s4978_s2 + $0x1c4] ss:$24 sps:$4 sm:$0xff]   ;;  %812 = vmatpush2.bf16.msra.mxu1 %v2919_v32 }
  0x71   :  { %813 = vmatprep.subr.bf16.mxu1 %v2939_v35 }
  0x73   :  { %711 = vmatpush2.bf16.msra.mxu0 %v3305_v57  ;;  %v3333_v57 = vld [vmem:[%s4978_s2 + $0x1c0] ss:$24 sps:$4 sm:$0xff]  }
  0x74   :  { %712 = vmatprep.subr.bf16.mxu0 %v3312_v59  ;;  %v3340_v59 = vld [vmem:[%s4978_s2 + $0x194] ss:$24 sps:$4 sm:$0xff]   ;;  %814 = vmatpush2.bf16.msra.mxu1 %v2944_v36 }
  0x75   :  { %815 = vmatprep.subr.bf16.mxu1 %v2963_v39 }
  0x77   :  { %713 = vmatpush2.bf16.msra.mxu0 %v3319_v54  ;;  %v3347_v54 = vld [vmem:[%s4978_s2 + $0x190] ss:$24 sps:$4 sm:$0xff]  }
  0x78   :  { %714 = vmatprep.subr.bf16.mxu0 %v3326_v63  ;;  %816 = vmatpush2.bf16.msra.mxu1 %v2968_v40 }
  0x79   :  { %817 = vmatprep.subr.bf16.mxu1 %v2987_v43 }
  0x7b   :  { %715 = vmatpush2.bf16.msra.mxu0 %v3333_v57 }
  0x7c   :  { %716 = vmatprep.subr.bf16.mxu0 %v3340_v59  ;;  %818 = vmatpush2.bf16.msra.mxu1 %v2992_v44 }
  0x7d   :  { %819 = vmatprep.subr.bf16.mxu1 %v3011_v47 }
  0x7f   :  { %717 = vmatpush2.bf16.msra.mxu0 %v3347_v54 }
  0x80   :  { %834 = vmatprep.subr.bf16.mxu0 %v2791_v10  ;;  %820 = vmatpush2.bf16.msra.mxu1 %v3016_v48 }
  0x81   :  { %821 = vmatprep.subr.bf16.mxu1 %v3035_v51 }
  0x82   :  { %719 = vmatmul.mubr.bf16.vlgmr.msra.gmra.mxu0 %v3097_v62  ;;  %v5252_v62 = vld [vmem:[#allocation20_spill] sm:$0xff] }
  0x83   :  { %835 = vmatpush1.bf16.msra.mxu0 %v2796_v11 }
  0x84   :  { %836 = vmatprep.subr.bf16.mxu0 %v2809_v13  ;;  %822 = vmatpush2.bf16.msra.mxu1 %v3040_v52 }
  0x85   :  { %823 = vmatprep.subr.bf16.mxu1 %v3059_v55 }
  0x87   :  { %837 = vmatpush1.bf16.msra.mxu0 %v2814_v14 }
  0x88   :  { %838 = vmatprep.subr.bf16.mxu0 %v2832_v17  ;;  %824 = vmatpush2.bf16.msra.mxu1 %v3064_v56 }
  0x89   :  { %875 = vmatprep.subr.bf16.mxu1 %v3088_v60 }
  0x8b   :  { %839 = vmatpush1.bf16.msra.mxu0 %v2838_v18 }
  0x8c   :  { %840 = vmatprep.subr.bf16.mxu0 %v2850_v20  ;;  %v5261_v20 = vld [vmem:[#allocation6_spill] sm:$0xff] }
  0x8f   :  { %841 = vmatpush1.bf16.msra.mxu0 %v2862_v22 }
  0x90   :  { %842 = vmatprep.subr.bf16.mxu0 %v2874_v24 }
  0x93   :  { %843 = vmatpush1.bf16.msra.mxu0 %v2896_v28 }
  0x94   :  { %844 = vmatprep.subr.bf16.mxu0 %v2907_v30 }
  0x97   :  { %845 = vmatpush1.bf16.msra.mxu0 %v2926_v33 }
  0x98   :  { %846 = vmatprep.subr.bf16.mxu0 %v2933_v34  ;;  %v5253_v34 = vld [vmem:[#allocation22_spill] sm:$0xff] }
  0x9b   :  { %847 = vmatpush1.bf16.msra.mxu0 %v2950_v37  ;;  %v5254_v37 = vld [vmem:[#allocation23_spill] sm:$0xff] }
  0x9c   :  { %848 = vmatprep.subr.bf16.mxu0 %v2957_v38  ;;  %v5255_v38 = vld [vmem:[#allocation25_spill] sm:$0xff] }
  0x9f   :  { %849 = vmatpush1.bf16.msra.mxu0 %v2974_v41 }
  0xa0   :  { %850 = vmatprep.subr.bf16.mxu0 %v2981_v42  ;;  %v5256_v42 = vld [vmem:[#allocation28_spill] sm:$0xff] }
  0xa3   :  { %851 = vmatpush2.bf16.msra.mxu0 %v2998_v45  ;;  %v5257_v45 = vld [vmem:[#allocation30_spill] sm:$0xff] }
  0xa4   :  { %852 = vmatprep.subr.bf16.mxu0 %v3005_v46 }
  0xa7   :  { %853 = vmatpush2.bf16.msra.mxu0 %v3022_v49 }
  0xa8   :  { %854 = vmatprep.subr.bf16.mxu0 %v3029_v50 }
  0xab   :  { %855 = vmatpush2.bf16.msra.mxu0 %v3046_v53 }
  0xac   :  { %856 = vmatprep.subr.bf16.mxu0 %v5252_v62 }
  0xaf   :  { %857 = vmatpush2.bf16.msra.mxu0 %v5253_v34 }
  0xb0   :  { %858 = vmatprep.subr.bf16.mxu0 %v5254_v37 }
  0xb3   :  { %859 = vmatpush2.bf16.msra.mxu0 %v5255_v38 }
  0xb4   :  { %860 = vmatprep.subr.bf16.mxu0 %v3110_v27 }
  0xb7   :  { %861 = vmatpush2.bf16.msra.mxu0 %v5256_v42 }
  0xb8   :  { %862 = vmatprep.subr.bf16.mxu0 %v5257_v45  ;;  %v116_v45 = vld [vmem:[%s4980_s0] sm:$0xff] }
  0xbb   :  { %863 = vmatpush2.bf16.msra.mxu0 %v3148_v61 }
  0xbc   :  { %864 = vmatprep.subr.bf16.mxu0 %v3160_v29  ;;  %v117_v29 = vld [vmem:[%s4980_s0 + $0x8] sm:$0xff] }
  0xbf   :  { %865 = vmatpush2.bf16.msra.mxu0 %v3172_v58 }
  0xc0   :  { %972 = vmatprep.subr.bf16.mxu0 %v2733_v0 }
 0x102   :  { %v638_v62 = vpop.f32.mrf.mxu0 }
 0x103   :  { %v727_v61 = vadd.f32 %v638_v62, %v116_v45 }
 0x104   :  { %v640_v34 = vpop.f32.mrf.mxu0 }
 0x105   :  { %v728_v58 = vadd.f32 %v640_v34, %v117_v29  ;;  %v2137_v42 = vmul.f32 -1.442695, %v727_v61 }
 0x106   :  { %v642_v53 = vpop.f32.mrf.mxu0 }
 0x107   :  { %v2138_v0 = vmul.f32 -1.442695, %v728_v58  ;;  %2369 = vpow2.f32 %v2137_v42  ;;  %v756_v58 = vlaneseq }
 0x108   :  { %v643_v37 = vpop.f32.mrf.mxu0 }
 0x109   :  { %v118_v37 = vld [vmem:[%s4980_s0 + $0x10] sm:$0xff]  ;;  %2371 = vpow2.f32 %v2138_v0  ;;  %v757_v61 = vshrl.u32 %v756_v58, 7 }
 0x10b   :  { %v679_v50 = vpop.f32.mrf.mxu1  ;;  %v758_v29 = vsub.s32 0, %v757_v61  ;;  %v762_v0 = vsub.s32 1, %v757_v61 }
 0x10d   :  { %v681_v38 = vpop.f32.mrf.mxu1 }
 0x10f   :  { %v683_v49 = vpop.f32.mrf.mxu1 }
 0x110   :  { %v741_v49 = vadd.f32 %v679_v50, %v118_v37  ;;  %v113_v50 = vld [vmem:[%s4981_s3] sm:$0x3] }
 0x111   :  { %v684_v27 = vpop.f32.mrf.mxu1 }
 0x112   :  { %v119_v27 = vld [vmem:[%s4980_s0 + $0x18] sm:$0xff]  ;;  %v2139_v53 = vmul.f32 -1.442695, %v741_v49  ;;  %v3413_v49 = vrot.slane %v113_v50, %v762_v0 }
 0x113   :  { %v742_v46 = vadd.f32 %v681_v38, %v119_v27  ;;  %v3411_v38 = vrot.slane %v113_v50, %v758_v29  ;;  %v121_v29 = vld [vmem:[%s4980_s0 + $0x28] sm:$0xff] }
 0x114   :  { %2373 = vpow2.f32 %v2139_v53  ;;  %v2370_v33 = vpop.eup %2369  ;;  %5259 = vst [vmem:[#allocation59_spill] sm:$0xff] %v3413_v49 }
 0x115   :  { %v2140_v41 = vmul.f32 -1.442695, %v742_v46  ;;  %v735_v34 = vadd.f32 1.0, %v2370_v33  ;;  %5258 = vst [vmem:[#allocation58_spill] sm:$0xff] %v3411_v38 }
 0x116   :  { %v2372_v45 = vpop.eup %2371 }
 0x117   :  { %2375 = vpow2.f32 %v2140_v41  ;;  %v736_v42 = vadd.f32 1.0, %v2372_v45  ;;  %v120_v45 = vld [vmem:[%s4980_s0 + $0x20] sm:$0xff] }
 0x118   :  { %2377 = vrcp.f32 %v735_v34 }
 0x119   :  { %2379 = vrcp.f32 %v736_v42 }
 0x121   :  { %v2374_v62 = vpop.eup %2373 }
 0x122   :  { %v749_v37 = vadd.f32 1.0, %v2374_v62 }
 0x124   :  { %v2376_v46 = vpop.eup %2375  ;;  %2381 = vrcp.f32 %v749_v37 }
 0x125   :  { %v750_v41 = vadd.f32 1.0, %v2376_v46  ;;  %v2378_v53 = vpop.eup %2377 }
 0x126   :  { %v2380_v61 = vpop.eup %2379 }
 0x127   :  { %2383 = vrcp.f32 %v750_v41 }
 0x142   :  { %v720_v33 = vpop.f32.mrf.mxu0 }
 0x143   :  { %v766_v27 = vadd.f32 %v3411_v38, %v720_v33  ;;  %v2382_v33 = vpop.eup %2381 }
 0x144   :  { %v722_v34 = vpop.f32.mrf.mxu0  ;;  %v774_v38 = vsub.f32 1.0, %v2382_v33  ;;  %v2384_v30 = vpop.eup %2383 }
 0x145   :  { %v768_v58 = vmul.f32 %v2378_v53, %v766_v27  ;;  %v767_v42 = vadd.f32 %v3413_v49, %v722_v34  ;;  %v775_v27 = vsub.f32 1.0, %v2384_v30  ;;  %v5260_v34 = vld [vmem:[#allocation21_spill] sm:$0xff]  ;;  %v779_v18 = vmul.f32 %v2384_v30, %v5261_v20  ;;  %v5265_v30 = vld [vmem:[#allocation31_spill] sm:$0xff] }
 0x146   :  { %v724_v62 = vpop.f32.mrf.mxu0  ;;  %v778_v49 = vmul.f32 %v2382_v33, %v5260_v34  ;;  %v5307_v33 = vld [vmem:[#allocation22_spill] sm:$0xff] }
 0x147   :  { %v770_v50 = vadd.f32 %v768_v58, %v120_v45  ;;  %v769_v0 = vmul.f32 %v2380_v61, %v767_v42  ;;  %v5268_v45 = vld [vmem:[#allocation37_spill] sm:$0xff]  ;;  %v5300_v42 = vld [vmem:[#allocation14_spill] sm:$0xff]  ;;  %v5301_v61 = vld [vmem:[#allocation15_spill] sm:$0xff] }
 0x148   :  { %v725_v37 = vpop.f32.mrf.mxu0  ;;  %v5295_v58 = vld [vmem:[#allocation9_spill] sm:$0xff]  ;;  %v5310_v34 = vld [vmem:[#allocation26_spill] sm:$0xff] }
 0x149   :  { %2385 = vtanh.f32 %v770_v50  ;;  %v771_v46 = vadd.f32 %v769_v0, %v121_v29  ;;  %v5302_v29 = vld [vmem:[#allocation16_spill] sm:$0xff]  ;;  %v5303_v50 = vld [vmem:[#allocation17_spill] sm:$0xff]  ;;  %v5304_v0 = vld [vmem:[#allocation18_spill] sm:$0xff] }
 0x14a   :  { %v5305_v37 = vld [vmem:[#allocation19_spill] sm:$0xff] }
 0x14b   :  { %2387 = vtanh.f32 %v771_v46  ;;  %v5306_v46 = vld [vmem:[#allocation20_spill] sm:$0xff] }
 0x156   :  { %v2386_v28 = vpop.eup %2385 }
 0x157   :  { %v776_v53 = vmul.f32 %v2386_v28, %v774_v38  ;;  %v5266_v38 = vld [vmem:[#allocation33_spill] sm:$0xff] }
 0x158   :  { %v2388_v24 = vpop.eup %2387 }
 0x159   :  { %v777_v22 = vmul.f32 %v2388_v24, %v775_v27  ;;  %v3425_v62 = vadd.f32 %v778_v49, %v776_v53  ;;  %v5264_v24 = vld [vmem:[#allocation29_spill] sm:$0xff]  ;;  %v5267_v49 = vld [vmem:[#allocation35_spill] sm:$0xff] }
 0x15a   :  { %v5308_v27 = vld [vmem:[#allocation23_spill] sm:$0xff]  ;;  %v5309_v53 = vld [vmem:[#allocation25_spill] sm:$0xff] }
 0x15b   :  { %v3427_v41 = vadd.f32 %v779_v18, %v777_v22  ;;  %782 = vst [vmem:[%s4982_s4] sm:$0xff] %v3425_v62  ;;  %v3441_v20 = vpack.c.bf16 %v3425_v62, %v3425_v62  ;;  %v5262_v18 = vld [vmem:[#allocation24_spill] sm:$0xff]  ;;  %v5263_v22 = vld [vmem:[#allocation27_spill] sm:$0xff] }
 0x15d   :  { %783 = vst [vmem:[%s4982_s4 + $0x8] sm:$0xff] %v3427_v41  ;;  %v792_v28 = vpack.c.bf16 %v3427_v41, %v3427_v41 }
 0x15f   :  { %825 = vmatprep.mubr.bf16.mxu1 %v792_v28  ;;  %866 = vmatprep.mubr.bf16.mxu0 %v792_v28 }
 0x160   :  { %826 = vmatmul.mubr.bf16.vlgmr.msra.gmra.mxu1 %v3441_v20  ;;  %867 = vmatmul.mubr.bf16.vlgmr.msra.gmra.mxu0 %v3441_v20 }
 0x161   :  { %876 = vmatpush1.bf16.msra.mxu1 %v5262_v18  ;;  %907 = vmatprep.mubr.bf16.mxu1 %v792_v28  ;;  %v5311_v28 = vld [vmem:[#allocation28_spill] sm:$0xff] }
 0x162   :  { %877 = vmatprep.subr.bf16.mxu1 %v5263_v22  ;;  %973 = vmatpush1.bf16.msra.mxu0 %v2738_v1  ;;  %v5269_v1 = vld [vmem:[#allocation38_spill] sm:$0xff] }
 0x163   :  { %974 = vmatprep.subr.bf16.mxu0 %v2744_v2  ;;  %v5270_v2 = vld [vmem:[#allocation39_spill] sm:$0xff] }
 0x165   :  { %878 = vmatpush1.bf16.msra.mxu1 %v5264_v24 }
 0x166   :  { %879 = vmatprep.subr.bf16.mxu1 %v5265_v30  ;;  %975 = vmatpush1.bf16.msra.mxu0 %v2750_v3  ;;  %v5271_v3 = vld [vmem:[#allocation40_spill] sm:$0xff] }
 0x167   :  { %976 = vmatprep.subr.bf16.mxu0 %v2756_v4  ;;  %v5272_v4 = vld [vmem:[#allocation41_spill] sm:$0xff] }
 0x169   :  { %880 = vmatpush1.bf16.msra.mxu1 %v5266_v38 }
 0x16a   :  { %881 = vmatprep.subr.bf16.mxu1 %v5267_v49  ;;  %977 = vmatpush1.bf16.msra.mxu0 %v2762_v5  ;;  %v5273_v5 = vld [vmem:[#allocation42_spill] sm:$0xff] }
 0x16b   :  { %978 = vmatprep.subr.bf16.mxu0 %v2768_v6  ;;  %v5274_v6 = vld [vmem:[#allocation43_spill] sm:$0xff] }
 0x16d   :  { %882 = vmatpush1.bf16.msra.mxu1 %v5268_v45 }
 0x16e   :  { %883 = vmatprep.subr.bf16.mxu1 %v5269_v1  ;;  %979 = vmatpush1.bf16.msra.mxu0 %v2774_v7  ;;  %v5275_v7 = vld [vmem:[#allocation44_spill] sm:$0xff] }
 0x16f   :  { %980 = vmatprep.subr.bf16.mxu0 %v2780_v8  ;;  %v5276_v8 = vld [vmem:[#allocation45_spill] sm:$0xff] }
 0x171   :  { %884 = vmatpush1.bf16.msra.mxu1 %v5270_v2 }
 0x172   :  { %885 = vmatprep.subr.bf16.mxu1 %v5271_v3  ;;  %981 = vmatpush1.bf16.msra.mxu0 %v2785_v9  ;;  %v5277_v9 = vld [vmem:[#allocation46_spill] sm:$0xff] }
 0x173   :  { %982 = vmatprep.subr.bf16.mxu0 %v2802_v12  ;;  %v5278_v12 = vld [vmem:[#allocation47_spill] sm:$0xff] }
 0x175   :  { %886 = vmatpush1.bf16.msra.mxu1 %v5272_v4 }
 0x176   :  { %887 = vmatprep.subr.bf16.mxu1 %v5273_v5  ;;  %983 = vmatpush1.bf16.msra.mxu0 %v2820_v15  ;;  %v5279_v15 = vld [vmem:[#allocation48_spill] sm:$0xff] }
 0x177   :  { %984 = vmatprep.subr.bf16.mxu0 %v2825_v16  ;;  %v5280_v16 = vld [vmem:[#allocation49_spill] sm:$0xff] }
 0x179   :  { %888 = vmatpush1.bf16.msra.mxu1 %v5274_v6 }
 0x17a   :  { %889 = vmatprep.subr.bf16.mxu1 %v5275_v7  ;;  %985 = vmatpush1.bf16.msra.mxu0 %v2844_v19  ;;  %v5281_v19 = vld [vmem:[#allocation50_spill] sm:$0xff] }
 0x17b   :  { %986 = vmatprep.subr.bf16.mxu0 %v2856_v21  ;;  %v5282_v21 = vld [vmem:[#allocation51_spill] sm:$0xff] }
 0x17d   :  { %890 = vmatpush1.bf16.msra.mxu1 %v5276_v8 }
 0x17e   :  { %891 = vmatprep.subr.bf16.mxu1 %v5277_v9  ;;  %987 = vmatpush1.bf16.msra.mxu0 %v2868_v23  ;;  %v5283_v23 = vld [vmem:[#allocation52_spill] sm:$0xff] }
 0x17f   :  { %988 = vmatprep.subr.bf16.mxu0 %v2880_v25  ;;  %v5284_v25 = vld [vmem:[#allocation53_spill] sm:$0xff] }
 0x181   :  { %892 = vmatpush2.bf16.msra.mxu1 %v5278_v12 }
 0x182   :  { %893 = vmatprep.subr.bf16.mxu1 %v5279_v15  ;;  %989 = vmatpush2.bf16.msra.mxu0 %v2885_v26  ;;  %v5285_v26 = vld [vmem:[#allocation54_spill] sm:$0xff] }
 0x183   :  { %990 = vmatprep.subr.bf16.mxu0 %v2913_v31  ;;  %v5286_v31 = vld [vmem:[#allocation55_spill] sm:$0xff] }
 0x185   :  { %894 = vmatpush2.bf16.msra.mxu1 %v5280_v16 }
 0x186   :  { %895 = vmatprep.subr.bf16.mxu1 %v5281_v19  ;;  %991 = vmatpush2.bf16.msra.mxu0 %v2919_v32  ;;  %v5287_v32 = vld [vmem:[#allocation56_spill] sm:$0xff] }
 0x187   :  { %992 = vmatprep.subr.bf16.mxu0 %v2939_v35  ;;  %v5288_v35 = vld [vmem:[#allocation57_spill] sm:$0xff] }
 0x189   :  { %896 = vmatpush2.bf16.msra.mxu1 %v5282_v21 }
 0x18a   :  { %897 = vmatprep.subr.bf16.mxu1 %v5283_v23  ;;  %993 = vmatpush2.bf16.msra.mxu0 %v2944_v36  ;;  %v5289_v36 = vld [vmem:[#allocation2_spill] sm:$0xff] }
 0x18b   :  { %994 = vmatprep.subr.bf16.mxu0 %v2963_v39  ;;  %v5290_v39 = vld [vmem:[#allocation3_spill] sm:$0xff] }
 0x18d   :  { %898 = vmatpush2.bf16.msra.mxu1 %v5284_v25 }
 0x18e   :  { %899 = vmatprep.subr.bf16.mxu1 %v5285_v26  ;;  %995 = vmatpush2.bf16.msra.mxu0 %v2968_v40  ;;  %v5291_v40 = vld [vmem:[#allocation4_spill] sm:$0xff] }
 0x18f   :  { %996 = vmatprep.subr.bf16.mxu0 %v2987_v43  ;;  %v5293_v43 = vld [vmem:[#allocation7_spill] sm:$0xff] }
 0x191   :  { %900 = vmatpush2.bf16.msra.mxu1 %v5286_v31 }
 0x192   :  { %901 = vmatprep.subr.bf16.mxu1 %v5287_v32  ;;  %997 = vmatpush2.bf16.msra.mxu0 %v2992_v44  ;;  %v5294_v44 = vld [vmem:[#allocation8_spill] sm:$0xff] }
 0x193   :  { %998 = vmatprep.subr.bf16.mxu0 %v3011_v47 }
 0x195   :  { %902 = vmatpush2.bf16.msra.mxu1 %v5288_v35 }
 0x196   :  { %903 = vmatprep.subr.bf16.mxu1 %v3326_v63  ;;  %999 = vmatpush2.bf16.msra.mxu0 %v3016_v48 }
 0x197   :  { %1000 = vmatprep.subr.bf16.mxu0 %v3035_v51 }
 0x199   :  { %904 = vmatpush2.bf16.msra.mxu1 %v3333_v57 }
 0x19a   :  { %905 = vmatprep.subr.bf16.mxu1 %v3340_v59  ;;  %1001 = vmatpush2.bf16.msra.mxu0 %v3040_v52 }
 0x19b   :  { %1002 = vmatprep.subr.bf16.mxu0 %v3059_v55 }
 0x19d   :  { %906 = vmatpush2.bf16.msra.mxu1 %v3347_v54 }
 0x19e   :  { %1013 = vmatprep.subr.bf16.mxu1 %v2791_v10  ;;  %1003 = vmatpush2.bf16.msra.mxu0 %v3064_v56  ;;  %v5292_v10 = vld [vmem:[#allocation5_spill] sm:$0xff] }
 0x19f   :  { %1054 = vmatprep.subr.bf16.mxu0 %v3088_v60 }
 0x1a0   :  { %908 = vmatmul.mubr.bf16.vlgmr.msra.gmra.mxu1 %v3441_v20  ;;  %v5312_v20 = vld [vmem:[#allocation30_spill] sm:$0xff] }
 0x1a1   :  { %1014 = vmatpush1.bf16.msra.mxu1 %v2796_v11  ;;  %v5296_v11 = vld [vmem:[#allocation10_spill] sm:$0xff] }
 0x1a2   :  { %1015 = vmatprep.subr.bf16.mxu1 %v2809_v13  ;;  %v5297_v13 = vld [vmem:[#allocation11_spill] sm:$0xff] }
 0x1a5   :  { %1016 = vmatpush1.bf16.msra.mxu1 %v2814_v14  ;;  %v5298_v14 = vld [vmem:[#allocation12_spill] sm:$0xff] }
 0x1a6   :  { %1017 = vmatprep.subr.bf16.mxu1 %v2832_v17  ;;  %v5299_v17 = vld [vmem:[#allocation13_spill] sm:$0xff] }
 0x1a9   :  { %1018 = vmatpush1.bf16.msra.mxu1 %v5289_v36  ;;  %v5313_v36 = vld [vmem:[#allocation32_spill] sm:$0xff] }
 0x1aa   :  { %1019 = vmatprep.subr.bf16.mxu1 %v5290_v39  ;;  %v5314_v39 = vld [vmem:[#allocation34_spill] sm:$0xff] }
 0x1ad   :  { %1020 = vmatpush1.bf16.msra.mxu1 %v5291_v40  ;;  %v5315_v40 = vld [vmem:[#allocation36_spill] sm:$0xff] }
 0x1ae   :  { %1021 = vmatprep.subr.bf16.mxu1 %v5292_v10  ;;  %v3544_v10 = vld [vmem:[%s4978_s2 + $0x154] ss:$24 sps:$4 sm:$0xff]  }
 0x1af   :  { %5316 = vst [vmem:[#allocation21_spill] sm:$0xff] %v3544_v10 }
 0x1b1   :  { %1022 = vmatpush1.bf16.msra.mxu1 %v5293_v43 }
 0x1b2   :  { %1023 = vmatprep.subr.bf16.mxu1 %v5294_v44 }
 0x1b5   :  { %1024 = vmatpush1.bf16.msra.mxu1 %v5295_v58 }
 0x1b6   :  { %1025 = vmatprep.subr.bf16.mxu1 %v5296_v11 }
 0x1b9   :  { %1026 = vmatpush1.bf16.msra.mxu1 %v5297_v13 }
 0x1ba   :  { %1027 = vmatprep.subr.bf16.mxu1 %v5298_v14 }
 0x1bd   :  { %1028 = vmatpush1.bf16.msra.mxu1 %v5299_v17 }
 0x1be   :  { %1029 = vmatprep.subr.bf16.mxu1 %v5300_v42 }
 0x1c1   :  { %1030 = vmatpush2.bf16.msra.mxu1 %v5301_v61  ;;  %v2141_v61 = vld [vmem:[%s4980_s0 + $0x30] sm:$0xff] }
 0x1c2   :  { %1031 = vmatprep.subr.bf16.mxu1 %v5302_v29  ;;  %v2142_v29 = vld [vmem:[%s4980_s0 + $0x38] sm:$0xff] }
 0x1c5   :  { %1032 = vmatpush2.bf16.msra.mxu1 %v5303_v50 }
 0x1c6   :  { %1033 = vmatprep.subr.bf16.mxu1 %v5304_v0 }
 0x1c9   :  { %1034 = vmatpush2.bf16.msra.mxu1 %v5305_v37 }
 0x1ca   :  { %1035 = vmatprep.subr.bf16.mxu1 %v5306_v46 }
 0x1cd   :  { %1036 = vmatpush2.bf16.msra.mxu1 %v5307_v33 }
 0x1ce   :  { %1037 = vmatprep.subr.bf16.mxu1 %v5308_v27 }
 0x1d1   :  { %1038 = vmatpush2.bf16.msra.mxu1 %v5309_v53 }
 0x1d2   :  { %1039 = vmatprep.subr.bf16.mxu1 %v5310_v34 }
 0x1d5   :  { %1040 = vmatpush2.bf16.msra.mxu1 %v5311_v28 }
 0x1d6   :  { %1041 = vmatprep.subr.bf16.mxu1 %v5312_v20 }
 0x1d9   :  { %1042 = vmatpush2.bf16.msra.mxu1 %v5313_v36  ;;  %v5317_v36 = vld [vmem:[#allocation58_spill] sm:$0xff] }
 0x1da   :  { %1043 = vmatprep.subr.bf16.mxu1 %v5314_v39 }
 0x1dd   :  { %1044 = vmatpush2.bf16.msra.mxu1 %v5315_v40 }
 0x1de   :  { %1151 = vmatprep.subr.bf16.mxu1 %v3544_v10 }
 0x220   :  { %v827_v43 = vpop.f32.mrf.mxu1  ;;  %v868_v44 = vpop.f32.mrf.mxu0 }
 0x221   :  { %v916_v50 = vadd.f32 %v2141_v61, %v827_v43 }
 0x222   :  { %v829_v58 = vpop.f32.mrf.mxu1  ;;  %v870_v11 = vpop.f32.mrf.mxu0 }
 0x223   :  { %v917_v0 = vadd.f32 %v2142_v29, %v829_v58  ;;  %v2147_v37 = vmul.f32 -1.442695, %v916_v50 }
 0x224   :  { %v831_v13 = vpop.f32.mrf.mxu1  ;;  %v872_v14 = vpop.f32.mrf.mxu0 }
 0x225   :  { %v2148_v46 = vmul.f32 -1.442695, %v917_v0  ;;  %2389 = vpow2.f32 %v2147_v37  ;;  %v2143_v13 = vld [vmem:[%s4980_s0 + $0x40] sm:$0xff]  ;;  %v2144_v14 = vld [vmem:[%s4980_s0 + $0x48] sm:$0xff] }
 0x226   :  { %v832_v17 = vpop.f32.mrf.mxu1  ;;  %v873_v42 = vpop.f32.mrf.mxu0 }
 0x227   :  { %2391 = vpow2.f32 %v2148_v46  ;;  %v930_v17 = vadd.f32 %v2143_v13, %v868_v44  ;;  %v931_v42 = vadd.f32 %v2144_v14, %v870_v11  ;;  %v2145_v44 = vld [vmem:[%s4980_s0 + $0x50] sm:$0xff]  ;;  %v2146_v14 = vld [vmem:[%s4980_s0 + $0x58] sm:$0xff] }
 0x229   :  { %v2149_v10 = vmul.f32 -1.442695, %v930_v17  ;;  %v2150_v40 = vmul.f32 -1.442695, %v931_v42 }
 0x22b   :  { %2393 = vpow2.f32 %v2149_v10 }
 0x22c   :  { %2395 = vpow2.f32 %v2150_v40 }
 0x232   :  { %v2390_v39 = vpop.eup %2389 }
 0x233   :  { %v924_v58 = vadd.f32 1.0, %v2390_v39  ;;  %v5318_v39 = vld [vmem:[#allocation59_spill] sm:$0xff] }
 0x234   :  { %v2392_v43 = vpop.eup %2391 }
 0x235   :  { %v925_v61 = vadd.f32 1.0, %v2392_v43  ;;  %2397 = vrcp.f32 %v924_v58 }
 0x237   :  { %2399 = vrcp.f32 %v925_v61 }
 0x238   :  { %v2394_v29 = vpop.eup %2393 }
 0x239   :  { %v2396_v50 = vpop.eup %2395  ;;  %v938_v0 = vadd.f32 1.0, %v2394_v29 }
 0x23a   :  { %v939_v46 = vadd.f32 1.0, %v2396_v50 }
 0x23b   :  { %2401 = vrcp.f32 %v938_v0 }
 0x23c   :  { %2403 = vrcp.f32 %v939_v46 }
 0x242   :  { %v2398_v28 = vpop.eup %2397 }
 0x244   :  { %v2400_v13 = vpop.eup %2399 }
 0x248   :  { %v2402_v29 = vpop.eup %2401 }
 0x249   :  { %v2404_v50 = vpop.eup %2403 }
 0x24a   :  { %v957_v34 = vmul.f32 %v2404_v50, %v3427_v41 }
 0x260   :  { %v909_v37 = vpop.f32.mrf.mxu1 }
 0x261   :  { %v944_v20 = vadd.f32 %v909_v37, %v5317_v36  ;;  %v952_v37 = vsub.f32 1.0, %v2402_v29 }
 0x262   :  { %v911_v11 = vpop.f32.mrf.mxu1 }
 0x263   :  { %v946_v10 = vmul.f32 %v2398_v28, %v944_v20  ;;  %v945_v40 = vadd.f32 %v911_v11, %v5318_v39  ;;  %v953_v28 = vsub.f32 1.0, %v2404_v50  ;;  %v956_v11 = vmul.f32 %v2402_v29, %v3425_v62  ;;  %v5351_v29 = vld [vmem:[#allocation30_spill] sm:$0xff]  ;;  %v5352_v50 = vld [vmem:[#allocation32_spill] sm:$0xff] }
 0x264   :  { %v913_v17 = vpop.f32.mrf.mxu1 }
 0x265   :  { %v948_v42 = vadd.f32 %v2145_v44, %v946_v10  ;;  %v947_v43 = vmul.f32 %v2400_v13, %v945_v40  ;;  %v3871_v44 = vld [vmem:[%s4978_s2 + $0x8] ss:$24 sps:$4 sm:$0xff]   ;;  %v3877_v10 = vld [vmem:[%s4978_s2 + $0x2dc] ss:$24 sps:$4 sm:$0xff]   ;;  %v3889_v40 = vld [vmem:[%s4978_s2 + $0x2ac] ss:$24 sps:$4 sm:$0xff]  }
 0x266   :  { %v914_v58 = vpop.f32.mrf.mxu1  ;;  %5341 = vst [vmem:[#allocation52_spill] sm:$0xff] %v3871_v44  ;;  %5342 = vst [vmem:[#allocation53_spill] sm:$0xff] %v3877_v10  ;;  %v3895_v13 = vld [vmem:[%s4978_s2 + $0x2a8] ss:$24 sps:$4 sm:$0xff]  }
 0x267   :  { %2405 = vtanh.f32 %v948_v42  ;;  %v949_v61 = vadd.f32 %v2146_v14, %v947_v43  ;;  %5344 = vst [vmem:[#allocation55_spill] sm:$0xff] %v3889_v40  ;;  %5345 = vst [vmem:[#allocation56_spill] sm:$0xff] %v3895_v13  ;;  %v3901_v14 = vld [vmem:[%s4978_s2 + $0x27c] ss:$24 sps:$4 sm:$0xff]   ;;  %v3907_v42 = vld [vmem:[%s4978_s2 + $0x278] ss:$24 sps:$4 sm:$0xff]  }
 0x268   :  { %5346 = vst [vmem:[#allocation57_spill] sm:$0xff] %v3901_v14  ;;  %5347 = vst [vmem:[#allocation2_spill] sm:$0xff] %v3907_v42  ;;  %v3913_v43 = vld [vmem:[%s4978_s2 + $0x24c] ss:$24 sps:$4 sm:$0xff]  }
 0x269   :  { %2407 = vtanh.f32 %v949_v61  ;;  %5348 = vst [vmem:[#allocation3_spill] sm:$0xff] %v3913_v43  ;;  %v5349_v58 = vld [vmem:[#allocation26_spill] sm:$0xff]  ;;  %v5350_v61 = vld [vmem:[#allocation28_spill] sm:$0xff] }
 0x274   :  { %v2406_v0 = vpop.eup %2405 }
 0x275   :  { %v954_v20 = vmul.f32 %v2406_v0, %v952_v37  ;;  %v5353_v37 = vld [vmem:[#allocation34_spill] sm:$0xff]  ;;  %v5354_v0 = vld [vmem:[#allocation36_spill] sm:$0xff] }
 0x276   :  { %v2408_v39 = vpop.eup %2407 }
 0x277   :  { %v955_v36 = vmul.f32 %v2408_v39, %v953_v28  ;;  %v3569_v17 = vadd.f32 %v956_v11, %v954_v20  ;;  %v3883_v39 = vld [vmem:[%s4978_s2 + $0x2d8] ss:$24 sps:$4 sm:$0xff]  }
 0x278   :  { %5343 = vst [vmem:[#allocation54_spill] sm:$0xff] %v3883_v39  ;;  %v5355_v28 = vld [vmem:[#allocation21_spill] sm:$0xff] }
 0x279   :  { %v3571_v46 = vadd.f32 %v957_v34, %v955_v36  ;;  %2151 = vst [vmem:[%s4982_s4 + $0x10] sm:$0xff] %v3569_v17  ;;  %v3585_v41 = vpack.c.bf16 %v3569_v17, %v3569_v17  ;;  %v3594_v34 = vld [vmem:[%s4978_s2 + $0x150] ss:$24 sps:$4 sm:$0xff]   ;;  %v3600_v36 = vld [vmem:[%s4978_s2 + $0x124] ss:$24 sps:$4 sm:$0xff]  }
 0x27b   :  { %2152 = vst [vmem:[%s4982_s4 + $0x18] sm:$0xff] %v3571_v46  ;;  %v971_v62 = vpack.c.bf16 %v3571_v46, %v3571_v46 }
 0x27d   :  { %1004 = vmatprep.mubr.bf16.mxu0 %v971_v62  ;;  %1045 = vmatprep.mubr.bf16.mxu1 %v971_v62 }
 0x27e   :  { %1005 = vmatmul.mubr.bf16.vlgmr.msra.gmra.mxu0 %v3585_v41  ;;  %1046 = vmatmul.mubr.bf16.vlgmr.msra.gmra.mxu1 %v3585_v41 }
 0x27f   :  { %1055 = vmatpush1.bf16.msra.mxu0 %v5262_v18  ;;  %1086 = vmatprep.mubr.bf16.mxu0 %v971_v62  ;;  %v3608_v18 = vld [vmem:[%s4978_s2 + $0x120] ss:$24 sps:$4 sm:$0xff]  }
 0x280   :  { %1056 = vmatprep.subr.bf16.mxu0 %v5263_v22  ;;  %1152 = vmatpush1.bf16.msra.mxu1 %v3594_v34  ;;  %v3614_v22 = vld [vmem:[%s4978_s2 + $0xf4] ss:$24 sps:$4 sm:$0xff]  }
 0x281   :  { %1153 = vmatprep.subr.bf16.mxu1 %v3600_v36 }
 0x283   :  { %1057 = vmatpush1.bf16.msra.mxu0 %v5264_v24  ;;  %v3622_v24 = vld [vmem:[%s4978_s2 + $0xf0] ss:$24 sps:$4 sm:$0xff]  }
 0x284   :  { %1058 = vmatprep.subr.bf16.mxu0 %v5265_v30  ;;  %1154 = vmatpush1.bf16.msra.mxu1 %v3608_v18  ;;  %v3628_v30 = vld [vmem:[%s4978_s2 + $0xc4] ss:$24 sps:$4 sm:$0xff]  }
 0x285   :  { %1155 = vmatprep.subr.bf16.mxu1 %v3614_v22 }
 0x287   :  { %1059 = vmatpush1.bf16.msra.mxu0 %v5266_v38  ;;  %v3636_v38 = vld [vmem:[%s4978_s2 + $0xc0] ss:$24 sps:$4 sm:$0xff]  }
 0x288   :  { %1060 = vmatprep.subr.bf16.mxu0 %v5267_v49  ;;  %1156 = vmatpush1.bf16.msra.mxu1 %v3622_v24  ;;  %v3642_v49 = vld [vmem:[%s4978_s2 + $0x94] ss:$24 sps:$4 sm:$0xff]  }
 0x289   :  { %1157 = vmatprep.subr.bf16.mxu1 %v3628_v30 }
 0x28b   :  { %1061 = vmatpush1.bf16.msra.mxu0 %v5268_v45  ;;  %v3650_v45 = vld [vmem:[%s4978_s2 + $0x90] ss:$24 sps:$4 sm:$0xff]  }
 0x28c   :  { %1062 = vmatprep.subr.bf16.mxu0 %v5269_v1  ;;  %1158 = vmatpush1.bf16.msra.mxu1 %v3636_v38  ;;  %v3656_v1 = vld [vmem:[%s4978_s2 + $0x64] ss:$24 sps:$4 sm:$0xff]  }
 0x28d   :  { %1159 = vmatprep.subr.bf16.mxu1 %v3642_v49 }
 0x28f   :  { %1063 = vmatpush1.bf16.msra.mxu0 %v5270_v2  ;;  %v3664_v2 = vld [vmem:[%s4978_s2 + $0x60] ss:$24 sps:$4 sm:$0xff]  }
 0x290   :  { %1064 = vmatprep.subr.bf16.mxu0 %v5271_v3  ;;  %1160 = vmatpush1.bf16.msra.mxu1 %v3650_v45  ;;  %v3670_v3 = vld [vmem:[%s4978_s2 + $0x34] ss:$24 sps:$4 sm:$0xff]  }
 0x291   :  { %1161 = vmatprep.subr.bf16.mxu1 %v3656_v1 }
 0x293   :  { %1065 = vmatpush1.bf16.msra.mxu0 %v5272_v4  ;;  %v3678_v4 = vld [vmem:[%s4978_s2 + $0x30] ss:$24 sps:$4 sm:$0xff]  }
 0x294   :  { %1066 = vmatprep.subr.bf16.mxu0 %v5273_v5  ;;  %1162 = vmatpush1.bf16.msra.mxu1 %v3664_v2  ;;  %v3684_v5 = vld [vmem:[%s4978_s2 + $0x4] ss:$24 sps:$4 sm:$0xff]  }
 0x295   :  { %1163 = vmatprep.subr.bf16.mxu1 %v3670_v3 }
 0x297   :  { %1067 = vmatpush1.bf16.msra.mxu0 %v5274_v6  ;;  %v3692_v6 = vld [vmem:[%s4978_s2] ss:$24 sps:$4 sm:$0xff]  }
 0x298   :  { %1068 = vmatprep.subr.bf16.mxu0 %v5275_v7  ;;  %1164 = vmatpush1.bf16.msra.mxu1 %v3678_v4  ;;  %v3698_v7 = vld [vmem:[%s4978_s2 + $0x2d4] ss:$24 sps:$4 sm:$0xff]  }
 0x299   :  { %1165 = vmatprep.subr.bf16.mxu1 %v3684_v5 }
 0x29b   :  { %1069 = vmatpush1.bf16.msra.mxu0 %v5276_v8  ;;  %v3706_v8 = vld [vmem:[%s4978_s2 + $0x2d0] ss:$24 sps:$4 sm:$0xff]  }
 0x29c   :  { %1070 = vmatprep.subr.bf16.mxu0 %v5277_v9  ;;  %1166 = vmatpush1.bf16.msra.mxu1 %v3692_v6  ;;  %v3712_v9 = vld [vmem:[%s4978_s2 + $0x2a4] ss:$24 sps:$4 sm:$0xff]  }
 0x29d   :  { %1167 = vmatprep.subr.bf16.mxu1 %v3698_v7  ;;  %5319 = vst [vmem:[#allocation6_spill] sm:$0xff] %v3712_v9 }
 0x29f   :  { %1071 = vmatpush2.bf16.msra.mxu0 %v5278_v12  ;;  %v3720_v12 = vld [vmem:[%s4978_s2 + $0x2a0] ss:$24 sps:$4 sm:$0xff]  }
 0x2a0   :  { %1072 = vmatprep.subr.bf16.mxu0 %v5279_v15  ;;  %1168 = vmatpush2.bf16.msra.mxu1 %v3706_v8  ;;  %v3726_v15 = vld [vmem:[%s4978_s2 + $0x274] ss:$24 sps:$4 sm:$0xff]  }
 0x2a1   :  { %1169 = vmatprep.subr.bf16.mxu1 %v3712_v9  ;;  %5320 = vst [vmem:[#allocation24_spill] sm:$0xff] %v3726_v15 }
 0x2a3   :  { %1073 = vmatpush2.bf16.msra.mxu0 %v5280_v16  ;;  %v3734_v16 = vld [vmem:[%s4978_s2 + $0x270] ss:$24 sps:$4 sm:$0xff]  }
 0x2a4   :  { %1074 = vmatprep.subr.bf16.mxu0 %v5281_v19  ;;  %1170 = vmatpush2.bf16.msra.mxu1 %v3720_v12  ;;  %5321 = vst [vmem:[#allocation27_spill] sm:$0xff] %v3734_v16  ;;  %v3740_v19 = vld [vmem:[%s4978_s2 + $0x244] ss:$24 sps:$4 sm:$0xff]  }
 0x2a5   :  { %1171 = vmatprep.subr.bf16.mxu1 %v3726_v15  ;;  %5322 = vst [vmem:[#allocation29_spill] sm:$0xff] %v3740_v19 }
 0x2a7   :  { %1075 = vmatpush2.bf16.msra.mxu0 %v5282_v21  ;;  %v3748_v21 = vld [vmem:[%s4978_s2 + $0x240] ss:$24 sps:$4 sm:$0xff]  }
 0x2a8   :  { %1076 = vmatprep.subr.bf16.mxu0 %v5283_v23  ;;  %1172 = vmatpush2.bf16.msra.mxu1 %v3734_v16  ;;  %5323 = vst [vmem:[#allocation31_spill] sm:$0xff] %v3748_v21  ;;  %v3754_v23 = vld [vmem:[%s4978_s2 + $0x214] ss:$24 sps:$4 sm:$0xff]  }
 0x2a9   :  { %1173 = vmatprep.subr.bf16.mxu1 %v3740_v19  ;;  %5324 = vst [vmem:[#allocation33_spill] sm:$0xff] %v3754_v23 }
 0x2ab   :  { %1077 = vmatpush2.bf16.msra.mxu0 %v5284_v25  ;;  %v3762_v25 = vld [vmem:[%s4978_s2 + $0x210] ss:$24 sps:$4 sm:$0xff]  }
 0x2ac   :  { %1078 = vmatprep.subr.bf16.mxu0 %v5285_v26  ;;  %1174 = vmatpush2.bf16.msra.mxu1 %v3748_v21  ;;  %5325 = vst [vmem:[#allocation35_spill] sm:$0xff] %v3762_v25  ;;  %v3847_v26 = vld [vmem:[%s4978_s2 + $0x68] ss:$24 sps:$4 sm:$0xff]  }
 0x2ad   :  { %1175 = vmatprep.subr.bf16.mxu1 %v3754_v23  ;;  %5337 = vst [vmem:[#allocation48_spill] sm:$0xff] %v3847_v26 }
 0x2af   :  { %1079 = vmatpush2.bf16.msra.mxu0 %v5286_v31  ;;  %v3853_v31 = vld [vmem:[%s4978_s2 + $0x3c] ss:$24 sps:$4 sm:$0xff]  }
 0x2b0   :  { %1080 = vmatprep.subr.bf16.mxu0 %v5287_v32  ;;  %1176 = vmatpush2.bf16.msra.mxu1 %v3762_v25  ;;  %5338 = vst [vmem:[#allocation49_spill] sm:$0xff] %v3853_v31  ;;  %v3859_v32 = vld [vmem:[%s4978_s2 + $0x38] ss:$24 sps:$4 sm:$0xff]  }
 0x2b1   :  { %1177 = vmatprep.subr.bf16.mxu1 %v3011_v47  ;;  %v3778_v47 = vld [vmem:[%s4978_s2 + $0x15c] ss:$24 sps:$4 sm:$0xff]   ;;  %5339 = vst [vmem:[#allocation50_spill] sm:$0xff] %v3859_v32 }
 0x2b2   :  { %5326 = vst [vmem:[#allocation37_spill] sm:$0xff] %v3778_v47 }
 0x2b3   :  { %1081 = vmatpush2.bf16.msra.mxu0 %v5288_v35  ;;  %v3865_v35 = vld [vmem:[%s4978_s2 + $0xc] ss:$24 sps:$4 sm:$0xff]  }
 0x2b4   :  { %1082 = vmatprep.subr.bf16.mxu0 %v3326_v63  ;;  %1178 = vmatpush2.bf16.msra.mxu1 %v3016_v48  ;;  %v3787_v48 = vld [vmem:[%s4978_s2 + $0x158] ss:$24 sps:$4 sm:$0xff]   ;;  %v3841_v63 = vld [vmem:[%s4978_s2 + $0x6c] ss:$24 sps:$4 sm:$0xff]   ;;  %5340 = vst [vmem:[#allocation51_spill] sm:$0xff] %v3865_v35 }
 0x2b5   :  { %1179 = vmatprep.subr.bf16.mxu1 %v3035_v51  ;;  %5327 = vst [vmem:[#allocation38_spill] sm:$0xff] %v3787_v48  ;;  %v3793_v51 = vld [vmem:[%s4978_s2 + $0x12c] ss:$24 sps:$4 sm:$0xff]   ;;  %5336 = vst [vmem:[#allocation47_spill] sm:$0xff] %v3841_v63 }
 0x2b6   :  { %5328 = vst [vmem:[#allocation39_spill] sm:$0xff] %v3793_v51 }
 0x2b7   :  { %1083 = vmatpush2.bf16.msra.mxu0 %v3333_v57  ;;  %v3823_v57 = vld [vmem:[%s4978_s2 + $0xc8] ss:$24 sps:$4 sm:$0xff]  }
 0x2b8   :  { %1084 = vmatprep.subr.bf16.mxu0 %v3340_v59  ;;  %1180 = vmatpush2.bf16.msra.mxu1 %v3040_v52  ;;  %v3799_v52 = vld [vmem:[%s4978_s2 + $0x128] ss:$24 sps:$4 sm:$0xff]   ;;  %5333 = vst [vmem:[#allocation44_spill] sm:$0xff] %v3823_v57  ;;  %v3829_v59 = vld [vmem:[%s4978_s2 + $0x9c] ss:$24 sps:$4 sm:$0xff]  }
 0x2b9   :  { %1181 = vmatprep.subr.bf16.mxu1 %v3059_v55  ;;  %5329 = vst [vmem:[#allocation40_spill] sm:$0xff] %v3799_v52  ;;  %v3811_v55 = vld [vmem:[%s4978_s2 + $0xf8] ss:$24 sps:$4 sm:$0xff]   ;;  %5334 = vst [vmem:[#allocation45_spill] sm:$0xff] %v3829_v59 }
 0x2ba   :  { %5331 = vst [vmem:[#allocation42_spill] sm:$0xff] %v3811_v55 }
 0x2bb   :  { %1085 = vmatpush2.bf16.msra.mxu0 %v3347_v54  ;;  %v3805_v54 = vld [vmem:[%s4978_s2 + $0xfc] ss:$24 sps:$4 sm:$0xff]  }
 0x2bc   :  { %1192 = vmatprep.subr.bf16.mxu0 %v3778_v47  ;;  %1182 = vmatpush2.bf16.msra.mxu1 %v3064_v56  ;;  %5330 = vst [vmem:[#allocation41_spill] sm:$0xff] %v3805_v54  ;;  %v3817_v56 = vld [vmem:[%s4978_s2 + $0xcc] ss:$24 sps:$4 sm:$0xff]  }
 0x2bd   :  { %1233 = vmatprep.subr.bf16.mxu1 %v3088_v60  ;;  %5332 = vst [vmem:[#allocation43_spill] sm:$0xff] %v3817_v56  ;;  %v3835_v60 = vld [vmem:[%s4978_s2 + $0x98] ss:$24 sps:$4 sm:$0xff]  }
 0x2be   :  { %1087 = vmatmul.mubr.bf16.vlgmr.msra.gmra.mxu0 %v3585_v41  ;;  %5335 = vst [vmem:[#allocation46_spill] sm:$0xff] %v3835_v60 }
 0x2bf   :  { %1193 = vmatpush1.bf16.msra.mxu0 %v3787_v48 }
 0x2c0   :  { %1194 = vmatprep.subr.bf16.mxu0 %v3793_v51 }
 0x2c3   :  { %1195 = vmatpush1.bf16.msra.mxu0 %v3799_v52 }
 0x2c4   :  { %1196 = vmatprep.subr.bf16.mxu0 %v3805_v54 }
 0x2c7   :  { %1197 = vmatpush1.bf16.msra.mxu0 %v3811_v55 }
 0x2c8   :  { %1198 = vmatprep.subr.bf16.mxu0 %v3817_v56 }
 0x2cb   :  { %1199 = vmatpush1.bf16.msra.mxu0 %v3823_v57 }
 0x2cc   :  { %1200 = vmatprep.subr.bf16.mxu0 %v3829_v59 }
 0x2cf   :  { %1201 = vmatpush1.bf16.msra.mxu0 %v3835_v60 }
 0x2d0   :  { %1202 = vmatprep.subr.bf16.mxu0 %v3841_v63 }
 0x2d3   :  { %1203 = vmatpush1.bf16.msra.mxu0 %v3847_v26 }
 0x2d4   :  { %1204 = vmatprep.subr.bf16.mxu0 %v3853_v31 }
 0x2d7   :  { %1205 = vmatpush1.bf16.msra.mxu0 %v3859_v32 }
 0x2d8   :  { %1206 = vmatprep.subr.bf16.mxu0 %v3865_v35 }
 0x2db   :  { %1207 = vmatpush1.bf16.msra.mxu0 %v3871_v44 }
 0x2dc   :  { %1208 = vmatprep.subr.bf16.mxu0 %v3877_v10 }
 0x2df   :  { %1209 = vmatpush2.bf16.msra.mxu0 %v3883_v39 }
 0x2e0   :  { %1210 = vmatprep.subr.bf16.mxu0 %v3889_v40 }
 0x2e3   :  { %1211 = vmatpush2.bf16.msra.mxu0 %v3895_v13  ;;  %v5356_v13 = vld [vmem:[#allocation58_spill] sm:$0xff] }
 0x2e4   :  { %1212 = vmatprep.subr.bf16.mxu0 %v3901_v14 }
 0x2e7   :  { %1213 = vmatpush2.bf16.msra.mxu0 %v3907_v42 }
 0x2e8   :  { %1214 = vmatprep.subr.bf16.mxu0 %v3913_v43 }
 0x2eb   :  { %1215 = vmatpush2.bf16.msra.mxu0 %v5307_v33 }
 0x2ec   :  { %1216 = vmatprep.subr.bf16.mxu0 %v5308_v27 }
 0x2ef   :  { %1217 = vmatpush2.bf16.msra.mxu0 %v5309_v53 }
 0x2f0   :  { %1218 = vmatprep.subr.bf16.mxu0 %v5349_v58 }
 0x2f3   :  { %1219 = vmatpush2.bf16.msra.mxu0 %v5350_v61  ;;  %v2153_v61 = vld [vmem:[%s4980_s0 + $0x60] sm:$0xff] }
 0x2f4   :  { %1220 = vmatprep.subr.bf16.mxu0 %v5351_v29  ;;  %v2154_v29 = vld [vmem:[%s4980_s0 + $0x68] sm:$0xff] }
 0x2f7   :  { %1221 = vmatpush2.bf16.msra.mxu0 %v5352_v50 }
 0x2f8   :  { %1222 = vmatprep.subr.bf16.mxu0 %v5353_v37 }
 0x2fb   :  { %1223 = vmatpush2.bf16.msra.mxu0 %v5354_v0 }
 0x2fc   :  { %1330 = vmatprep.subr.bf16.mxu0 %v5355_v28 }
 0x33e   :  { %v1006_v20 = vpop.f32.mrf.mxu0  ;;  %v1047_v33 = vpop.f32.mrf.mxu1 }
 0x33f   :  { %v1095_v50 = vadd.f32 %v2153_v61, %v1006_v20 }
 0x340   :  { %v1008_v11 = vpop.f32.mrf.mxu0  ;;  %v1049_v27 = vpop.f32.mrf.mxu1 }
 0x341   :  { %v1096_v37 = vadd.f32 %v2154_v29, %v1008_v11  ;;  %v2159_v0 = vmul.f32 -1.442695, %v1095_v50 }
 0x342   :  { %v1010_v62 = vpop.f32.mrf.mxu0  ;;  %v1051_v53 = vpop.f32.mrf.mxu1 }
 0x343   :  { %v2160_v28 = vmul.f32 -1.442695, %v1096_v37  ;;  %2409 = vpow2.f32 %v2159_v0  ;;  %v2155_v62 = vld [vmem:[%s4980_s0 + $0x70] sm:$0xff]  ;;  %v2156_v53 = vld [vmem:[%s4980_s0 + $0x78] sm:$0xff] }
 0x344   :  { %v1011_v41 = vpop.f32.mrf.mxu0  ;;  %v1052_v58 = vpop.f32.mrf.mxu1 }
 0x345   :  { %2411 = vpow2.f32 %v2160_v28  ;;  %v1109_v41 = vadd.f32 %v2155_v62, %v1047_v33  ;;  %v1110_v58 = vadd.f32 %v2156_v53, %v1049_v27  ;;  %v2157_v33 = vld [vmem:[%s4980_s0 + $0x80] sm:$0xff]  ;;  %v2158_v53 = vld [vmem:[%s4980_s0 + $0x88] sm:$0xff] }
 0x347   :  { %v2161_v43 = vmul.f32 -1.442695, %v1109_v41  ;;  %v2162_v42 = vmul.f32 -1.442695, %v1110_v58 }
 0x349   :  { %2413 = vpow2.f32 %v2161_v43 }
 0x34a   :  { %2415 = vpow2.f32 %v2162_v42 }
 0x350   :  { %v2410_v14 = vpop.eup %2409 }
 0x351   :  { %v1103_v11 = vadd.f32 1.0, %v2410_v14  ;;  %v5357_v14 = vld [vmem:[#allocation59_spill] sm:$0xff] }
 0x352   :  { %v2412_v20 = vpop.eup %2411 }
 0x353   :  { %v1104_v61 = vadd.f32 1.0, %v2412_v20  ;;  %2417 = vrcp.f32 %v1103_v11 }
 0x355   :  { %2419 = vrcp.f32 %v1104_v61 }
 0x356   :  { %v2414_v28 = vpop.eup %2413 }
 0x357   :  { %v2416_v29 = vpop.eup %2415  ;;  %v1117_v50 = vadd.f32 1.0, %v2414_v28 }
 0x358   :  { %v1118_v0 = vadd.f32 1.0, %v2416_v29 }
 0x359   :  { %2421 = vrcp.f32 %v1117_v50 }
 0x35a   :  { %2423 = vrcp.f32 %v1118_v0 }
 0x360   :  { %v2418_v39 = vpop.eup %2417 }
 0x362   :  { %v2420_v62 = vpop.eup %2419 }
 0x366   :  { %v2422_v28 = vpop.eup %2421 }
 0x367   :  { %v2424_v29 = vpop.eup %2423 }
 0x368   :  { %v1136_v10 = vmul.f32 %v2424_v29, %v3571_v46 }
 0x37e   :  { %v1088_v37 = vpop.f32.mrf.mxu0 }
 0x37f   :  { %v1123_v40 = vadd.f32 %v1088_v37, %v5356_v13  ;;  %v1131_v37 = vsub.f32 1.0, %v2422_v28 }
 0x380   :  { %v1090_v27 = vpop.f32.mrf.mxu0 }
 0x381   :  { %v1125_v43 = vmul.f32 %v2418_v39, %v1123_v40  ;;  %v1124_v42 = vadd.f32 %v1090_v27, %v5357_v14  ;;  %v1132_v39 = vsub.f32 1.0, %v2424_v29  ;;  %v1135_v27 = vmul.f32 %v2422_v28, %v3569_v17  ;;  %v4055_v28 = vld [vmem:[%s4978_s2 + $0x40] ss:$24 sps:$4 sm:$0xff]   ;;  %v4061_v29 = vld [vmem:[%s4978_s2 + $0x14] ss:$24 sps:$4 sm:$0xff]  }
 0x382   :  { %v1092_v41 = vpop.f32.mrf.mxu0 }
 0x383   :  { %v1127_v58 = vadd.f32 %v2157_v33, %v1125_v43  ;;  %v1126_v20 = vmul.f32 %v2420_v62, %v1124_v42  ;;  %v3985_v33 = vld [vmem:[%s4978_s2 + $0x130] ss:$24 sps:$4 sm:$0xff]   ;;  %v3991_v43 = vld [vmem:[%s4978_s2 + $0x104] ss:$24 sps:$4 sm:$0xff]   ;;  %v4005_v42 = vld [vmem:[%s4978_s2 + $0xd4] ss:$24 sps:$4 sm:$0xff]  }
 0x384   :  { %v1093_v11 = vpop.f32.mrf.mxu0  ;;  %v4013_v62 = vld [vmem:[%s4978_s2 + $0xd0] ss:$24 sps:$4 sm:$0xff]  }
 0x385   :  { %2425 = vtanh.f32 %v1127_v58  ;;  %v1128_v61 = vadd.f32 %v2158_v53, %v1126_v20  ;;  %v4019_v53 = vld [vmem:[%s4978_s2 + $0xa4] ss:$24 sps:$4 sm:$0xff]   ;;  %v4027_v58 = vld [vmem:[%s4978_s2 + $0xa0] ss:$24 sps:$4 sm:$0xff]   ;;  %v4033_v20 = vld [vmem:[%s4978_s2 + $0x74] ss:$24 sps:$4 sm:$0xff]  }
 0x386   :  { %v4041_v11 = vld [vmem:[%s4978_s2 + $0x70] ss:$24 sps:$4 sm:$0xff]  }
 0x387   :  { %2427 = vtanh.f32 %v1128_v61  ;;  %v4047_v61 = vld [vmem:[%s4978_s2 + $0x44] ss:$24 sps:$4 sm:$0xff]  }
 0x392   :  { %v2426_v50 = vpop.eup %2425 }
 0x393   :  { %v1133_v40 = vmul.f32 %v2426_v50, %v1131_v37  ;;  %v4069_v37 = vld [vmem:[%s4978_s2 + $0x10] ss:$24 sps:$4 sm:$0xff]   ;;  %v4075_v50 = vld [vmem:[%s4978_s2 + $0x2e4] ss:$24 sps:$4 sm:$0xff]  }
 0x394   :  { %v2428_v14 = vpop.eup %2427 }
 0x395   :  { %v1134_v13 = vmul.f32 %v2428_v14, %v1132_v39  ;;  %v3948_v41 = vadd.f32 %v1135_v27, %v1133_v40  ;;  %v3999_v14 = vld [vmem:[%s4978_s2 + $0x100] ss:$24 sps:$4 sm:$0xff]   ;;  %v4089_v40 = vld [vmem:[%s4978_s2 + $0x2b4] ss:$24 sps:$4 sm:$0xff]   ;;  %v4097_v27 = vld [vmem:[%s4978_s2 + $0x2b0] ss:$24 sps:$4 sm:$0xff]  }
 0x396   :  { %v4083_v39 = vld [vmem:[%s4978_s2 + $0x2e0] ss:$24 sps:$4 sm:$0xff]   ;;  %5358 = vst [vmem:[#allocation4_spill] sm:$0xff] %v4097_v27 }
 0x397   :  { %v3950_v0 = vadd.f32 %v1136_v10, %v1134_v13  ;;  %2163 = vst [vmem:[%s4982_s4 + $0x20] sm:$0xff] %v3948_v41  ;;  %v3964_v46 = vpack.c.bf16 %v3948_v41, %v3948_v41  ;;  %v3971_v10 = vld [vmem:[%s4978_s2 + $0x160] ss:$24 sps:$4 sm:$0xff]   ;;  %v3977_v13 = vld [vmem:[%s4978_s2 + $0x134] ss:$24 sps:$4 sm:$0xff]  }
 0x399   :  { %2164 = vst [vmem:[%s4982_s4 + $0x28] sm:$0xff] %v3950_v0  ;;  %v1150_v17 = vpack.c.bf16 %v3950_v0, %v3950_v0 }
 0x39b   :  { %1183 = vmatprep.mubr.bf16.mxu1 %v1150_v17  ;;  %1224 = vmatprep.mubr.bf16.mxu0 %v1150_v17 }
 0x39c   :  { %1184 = vmatmul.mubr.bf16.vlgmr.msra.gmra.mxu1 %v3964_v46  ;;  %1225 = vmatmul.mubr.bf16.vlgmr.msra.gmra.mxu0 %v3964_v46 }
 0x39d   :  { %1234 = vmatpush1.bf16.msra.mxu1 %v3971_v10  ;;  %1265 = vmatprep.mubr.bf16.mxu1 %v1150_v17  ;;  %v4103_v17 = vld [vmem:[%s4978_s2 + $0x284] ss:$24 sps:$4 sm:$0xff]  }
 0x39e   :  { %1235 = vmatprep.subr.bf16.mxu1 %v3977_v13  ;;  %1331 = vmatpush1.bf16.msra.mxu0 %v3594_v34 }
 0x39f   :  { %1332 = vmatprep.subr.bf16.mxu0 %v3600_v36 }
 0x3a1   :  { %1236 = vmatpush1.bf16.msra.mxu1 %v3985_v33 }
 0x3a2   :  { %1237 = vmatprep.subr.bf16.mxu1 %v3991_v43  ;;  %1333 = vmatpush1.bf16.msra.mxu0 %v3608_v18 }
 0x3a3   :  { %1334 = vmatprep.subr.bf16.mxu0 %v3614_v22 }
 0x3a5   :  { %1238 = vmatpush1.bf16.msra.mxu1 %v3999_v14 }
 0x3a6   :  { %1239 = vmatprep.subr.bf16.mxu1 %v4005_v42  ;;  %1335 = vmatpush1.bf16.msra.mxu0 %v3622_v24 }
 0x3a7   :  { %1336 = vmatprep.subr.bf16.mxu0 %v3628_v30 }
 0x3a9   :  { %1240 = vmatpush1.bf16.msra.mxu1 %v4013_v62 }
 0x3aa   :  { %1241 = vmatprep.subr.bf16.mxu1 %v4019_v53  ;;  %1337 = vmatpush1.bf16.msra.mxu0 %v3636_v38 }
 0x3ab   :  { %1338 = vmatprep.subr.bf16.mxu0 %v3642_v49 }
 0x3ad   :  { %1242 = vmatpush1.bf16.msra.mxu1 %v4027_v58 }
 0x3ae   :  { %1243 = vmatprep.subr.bf16.mxu1 %v4033_v20  ;;  %1339 = vmatpush1.bf16.msra.mxu0 %v3650_v45 }
 0x3af   :  { %1340 = vmatprep.subr.bf16.mxu0 %v3656_v1 }
 0x3b1   :  { %1244 = vmatpush1.bf16.msra.mxu1 %v4041_v11 }
 0x3b2   :  { %1245 = vmatprep.subr.bf16.mxu1 %v4047_v61  ;;  %1341 = vmatpush1.bf16.msra.mxu0 %v3664_v2 }
 0x3b3   :  { %1342 = vmatprep.subr.bf16.mxu0 %v3670_v3 }
 0x3b5   :  { %1246 = vmatpush1.bf16.msra.mxu1 %v4055_v28 }
 0x3b6   :  { %1247 = vmatprep.subr.bf16.mxu1 %v4061_v29  ;;  %1343 = vmatpush1.bf16.msra.mxu0 %v3678_v4 }
 0x3b7   :  { %1344 = vmatprep.subr.bf16.mxu0 %v3684_v5 }
 0x3b9   :  { %1248 = vmatpush1.bf16.msra.mxu1 %v4069_v37 }
 0x3ba   :  { %1249 = vmatprep.subr.bf16.mxu1 %v4075_v50  ;;  %1345 = vmatpush1.bf16.msra.mxu0 %v3692_v6 }
 0x3bb   :  { %1346 = vmatprep.subr.bf16.mxu0 %v3698_v7 }
 0x3bd   :  { %1250 = vmatpush2.bf16.msra.mxu1 %v4083_v39 }
 0x3be   :  { %1251 = vmatprep.subr.bf16.mxu1 %v4089_v40  ;;  %1347 = vmatpush2.bf16.msra.mxu0 %v3706_v8 }
 0x3bf   :  { %1348 = vmatprep.subr.bf16.mxu0 %v3712_v9  ;;  %v4111_v9 = vld [vmem:[%s4978_s2 + $0x280] ss:$24 sps:$4 sm:$0xff]  }
 0x3c0   :  { %5359 = vst [vmem:[#allocation5_spill] sm:$0xff] %v4111_v9 }
 0x3c1   :  { %1252 = vmatpush2.bf16.msra.mxu1 %v4097_v27  ;;  %v4117_v27 = vld [vmem:[%s4978_s2 + $0x254] ss:$24 sps:$4 sm:$0xff]  }
 0x3c2   :  { %1253 = vmatprep.subr.bf16.mxu1 %v4103_v17  ;;  %1349 = vmatpush2.bf16.msra.mxu0 %v3720_v12  ;;  %5360 = vst [vmem:[#allocation7_spill] sm:$0xff] %v4117_v27 }
 0x3c3   :  { %1350 = vmatprep.subr.bf16.mxu0 %v3726_v15  ;;  %v4125_v15 = vld [vmem:[%s4978_s2 + $0x250] ss:$24 sps:$4 sm:$0xff]  }
 0x3c4   :  { %5361 = vst [vmem:[#allocation8_spill] sm:$0xff] %v4125_v15 }
 0x3c5   :  { %1254 = vmatpush2.bf16.msra.mxu1 %v4111_v9  ;;  %v4131_v9 = vld [vmem:[%s4978_s2 + $0x224] ss:$24 sps:$4 sm:$0xff]  }
 0x3c6   :  { %1255 = vmatprep.subr.bf16.mxu1 %v4117_v27  ;;  %1351 = vmatpush2.bf16.msra.mxu0 %v3734_v16  ;;  %5362 = vst [vmem:[#allocation9_spill] sm:$0xff] %v4131_v9 }
 0x3c7   :  { %1352 = vmatprep.subr.bf16.mxu0 %v3740_v19  ;;  %v4139_v19 = vld [vmem:[%s4978_s2 + $0x220] ss:$24 sps:$4 sm:$0xff]  }
 0x3c8   :  { %5363 = vst [vmem:[#allocation10_spill] sm:$0xff] %v4139_v19 }
 0x3c9   :  { %1256 = vmatpush2.bf16.msra.mxu1 %v4125_v15  ;;  %v4145_v15 = vld [vmem:[%s4978_s2 + $0x1f4] ss:$24 sps:$4 sm:$0xff]  }
 0x3ca   :  { %1257 = vmatprep.subr.bf16.mxu1 %v4131_v9  ;;  %1353 = vmatpush2.bf16.msra.mxu0 %v3748_v21  ;;  %5364 = vst [vmem:[#allocation11_spill] sm:$0xff] %v4145_v15 }
 0x3cb   :  { %1354 = vmatprep.subr.bf16.mxu0 %v3754_v23  ;;  %v4152_v23 = vld [vmem:[%s4978_s2 + $0x1e4] ss:$24 sps:$4 sm:$0xff]  }
 0x3cc   :  { %5365 = vst [vmem:[#allocation12_spill] sm:$0xff] %v4152_v23 }
 0x3cd   :  { %1258 = vmatpush2.bf16.msra.mxu1 %v4139_v19  ;;  %v4158_v19 = vld [vmem:[%s4978_s2 + $0x1f0] ss:$24 sps:$4 sm:$0xff]  }
 0x3ce   :  { %1259 = vmatprep.subr.bf16.mxu1 %v4145_v15  ;;  %1355 = vmatpush2.bf16.msra.mxu0 %v3762_v25  ;;  %5366 = vst [vmem:[#allocation13_spill] sm:$0xff] %v4158_v19  ;;  %v4164_v15 = vld [vmem:[%s4978_s2 + $0x1c4] ss:$24 sps:$4 sm:$0xff]   ;;  %v4170_v25 = vld [vmem:[%s4978_s2 + $0x1e0] ss:$24 sps:$4 sm:$0xff]  }
 0x3cf   :  { %1356 = vmatprep.subr.bf16.mxu0 %v4152_v23  ;;  %5367 = vst [vmem:[#allocation14_spill] sm:$0xff] %v4164_v15  ;;  %5368 = vst [vmem:[#allocation15_spill] sm:$0xff] %v4170_v25  ;;  %v4176_v23 = vld [vmem:[%s4978_s2 + $0x1b4] ss:$24 sps:$4 sm:$0xff]  }
 0x3d0   :  { %5369 = vst [vmem:[#allocation16_spill] sm:$0xff] %v4176_v23 }
 0x3d1   :  { %1260 = vmatpush2.bf16.msra.mxu1 %v4158_v19  ;;  %v4182_v19 = vld [vmem:[%s4978_s2 + $0x1c0] ss:$24 sps:$4 sm:$0xff]  }
 0x3d2   :  { %1261 = vmatprep.subr.bf16.mxu1 %v4164_v15  ;;  %1357 = vmatpush2.bf16.msra.mxu0 %v4170_v25  ;;  %5370 = vst [vmem:[#allocation17_spill] sm:$0xff] %v4182_v19  ;;  %v4188_v15 = vld [vmem:[%s4978_s2 + $0x194] ss:$24 sps:$4 sm:$0xff]   ;;  %v4194_v25 = vld [vmem:[%s4978_s2 + $0x1b0] ss:$24 sps:$4 sm:$0xff]  }
 0x3d3   :  { %1358 = vmatprep.subr.bf16.mxu0 %v4176_v23  ;;  %5371 = vst [vmem:[#allocation18_spill] sm:$0xff] %v4188_v15  ;;  %5372 = vst [vmem:[#allocation19_spill] sm:$0xff] %v4194_v25  ;;  %v4200_v23 = vld [vmem:[%s4978_s2 + $0x184] ss:$24 sps:$4 sm:$0xff]  }
 0x3d4   :  { %5373 = vst [vmem:[#allocation20_spill] sm:$0xff] %v4200_v23 }
 0x3d5   :  { %1262 = vmatpush2.bf16.msra.mxu1 %v4182_v19  ;;  %v4206_v19 = vld [vmem:[%s4978_s2 + $0x190] ss:$24 sps:$4 sm:$0xff]  }
 0x3d6   :  { %1263 = vmatprep.subr.bf16.mxu1 %v4188_v15  ;;  %1359 = vmatpush2.bf16.msra.mxu0 %v4194_v25  ;;  %5374 = vst [vmem:[#allocation22_spill] sm:$0xff] %v4206_v19  ;;  %v4213_v25 = vld [vmem:[%s4978_s2 + $0x180] ss:$24 sps:$4 sm:$0xff]  }
 0x3d7   :  { %1360 = vmatprep.subr.bf16.mxu0 %v4200_v23  ;;  %5375 = vst [vmem:[#allocation23_spill] sm:$0xff] %v4213_v25  ;;  %v4219_v23 = vld [vmem:[%s4978_s2 + $0x164] ss:$24 sps:$4 sm:$0xff]  }
 0x3d8   :  { %5376 = vst [vmem:[#allocation25_spill] sm:$0xff] %v4219_v23 }
 0x3d9   :  { %1264 = vmatpush2.bf16.msra.mxu1 %v4206_v19 }
 0x3da   :  { %1371 = vmatprep.subr.bf16.mxu1 %v3778_v47  ;;  %1361 = vmatpush2.bf16.msra.mxu0 %v4213_v25  ;;  %v5394_v25 = vld [vmem:[#allocation58_spill] sm:$0xff] }
 0x3db   :  { %1412 = vmatprep.subr.bf16.mxu0 %v4219_v23 }
 0x3dc   :  { %1266 = vmatmul.mubr.bf16.vlgmr.msra.gmra.mxu1 %v3964_v46  ;;  %v5377_v46 = vld [vmem:[#allocation53_spill] sm:$0xff] }
 0x3dd   :  { %1372 = vmatpush1.bf16.msra.mxu1 %v3787_v48 }
 0x3de   :  { %1373 = vmatprep.subr.bf16.mxu1 %v3793_v51 }
 0x3e1   :  { %1374 = vmatpush1.bf16.msra.mxu1 %v3799_v52 }
 0x3e2   :  { %1375 = vmatprep.subr.bf16.mxu1 %v3805_v54 }
 0x3e5   :  { %1376 = vmatpush1.bf16.msra.mxu1 %v3811_v55  ;;  %v2166_v55 = vld [vmem:[%s4980_s0 + $0x98] sm:$0xff] }
 0x3e6   :  { %1377 = vmatprep.subr.bf16.mxu1 %v3817_v56  ;;  %v5378_v56 = vld [vmem:[#allocation54_spill] sm:$0xff] }
 0x3e9   :  { %1378 = vmatpush1.bf16.msra.mxu1 %v3823_v57  ;;  %v5379_v57 = vld [vmem:[#allocation55_spill] sm:$0xff] }
 0x3ea   :  { %1379 = vmatprep.subr.bf16.mxu1 %v3829_v59  ;;  %v5380_v59 = vld [vmem:[#allocation56_spill] sm:$0xff] }
 0x3ed   :  { %1380 = vmatpush1.bf16.msra.mxu1 %v3835_v60  ;;  %v5381_v60 = vld [vmem:[#allocation57_spill] sm:$0xff] }
 0x3ee   :  { %1381 = vmatprep.subr.bf16.mxu1 %v3841_v63  ;;  %v5382_v63 = vld [vmem:[#allocation2_spill] sm:$0xff] }
 0x3f1   :  { %1382 = vmatpush1.bf16.msra.mxu1 %v3847_v26  ;;  %v5383_v26 = vld [vmem:[#allocation3_spill] sm:$0xff] }
 0x3f2   :  { %1383 = vmatprep.subr.bf16.mxu1 %v3853_v31 }
 0x3f5   :  { %1384 = vmatpush1.bf16.msra.mxu1 %v3859_v32 }
 0x3f6   :  { %1385 = vmatprep.subr.bf16.mxu1 %v3865_v35  ;;  %v4248_v35 = vld [vmem:[%s4978_s2 + $0x248] ss:$24 sps:$4 sm:$0xff]  }
 0x3f7   :  { %5384 = vst [vmem:[#allocation26_spill] sm:$0xff] %v4248_v35 }
 0x3f9   :  { %1386 = vmatpush1.bf16.msra.mxu1 %v3871_v44 }
 0x3fa   :  { %1387 = vmatprep.subr.bf16.mxu1 %v5377_v46 }
 0x3fd   :  { %1388 = vmatpush2.bf16.msra.mxu1 %v5378_v56  ;;  %v4254_v56 = vld [vmem:[%s4978_s2 + $0x21c] ss:$24 sps:$4 sm:$0xff]  }
 0x3fe   :  { %1389 = vmatprep.subr.bf16.mxu1 %v5379_v57  ;;  %5385 = vst [vmem:[#allocation28_spill] sm:$0xff] %v4254_v56 }
 0x401   :  { %1390 = vmatpush2.bf16.msra.mxu1 %v5380_v59 }
 0x402   :  { %1391 = vmatprep.subr.bf16.mxu1 %v5381_v60 }
 0x405   :  { %1392 = vmatpush2.bf16.msra.mxu1 %v5382_v63  ;;  %v4260_v63 = vld [vmem:[%s4978_s2 + $0x218] ss:$24 sps:$4 sm:$0xff]  }
 0x406   :  { %1393 = vmatprep.subr.bf16.mxu1 %v5383_v26  ;;  %5386 = vst [vmem:[#allocation30_spill] sm:$0xff] %v4260_v63  ;;  %v4266_v26 = vld [vmem:[%s4978_s2 + $0x1ec] ss:$24 sps:$4 sm:$0xff]  }
 0x407   :  { %5387 = vst [vmem:[#allocation32_spill] sm:$0xff] %v4266_v26 }
 0x409   :  { %1394 = vmatpush2.bf16.msra.mxu1 %v4248_v35  ;;  %v4272_v35 = vld [vmem:[%s4978_s2 + $0x1e8] ss:$24 sps:$4 sm:$0xff]  }
 0x40a   :  { %1395 = vmatprep.subr.bf16.mxu1 %v4254_v56  ;;  %5388 = vst [vmem:[#allocation34_spill] sm:$0xff] %v4272_v35  ;;  %v4278_v56 = vld [vmem:[%s4978_s2 + $0x1bc] ss:$24 sps:$4 sm:$0xff]  }
 0x40b   :  { %5389 = vst [vmem:[#allocation36_spill] sm:$0xff] %v4278_v56 }
 0x40d   :  { %1396 = vmatpush2.bf16.msra.mxu1 %v4260_v63  ;;  %v4284_v63 = vld [vmem:[%s4978_s2 + $0x1b8] ss:$24 sps:$4 sm:$0xff]  }
 0x40e   :  { %1397 = vmatprep.subr.bf16.mxu1 %v4266_v26  ;;  %5390 = vst [vmem:[#allocation60_spill] sm:$0xff] %v4284_v63  ;;  %v4290_v26 = vld [vmem:[%s4978_s2 + $0x18c] ss:$24 sps:$4 sm:$0xff]  }
 0x40f   :  { %5391 = vst [vmem:[#allocation61_spill] sm:$0xff] %v4290_v26 }
 0x411   :  { %1398 = vmatpush2.bf16.msra.mxu1 %v4272_v35  ;;  %v4296_v35 = vld [vmem:[%s4978_s2 + $0x188] ss:$24 sps:$4 sm:$0xff]  }
 0x412   :  { %1399 = vmatprep.subr.bf16.mxu1 %v4278_v56  ;;  %5392 = vst [vmem:[#allocation62_spill] sm:$0xff] %v4296_v35  ;;  %v5393_v56 = vld [vmem:[#allocation21_spill] sm:$0xff] }
 0x415   :  { %1400 = vmatpush2.bf16.msra.mxu1 %v4284_v63 }
 0x416   :  { %1401 = vmatprep.subr.bf16.mxu1 %v4290_v26  ;;  %v2165_v26 = vld [vmem:[%s4980_s0 + $0x90] sm:$0xff] }
 0x419   :  { %1402 = vmatpush2.bf16.msra.mxu1 %v4296_v35 }
 0x41a   :  { %1509 = vmatprep.subr.bf16.mxu1 %v5393_v56 }
 0x45c   :  { %v1185_v60 = vpop.f32.mrf.mxu1  ;;  %v1226_v59 = vpop.f32.mrf.mxu0 }
 0x45d   :  { %v1274_v54 = vadd.f32 %v2165_v26, %v1185_v60 }
 0x45e   :  { %v1187_v57 = vpop.f32.mrf.mxu1  ;;  %v1228_v63 = vpop.f32.mrf.mxu0 }
 0x45f   :  { %v1275_v35 = vadd.f32 %v2166_v55, %v1187_v57  ;;  %v2171_v52 = vmul.f32 -1.442695, %v1274_v54 }
 0x460   :  { %v1189_v46 = vpop.f32.mrf.mxu1  ;;  %v1230_v44 = vpop.f32.mrf.mxu0 }
 0x461   :  { %v2172_v56 = vmul.f32 -1.442695, %v1275_v35  ;;  %2429 = vpow2.f32 %v2171_v52  ;;  %v2167_v44 = vld [vmem:[%s4980_s0 + $0xa0] sm:$0xff] }
 0x462   :  { %v1190_v32 = vpop.f32.mrf.mxu1  ;;  %v1231_v31 = vpop.f32.mrf.mxu0 }
 0x463   :  { %2431 = vpow2.f32 %v2172_v56  ;;  %v2168_v31 = vld [vmem:[%s4980_s0 + $0xa8] sm:$0xff]  ;;  %v1288_v32 = vadd.f32 %v2167_v44, %v1226_v59  ;;  %v2169_v59 = vld [vmem:[%s4980_s0 + $0xb0] sm:$0xff] }
 0x464   :  { %v1289_v46 = vadd.f32 %v2168_v31, %v1228_v63  ;;  %v2170_v31 = vld [vmem:[%s4980_s0 + $0xb8] sm:$0xff] }
 0x465   :  { %v2173_v51 = vmul.f32 -1.442695, %v1288_v32 }
 0x466   :  { %v2174_v48 = vmul.f32 -1.442695, %v1289_v46 }
 0x467   :  { %2433 = vpow2.f32 %v2173_v51 }
 0x468   :  { %2435 = vpow2.f32 %v2174_v48 }
 0x46e   :  { %v2430_v23 = vpop.eup %2429 }
 0x46f   :  { %v1282_v55 = vadd.f32 1.0, %v2430_v23  ;;  %v5395_v23 = vld [vmem:[#allocation59_spill] sm:$0xff] }
 0x470   :  { %v2432_v60 = vpop.eup %2431 }
 0x471   :  { %v1283_v54 = vadd.f32 1.0, %v2432_v60  ;;  %2437 = vrcp.f32 %v1282_v55 }
 0x473   :  { %2439 = vrcp.f32 %v1283_v54 }
 0x474   :  { %v2434_v52 = vpop.eup %2433 }
 0x475   :  { %v2436_v56 = vpop.eup %2435  ;;  %v1296_v57 = vadd.f32 1.0, %v2434_v52 }
 0x476   :  { %v1297_v35 = vadd.f32 1.0, %v2436_v56 }
 0x477   :  { %2441 = vrcp.f32 %v1296_v57 }
 0x478   :  { %2443 = vrcp.f32 %v1297_v35 }
 0x47e   :  { %v2438_v19 = vpop.eup %2437 }
 0x480   :  { %v2440_v44 = vpop.eup %2439 }
 0x484   :  { %v2442_v52 = vpop.eup %2441 }
 0x485   :  { %v2444_v56 = vpop.eup %2443 }
 0x486   :  { %v1315_v15 = vmul.f32 %v2444_v56, %v3950_v0 }
 0x49c   :  { %v1267_v26 = vpop.f32.mrf.mxu1 }
 0x49d   :  { %v1302_v47 = vadd.f32 %v1267_v26, %v5394_v25  ;;  %v1310_v26 = vsub.f32 1.0, %v2442_v52 }
 0x49e   :  { %v1269_v63 = vpop.f32.mrf.mxu1 }
 0x49f   :  { %v1304_v51 = vmul.f32 %v2438_v19, %v1302_v47  ;;  %v1303_v48 = vadd.f32 %v1269_v63, %v5395_v23  ;;  %v1311_v19 = vsub.f32 1.0, %v2444_v56  ;;  %v1314_v63 = vmul.f32 %v2442_v52, %v3948_v41  ;;  %v5408_v52 = vld [vmem:[#allocation14_spill] sm:$0xff]  ;;  %v5409_v56 = vld [vmem:[#allocation15_spill] sm:$0xff] }
 0x4a0   :  { %v1271_v32 = vpop.f32.mrf.mxu1 }
 0x4a1   :  { %v1306_v46 = vadd.f32 %v2169_v59, %v1304_v51  ;;  %v1305_v60 = vmul.f32 %v2440_v44, %v1303_v48  ;;  %v5398_v59 = vld [vmem:[#allocation24_spill] sm:$0xff]  ;;  %v5399_v51 = vld [vmem:[#allocation5_spill] sm:$0xff] }
 0x4a2   :  { %v1272_v55 = vpop.f32.mrf.mxu1  ;;  %v5401_v48 = vld [vmem:[#allocation8_spill] sm:$0xff]  ;;  %v5402_v44 = vld [vmem:[#allocation33_spill] sm:$0xff] }
 0x4a3   :  { %2445 = vtanh.f32 %v1306_v46  ;;  %v1307_v54 = vadd.f32 %v2170_v31, %v1305_v60  ;;  %v5403_v31 = vld [vmem:[#allocation10_spill] sm:$0xff]  ;;  %v5404_v46 = vld [vmem:[#allocation11_spill] sm:$0xff]  ;;  %v5406_v55 = vld [vmem:[#allocation12_spill] sm:$0xff] }
 0x4a4   :  { %v5405_v60 = vld [vmem:[#allocation35_spill] sm:$0xff] }
 0x4a5   :  { %2447 = vtanh.f32 %v1307_v54  ;;  %v5407_v54 = vld [vmem:[#allocation13_spill] sm:$0xff] }
 0x4b0   :  { %v2446_v57 = vpop.eup %2445 }
 0x4b1   :  { %v1312_v47 = vmul.f32 %v2446_v57, %v1310_v26  ;;  %v5410_v26 = vld [vmem:[#allocation16_spill] sm:$0xff]  ;;  %v5411_v57 = vld [vmem:[#allocation17_spill] sm:$0xff] }
 0x4b2   :  { %v2448_v23 = vpop.eup %2447 }
 0x4b3   :  { %v1313_v25 = vmul.f32 %v2448_v23, %v1311_v19  ;;  %v4322_v32 = vadd.f32 %v1314_v63, %v1312_v47  ;;  %v5400_v23 = vld [vmem:[#allocation29_spill] sm:$0xff]  ;;  %v5412_v19 = vld [vmem:[#allocation18_spill] sm:$0xff]  ;;  %v5413_v47 = vld [vmem:[#allocation19_spill] sm:$0xff] }
 0x4b4   :  { %v5414_v63 = vld [vmem:[#allocation20_spill] sm:$0xff] }
 0x4b5   :  { %v4324_v35 = vadd.f32 %v1315_v15, %v1313_v25  ;;  %2175 = vst [vmem:[%s4982_s4 + $0x30] sm:$0xff] %v4322_v32  ;;  %v4338_v0 = vpack.c.bf16 %v4322_v32, %v4322_v32  ;;  %v5396_v15 = vld [vmem:[#allocation6_spill] sm:$0xff]  ;;  %v5397_v25 = vld [vmem:[#allocation4_spill] sm:$0xff] }
 0x4b7   :  { %2176 = vst [vmem:[%s4982_s4 + $0x38] sm:$0xff] %v4324_v35  ;;  %v1329_v41 = vpack.c.bf16 %v4324_v35, %v4324_v35 }
 0x4b9   :  { %1362 = vmatprep.mubr.bf16.mxu0 %v1329_v41  ;;  %1403 = vmatprep.mubr.bf16.mxu1 %v1329_v41 }
 0x4ba   :  { %1363 = vmatmul.mubr.bf16.vlgmr.msra.gmra.mxu0 %v4338_v0  ;;  %1404 = vmatmul.mubr.bf16.vlgmr.msra.gmra.mxu1 %v4338_v0 }
 0x4bb   :  { %1413 = vmatpush1.bf16.msra.mxu0 %v3971_v10  ;;  %1444 = vmatprep.mubr.bf16.mxu0 %v1329_v41  ;;  %v5415_v41 = vld [vmem:[#allocation22_spill] sm:$0xff] }
 0x4bc   :  { %1414 = vmatprep.subr.bf16.mxu0 %v3977_v13  ;;  %1510 = vmatpush1.bf16.msra.mxu1 %v3594_v34 }
 0x4bd   :  { %1511 = vmatprep.subr.bf16.mxu1 %v3600_v36 }
 0x4bf   :  { %1415 = vmatpush1.bf16.msra.mxu0 %v3985_v33 }
 0x4c0   :  { %1416 = vmatprep.subr.bf16.mxu0 %v3991_v43  ;;  %1512 = vmatpush1.bf16.msra.mxu1 %v3608_v18 }
 0x4c1   :  { %1513 = vmatprep.subr.bf16.mxu1 %v3614_v22 }
 0x4c3   :  { %1417 = vmatpush1.bf16.msra.mxu0 %v3999_v14 }
 0x4c4   :  { %1418 = vmatprep.subr.bf16.mxu0 %v4005_v42  ;;  %1514 = vmatpush1.bf16.msra.mxu1 %v3622_v24 }
 0x4c5   :  { %1515 = vmatprep.subr.bf16.mxu1 %v3628_v30 }
 0x4c7   :  { %1419 = vmatpush1.bf16.msra.mxu0 %v4013_v62 }
 0x4c8   :  { %1420 = vmatprep.subr.bf16.mxu0 %v4019_v53  ;;  %1516 = vmatpush1.bf16.msra.mxu1 %v3636_v38 }
 0x4c9   :  { %1517 = vmatprep.subr.bf16.mxu1 %v3642_v49 }
 0x4cb   :  { %1421 = vmatpush1.bf16.msra.mxu0 %v4027_v58 }
 0x4cc   :  { %1422 = vmatprep.subr.bf16.mxu0 %v4033_v20  ;;  %1518 = vmatpush1.bf16.msra.mxu1 %v3650_v45 }
 0x4cd   :  { %1519 = vmatprep.subr.bf16.mxu1 %v3656_v1 }
 0x4cf   :  { %1423 = vmatpush1.bf16.msra.mxu0 %v4041_v11 }
 0x4d0   :  { %1424 = vmatprep.subr.bf16.mxu0 %v4047_v61  ;;  %1520 = vmatpush1.bf16.msra.mxu1 %v3664_v2 }
 0x4d1   :  { %1521 = vmatprep.subr.bf16.mxu1 %v3670_v3 }
 0x4d3   :  { %1425 = vmatpush1.bf16.msra.mxu0 %v4055_v28 }
 0x4d4   :  { %1426 = vmatprep.subr.bf16.mxu0 %v4061_v29  ;;  %1522 = vmatpush1.bf16.msra.mxu1 %v3678_v4 }
 0x4d5   :  { %1523 = vmatprep.subr.bf16.mxu1 %v3684_v5 }
 0x4d7   :  { %1427 = vmatpush1.bf16.msra.mxu0 %v4069_v37 }
 0x4d8   :  { %1428 = vmatprep.subr.bf16.mxu0 %v4075_v50  ;;  %1524 = vmatpush1.bf16.msra.mxu1 %v3692_v6 }
 0x4d9   :  { %1525 = vmatprep.subr.bf16.mxu1 %v3698_v7 }
 0x4db   :  { %1429 = vmatpush2.bf16.msra.mxu0 %v4083_v39 }
 0x4dc   :  { %1430 = vmatprep.subr.bf16.mxu0 %v4089_v40  ;;  %1526 = vmatpush2.bf16.msra.mxu1 %v3706_v8 }
 0x4dd   :  { %1527 = vmatprep.subr.bf16.mxu1 %v5396_v15 }
 0x4df   :  { %1431 = vmatpush2.bf16.msra.mxu0 %v5397_v25 }
 0x4e0   :  { %1432 = vmatprep.subr.bf16.mxu0 %v4103_v17  ;;  %1528 = vmatpush2.bf16.msra.mxu1 %v3720_v12 }
 0x4e1   :  { %1529 = vmatprep.subr.bf16.mxu1 %v5398_v59 }
 0x4e3   :  { %1433 = vmatpush2.bf16.msra.mxu0 %v5399_v51 }
 0x4e4   :  { %1434 = vmatprep.subr.bf16.mxu0 %v4117_v27  ;;  %1530 = vmatpush2.bf16.msra.mxu1 %v3734_v16 }
 0x4e5   :  { %1531 = vmatprep.subr.bf16.mxu1 %v5400_v23 }
 0x4e7   :  { %1435 = vmatpush2.bf16.msra.mxu0 %v5401_v48  ;;  %v5451_v48 = vld [vmem:[#allocation58_spill] sm:$0xff] }
 0x4e8   :  { %1436 = vmatprep.subr.bf16.mxu0 %v4131_v9  ;;  %1532 = vmatpush2.bf16.msra.mxu1 %v3748_v21 }
 0x4e9   :  { %1533 = vmatprep.subr.bf16.mxu1 %v5402_v44 }
 0x4eb   :  { %1437 = vmatpush2.bf16.msra.mxu0 %v5403_v31 }
 0x4ec   :  { %1438 = vmatprep.subr.bf16.mxu0 %v5404_v46  ;;  %1534 = vmatpush2.bf16.msra.mxu1 %v5405_v60  ;;  %v5416_v60 = vld [vmem:[#allocation37_spill] sm:$0xff] }
 0x4ed   :  { %1535 = vmatprep.subr.bf16.mxu1 %v5406_v55  ;;  %v5417_v55 = vld [vmem:[#allocation23_spill] sm:$0xff] }
 0x4ef   :  { %1439 = vmatpush2.bf16.msra.mxu0 %v5407_v54  ;;  %v5418_v54 = vld [vmem:[#allocation25_spill] sm:$0xff] }
 0x4f0   :  { %1440 = vmatprep.subr.bf16.mxu0 %v5408_v52  ;;  %1536 = vmatpush2.bf16.msra.mxu1 %v5409_v56  ;;  %v5419_v56 = vld [vmem:[#allocation38_spill] sm:$0xff] }
 0x4f1   :  { %1537 = vmatprep.subr.bf16.mxu1 %v5410_v26  ;;  %v5420_v26 = vld [vmem:[#allocation39_spill] sm:$0xff] }
 0x4f3   :  { %1441 = vmatpush2.bf16.msra.mxu0 %v5411_v57  ;;  %v5421_v57 = vld [vmem:[#allocation40_spill] sm:$0xff] }
 0x4f4   :  { %1442 = vmatprep.subr.bf16.mxu0 %v5412_v19  ;;  %1538 = vmatpush2.bf16.msra.mxu1 %v5413_v47  ;;  %v5422_v19 = vld [vmem:[#allocation41_spill] sm:$0xff]  ;;  %v5423_v47 = vld [vmem:[#allocation42_spill] sm:$0xff] }
 0x4f5   :  { %1539 = vmatprep.subr.bf16.mxu1 %v5414_v63  ;;  %v5424_v63 = vld [vmem:[#allocation43_spill] sm:$0xff] }
 0x4f7   :  { %1443 = vmatpush2.bf16.msra.mxu0 %v5415_v41  ;;  %v5425_v41 = vld [vmem:[#allocation44_spill] sm:$0xff] }
 0x4f8   :  { %1550 = vmatprep.subr.bf16.mxu0 %v5416_v60  ;;  %1540 = vmatpush2.bf16.msra.mxu1 %v5417_v55  ;;  %v5426_v60 = vld [vmem:[#allocation45_spill] sm:$0xff]  ;;  %v5427_v55 = vld [vmem:[#allocation46_spill] sm:$0xff] }
 0x4f9   :  { %1591 = vmatprep.subr.bf16.mxu1 %v5418_v54  ;;  %v5428_v54 = vld [vmem:[#allocation47_spill] sm:$0xff] }
 0x4fa   :  { %1445 = vmatmul.mubr.bf16.vlgmr.msra.gmra.mxu0 %v4338_v0  ;;  %v5429_v0 = vld [vmem:[#allocation48_spill] sm:$0xff] }
 0x4fb   :  { %1551 = vmatpush1.bf16.msra.mxu0 %v5419_v56  ;;  %v5430_v56 = vld [vmem:[#allocation49_spill] sm:$0xff] }
 0x4fc   :  { %1552 = vmatprep.subr.bf16.mxu0 %v5420_v26  ;;  %v5431_v26 = vld [vmem:[#allocation50_spill] sm:$0xff] }
 0x4ff   :  { %1553 = vmatpush1.bf16.msra.mxu0 %v5421_v57  ;;  %v5432_v57 = vld [vmem:[#allocation51_spill] sm:$0xff] }
 0x500   :  { %1554 = vmatprep.subr.bf16.mxu0 %v5422_v19  ;;  %v5433_v19 = vld [vmem:[#allocation52_spill] sm:$0xff] }
 0x503   :  { %1555 = vmatpush1.bf16.msra.mxu0 %v5423_v47  ;;  %v5434_v47 = vld [vmem:[#allocation53_spill] sm:$0xff] }
 0x504   :  { %1556 = vmatprep.subr.bf16.mxu0 %v5424_v63  ;;  %v5435_v63 = vld [vmem:[#allocation54_spill] sm:$0xff] }
 0x507   :  { %1557 = vmatpush1.bf16.msra.mxu0 %v5425_v41  ;;  %v5436_v41 = vld [vmem:[#allocation55_spill] sm:$0xff] }
 0x508   :  { %1558 = vmatprep.subr.bf16.mxu0 %v5426_v60  ;;  %v5437_v60 = vld [vmem:[#allocation56_spill] sm:$0xff] }
 0x50b   :  { %1559 = vmatpush1.bf16.msra.mxu0 %v5427_v55  ;;  %v5438_v55 = vld [vmem:[#allocation57_spill] sm:$0xff] }
 0x50c   :  { %1560 = vmatprep.subr.bf16.mxu0 %v5428_v54  ;;  %v5439_v54 = vld [vmem:[#allocation2_spill] sm:$0xff] }
 0x50f   :  { %1561 = vmatpush1.bf16.msra.mxu0 %v5429_v0  ;;  %v5440_v0 = vld [vmem:[#allocation3_spill] sm:$0xff] }
 0x510   :  { %1562 = vmatprep.subr.bf16.mxu0 %v5430_v56  ;;  %v5441_v56 = vld [vmem:[#allocation26_spill] sm:$0xff] }
 0x513   :  { %1563 = vmatpush1.bf16.msra.mxu0 %v5431_v26  ;;  %v5442_v26 = vld [vmem:[#allocation28_spill] sm:$0xff] }
 0x514   :  { %1564 = vmatprep.subr.bf16.mxu0 %v5432_v57  ;;  %v5443_v57 = vld [vmem:[#allocation30_spill] sm:$0xff] }
 0x517   :  { %1565 = vmatpush1.bf16.msra.mxu0 %v5433_v19  ;;  %v5444_v19 = vld [vmem:[#allocation32_spill] sm:$0xff] }
 0x518   :  { %1566 = vmatprep.subr.bf16.mxu0 %v5434_v47  ;;  %v5445_v47 = vld [vmem:[#allocation34_spill] sm:$0xff] }
 0x51b   :  { %1567 = vmatpush2.bf16.msra.mxu0 %v5435_v63  ;;  %v5446_v63 = vld [vmem:[#allocation36_spill] sm:$0xff] }
 0x51c   :  { %1568 = vmatprep.subr.bf16.mxu0 %v5436_v41  ;;  %v5447_v41 = vld [vmem:[#allocation60_spill] sm:$0xff] }
 0x51f   :  { %1569 = vmatpush2.bf16.msra.mxu0 %v5437_v60  ;;  %v5448_v60 = vld [vmem:[#allocation61_spill] sm:$0xff] }
 0x520   :  { %1570 = vmatprep.subr.bf16.mxu0 %v5438_v55  ;;  %v5449_v55 = vld [vmem:[#allocation62_spill] sm:$0xff] }
 0x523   :  { %1571 = vmatpush2.bf16.msra.mxu0 %v5439_v54  ;;  %v5450_v54 = vld [vmem:[#allocation21_spill] sm:$0xff] }
 0x524   :  { %1572 = vmatprep.subr.bf16.mxu0 %v5440_v0 }
 0x527   :  { %1573 = vmatpush2.bf16.msra.mxu0 %v5441_v56 }
 0x528   :  { %1574 = vmatprep.subr.bf16.mxu0 %v5442_v26 }
 0x52b   :  { %1575 = vmatpush2.bf16.msra.mxu0 %v5443_v57 }
 0x52c   :  { %1576 = vmatprep.subr.bf16.mxu0 %v5444_v19 }
 0x52f   :  { %1577 = vmatpush2.bf16.msra.mxu0 %v5445_v47 }
 0x530   :  { %1578 = vmatprep.subr.bf16.mxu0 %v5446_v63  ;;  %v2177_v63 = vld [vmem:[%s4980_s0 + $0xc0] sm:$0xff] }
 0x533   :  { %1579 = vmatpush2.bf16.msra.mxu0 %v5447_v41 }
 0x534   :  { %1580 = vmatprep.subr.bf16.mxu0 %v5448_v60  ;;  %v2178_v60 = vld [vmem:[%s4980_s0 + $0xc8] sm:$0xff] }
 0x537   :  { %1581 = vmatpush2.bf16.msra.mxu0 %v5449_v55 }
 0x538   :  { %1688 = vmatprep.subr.bf16.mxu0 %v5450_v54 }
 0x57a   :  { %v1364_v0 = vpop.f32.mrf.mxu0  ;;  %v1405_v56 = vpop.f32.mrf.mxu1 }
 0x57b   :  { %v1453_v41 = vadd.f32 %v2177_v63, %v1364_v0 }
 0x57c   :  { %v1366_v52 = vpop.f32.mrf.mxu0  ;;  %v1407_v26 = vpop.f32.mrf.mxu1 }
 0x57d   :  { %v1454_v55 = vadd.f32 %v2178_v60, %v1366_v52  ;;  %v2183_v47 = vmul.f32 -1.442695, %v1453_v41 }
 0x57e   :  { %v1368_v46 = vpop.f32.mrf.mxu0  ;;  %v1409_v57 = vpop.f32.mrf.mxu1 }
 0x57f   :  { %v2184_v54 = vmul.f32 -1.442695, %v1454_v55  ;;  %2449 = vpow2.f32 %v2183_v47  ;;  %v2179_v46 = vld [vmem:[%s4980_s0 + $0xd0] sm:$0xff] }
 0x580   :  { %v1369_v31 = vpop.f32.mrf.mxu0  ;;  %v1410_v19 = vpop.f32.mrf.mxu1  ;;  %v1467_v57 = vadd.f32 %v2179_v46, %v1405_v56  ;;  %v2181_v56 = vld [vmem:[%s4980_s0 + $0xe0] sm:$0xff] }
 0x581   :  { %2451 = vpow2.f32 %v2184_v54  ;;  %v2180_v31 = vld [vmem:[%s4980_s0 + $0xd8] sm:$0xff] }
 0x582   :  { %v1468_v19 = vadd.f32 %v2180_v31, %v1407_v26  ;;  %v2185_v44 = vmul.f32 -1.442695, %v1467_v57  ;;  %v2182_v31 = vld [vmem:[%s4980_s0 + $0xe8] sm:$0xff] }
 0x584   :  { %v2186_v21 = vmul.f32 -1.442695, %v1468_v19  ;;  %2453 = vpow2.f32 %v2185_v44 }
 0x586   :  { %2455 = vpow2.f32 %v2186_v21 }
 0x58c   :  { %v2450_v9 = vpop.eup %2449 }
 0x58d   :  { %v1461_v60 = vadd.f32 1.0, %v2450_v9  ;;  %v5452_v9 = vld [vmem:[#allocation59_spill] sm:$0xff] }
 0x58e   :  { %v2452_v63 = vpop.eup %2451 }
 0x58f   :  { %v1462_v55 = vadd.f32 1.0, %v2452_v63  ;;  %2457 = vrcp.f32 %v1461_v60 }
 0x591   :  { %2459 = vrcp.f32 %v1462_v55  ;;  %v2454_v52 = vpop.eup %2453 }
 0x592   :  { %v1475_v41 = vadd.f32 1.0, %v2454_v52 }
 0x593   :  { %v2456_v47 = vpop.eup %2455 }
 0x594   :  { %v1476_v54 = vadd.f32 1.0, %v2456_v47  ;;  %2461 = vrcp.f32 %v1475_v41 }
 0x596   :  { %2463 = vrcp.f32 %v1476_v54 }
 0x59c   :  { %v2458_v16 = vpop.eup %2457 }
 0x59e   :  { %v2460_v46 = vpop.eup %2459 }
 0x5a1   :  { %v2462_v52 = vpop.eup %2461 }
 0x5a3   :  { %v2464_v47 = vpop.eup %2463 }
 0x5a4   :  { %v1494_v27 = vmul.f32 %v2464_v47, %v4324_v35 }
 0x5ba   :  { %v1446_v0 = vpop.f32.mrf.mxu0 }
 0x5bb   :  { %v1481_v23 = vadd.f32 %v1446_v0, %v5451_v48  ;;  %v1489_v0 = vsub.f32 1.0, %v2462_v52 }
 0x5bc   :  { %v1448_v26 = vpop.f32.mrf.mxu0 }
 0x5bd   :  { %v1483_v44 = vmul.f32 %v2458_v16, %v1481_v23  ;;  %v1482_v21 = vadd.f32 %v1448_v26, %v5452_v9  ;;  %v1490_v16 = vsub.f32 1.0, %v2464_v47  ;;  %v1493_v26 = vmul.f32 %v2462_v52, %v4322_v32  ;;  %v5485_v52 = vld [vmem:[#allocation47_spill] sm:$0xff]  ;;  %v5486_v47 = vld [vmem:[#allocation48_spill] sm:$0xff] }
 0x5be   :  { %v1450_v57 = vpop.f32.mrf.mxu0 }
 0x5bf   :  { %v1485_v19 = vadd.f32 %v2181_v56, %v1483_v44  ;;  %v1484_v63 = vmul.f32 %v2460_v46, %v1482_v21  ;;  %v5475_v56 = vld [vmem:[#allocation25_spill] sm:$0xff]  ;;  %v5476_v44 = vld [vmem:[#allocation38_spill] sm:$0xff]  ;;  %v5478_v21 = vld [vmem:[#allocation40_spill] sm:$0xff] }
 0x5c0   :  { %v1451_v60 = vpop.f32.mrf.mxu0  ;;  %v5479_v46 = vld [vmem:[#allocation41_spill] sm:$0xff] }
 0x5c1   :  { %2465 = vtanh.f32 %v1485_v19  ;;  %v1486_v55 = vadd.f32 %v2182_v31, %v1484_v63  ;;  %v5480_v31 = vld [vmem:[#allocation42_spill] sm:$0xff]  ;;  %v5481_v19 = vld [vmem:[#allocation43_spill] sm:$0xff]  ;;  %v5482_v63 = vld [vmem:[#allocation44_spill] sm:$0xff] }
 0x5c2   :  { %v5483_v60 = vld [vmem:[#allocation45_spill] sm:$0xff] }
 0x5c3   :  { %2467 = vtanh.f32 %v1486_v55  ;;  %v5484_v55 = vld [vmem:[#allocation46_spill] sm:$0xff] }
 0x5ce   :  { %v2466_v41 = vpop.eup %2465 }
 0x5cf   :  { %v1491_v23 = vmul.f32 %v2466_v41, %v1489_v0  ;;  %v5487_v0 = vld [vmem:[#allocation49_spill] sm:$0xff]  ;;  %v5488_v41 = vld [vmem:[#allocation50_spill] sm:$0xff] }
 0x5d0   :  { %v2468_v9 = vpop.eup %2467 }
 0x5d1   :  { %v1492_v48 = vmul.f32 %v2468_v9, %v1490_v16  ;;  %v4461_v57 = vadd.f32 %v1493_v26, %v1491_v23  ;;  %v5477_v9 = vld [vmem:[#allocation39_spill] sm:$0xff]  ;;  %v5490_v23 = vld [vmem:[#allocation52_spill] sm:$0xff]  ;;  %v5491_v26 = vld [vmem:[#allocation53_spill] sm:$0xff] }
 0x5d2   :  { %v5489_v16 = vld [vmem:[#allocation51_spill] sm:$0xff] }
 0x5d3   :  { %v4463_v54 = vadd.f32 %v1494_v27, %v1492_v48  ;;  %2187 = vst [vmem:[%s4982_s4 + $0x40] sm:$0xff] %v4461_v57  ;;  %v4477_v35 = vpack.c.bf16 %v4461_v57, %v4461_v57  ;;  %v5471_v27 = vld [vmem:[#allocation20_spill] sm:$0xff]  ;;  %v5474_v48 = vld [vmem:[#allocation23_spill] sm:$0xff] }
 0x5d5   :  { %2188 = vst [vmem:[%s4982_s4 + $0x48] sm:$0xff] %v4463_v54  ;;  %v1508_v32 = vpack.c.bf16 %v4463_v54, %v4463_v54 }
 0x5d7   :  { %1541 = vmatprep.mubr.bf16.mxu1 %v1508_v32  ;;  %1582 = vmatprep.mubr.bf16.mxu0 %v1508_v32 }
 0x5d8   :  { %1542 = vmatmul.mubr.bf16.vlgmr.msra.gmra.mxu1 %v4477_v35  ;;  %1583 = vmatmul.mubr.bf16.vlgmr.msra.gmra.mxu0 %v4477_v35 }
 0x5d9   :  { %1592 = vmatpush1.bf16.msra.mxu1 %v3971_v10  ;;  %1623 = vmatprep.mubr.bf16.mxu1 %v1508_v32  ;;  %v5492_v32 = vld [vmem:[#allocation54_spill] sm:$0xff] }
 0x5da   :  { %1593 = vmatprep.subr.bf16.mxu1 %v3977_v13  ;;  %1689 = vmatpush1.bf16.msra.mxu0 %v3594_v34  ;;  %v5453_v34 = vld [vmem:[#allocation7_spill] sm:$0xff] }
 0x5db   :  { %1690 = vmatprep.subr.bf16.mxu0 %v3600_v36  ;;  %v5454_v36 = vld [vmem:[#allocation27_spill] sm:$0xff] }
 0x5dd   :  { %1594 = vmatpush1.bf16.msra.mxu1 %v3985_v33 }
 0x5de   :  { %1595 = vmatprep.subr.bf16.mxu1 %v3991_v43  ;;  %1691 = vmatpush1.bf16.msra.mxu0 %v3608_v18  ;;  %v5455_v18 = vld [vmem:[#allocation29_spill] sm:$0xff] }
 0x5df   :  { %1692 = vmatprep.subr.bf16.mxu0 %v3614_v22  ;;  %v5456_v22 = vld [vmem:[#allocation8_spill] sm:$0xff] }
 0x5e1   :  { %1596 = vmatpush1.bf16.msra.mxu1 %v3999_v14 }
 0x5e2   :  { %1597 = vmatprep.subr.bf16.mxu1 %v4005_v42  ;;  %1693 = vmatpush1.bf16.msra.mxu0 %v3622_v24  ;;  %v5457_v24 = vld [vmem:[#allocation9_spill] sm:$0xff] }
 0x5e3   :  { %1694 = vmatprep.subr.bf16.mxu0 %v3628_v30  ;;  %v5458_v30 = vld [vmem:[#allocation31_spill] sm:$0xff] }
 0x5e5   :  { %1598 = vmatpush1.bf16.msra.mxu1 %v4013_v62 }
 0x5e6   :  { %1599 = vmatprep.subr.bf16.mxu1 %v4019_v53  ;;  %1695 = vmatpush1.bf16.msra.mxu0 %v3636_v38  ;;  %v5459_v38 = vld [vmem:[#allocation33_spill] sm:$0xff] }
 0x5e7   :  { %1696 = vmatprep.subr.bf16.mxu0 %v3642_v49  ;;  %v5460_v49 = vld [vmem:[#allocation10_spill] sm:$0xff] }
 0x5e9   :  { %1600 = vmatpush1.bf16.msra.mxu1 %v4027_v58 }
 0x5ea   :  { %1601 = vmatprep.subr.bf16.mxu1 %v4033_v20  ;;  %1697 = vmatpush1.bf16.msra.mxu0 %v3650_v45  ;;  %v5461_v45 = vld [vmem:[#allocation11_spill] sm:$0xff] }
 0x5eb   :  { %1698 = vmatprep.subr.bf16.mxu0 %v3656_v1  ;;  %v5462_v1 = vld [vmem:[#allocation35_spill] sm:$0xff] }
 0x5ed   :  { %1602 = vmatpush1.bf16.msra.mxu1 %v4041_v11 }
 0x5ee   :  { %1603 = vmatprep.subr.bf16.mxu1 %v4047_v61  ;;  %1699 = vmatpush1.bf16.msra.mxu0 %v3664_v2  ;;  %v5463_v2 = vld [vmem:[#allocation12_spill] sm:$0xff] }
 0x5ef   :  { %1700 = vmatprep.subr.bf16.mxu0 %v3670_v3  ;;  %v5464_v3 = vld [vmem:[#allocation13_spill] sm:$0xff] }
 0x5f1   :  { %1604 = vmatpush1.bf16.msra.mxu1 %v4055_v28 }
 0x5f2   :  { %1605 = vmatprep.subr.bf16.mxu1 %v4061_v29  ;;  %1701 = vmatpush1.bf16.msra.mxu0 %v3678_v4  ;;  %v5465_v4 = vld [vmem:[#allocation14_spill] sm:$0xff] }
 0x5f3   :  { %1702 = vmatprep.subr.bf16.mxu0 %v3684_v5  ;;  %v5466_v5 = vld [vmem:[#allocation15_spill] sm:$0xff] }
 0x5f5   :  { %1606 = vmatpush1.bf16.msra.mxu1 %v4069_v37 }
 0x5f6   :  { %1607 = vmatprep.subr.bf16.mxu1 %v4075_v50  ;;  %1703 = vmatpush1.bf16.msra.mxu0 %v3692_v6  ;;  %v5467_v6 = vld [vmem:[#allocation16_spill] sm:$0xff] }
 0x5f7   :  { %1704 = vmatprep.subr.bf16.mxu0 %v3698_v7  ;;  %v5468_v7 = vld [vmem:[#allocation17_spill] sm:$0xff] }
 0x5f9   :  { %1608 = vmatpush2.bf16.msra.mxu1 %v4083_v39 }
 0x5fa   :  { %1609 = vmatprep.subr.bf16.mxu1 %v4089_v40  ;;  %1705 = vmatpush2.bf16.msra.mxu0 %v3706_v8  ;;  %v5469_v8 = vld [vmem:[#allocation18_spill] sm:$0xff] }
 0x5fb   :  { %1706 = vmatprep.subr.bf16.mxu0 %v5396_v15  ;;  %v5472_v15 = vld [vmem:[#allocation22_spill] sm:$0xff] }
 0x5fd   :  { %1610 = vmatpush2.bf16.msra.mxu1 %v5397_v25 }
 0x5fe   :  { %1611 = vmatprep.subr.bf16.mxu1 %v4103_v17  ;;  %1707 = vmatpush2.bf16.msra.mxu0 %v3720_v12  ;;  %v5470_v12 = vld [vmem:[#allocation19_spill] sm:$0xff] }
 0x5ff   :  { %1708 = vmatprep.subr.bf16.mxu0 %v5398_v59  ;;  %v5473_v59 = vld [vmem:[#allocation37_spill] sm:$0xff] }
 0x601   :  { %1612 = vmatpush2.bf16.msra.mxu1 %v5399_v51 }
 0x602   :  { %1613 = vmatprep.subr.bf16.mxu1 %v5453_v34  ;;  %1709 = vmatpush2.bf16.msra.mxu0 %v5454_v36  ;;  %v5494_v36 = vld [vmem:[#allocation56_spill] sm:$0xff] }
 0x603   :  { %1710 = vmatprep.subr.bf16.mxu0 %v5455_v18  ;;  %v5495_v18 = vld [vmem:[#allocation57_spill] sm:$0xff] }
 0x605   :  { %1614 = vmatpush2.bf16.msra.mxu1 %v5456_v22 }
 0x606   :  { %1615 = vmatprep.subr.bf16.mxu1 %v5457_v24  ;;  %1711 = vmatpush2.bf16.msra.mxu0 %v5458_v30  ;;  %v5496_v30 = vld [vmem:[#allocation2_spill] sm:$0xff] }
 0x607   :  { %1712 = vmatprep.subr.bf16.mxu0 %v5459_v38  ;;  %v5497_v38 = vld [vmem:[#allocation3_spill] sm:$0xff] }
 0x609   :  { %1616 = vmatpush2.bf16.msra.mxu1 %v5460_v49 }
 0x60a   :  { %1617 = vmatprep.subr.bf16.mxu1 %v5461_v45  ;;  %1713 = vmatpush2.bf16.msra.mxu0 %v5462_v1  ;;  %v5498_v1 = vld [vmem:[#allocation26_spill] sm:$0xff] }
 0x60b   :  { %1714 = vmatprep.subr.bf16.mxu0 %v5463_v2 }
 0x60d   :  { %1618 = vmatpush2.bf16.msra.mxu1 %v5464_v3 }
 0x60e   :  { %1619 = vmatprep.subr.bf16.mxu1 %v5465_v4  ;;  %1715 = vmatpush2.bf16.msra.mxu0 %v5466_v5 }
 0x60f   :  { %1716 = vmatprep.subr.bf16.mxu0 %v5467_v6 }
 0x611   :  { %1620 = vmatpush2.bf16.msra.mxu1 %v5468_v7 }
 0x612   :  { %1621 = vmatprep.subr.bf16.mxu1 %v5469_v8  ;;  %1717 = vmatpush2.bf16.msra.mxu0 %v5470_v12 }
 0x613   :  { %1718 = vmatprep.subr.bf16.mxu0 %v5471_v27 }
 0x615   :  { %1622 = vmatpush2.bf16.msra.mxu1 %v5472_v15 }
 0x616   :  { %1729 = vmatprep.subr.bf16.mxu1 %v5473_v59  ;;  %1719 = vmatpush2.bf16.msra.mxu0 %v5474_v48  ;;  %v5499_v59 = vld [vmem:[#allocation28_spill] sm:$0xff] }
 0x617   :  { %1770 = vmatprep.subr.bf16.mxu0 %v5475_v56 }
 0x618   :  { %1624 = vmatmul.mubr.bf16.vlgmr.msra.gmra.mxu1 %v4477_v35  ;;  %v5493_v35 = vld [vmem:[#allocation55_spill] sm:$0xff] }
 0x619   :  { %1730 = vmatpush1.bf16.msra.mxu1 %v5476_v44  ;;  %v5500_v44 = vld [vmem:[#allocation30_spill] sm:$0xff] }
 0x61a   :  { %1731 = vmatprep.subr.bf16.mxu1 %v5477_v9  ;;  %v5501_v9 = vld [vmem:[#allocation32_spill] sm:$0xff] }
 0x61d   :  { %1732 = vmatpush1.bf16.msra.mxu1 %v5478_v21  ;;  %v5502_v21 = vld [vmem:[#allocation34_spill] sm:$0xff] }
 0x61e   :  { %1733 = vmatprep.subr.bf16.mxu1 %v5479_v46  ;;  %v5503_v46 = vld [vmem:[#allocation36_spill] sm:$0xff] }
 0x621   :  { %1734 = vmatpush1.bf16.msra.mxu1 %v5480_v31  ;;  %v5504_v31 = vld [vmem:[#allocation60_spill] sm:$0xff] }
 0x622   :  { %1735 = vmatprep.subr.bf16.mxu1 %v5481_v19  ;;  %v5505_v19 = vld [vmem:[#allocation61_spill] sm:$0xff] }
 0x625   :  { %1736 = vmatpush1.bf16.msra.mxu1 %v5482_v63  ;;  %v5506_v63 = vld [vmem:[#allocation62_spill] sm:$0xff] }
 0x626   :  { %1737 = vmatprep.subr.bf16.mxu1 %v5483_v60  ;;  %v2625_v60 = vld [vmem:[%s4978_s2 + $0x154] ss:$24 sps:$4 sm:$0xff]  }
 0x629   :  { %1738 = vmatpush1.bf16.msra.mxu1 %v5484_v55 }
 0x62a   :  { %1739 = vmatprep.subr.bf16.mxu1 %v5485_v52 }
 0x62d   :  { %1740 = vmatpush1.bf16.msra.mxu1 %v5486_v47 }
 0x62e   :  { %1741 = vmatprep.subr.bf16.mxu1 %v5487_v0 }
 0x631   :  { %1742 = vmatpush1.bf16.msra.mxu1 %v5488_v41 }
 0x632   :  { %1743 = vmatprep.subr.bf16.mxu1 %v5489_v16 }
 0x635   :  { %1744 = vmatpush1.bf16.msra.mxu1 %v5490_v23 }
 0x636   :  { %1745 = vmatprep.subr.bf16.mxu1 %v5491_v26 }
 0x639   :  { %1746 = vmatpush2.bf16.msra.mxu1 %v5492_v32  ;;  %v2189_v32 = vld [vmem:[%s4980_s0 + $0xf0] sm:$0xff] }
 0x63a   :  { %1747 = vmatprep.subr.bf16.mxu1 %v5493_v35  ;;  %v2190_v35 = vld [vmem:[%s4980_s0 + $0xf8] sm:$0xff] }
 0x63d   :  { %1748 = vmatpush2.bf16.msra.mxu1 %v5494_v36 }
 0x63e   :  { %1749 = vmatprep.subr.bf16.mxu1 %v5495_v18 }
 0x641   :  { %1750 = vmatpush2.bf16.msra.mxu1 %v5496_v30 }
 0x642   :  { %1751 = vmatprep.subr.bf16.mxu1 %v5497_v38 }
 0x645   :  { %1752 = vmatpush2.bf16.msra.mxu1 %v5498_v1 }
 0x646   :  { %1753 = vmatprep.subr.bf16.mxu1 %v5499_v59 }
 0x649   :  { %1754 = vmatpush2.bf16.msra.mxu1 %v5500_v44 }
 0x64a   :  { %1755 = vmatprep.subr.bf16.mxu1 %v5501_v9 }
 0x64d   :  { %1756 = vmatpush2.bf16.msra.mxu1 %v5502_v21 }
 0x64e   :  { %1757 = vmatprep.subr.bf16.mxu1 %v5503_v46 }
 0x651   :  { %1758 = vmatpush2.bf16.msra.mxu1 %v5504_v31  ;;  %v5507_v31 = vld [vmem:[#allocation58_spill] sm:$0xff] }
 0x652   :  { %1759 = vmatprep.subr.bf16.mxu1 %v5505_v19 }
 0x655   :  { %1760 = vmatpush2.bf16.msra.mxu1 %v5506_v63 }
 0x656   :  { %1867 = vmatprep.subr.bf16.mxu1 %v2625_v60  ;;  %v2191_v60 = vld [vmem:[%s4980_s0 + $0x100] sm:$0xff] }
 0x698   :  { %v1543_v55 = vpop.f32.mrf.mxu1  ;;  %v1584_v52 = vpop.f32.mrf.mxu0 }
 0x699   :  { %v1632_v36 = vadd.f32 %v2189_v32, %v1543_v55 }
 0x69a   :  { %v1545_v47 = vpop.f32.mrf.mxu1  ;;  %v1586_v0 = vpop.f32.mrf.mxu0 }
 0x69b   :  { %v1633_v18 = vadd.f32 %v2190_v35, %v1545_v47  ;;  %v2195_v30 = vmul.f32 -1.442695, %v1632_v36 }
 0x69c   :  { %v1547_v41 = vpop.f32.mrf.mxu1  ;;  %v1588_v16 = vpop.f32.mrf.mxu0 }
 0x69d   :  { %v2196_v38 = vmul.f32 -1.442695, %v1633_v18  ;;  %2469 = vpow2.f32 %v2195_v30  ;;  %v2192_v41 = vld [vmem:[%s4980_s0 + $0x108] sm:$0xff]  ;;  %v1646_v16 = vadd.f32 %v2191_v60, %v1584_v52  ;;  %v2193_v52 = vld [vmem:[%s4980_s0 + $0x110] sm:$0xff] }
 0x69e   :  { %v1548_v23 = vpop.f32.mrf.mxu1  ;;  %v1589_v26 = vpop.f32.mrf.mxu0 }
 0x69f   :  { %2471 = vpow2.f32 %v2196_v38  ;;  %v1647_v23 = vadd.f32 %v2192_v41, %v1586_v0  ;;  %v2197_v26 = vmul.f32 -1.442695, %v1646_v16  ;;  %v2194_v16 = vld [vmem:[%s4980_s0 + $0x118] sm:$0xff] }
 0x6a1   :  { %v2198_v63 = vmul.f32 -1.442695, %v1647_v23  ;;  %2473 = vpow2.f32 %v2197_v26 }
 0x6a3   :  { %2475 = vpow2.f32 %v2198_v63 }
 0x6aa   :  { %v2470_v19 = vpop.eup %2469 }
 0x6ab   :  { %v1640_v47 = vadd.f32 1.0, %v2470_v19  ;;  %v5508_v19 = vld [vmem:[#allocation59_spill] sm:$0xff] }
 0x6ac   :  { %v2472_v55 = vpop.eup %2471 }
 0x6ad   :  { %v1641_v32 = vadd.f32 1.0, %v2472_v55  ;;  %2477 = vrcp.f32 %v1640_v47 }
 0x6ae   :  { %v2474_v35 = vpop.eup %2473 }
 0x6af   :  { %2479 = vrcp.f32 %v1641_v32  ;;  %v1654_v18 = vadd.f32 1.0, %v2474_v35 }
 0x6b0   :  { %v2476_v36 = vpop.eup %2475 }
 0x6b1   :  { %v1655_v38 = vadd.f32 1.0, %v2476_v36  ;;  %2481 = vrcp.f32 %v1654_v18 }
 0x6b3   :  { %2483 = vrcp.f32 %v1655_v38 }
 0x6ba   :  { %v2478_v21 = vpop.eup %2477 }
 0x6bc   :  { %v2480_v41 = vpop.eup %2479 }
 0x6be   :  { %v2482_v35 = vpop.eup %2481 }
 0x6c0   :  { %v2484_v36 = vpop.eup %2483 }
 0x6c1   :  { %v1673_v9 = vmul.f32 %v2484_v36, %v4463_v54 }
 0x6d8   :  { %v1625_v30 = vpop.f32.mrf.mxu1 }
 0x6d9   :  { %v1660_v46 = vadd.f32 %v1625_v30, %v5507_v31  ;;  %v1668_v30 = vsub.f32 1.0, %v2482_v35 }
 0x6da   :  { %v1627_v0 = vpop.f32.mrf.mxu1 }
 0x6db   :  { %v1662_v60 = vmul.f32 %v2478_v21, %v1660_v46  ;;  %v1661_v63 = vadd.f32 %v1627_v0, %v5508_v19  ;;  %v1669_v21 = vsub.f32 1.0, %v2484_v36  ;;  %v1672_v0 = vmul.f32 %v2482_v35, %v4461_v57  ;;  %v5511_v35 = vld [vmem:[#allocation36_spill] sm:$0xff] }
 0x6dc   :  { %v1629_v23 = vpop.f32.mrf.mxu1  ;;  %v5512_v36 = vld [vmem:[#allocation60_spill] sm:$0xff] }
 0x6dd   :  { %v1664_v26 = vadd.f32 %v2193_v52, %v1662_v60  ;;  %v1663_v55 = vmul.f32 %v2480_v41, %v1661_v63  ;;  %v2666_v52 = vld [vmem:[%s4978_s2 + $0x8] ss:$24 sps:$4 sm:$0xff]   ;;  %v2667_v60 = vld [vmem:[%s4978_s2 + $0x2dc] ss:$24 sps:$4 sm:$0xff]   ;;  %v2669_v63 = vld [vmem:[%s4978_s2 + $0x2ac] ss:$24 sps:$4 sm:$0xff]  }
 0x6de   :  { %v1630_v47 = vpop.f32.mrf.mxu1  ;;  %v2670_v41 = vld [vmem:[%s4978_s2 + $0x2a8] ss:$24 sps:$4 sm:$0xff]  }
 0x6df   :  { %2485 = vtanh.f32 %v1664_v26  ;;  %v1665_v32 = vadd.f32 %v2194_v16, %v1663_v55  ;;  %v2671_v16 = vld [vmem:[%s4978_s2 + $0x27c] ss:$24 sps:$4 sm:$0xff]   ;;  %v2672_v26 = vld [vmem:[%s4978_s2 + $0x278] ss:$24 sps:$4 sm:$0xff]   ;;  %v2673_v55 = vld [vmem:[%s4978_s2 + $0x24c] ss:$24 sps:$4 sm:$0xff]  }
 0x6e0   :  { %v5509_v47 = vld [vmem:[#allocation32_spill] sm:$0xff] }
 0x6e1   :  { %2487 = vtanh.f32 %v1665_v32  ;;  %v5510_v32 = vld [vmem:[#allocation34_spill] sm:$0xff] }
 0x6ec   :  { %v2486_v18 = vpop.eup %2485 }
 0x6ed   :  { %v1670_v46 = vmul.f32 %v2486_v18, %v1668_v30  ;;  %v5513_v30 = vld [vmem:[#allocation61_spill] sm:$0xff]  ;;  %v5514_v18 = vld [vmem:[#allocation62_spill] sm:$0xff] }
 0x6ee   :  { %v2488_v19 = vpop.eup %2487 }
 0x6ef   :  { %v1671_v31 = vmul.f32 %v2488_v19, %v1669_v21  ;;  %v4602_v23 = vadd.f32 %v1672_v0, %v1670_v46  ;;  %v2668_v19 = vld [vmem:[%s4978_s2 + $0x2d8] ss:$24 sps:$4 sm:$0xff]  }
 0x6f1   :  { %v4604_v38 = vadd.f32 %v1673_v9, %v1671_v31  ;;  %2199 = vst [vmem:[%s4982_s4 + $0x50] sm:$0xff] %v4602_v23  ;;  %v4618_v54 = vpack.c.bf16 %v4602_v23, %v4602_v23  ;;  %v2626_v9 = vld [vmem:[%s4978_s2 + $0x150] ss:$24 sps:$4 sm:$0xff]   ;;  %v2627_v31 = vld [vmem:[%s4978_s2 + $0x124] ss:$24 sps:$4 sm:$0xff]  }
 0x6f3   :  { %2200 = vst [vmem:[%s4982_s4 + $0x58] sm:$0xff] %v4604_v38  ;;  %v1687_v57 = vpack.c.bf16 %v4604_v38, %v4604_v38 }
 0x6f5   :  { %1720 = vmatprep.mubr.bf16.mxu0 %v1687_v57  ;;  %1761 = vmatprep.mubr.bf16.mxu1 %v1687_v57 }
 0x6f6   :  { %1721 = vmatmul.mubr.bf16.vlgmr.msra.gmra.mxu0 %v4618_v54  ;;  %1762 = vmatmul.mubr.bf16.vlgmr.msra.gmra.mxu1 %v4618_v54 }
 0x6f7   :  { %1771 = vmatpush1.bf16.msra.mxu0 %v3971_v10  ;;  %1802 = vmatprep.mubr.bf16.mxu0 %v1687_v57  ;;  %v2628_v10 = vld [vmem:[%s4978_s2 + $0x120] ss:$24 sps:$4 sm:$0xff]  }
 0x6f8   :  { %1772 = vmatprep.subr.bf16.mxu0 %v3977_v13  ;;  %1868 = vmatpush1.bf16.msra.mxu1 %v2626_v9  ;;  %v2629_v13 = vld [vmem:[%s4978_s2 + $0xf4] ss:$24 sps:$4 sm:$0xff]   ;;  %v2201_v9 = vld [vmem:[%s4980_s0 + $0x120] sm:$0xff] }
 0x6f9   :  { %1869 = vmatprep.subr.bf16.mxu1 %v2627_v31  ;;  %v2202_v31 = vld [vmem:[%s4980_s0 + $0x128] sm:$0xff] }
 0x6fb   :  { %1773 = vmatpush1.bf16.msra.mxu0 %v3985_v33  ;;  %v2630_v33 = vld [vmem:[%s4978_s2 + $0xf0] ss:$24 sps:$4 sm:$0xff]  }
 0x6fc   :  { %1774 = vmatprep.subr.bf16.mxu0 %v3991_v43  ;;  %1870 = vmatpush1.bf16.msra.mxu1 %v2628_v10  ;;  %v2631_v43 = vld [vmem:[%s4978_s2 + $0xc4] ss:$24 sps:$4 sm:$0xff]  }
 0x6fd   :  { %1871 = vmatprep.subr.bf16.mxu1 %v2629_v13 }
 0x6ff   :  { %1775 = vmatpush1.bf16.msra.mxu0 %v3999_v14  ;;  %v2632_v14 = vld [vmem:[%s4978_s2 + $0xc0] ss:$24 sps:$4 sm:$0xff]  }
 0x700   :  { %1776 = vmatprep.subr.bf16.mxu0 %v4005_v42  ;;  %1872 = vmatpush1.bf16.msra.mxu1 %v2630_v33  ;;  %v2633_v42 = vld [vmem:[%s4978_s2 + $0x94] ss:$24 sps:$4 sm:$0xff]  }
 0x701   :  { %1873 = vmatprep.subr.bf16.mxu1 %v2631_v43 }
 0x703   :  { %1777 = vmatpush1.bf16.msra.mxu0 %v4013_v62  ;;  %v2634_v62 = vld [vmem:[%s4978_s2 + $0x90] ss:$24 sps:$4 sm:$0xff]  }
 0x704   :  { %1778 = vmatprep.subr.bf16.mxu0 %v4019_v53  ;;  %1874 = vmatpush1.bf16.msra.mxu1 %v2632_v14  ;;  %v2635_v53 = vld [vmem:[%s4978_s2 + $0x64] ss:$24 sps:$4 sm:$0xff]   ;;  %v2203_v14 = vld [vmem:[%s4980_s0 + $0x130] sm:$0xff] }
 0x705   :  { %1875 = vmatprep.subr.bf16.mxu1 %v2633_v42  ;;  %v2204_v42 = vld [vmem:[%s4980_s0 + $0x138] sm:$0xff] }
 0x707   :  { %1779 = vmatpush1.bf16.msra.mxu0 %v4027_v58  ;;  %v2636_v58 = vld [vmem:[%s4978_s2 + $0x60] ss:$24 sps:$4 sm:$0xff]  }
 0x708   :  { %1780 = vmatprep.subr.bf16.mxu0 %v4033_v20  ;;  %1876 = vmatpush1.bf16.msra.mxu1 %v2634_v62  ;;  %v2637_v20 = vld [vmem:[%s4978_s2 + $0x34] ss:$24 sps:$4 sm:$0xff]  }
 0x709   :  { %1877 = vmatprep.subr.bf16.mxu1 %v2635_v53 }
 0x70b   :  { %1781 = vmatpush1.bf16.msra.mxu0 %v4041_v11  ;;  %v2638_v11 = vld [vmem:[%s4978_s2 + $0x30] ss:$24 sps:$4 sm:$0xff]  }
 0x70c   :  { %1782 = vmatprep.subr.bf16.mxu0 %v4047_v61  ;;  %1878 = vmatpush1.bf16.msra.mxu1 %v2636_v58  ;;  %v2639_v61 = vld [vmem:[%s4978_s2 + $0x4] ss:$24 sps:$4 sm:$0xff]  }
 0x70d   :  { %1879 = vmatprep.subr.bf16.mxu1 %v2637_v20 }
 0x70f   :  { %1783 = vmatpush1.bf16.msra.mxu0 %v4055_v28  ;;  %v2640_v28 = vld [vmem:[%s4978_s2] ss:$24 sps:$4 sm:$0xff]  }
 0x710   :  { %1784 = vmatprep.subr.bf16.mxu0 %v4061_v29  ;;  %1880 = vmatpush1.bf16.msra.mxu1 %v2638_v11  ;;  %v2641_v29 = vld [vmem:[%s4978_s2 + $0x2d4] ss:$24 sps:$4 sm:$0xff]  }
 0x711   :  { %1881 = vmatprep.subr.bf16.mxu1 %v2639_v61 }
 0x713   :  { %1785 = vmatpush1.bf16.msra.mxu0 %v4069_v37  ;;  %v2642_v37 = vld [vmem:[%s4978_s2 + $0x2d0] ss:$24 sps:$4 sm:$0xff]  }
 0x714   :  { %1786 = vmatprep.subr.bf16.mxu0 %v4075_v50  ;;  %1882 = vmatpush1.bf16.msra.mxu1 %v2640_v28  ;;  %v2643_v50 = vld [vmem:[%s4978_s2 + $0x2a4] ss:$24 sps:$4 sm:$0xff]  }
 0x715   :  { %1883 = vmatprep.subr.bf16.mxu1 %v2641_v29 }
 0x717   :  { %1787 = vmatpush2.bf16.msra.mxu0 %v4083_v39  ;;  %v2644_v39 = vld [vmem:[%s4978_s2 + $0x2a0] ss:$24 sps:$4 sm:$0xff]  }
 0x718   :  { %1788 = vmatprep.subr.bf16.mxu0 %v4089_v40  ;;  %1884 = vmatpush2.bf16.msra.mxu1 %v2642_v37  ;;  %v2645_v40 = vld [vmem:[%s4978_s2 + $0x274] ss:$24 sps:$4 sm:$0xff]  }
 0x719   :  { %1885 = vmatprep.subr.bf16.mxu1 %v2643_v50 }
 0x71b   :  { %1789 = vmatpush2.bf16.msra.mxu0 %v5397_v25  ;;  %v2646_v25 = vld [vmem:[%s4978_s2 + $0x270] ss:$24 sps:$4 sm:$0xff]  }
 0x71c   :  { %1790 = vmatprep.subr.bf16.mxu0 %v4103_v17  ;;  %1886 = vmatpush2.bf16.msra.mxu1 %v2644_v39  ;;  %v2647_v17 = vld [vmem:[%s4978_s2 + $0x244] ss:$24 sps:$4 sm:$0xff]  }
 0x71d   :  { %1887 = vmatprep.subr.bf16.mxu1 %v2645_v40 }
 0x71f   :  { %1791 = vmatpush2.bf16.msra.mxu0 %v5399_v51  ;;  %v2648_v51 = vld [vmem:[%s4978_s2 + $0x240] ss:$24 sps:$4 sm:$0xff]  }
 0x720   :  { %1792 = vmatprep.subr.bf16.mxu0 %v5453_v34  ;;  %1888 = vmatpush2.bf16.msra.mxu1 %v2646_v25  ;;  %v2649_v34 = vld [vmem:[%s4978_s2 + $0x214] ss:$24 sps:$4 sm:$0xff]  }
 0x721   :  { %1889 = vmatprep.subr.bf16.mxu1 %v2647_v17  ;;  %v5515_v17 = vld [vmem:[#allocation58_spill] sm:$0xff] }
 0x723   :  { %1793 = vmatpush2.bf16.msra.mxu0 %v5456_v22  ;;  %v2650_v22 = vld [vmem:[%s4978_s2 + $0x210] ss:$24 sps:$4 sm:$0xff]  }
 0x724   :  { %1794 = vmatprep.subr.bf16.mxu0 %v5457_v24  ;;  %1890 = vmatpush2.bf16.msra.mxu1 %v2648_v51  ;;  %v2651_v24 = vld [vmem:[%s4978_s2 + $0x15c] ss:$24 sps:$4 sm:$0xff]  }
 0x725   :  { %1891 = vmatprep.subr.bf16.mxu1 %v2649_v34 }
 0x727   :  { %1795 = vmatpush2.bf16.msra.mxu0 %v5460_v49  ;;  %v2652_v49 = vld [vmem:[%s4978_s2 + $0x158] ss:$24 sps:$4 sm:$0xff]  }
 0x728   :  { %1796 = vmatprep.subr.bf16.mxu0 %v5461_v45  ;;  %1892 = vmatpush2.bf16.msra.mxu1 %v2650_v22  ;;  %v2653_v45 = vld [vmem:[%s4978_s2 + $0x12c] ss:$24 sps:$4 sm:$0xff]  }
 0x729   :  { %1893 = vmatprep.subr.bf16.mxu1 %v5463_v2  ;;  %v2654_v2 = vld [vmem:[%s4978_s2 + $0x128] ss:$24 sps:$4 sm:$0xff]  }
 0x72a   :  { %v2205_v22 = vld [vmem:[%s4980_s0 + $0x140] sm:$0xff] }
 0x72b   :  { %1797 = vmatpush2.bf16.msra.mxu0 %v5464_v3  ;;  %v2655_v3 = vld [vmem:[%s4978_s2 + $0xfc] ss:$24 sps:$4 sm:$0xff]  }
 0x72c   :  { %1798 = vmatprep.subr.bf16.mxu0 %v5465_v4  ;;  %1894 = vmatpush2.bf16.msra.mxu1 %v5466_v5  ;;  %v2656_v4 = vld [vmem:[%s4978_s2 + $0xf8] ss:$24 sps:$4 sm:$0xff]   ;;  %v2657_v5 = vld [vmem:[%s4978_s2 + $0xcc] ss:$24 sps:$4 sm:$0xff]  }
 0x72d   :  { %1895 = vmatprep.subr.bf16.mxu1 %v5467_v6  ;;  %v2658_v6 = vld [vmem:[%s4978_s2 + $0xc8] ss:$24 sps:$4 sm:$0xff]  }
 0x72f   :  { %1799 = vmatpush2.bf16.msra.mxu0 %v5468_v7  ;;  %v2659_v7 = vld [vmem:[%s4978_s2 + $0x9c] ss:$24 sps:$4 sm:$0xff]  }
 0x730   :  { %1800 = vmatprep.subr.bf16.mxu0 %v5469_v8  ;;  %1896 = vmatpush2.bf16.msra.mxu1 %v5470_v12  ;;  %v2660_v8 = vld [vmem:[%s4978_s2 + $0x98] ss:$24 sps:$4 sm:$0xff]   ;;  %v2661_v12 = vld [vmem:[%s4978_s2 + $0x6c] ss:$24 sps:$4 sm:$0xff]  }
 0x731   :  { %1897 = vmatprep.subr.bf16.mxu1 %v5471_v27  ;;  %v2662_v27 = vld [vmem:[%s4978_s2 + $0x68] ss:$24 sps:$4 sm:$0xff]  }
 0x733   :  { %1801 = vmatpush2.bf16.msra.mxu0 %v5472_v15  ;;  %v2663_v15 = vld [vmem:[%s4978_s2 + $0x3c] ss:$24 sps:$4 sm:$0xff]  }
 0x734   :  { %1908 = vmatprep.subr.bf16.mxu0 %v2651_v24  ;;  %1898 = vmatpush2.bf16.msra.mxu1 %v5474_v48  ;;  %v2664_v48 = vld [vmem:[%s4978_s2 + $0x38] ss:$24 sps:$4 sm:$0xff]  }
 0x735   :  { %1949 = vmatprep.subr.bf16.mxu1 %v5475_v56  ;;  %v2665_v56 = vld [vmem:[%s4978_s2 + $0xc] ss:$24 sps:$4 sm:$0xff]  }
 0x736   :  { %1803 = vmatmul.mubr.bf16.vlgmr.msra.gmra.mxu0 %v4618_v54 }
 0x737   :  { %1909 = vmatpush1.bf16.msra.mxu0 %v2652_v49 }
 0x738   :  { %1910 = vmatprep.subr.bf16.mxu0 %v2653_v45  ;;  %v5516_v45 = vld [vmem:[#allocation59_spill] sm:$0xff] }
 0x73b   :  { %1911 = vmatpush1.bf16.msra.mxu0 %v2654_v2 }
 0x73c   :  { %1912 = vmatprep.subr.bf16.mxu0 %v2655_v3 }
 0x73f   :  { %1913 = vmatpush1.bf16.msra.mxu0 %v2656_v4  ;;  %v2206_v4 = vld [vmem:[%s4980_s0 + $0x148] sm:$0xff] }
 0x740   :  { %1914 = vmatprep.subr.bf16.mxu0 %v2657_v5 }
 0x743   :  { %1915 = vmatpush1.bf16.msra.mxu0 %v2658_v6 }
 0x744   :  { %1916 = vmatprep.subr.bf16.mxu0 %v2659_v7 }
 0x747   :  { %1917 = vmatpush1.bf16.msra.mxu0 %v2660_v8 }
 0x748   :  { %1918 = vmatprep.subr.bf16.mxu0 %v2661_v12 }
 0x74b   :  { %1919 = vmatpush1.bf16.msra.mxu0 %v2662_v27 }
 0x74c   :  { %1920 = vmatprep.subr.bf16.mxu0 %v2663_v15 }
 0x74f   :  { %1921 = vmatpush1.bf16.msra.mxu0 %v2664_v48 }
 0x750   :  { %1922 = vmatprep.subr.bf16.mxu0 %v2665_v56 }
 0x753   :  { %1923 = vmatpush1.bf16.msra.mxu0 %v2666_v52 }
 0x754   :  { %1924 = vmatprep.subr.bf16.mxu0 %v2667_v60 }
 0x757   :  { %1925 = vmatpush2.bf16.msra.mxu0 %v2668_v19 }
 0x758   :  { %1926 = vmatprep.subr.bf16.mxu0 %v2669_v63 }
 0x75b   :  { %1927 = vmatpush2.bf16.msra.mxu0 %v2670_v41 }
 0x75c   :  { %1928 = vmatprep.subr.bf16.mxu0 %v2671_v16 }
 0x75f   :  { %1929 = vmatpush2.bf16.msra.mxu0 %v2672_v26 }
 0x760   :  { %1930 = vmatprep.subr.bf16.mxu0 %v2673_v55 }
 0x763   :  { %1931 = vmatpush2.bf16.msra.mxu0 %v5498_v1 }
 0x764   :  { %1932 = vmatprep.subr.bf16.mxu0 %v5499_v59 }
 0x767   :  { %1933 = vmatpush2.bf16.msra.mxu0 %v5500_v44 }
 0x768   :  { %1934 = vmatprep.subr.bf16.mxu0 %v5509_v47  ;;  %v2674_v47 = vld [vmem:[%s4978_s2 + $0x160] ss:$24 sps:$4 sm:$0xff]  }
 0x76b   :  { %1935 = vmatpush2.bf16.msra.mxu0 %v5510_v32  ;;  %v2675_v32 = vld [vmem:[%s4978_s2 + $0x134] ss:$24 sps:$4 sm:$0xff]  }
 0x76c   :  { %1936 = vmatprep.subr.bf16.mxu0 %v5511_v35  ;;  %v2676_v35 = vld [vmem:[%s4978_s2 + $0x130] ss:$24 sps:$4 sm:$0xff]  }
 0x76f   :  { %1937 = vmatpush2.bf16.msra.mxu0 %v5512_v36  ;;  %v2677_v36 = vld [vmem:[%s4978_s2 + $0x104] ss:$24 sps:$4 sm:$0xff]  }
 0x770   :  { %1938 = vmatprep.subr.bf16.mxu0 %v5513_v30  ;;  %v2678_v30 = vld [vmem:[%s4978_s2 + $0x100] ss:$24 sps:$4 sm:$0xff]  }
 0x773   :  { %1939 = vmatpush2.bf16.msra.mxu0 %v5514_v18  ;;  %v2679_v18 = vld [vmem:[%s4978_s2 + $0xd4] ss:$24 sps:$4 sm:$0xff]  }
 0x7b6   :  { %v1722_v21 = vpop.f32.mrf.mxu0  ;;  %v1763_v46 = vpop.f32.mrf.mxu1 }
 0x7b7   :  { %v1811_v10 = vadd.f32 %v2201_v9, %v1722_v21  ;;  %v1825_v62 = vadd.f32 %v2203_v14, %v1763_v46  ;;  %v2680_v21 = vld [vmem:[%s4978_s2 + $0xd0] ss:$24 sps:$4 sm:$0xff]   ;;  %v2681_v46 = vld [vmem:[%s4978_s2 + $0xa4] ss:$24 sps:$4 sm:$0xff]   ;;  %v2694_v14 = vld [vmem:[%s4978_s2 + $0x280] ss:$24 sps:$4 sm:$0xff]  }
 0x7b8   :  { %v1724_v0 = vpop.f32.mrf.mxu0  ;;  %v1765_v1 = vpop.f32.mrf.mxu1  ;;  %v2688_v9 = vld [vmem:[%s4978_s2 + $0x10] ss:$24 sps:$4 sm:$0xff]  }
 0x7b9   :  { %v1812_v13 = vadd.f32 %v2202_v31, %v1724_v0  ;;  %v2207_v33 = vmul.f32 -1.442695, %v1811_v10  ;;  %v1826_v53 = vadd.f32 %v2204_v42, %v1765_v1  ;;  %v2209_v58 = vmul.f32 -1.442695, %v1825_v62  ;;  %v2682_v0 = vld [vmem:[%s4978_s2 + $0xa0] ss:$24 sps:$4 sm:$0xff]  }
 0x7ba   :  { %v1726_v57 = vpop.f32.mrf.mxu0  ;;  %v1767_v59 = vpop.f32.mrf.mxu1  ;;  %v2683_v1 = vld [vmem:[%s4978_s2 + $0x74] ss:$24 sps:$4 sm:$0xff]   ;;  %v2689_v31 = vld [vmem:[%s4978_s2 + $0x2e4] ss:$24 sps:$4 sm:$0xff]   ;;  %v2690_v10 = vld [vmem:[%s4978_s2 + $0x2e0] ss:$24 sps:$4 sm:$0xff]  }
 0x7bb   :  { %v2208_v43 = vmul.f32 -1.442695, %v1812_v13  ;;  %2489 = vpow2.f32 %v2207_v33  ;;  %v2210_v20 = vmul.f32 -1.442695, %v1826_v53  ;;  %v2684_v57 = vld [vmem:[%s4978_s2 + $0x70] ss:$24 sps:$4 sm:$0xff]  }
 0x7bc   :  { %v1727_v54 = vpop.f32.mrf.mxu0  ;;  %v1768_v44 = vpop.f32.mrf.mxu1  ;;  %v2685_v59 = vld [vmem:[%s4978_s2 + $0x44] ss:$24 sps:$4 sm:$0xff]   ;;  %v2691_v13 = vld [vmem:[%s4978_s2 + $0x2b4] ss:$24 sps:$4 sm:$0xff]   ;;  %v2692_v33 = vld [vmem:[%s4978_s2 + $0x2b0] ss:$24 sps:$4 sm:$0xff]  }
 0x7bd   :  { %2491 = vpow2.f32 %v2208_v43  ;;  %v2686_v54 = vld [vmem:[%s4978_s2 + $0x40] ss:$24 sps:$4 sm:$0xff]   ;;  %v2687_v44 = vld [vmem:[%s4978_s2 + $0x14] ss:$24 sps:$4 sm:$0xff]   ;;  %v2693_v43 = vld [vmem:[%s4978_s2 + $0x284] ss:$24 sps:$4 sm:$0xff]  }
 0x7be   :  { %2493 = vpow2.f32 %v2209_v58  ;;  %v2695_v42 = vld [vmem:[%s4978_s2 + $0x254] ss:$24 sps:$4 sm:$0xff]   ;;  %v2696_v62 = vld [vmem:[%s4978_s2 + $0x250] ss:$24 sps:$4 sm:$0xff]   ;;  %v2697_v53 = vld [vmem:[%s4978_s2 + $0x224] ss:$24 sps:$4 sm:$0xff]  }
 0x7bf   :  { %2495 = vpow2.f32 %v2210_v20  ;;  %v2698_v58 = vld [vmem:[%s4978_s2 + $0x220] ss:$24 sps:$4 sm:$0xff]   ;;  %v2699_v20 = vld [vmem:[%s4978_s2 + $0x1f4] ss:$24 sps:$4 sm:$0xff]  }
 0x7c8   :  { %v2490_v11 = vpop.eup %2489 }
 0x7c9   :  { %v1819_v28 = vadd.f32 1.0, %v2490_v11  ;;  %v2700_v11 = vld [vmem:[%s4978_s2 + $0x1f0] ss:$24 sps:$4 sm:$0xff]  }
 0x7ca   :  { %v2492_v61 = vpop.eup %2491 }
 0x7cb   :  { %v1820_v29 = vadd.f32 1.0, %v2492_v61  ;;  %2497 = vrcp.f32 %v1819_v28  ;;  %v2494_v37 = vpop.eup %2493  ;;  %v2701_v61 = vld [vmem:[%s4978_s2 + $0x1c4] ss:$24 sps:$4 sm:$0xff]   ;;  %v2702_v28 = vld [vmem:[%s4978_s2 + $0x1c0] ss:$24 sps:$4 sm:$0xff]  }
 0x7cc   :  { %v2496_v50 = vpop.eup %2495  ;;  %v1833_v39 = vadd.f32 1.0, %v2494_v37  ;;  %v2704_v37 = vld [vmem:[%s4978_s2 + $0x190] ss:$24 sps:$4 sm:$0xff]  }
 0x7cd   :  { %2499 = vrcp.f32 %v1820_v29  ;;  %v1834_v25 = vadd.f32 1.0, %v2496_v50  ;;  %v2703_v29 = vld [vmem:[%s4978_s2 + $0x194] ss:$24 sps:$4 sm:$0xff]  }
 0x7ce   :  { %2501 = vrcp.f32 %v1833_v39 }
 0x7cf   :  { %2503 = vrcp.f32 %v1834_v25 }
 0x7d8   :  { %v2498_v34 = vpop.eup %2497 }
 0x7da   :  { %v2500_v3 = vpop.eup %2499 }
 0x7db   :  { %v2502_v27 = vpop.eup %2501 }
 0x7dc   :  { %v2504_v15 = vpop.eup %2503  ;;  %v1847_v48 = vsub.f32 1.0, %v2502_v27  ;;  %v1851_v19 = vmul.f32 %v2502_v27, %v4602_v23 }
 0x7dd   :  { %v1848_v52 = vsub.f32 1.0, %v2504_v15  ;;  %v1852_v16 = vmul.f32 %v2504_v15, %v4604_v38 }
 0x7f6   :  { %v1804_v40 = vpop.f32.mrf.mxu0 }
 0x7f7   :  { %v1839_v51 = vadd.f32 %v1804_v40, %v5515_v17 }
 0x7f8   :  { %v1806_v24 = vpop.f32.mrf.mxu0 }
 0x7f9   :  { %v1841_v49 = vmul.f32 %v2498_v34, %v1839_v51  ;;  %v1840_v2 = vadd.f32 %v1806_v24, %v5516_v45 }
 0x7fa   :  { %v1808_v5 = vpop.f32.mrf.mxu0 }
 0x7fb   :  { %v1843_v6 = vadd.f32 %v2205_v22, %v1841_v49  ;;  %v1842_v7 = vmul.f32 %v2500_v3, %v1840_v2  ;;  %v2213_v49 = vld [vmem:[%s4980_s0 + $0x150] sm:$0xff]  ;;  %v2214_v2 = vld [vmem:[%s4980_s0 + $0x158] sm:$0xff] }
 0x7fc   :  { %v1809_v8 = vpop.f32.mrf.mxu0 }
 0x7fd   :  { %2505 = vtanh.f32 %v1843_v6  ;;  %v1844_v12 = vadd.f32 %v2206_v4, %v1842_v7  ;;  %v2215_v7 = vld [vmem:[%s4980_s0 + $0x160] sm:$0xff]  ;;  %v2216_v8 = vld [vmem:[%s4980_s0 + $0x168] sm:$0xff] }
 0x7ff   :  { %2507 = vtanh.f32 %v1844_v12 }
 0x80a   :  { %v2506_v56 = vpop.eup %2505 }
 0x80b   :  { %v1849_v60 = vmul.f32 %v2506_v56, %v1847_v48 }
 0x80c   :  { %v2508_v63 = vpop.eup %2507 }
 0x80d   :  { %v1850_v41 = vmul.f32 %v2508_v63, %v1848_v52  ;;  %v4836_v26 = vadd.f32 %v1851_v19, %v1849_v60 }
 0x80f   :  { %v4838_v55 = vadd.f32 %v1852_v16, %v1850_v41  ;;  %2211 = vst [vmem:[%s4982_s4 + $0x60] sm:$0xff] %v4836_v26  ;;  %v4852_v38 = vpack.c.bf16 %v4836_v26, %v4836_v26 }
 0x811   :  { %2212 = vst [vmem:[%s4982_s4 + $0x68] sm:$0xff] %v4838_v55  ;;  %v1866_v23 = vpack.c.bf16 %v4838_v55, %v4838_v55 }
 0x813   :  { %1899 = vmatprep.mubr.bf16.mxu1 %v1866_v23  ;;  %1940 = vmatprep.mubr.bf16.mxu0 %v1866_v23 }
 0x814   :  { %1900 = vmatmul.mubr.bf16.vlgmr.msra.gmra.mxu1 %v4852_v38  ;;  %1941 = vmatmul.mubr.bf16.vlgmr.msra.gmra.mxu0 %v4852_v38 }
 0x815   :  { %1950 = vmatpush1.bf16.msra.mxu1 %v2674_v47  ;;  %1981 = vmatprep.mubr.bf16.mxu1 %v1866_v23 }
 0x816   :  { %1951 = vmatprep.subr.bf16.mxu1 %v2675_v32 }
 0x819   :  { %1952 = vmatpush1.bf16.msra.mxu1 %v2676_v35  ;;  %v2217_v35 = vld [vmem:[%s4980_s0 + $0x170] sm:$0xff] }
 0x81a   :  { %1953 = vmatprep.subr.bf16.mxu1 %v2677_v36 }
 0x81d   :  { %1954 = vmatpush1.bf16.msra.mxu1 %v2678_v30 }
 0x81e   :  { %1955 = vmatprep.subr.bf16.mxu1 %v2679_v18 }
 0x821   :  { %1956 = vmatpush1.bf16.msra.mxu1 %v2680_v21 }
 0x822   :  { %1957 = vmatprep.subr.bf16.mxu1 %v2681_v46  ;;  %v2218_v46 = vld [vmem:[%s4980_s0 + $0x178] sm:$0xff] }
 0x825   :  { %1958 = vmatpush1.bf16.msra.mxu1 %v2682_v0 }
 0x826   :  { %1959 = vmatprep.subr.bf16.mxu1 %v2683_v1 }
 0x829   :  { %1960 = vmatpush1.bf16.msra.mxu1 %v2684_v57 }
 0x82a   :  { %1961 = vmatprep.subr.bf16.mxu1 %v2685_v59 }
 0x82d   :  { %1962 = vmatpush1.bf16.msra.mxu1 %v2686_v54 }
 0x82e   :  { %1963 = vmatprep.subr.bf16.mxu1 %v2687_v44 }
 0x831   :  { %1964 = vmatpush1.bf16.msra.mxu1 %v2688_v9 }
 0x832   :  { %1965 = vmatprep.subr.bf16.mxu1 %v2689_v31 }
 0x835   :  { %1966 = vmatpush2.bf16.msra.mxu1 %v2690_v10 }
 0x836   :  { %1967 = vmatprep.subr.bf16.mxu1 %v2691_v13 }
 0x839   :  { %1968 = vmatpush2.bf16.msra.mxu1 %v2692_v33 }
 0x83a   :  { %1969 = vmatprep.subr.bf16.mxu1 %v2693_v43 }
 0x83d   :  { %1970 = vmatpush2.bf16.msra.mxu1 %v2694_v14 }
 0x83e   :  { %1971 = vmatprep.subr.bf16.mxu1 %v2695_v42 }
 0x841   :  { %1972 = vmatpush2.bf16.msra.mxu1 %v2696_v62 }
 0x842   :  { %1973 = vmatprep.subr.bf16.mxu1 %v2697_v53 }
 0x845   :  { %1974 = vmatpush2.bf16.msra.mxu1 %v2698_v58 }
 0x846   :  { %1975 = vmatprep.subr.bf16.mxu1 %v2699_v20 }
 0x849   :  { %1976 = vmatpush2.bf16.msra.mxu1 %v2700_v11 }
 0x84a   :  { %1977 = vmatprep.subr.bf16.mxu1 %v2701_v61 }
 0x84d   :  { %1978 = vmatpush2.bf16.msra.mxu1 %v2702_v28 }
 0x84e   :  { %1979 = vmatprep.subr.bf16.mxu1 %v2703_v29 }
 0x851   :  { %1980 = vmatpush2.bf16.msra.mxu1 %v2704_v37 }
 0x854   :  { %1982 = vmatmul.mubr.bf16.vlgmr.msra.gmra.mxu1 %v4852_v38 }
 0x8d4   :  { %v1901_v50 = vpop.f32.mrf.mxu1  ;;  %v1942_v39 = vpop.f32.mrf.mxu0 }
 0x8d5   :  { %v1990_v3 = vadd.f32 %v2213_v49, %v1901_v50  ;;  %v2004_v12 = vadd.f32 %v2215_v7, %v1942_v39 }
 0x8d6   :  { %v1903_v40 = vpop.f32.mrf.mxu1  ;;  %v1944_v25 = vpop.f32.mrf.mxu0 }
 0x8d7   :  { %v1991_v4 = vadd.f32 %v2214_v2, %v1903_v40  ;;  %v2219_v5 = vmul.f32 -1.442695, %v1990_v3  ;;  %v2005_v27 = vadd.f32 %v2216_v8, %v1944_v25  ;;  %v2221_v15 = vmul.f32 -1.442695, %v2004_v12 }
 0x8d8   :  { %v1905_v51 = vpop.f32.mrf.mxu1  ;;  %v1946_v34 = vpop.f32.mrf.mxu0 }
 0x8d9   :  { %v2220_v6 = vmul.f32 -1.442695, %v1991_v4  ;;  %2509 = vpow2.f32 %v2219_v5  ;;  %v2222_v48 = vmul.f32 -1.442695, %v2005_v27 }
 0x8da   :  { %v1906_v22 = vpop.f32.mrf.mxu1  ;;  %v1947_v24 = vpop.f32.mrf.mxu0 }
 0x8db   :  { %2511 = vpow2.f32 %v2220_v6 }
 0x8dc   :  { %2513 = vpow2.f32 %v2221_v15 }
 0x8dd   :  { %2515 = vpow2.f32 %v2222_v48 }
 0x8e6   :  { %v2510_v56 = vpop.eup %2509 }
 0x8e7   :  { %v1998_v60 = vadd.f32 1.0, %v2510_v56 }
 0x8e8   :  { %v2512_v52 = vpop.eup %2511 }
 0x8e9   :  { %v1999_v19 = vadd.f32 1.0, %v2512_v52  ;;  %2517 = vrcp.f32 %v1998_v60  ;;  %v2514_v63 = vpop.eup %2513 }
 0x8ea   :  { %v2516_v41 = vpop.eup %2515  ;;  %v2012_v16 = vadd.f32 1.0, %v2514_v63 }
 0x8eb   :  { %2519 = vrcp.f32 %v1999_v19  ;;  %v2013_v38 = vadd.f32 1.0, %v2516_v41 }
 0x8ec   :  { %2521 = vrcp.f32 %v2012_v16 }
 0x8ed   :  { %2523 = vrcp.f32 %v2013_v38 }
 0x8f6   :  { %v2518_v32 = vpop.eup %2517 }
 0x8f8   :  { %v2520_v21 = vpop.eup %2519 }
 0x8f9   :  { %v2522_v54 = vpop.eup %2521 }
 0x8fa   :  { %v2524_v44 = vpop.eup %2523  ;;  %v2026_v9 = vsub.f32 1.0, %v2522_v54  ;;  %v2030_v10 = vmul.f32 %v2522_v54, %v4836_v26 }
 0x8fb   :  { %v2031_v43 = vmul.f32 %v2524_v44, %v4838_v55 }
 0x914   :  { %v1983_v23 = vpop.f32.mrf.mxu1 }
 0x915   :  { %v2018_v47 = vadd.f32 %v1983_v23, %v5515_v17 }
 0x916   :  { %v1985_v36 = vpop.f32.mrf.mxu1 }
 0x917   :  { %v2020_v30 = vmul.f32 %v2518_v32, %v2018_v47  ;;  %v2019_v18 = vadd.f32 %v1985_v36, %v5516_v45  ;;  %v2027_v45 = vsub.f32 1.0, %v2524_v44 }
 0x918   :  { %v1987_v0 = vpop.f32.mrf.mxu1 }
 0x919   :  { %v2022_v1 = vadd.f32 %v2217_v35, %v2020_v30  ;;  %v2021_v57 = vmul.f32 %v2520_v21, %v2019_v18 }
 0x91a   :  { %v1988_v17 = vpop.f32.mrf.mxu1 }
 0x91b   :  { %2525 = vtanh.f32 %v2022_v1  ;;  %v2023_v59 = vadd.f32 %v2218_v46, %v2021_v57 }
 0x91d   :  { %2527 = vtanh.f32 %v2023_v59 }
 0x928   :  { %v2526_v31 = vpop.eup %2525 }
 0x929   :  { %v2028_v13 = vmul.f32 %v2526_v31, %v2026_v9 }
 0x92a   :  { %v2528_v33 = vpop.eup %2527 }
 0x92b   :  { %v2032_v14 = vadd.f32 %v2030_v10, %v2028_v13  ;;  %v2029_v42 = vmul.f32 %v2528_v33, %v2027_v45 }
 0x92d   :  { %2223 = vst [vmem:[%s4982_s4 + $0x70] sm:$0xff] %v2032_v14  ;;  %v2033_v62 = vadd.f32 %v2031_v43, %v2029_v42 }
 0x92f   :  { %2224 = vst [vmem:[%s4982_s4 + $0x78] sm:$0xff] %v2033_v62 }

// kernel: seq2seq_forward.10
= control target key start
LH: loop header
LB: loop body
LE: loop exit
PB: predicated region body
PF: predicated region fallthrough
CT: control target
= control target key end

     0   :  { %v1491_v1 = vmov 0.0   ;;  %v1492_v2 = vmov 0   ;;  %vm1493_vm0 = vmmov 0   ;;  %s2086_s2 = inlined_call_operand.vmem [shape: bf16[128,384], index: 2, kind: input, shape index: {}]   ;;  %s2087_s1 = inlined_call_operand.vmem [shape: f32[8,128], index: 1, kind: input, shape index: {}]   ;;  %s2088_s0 = inlined_call_operand.vmem [shape: f32[8,8,384], index: 0, kind: input, shape index: {}]   ;;  %s2089_s3 = inlined_call_operand.vmem [shape: f32[1,128], index: 3, kind: input, shape index: {}]   ;;  %s2090_s4 = inlined_call_operand.vmem [shape: f32[8,8,128], index: 4, kind: output, shape index: {}]  }
   0x1   :  { %v1522_v0 = vld [vmem:[%s2086_s2 + $0xac] ss:$12 sps:$4 sm:$0xff]   ;;  %1209 = vmatprep.subr.bf16.mxu1 %v1491_v1  ;;  %216 = vmatprep.mubr.bf16.mxu0 %v1492_v2  ;;  %v1529_v3 = vld [vmem:[%s2086_s2 + $0xa8] ss:$12 sps:$4 sm:$0xff]   ;;  %v1543_v5 = vld [vmem:[%s2086_s2 + $0x90] ss:$12 sps:$4 sm:$0xff]  }
   0x2   :  { %1225 = vmatprep.mubr.msk.bf16.mxu1 %vm1493_vm0, %v1491_v1  ;;  %184 = vmatprep.subr.bf16.mxu0 %v1522_v0  ;;  %v1537_v4 = vld [vmem:[%s2086_s2 + $0x94] ss:$12 sps:$4 sm:$0xff]   ;;  %v1549_v6 = vld [vmem:[%s2086_s2 + $0x7c] ss:$12 sps:$4 sm:$0xff]   ;;  %v1555_v7 = vld [vmem:[%s2086_s2 + $0x78] ss:$12 sps:$4 sm:$0xff]  }
   0x3   :  { %185 = vmatpush1.bf16.msra.mxu0 %v1529_v3  ;;  %v1561_v8 = vld [vmem:[%s2086_s2 + $0x64] ss:$12 sps:$4 sm:$0xff]   ;;  %v1572_v10 = vld [vmem:[%s2086_s2 + $0x60] ss:$12 sps:$4 sm:$0xff]   ;;  %v1590_v13 = vld [vmem:[%s2086_s2 + $0x48] ss:$12 sps:$4 sm:$0xff]  }
   0x4   :  { %186 = vmatprep.subr.bf16.mxu0 %v1537_v4  ;;  %v1566_v9 = vld [vmem:[%s2086_s2 + $0xb0] ss:$12 sps:$4 sm:$0xff]   ;;  %v1578_v11 = vld [vmem:[%s2086_s2 + $0x4c] ss:$12 sps:$4 sm:$0xff]   ;;  %v1596_v14 = vld [vmem:[%s2086_s2 + $0x34] ss:$12 sps:$4 sm:$0xff]  }
   0x5   :  { %1210 = vmatpush3.bf16.msra.mxu1 %v1566_v9  ;;  %v1584_v12 = vld [vmem:[%s2086_s2 + $0x98] ss:$12 sps:$4 sm:$0xff]   ;;  %v1603_v15 = vld [vmem:[%s2086_s2 + $0x80] ss:$12 sps:$4 sm:$0xff]   ;;  %v1610_v16 = vld [vmem:[%s2086_s2 + $0x30] ss:$12 sps:$4 sm:$0xff]  }
   0x6   :  { %1211 = vmatprep.subr.bf16.mxu1 %v1491_v1  ;;  %v1616_v17 = vld [vmem:[%s2086_s2 + $0x1c] ss:$12 sps:$4 sm:$0xff]   ;;  %v1629_v19 = vld [vmem:[%s2086_s2 + $0x18] ss:$12 sps:$4 sm:$0xff]   ;;  %v1648_v22 = vld [vmem:[%s2086_s2] ss:$12 sps:$4 sm:$0xff]  }
   0x7   :  { %187 = vmatpush1.bf16.msra.mxu0 %v1543_v5  ;;  %v1622_v18 = vld [vmem:[%s2086_s2 + $0x68] ss:$12 sps:$4 sm:$0xff]   ;;  %v1635_v20 = vld [vmem:[%s2086_s2 + $0x4] ss:$12 sps:$4 sm:$0xff]   ;;  %v1670_v26 = vld [vmem:[%s2086_s2 + $0x20] ss:$12 sps:$4 sm:$0xff]  }
   0x8   :  { %188 = vmatprep.subr.bf16.mxu0 %v1549_v6  ;;  %v1641_v21 = vld [vmem:[%s2086_s2 + $0x50] ss:$12 sps:$4 sm:$0xff]   ;;  %v1653_v23 = vld [vmem:[%s2087_s1] sm:$0xff]  ;;  %v1680_v27 = vld [vmem:[%s2086_s2 + $0x8] ss:$12 sps:$4 sm:$0xff]  }
   0x9   :  { %1212 = vmatpush3.bf16.msra.mxu1 %v1584_v12  ;;  %v1660_v24 = vld [vmem:[%s2086_s2 + $0x38] ss:$12 sps:$4 sm:$0xff]   ;;  %v55_v25 = vpack.c.bf16 %v1653_v23, %v1653_v23  ;;  %v53_v33 = vld [vmem:[%s2088_s0 + $0x8] sm:$0xff]  ;;  %v1727_v45 = vld [vmem:[%s2089_s3] ss:$0 sm:$0xff] }
   0xa   :  { %1213 = vmatprep.subr.bf16.mxu1 %v1491_v1  ;;  %v52_v28 = vld [vmem:[%s2088_s0] sm:$0xff]  ;;  %v54_v49 = vld [vmem:[%s2088_s0 + $0x10] sm:$0xff]  ;;  %v1095_v59 = vld [vmem:[%s2088_s0 + $0x18] sm:$0xff] }
   0xb   :  { %189 = vmatpush1.bf16.msra.mxu0 %v1555_v7 }
   0xc   :  { %190 = vmatprep.subr.bf16.mxu0 %v1561_v8 }
   0xd   :  { %1214 = vmatpush3.bf16.msra.mxu1 %v1603_v15 }
   0xe   :  { %1215 = vmatprep.subr.bf16.mxu1 %v1491_v1 }
   0xf   :  { %191 = vmatpush1.bf16.msra.mxu0 %v1572_v10 }
  0x10   :  { %192 = vmatprep.subr.bf16.mxu0 %v1578_v11 }
  0x11   :  { %1216 = vmatpush3.bf16.msra.mxu1 %v1622_v18 }
  0x12   :  { %1217 = vmatprep.subr.bf16.mxu1 %v1491_v1 }
  0x13   :  { %193 = vmatpush1.bf16.msra.mxu0 %v1590_v13 }
  0x14   :  { %194 = vmatprep.subr.bf16.mxu0 %v1596_v14 }
  0x15   :  { %1218 = vmatpush3.bf16.msra.mxu1 %v1641_v21 }
  0x16   :  { %1219 = vmatprep.subr.bf16.mxu1 %v1491_v1 }
  0x17   :  { %195 = vmatpush1.bf16.msra.mxu0 %v1610_v16 }
  0x18   :  { %196 = vmatprep.subr.bf16.mxu0 %v1616_v17 }
  0x19   :  { %1220 = vmatpush3.bf16.msra.mxu1 %v1660_v24 }
  0x1a   :  { %1221 = vmatprep.subr.bf16.mxu1 %v1491_v1 }
  0x1b   :  { %197 = vmatpush1.bf16.msra.mxu0 %v1629_v19 }
  0x1c   :  { %198 = vmatprep.subr.bf16.mxu0 %v1635_v20 }
  0x1d   :  { %1222 = vmatpush3.bf16.msra.mxu1 %v1670_v26 }
  0x1e   :  { %1223 = vmatprep.subr.bf16.mxu1 %v1491_v1 }
  0x1f   :  { %199 = vmatpush1.bf16.msra.mxu0 %v1648_v22 }
  0x20   :  { %299 = vmatprep.subr.bf16.mxu0 %v1522_v0 }
  0x21   :  { %1224 = vmatpush3.bf16.msra.mxu1 %v1680_v27 }
  0x22   :  { %217 = vmatmul.mubr.bf16.vlgmr.msra.gmra.mxu0 %v55_v25  ;;  %1229 = vmatprep.subr.bf16.mxu1 %v1491_v1 }
  0x23   :  { %300 = vmatpush1.bf16.msra.mxu0 %v1529_v3  ;;  %331 = vmatprep.mubr.bf16.mxu0 %v1492_v2 }
  0x24   :  { %301 = vmatprep.subr.bf16.mxu0 %v1537_v4  ;;  %1226 = vmatmul.mubr.bf16.vlgmr.msra.gmra.mxu1 %v55_v25 }
  0x25   :  { %1230 = vmatpush3.bf16.msra.mxu1 %v1566_v9  ;;  %1245 = vmatprep.mubr.msk.bf16.mxu1 %vm1493_vm0, %v1491_v1 }
  0x26   :  { %1231 = vmatprep.subr.bf16.mxu1 %v1491_v1 }
  0x27   :  { %302 = vmatpush1.bf16.msra.mxu0 %v1543_v5 }
  0x28   :  { %303 = vmatprep.subr.bf16.mxu0 %v1549_v6 }
  0x29   :  { %1232 = vmatpush3.bf16.msra.mxu1 %v1584_v12 }
  0x2a   :  { %1233 = vmatprep.subr.bf16.mxu1 %v1491_v1 }
  0x2b   :  { %304 = vmatpush1.bf16.msra.mxu0 %v1555_v7 }
  0x2c   :  { %305 = vmatprep.subr.bf16.mxu0 %v1561_v8 }
  0x2d   :  { %1234 = vmatpush3.bf16.msra.mxu1 %v1603_v15 }
  0x2e   :  { %1235 = vmatprep.subr.bf16.mxu1 %v1491_v1 }
  0x2f   :  { %306 = vmatpush1.bf16.msra.mxu0 %v1572_v10 }
  0x30   :  { %307 = vmatprep.subr.bf16.mxu0 %v1578_v11 }
  0x31   :  { %1236 = vmatpush3.bf16.msra.mxu1 %v1622_v18 }
  0x32   :  { %1237 = vmatprep.subr.bf16.mxu1 %v1491_v1 }
  0x33   :  { %308 = vmatpush1.bf16.msra.mxu0 %v1590_v13 }
  0x34   :  { %309 = vmatprep.subr.bf16.mxu0 %v1596_v14 }
  0x35   :  { %1238 = vmatpush3.bf16.msra.mxu1 %v1641_v21 }
  0x36   :  { %1239 = vmatprep.subr.bf16.mxu1 %v1491_v1 }
  0x37   :  { %310 = vmatpush1.bf16.msra.mxu0 %v1610_v16 }
  0x38   :  { %311 = vmatprep.subr.bf16.mxu0 %v1616_v17 }
  0x39   :  { %1240 = vmatpush3.bf16.msra.mxu1 %v1660_v24 }
  0x3a   :  { %1241 = vmatprep.subr.bf16.mxu1 %v1491_v1 }
  0x3b   :  { %312 = vmatpush1.bf16.msra.mxu0 %v1629_v19 }
  0x3c   :  { %313 = vmatprep.subr.bf16.mxu0 %v1635_v20 }
  0x3d   :  { %1242 = vmatpush3.bf16.msra.mxu1 %v1670_v26 }
  0x3e   :  { %1243 = vmatprep.subr.bf16.mxu1 %v1491_v1 }
  0x3f   :  { %314 = vmatpush1.bf16.msra.mxu0 %v1648_v22 }
  0x40   :  { %409 = vmatprep.subr.bf16.mxu0 %v1522_v0 }
  0x41   :  { %1244 = vmatpush3.bf16.msra.mxu1 %v1680_v27 }
  0x42   :  { %1249 = vmatprep.subr.bf16.mxu1 %v1491_v1 }
  0xe2   :  { %v218_v29 = vpop.f32.mrf.mxu0 }
  0xe3   :  { %v265_v30 = vadd.f32 %v218_v29, %v52_v28  ;;  %v1096_v28 = vld [vmem:[%s2088_s0 + $0x20] sm:$0xff] }
  0xe4   :  { %v220_v31 = vpop.f32.mrf.mxu0  ;;  %v259_v37 = vpop.f32.mrf.mxu1 }
  0xe5   :  { %v1092_v32 = vmul.f32 -1.442695, %v265_v30  ;;  %v272_v36 = vadd.f32 %v220_v31, %v53_v33  ;;  %v285_v47 = vadd.f32 %v1727_v45, %v259_v37 }
  0xe6   :  { %v222_v34 = vpop.f32.mrf.mxu0  ;;  %v1227_v39 = vpop.f32.mrf.mxu1 }
  0xe7   :  { %1404 = vpow2.f32 %v1092_v32  ;;  %v1093_v38 = vmul.f32 -1.442695, %v272_v36 }
  0xe8   :  { %v223_v35 = vpop.f32.mrf.mxu0  ;;  %v262_v40 = vpop.f32.mrf.mxu1 }
  0xe9   :  { %1406 = vpow2.f32 %v1093_v38 }
  0xea   :  { %v1228_v41 = vpop.f32.mrf.mxu1 }
  0xeb   :  { %v1097_v41 = vld [vmem:[%s2088_s0 + $0x28] sm:$0xff] }
  0xf4   :  { %v1405_v42 = vpop.eup %1404 }
  0xf5   :  { %v269_v43 = vadd.f32 1.0, %v1405_v42 }
  0xf6   :  { %v1407_v44 = vpop.eup %1406 }
  0xf7   :  { %1408 = vrcp.f32 %v269_v43  ;;  %v276_v46 = vadd.f32 1.0, %v1407_v44 }
  0xf9   :  { %1410 = vrcp.f32 %v276_v46 }
 0x104   :  { %v1409_v48 = vpop.eup %1408 }
 0x105   :  { %v286_v50 = vmul.f32 %v1409_v48, %v285_v47 }
 0x106   :  { %v1411_v52 = vpop.eup %1410 }
 0x107   :  { %v287_v51 = vadd.f32 %v286_v50, %v54_v49  ;;  %v289_v53 = vsub.f32 1.0, %v1411_v52  ;;  %v291_v56 = vmul.f32 %v1411_v52, %v1653_v23  ;;  %v1101_v52 = vld [vmem:[%s2088_s0 + $0x30] sm:$0xff] }
 0x109   :  { %1412 = vtanh.f32 %v287_v51 }
 0x116   :  { %v1413_v54 = vpop.eup %1412 }
 0x117   :  { %v290_v55 = vmul.f32 %v1413_v54, %v289_v53 }
 0x119   :  { %v1734_v57 = vadd.f32 %v291_v56, %v290_v55 }
 0x11b   :  { %293 = vst [vmem:[%s2090_s4] sm:$0xff] %v1734_v57  ;;  %v298_v58 = vpack.c.bf16 %v1734_v57, %v1734_v57 }
 0x11d   :  { %332 = vmatmul.mubr.bf16.vlgmr.msra.gmra.mxu0 %v298_v58  ;;  %1246 = vmatmul.mubr.bf16.vlgmr.msra.gmra.mxu1 %v298_v58 }
 0x11e   :  { %410 = vmatpush1.bf16.msra.mxu0 %v1529_v3  ;;  %1250 = vmatpush3.bf16.msra.mxu1 %v1566_v9 }
 0x11f   :  { %411 = vmatprep.subr.bf16.mxu0 %v1537_v4  ;;  %1251 = vmatprep.subr.bf16.mxu1 %v1491_v1 }
 0x120   :  { %441 = vmatprep.mubr.bf16.mxu0 %v1492_v2  ;;  %1265 = vmatprep.mubr.msk.bf16.mxu1 %vm1493_vm0, %v1491_v1 }
 0x122   :  { %412 = vmatpush1.bf16.msra.mxu0 %v1543_v5  ;;  %1252 = vmatpush3.bf16.msra.mxu1 %v1584_v12 }
 0x123   :  { %413 = vmatprep.subr.bf16.mxu0 %v1549_v6  ;;  %1253 = vmatprep.subr.bf16.mxu1 %v1491_v1 }
 0x126   :  { %414 = vmatpush1.bf16.msra.mxu0 %v1555_v7  ;;  %1254 = vmatpush3.bf16.msra.mxu1 %v1603_v15 }
 0x127   :  { %415 = vmatprep.subr.bf16.mxu0 %v1561_v8  ;;  %1255 = vmatprep.subr.bf16.mxu1 %v1491_v1 }
 0x12a   :  { %416 = vmatpush1.bf16.msra.mxu0 %v1572_v10  ;;  %1256 = vmatpush3.bf16.msra.mxu1 %v1622_v18 }
 0x12b   :  { %417 = vmatprep.subr.bf16.mxu0 %v1578_v11  ;;  %1257 = vmatprep.subr.bf16.mxu1 %v1491_v1 }
 0x12e   :  { %418 = vmatpush1.bf16.msra.mxu0 %v1590_v13  ;;  %1258 = vmatpush3.bf16.msra.mxu1 %v1641_v21 }
 0x12f   :  { %419 = vmatprep.subr.bf16.mxu0 %v1596_v14  ;;  %1259 = vmatprep.subr.bf16.mxu1 %v1491_v1 }
 0x132   :  { %420 = vmatpush1.bf16.msra.mxu0 %v1610_v16  ;;  %1260 = vmatpush3.bf16.msra.mxu1 %v1660_v24 }
 0x133   :  { %421 = vmatprep.subr.bf16.mxu0 %v1616_v17  ;;  %1261 = vmatprep.subr.bf16.mxu1 %v1491_v1 }
 0x136   :  { %422 = vmatpush1.bf16.msra.mxu0 %v1629_v19  ;;  %1262 = vmatpush3.bf16.msra.mxu1 %v1670_v26 }
 0x137   :  { %423 = vmatprep.subr.bf16.mxu0 %v1635_v20  ;;  %1263 = vmatprep.subr.bf16.mxu1 %v1491_v1 }
 0x13a   :  { %424 = vmatpush1.bf16.msra.mxu0 %v1648_v22  ;;  %1264 = vmatpush3.bf16.msra.mxu1 %v1680_v27 }
 0x13b   :  { %519 = vmatprep.subr.bf16.mxu0 %v1522_v0  ;;  %1269 = vmatprep.subr.bf16.mxu1 %v1491_v1 }
 0x1dd   :  { %v333_v60 = vpop.f32.mrf.mxu0  ;;  %v374_v61 = vpop.f32.mrf.mxu1 }
 0x1de   :  { %v380_v62 = vadd.f32 %v1095_v59, %v333_v60  ;;  %v394_v39 = vadd.f32 %v1727_v45, %v374_v61  ;;  %v1102_v59 = vld [vmem:[%s2088_s0 + $0x38] sm:$0xff] }
 0x1df   :  { %v335_v63 = vpop.f32.mrf.mxu0  ;;  %v1247_v23 = vpop.f32.mrf.mxu1 }
 0x1e0   :  { %v1098_v25 = vmul.f32 -1.442695, %v380_v62  ;;  %v387_v33 = vadd.f32 %v1096_v28, %v335_v63 }
 0x1e1   :  { %v337_v29 = vpop.f32.mrf.mxu0  ;;  %v377_v30 = vpop.f32.mrf.mxu1 }
 0x1e2   :  { %1414 = vpow2.f32 %v1098_v25  ;;  %v1099_v34 = vmul.f32 -1.442695, %v387_v33 }
 0x1e3   :  { %v338_v31 = vpop.f32.mrf.mxu0  ;;  %v1248_v32 = vpop.f32.mrf.mxu1 }
 0x1e4   :  { %1416 = vpow2.f32 %v1099_v34  ;;  %v1103_v34 = vld [vmem:[%s2088_s0 + $0x40] sm:$0xff] }
 0x1ef   :  { %v1415_v35 = vpop.eup %1414 }
 0x1f0   :  { %v384_v36 = vadd.f32 1.0, %v1415_v35 }
 0x1f1   :  { %v1417_v37 = vpop.eup %1416 }
 0x1f2   :  { %1418 = vrcp.f32 %v384_v36  ;;  %v391_v38 = vadd.f32 1.0, %v1417_v37 }
 0x1f4   :  { %1420 = vrcp.f32 %v391_v38 }
 0x1ff   :  { %v1419_v40 = vpop.eup %1418 }
 0x200   :  { %v395_v42 = vmul.f32 %v1419_v40, %v394_v39 }
 0x201   :  { %v1421_v44 = vpop.eup %1420 }
 0x202   :  { %v396_v43 = vadd.f32 %v1097_v41, %v395_v42  ;;  %v398_v46 = vsub.f32 1.0, %v1421_v44  ;;  %v400_v49 = vmul.f32 %v1421_v44, %v1734_v57  ;;  %v1107_v44 = vld [vmem:[%s2088_s0 + $0x48] sm:$0xff] }
 0x204   :  { %1422 = vtanh.f32 %v396_v43 }
 0x211   :  { %v1423_v47 = vpop.eup %1422 }
 0x212   :  { %v399_v48 = vmul.f32 %v1423_v47, %v398_v46 }
 0x214   :  { %v1788_v50 = vadd.f32 %v400_v49, %v399_v48 }
 0x216   :  { %1100 = vst [vmem:[%s2090_s4 + $0x8] sm:$0xff] %v1788_v50  ;;  %v408_v51 = vpack.c.bf16 %v1788_v50, %v1788_v50 }
 0x218   :  { %442 = vmatmul.mubr.bf16.vlgmr.msra.gmra.mxu0 %v408_v51  ;;  %1266 = vmatmul.mubr.bf16.vlgmr.msra.gmra.mxu1 %v408_v51 }
 0x219   :  { %520 = vmatpush1.bf16.msra.mxu0 %v1529_v3  ;;  %1270 = vmatpush3.bf16.msra.mxu1 %v1566_v9 }
 0x21a   :  { %521 = vmatprep.subr.bf16.mxu0 %v1537_v4  ;;  %1271 = vmatprep.subr.bf16.mxu1 %v1491_v1 }
 0x21b   :  { %551 = vmatprep.mubr.bf16.mxu0 %v1492_v2  ;;  %1285 = vmatprep.mubr.msk.bf16.mxu1 %vm1493_vm0, %v1491_v1 }
 0x21d   :  { %522 = vmatpush1.bf16.msra.mxu0 %v1543_v5  ;;  %1272 = vmatpush3.bf16.msra.mxu1 %v1584_v12 }
 0x21e   :  { %523 = vmatprep.subr.bf16.mxu0 %v1549_v6  ;;  %1273 = vmatprep.subr.bf16.mxu1 %v1491_v1 }
 0x221   :  { %524 = vmatpush1.bf16.msra.mxu0 %v1555_v7  ;;  %1274 = vmatpush3.bf16.msra.mxu1 %v1603_v15 }
 0x222   :  { %525 = vmatprep.subr.bf16.mxu0 %v1561_v8  ;;  %1275 = vmatprep.subr.bf16.mxu1 %v1491_v1 }
 0x225   :  { %526 = vmatpush1.bf16.msra.mxu0 %v1572_v10  ;;  %1276 = vmatpush3.bf16.msra.mxu1 %v1622_v18 }
 0x226   :  { %527 = vmatprep.subr.bf16.mxu0 %v1578_v11  ;;  %1277 = vmatprep.subr.bf16.mxu1 %v1491_v1 }
 0x229   :  { %528 = vmatpush1.bf16.msra.mxu0 %v1590_v13  ;;  %1278 = vmatpush3.bf16.msra.mxu1 %v1641_v21 }
 0x22a   :  { %529 = vmatprep.subr.bf16.mxu0 %v1596_v14  ;;  %1279 = vmatprep.subr.bf16.mxu1 %v1491_v1 }
 0x22d   :  { %530 = vmatpush1.bf16.msra.mxu0 %v1610_v16  ;;  %1280 = vmatpush3.bf16.msra.mxu1 %v1660_v24 }
 0x22e   :  { %531 = vmatprep.subr.bf16.mxu0 %v1616_v17  ;;  %1281 = vmatprep.subr.bf16.mxu1 %v1491_v1 }
 0x231   :  { %532 = vmatpush1.bf16.msra.mxu0 %v1629_v19  ;;  %1282 = vmatpush3.bf16.msra.mxu1 %v1670_v26 }
 0x232   :  { %533 = vmatprep.subr.bf16.mxu0 %v1635_v20  ;;  %1283 = vmatprep.subr.bf16.mxu1 %v1491_v1 }
 0x235   :  { %534 = vmatpush1.bf16.msra.mxu0 %v1648_v22  ;;  %1284 = vmatpush3.bf16.msra.mxu1 %v1680_v27 }
 0x236   :  { %629 = vmatprep.subr.bf16.mxu0 %v1522_v0  ;;  %1289 = vmatprep.subr.bf16.mxu1 %v1491_v1 }
 0x2d8   :  { %v443_v53 = vpop.f32.mrf.mxu0  ;;  %v484_v54 = vpop.f32.mrf.mxu1 }
 0x2d9   :  { %v490_v55 = vadd.f32 %v1101_v52, %v443_v53  ;;  %v504_v32 = vadd.f32 %v1727_v45, %v484_v54  ;;  %v1108_v52 = vld [vmem:[%s2088_s0 + $0x50] sm:$0xff] }
 0x2da   :  { %v445_v56 = vpop.f32.mrf.mxu0  ;;  %v1267_v57 = vpop.f32.mrf.mxu1 }
 0x2db   :  { %v1104_v58 = vmul.f32 -1.442695, %v490_v55  ;;  %v497_v23 = vadd.f32 %v1102_v59, %v445_v56 }
 0x2dc   :  { %v447_v60 = vpop.f32.mrf.mxu0  ;;  %v487_v61 = vpop.f32.mrf.mxu1 }
 0x2dd   :  { %1424 = vpow2.f32 %v1104_v58  ;;  %v1105_v25 = vmul.f32 -1.442695, %v497_v23 }
 0x2de   :  { %v448_v62 = vpop.f32.mrf.mxu0  ;;  %v1268_v63 = vpop.f32.mrf.mxu1 }
 0x2df   :  { %1426 = vpow2.f32 %v1105_v25  ;;  %v1109_v25 = vld [vmem:[%s2088_s0 + $0x58] sm:$0xff] }
 0x2ea   :  { %v1425_v28 = vpop.eup %1424 }
 0x2eb   :  { %v494_v29 = vadd.f32 1.0, %v1425_v28 }
 0x2ec   :  { %v1427_v30 = vpop.eup %1426 }
 0x2ed   :  { %1428 = vrcp.f32 %v494_v29  ;;  %v501_v31 = vadd.f32 1.0, %v1427_v30 }
 0x2ef   :  { %1430 = vrcp.f32 %v501_v31 }
 0x2fa   :  { %v1429_v33 = vpop.eup %1428 }
 0x2fb   :  { %v505_v35 = vmul.f32 %v1429_v33, %v504_v32 }
 0x2fc   :  { %v1431_v37 = vpop.eup %1430 }
 0x2fd   :  { %v506_v36 = vadd.f32 %v1103_v34, %v505_v35  ;;  %v508_v38 = vsub.f32 1.0, %v1431_v37  ;;  %v510_v41 = vmul.f32 %v1431_v37, %v1788_v50  ;;  %v1113_v37 = vld [vmem:[%s2088_s0 + $0x60] sm:$0xff] }
 0x2ff   :  { %1432 = vtanh.f32 %v506_v36 }
 0x30c   :  { %v1433_v39 = vpop.eup %1432 }
 0x30d   :  { %v509_v40 = vmul.f32 %v1433_v39, %v508_v38 }
 0x30f   :  { %v1842_v42 = vadd.f32 %v510_v41, %v509_v40 }
 0x311   :  { %1106 = vst [vmem:[%s2090_s4 + $0x10] sm:$0xff] %v1842_v42  ;;  %v518_v43 = vpack.c.bf16 %v1842_v42, %v1842_v42 }
 0x313   :  { %552 = vmatmul.mubr.bf16.vlgmr.msra.gmra.mxu0 %v518_v43  ;;  %1286 = vmatmul.mubr.bf16.vlgmr.msra.gmra.mxu1 %v518_v43 }
 0x314   :  { %630 = vmatpush1.bf16.msra.mxu0 %v1529_v3  ;;  %1290 = vmatpush3.bf16.msra.mxu1 %v1566_v9 }
 0x315   :  { %631 = vmatprep.subr.bf16.mxu0 %v1537_v4  ;;  %1291 = vmatprep.subr.bf16.mxu1 %v1491_v1 }
 0x316   :  { %661 = vmatprep.mubr.bf16.mxu0 %v1492_v2  ;;  %1305 = vmatprep.mubr.msk.bf16.mxu1 %vm1493_vm0, %v1491_v1 }
 0x318   :  { %632 = vmatpush1.bf16.msra.mxu0 %v1543_v5  ;;  %1292 = vmatpush3.bf16.msra.mxu1 %v1584_v12 }
 0x319   :  { %633 = vmatprep.subr.bf16.mxu0 %v1549_v6  ;;  %1293 = vmatprep.subr.bf16.mxu1 %v1491_v1 }
 0x31c   :  { %634 = vmatpush1.bf16.msra.mxu0 %v1555_v7  ;;  %1294 = vmatpush3.bf16.msra.mxu1 %v1603_v15 }
 0x31d   :  { %635 = vmatprep.subr.bf16.mxu0 %v1561_v8  ;;  %1295 = vmatprep.subr.bf16.mxu1 %v1491_v1 }
 0x320   :  { %636 = vmatpush1.bf16.msra.mxu0 %v1572_v10  ;;  %1296 = vmatpush3.bf16.msra.mxu1 %v1622_v18 }
 0x321   :  { %637 = vmatprep.subr.bf16.mxu0 %v1578_v11  ;;  %1297 = vmatprep.subr.bf16.mxu1 %v1491_v1 }
 0x324   :  { %638 = vmatpush1.bf16.msra.mxu0 %v1590_v13  ;;  %1298 = vmatpush3.bf16.msra.mxu1 %v1641_v21 }
 0x325   :  { %639 = vmatprep.subr.bf16.mxu0 %v1596_v14  ;;  %1299 = vmatprep.subr.bf16.mxu1 %v1491_v1 }
 0x328   :  { %640 = vmatpush1.bf16.msra.mxu0 %v1610_v16  ;;  %1300 = vmatpush3.bf16.msra.mxu1 %v1660_v24 }
 0x329   :  { %641 = vmatprep.subr.bf16.mxu0 %v1616_v17  ;;  %1301 = vmatprep.subr.bf16.mxu1 %v1491_v1 }
 0x32c   :  { %642 = vmatpush1.bf16.msra.mxu0 %v1629_v19  ;;  %1302 = vmatpush3.bf16.msra.mxu1 %v1670_v26 }
 0x32d   :  { %643 = vmatprep.subr.bf16.mxu0 %v1635_v20  ;;  %1303 = vmatprep.subr.bf16.mxu1 %v1491_v1 }
 0x330   :  { %644 = vmatpush1.bf16.msra.mxu0 %v1648_v22  ;;  %1304 = vmatpush3.bf16.msra.mxu1 %v1680_v27 }
 0x331   :  { %739 = vmatprep.subr.bf16.mxu0 %v1522_v0  ;;  %1309 = vmatprep.subr.bf16.mxu1 %v1491_v1 }
 0x3d3   :  { %v553_v46 = vpop.f32.mrf.mxu0  ;;  %v594_v47 = vpop.f32.mrf.mxu1 }
 0x3d4   :  { %v600_v48 = vadd.f32 %v1107_v44, %v553_v46  ;;  %v614_v63 = vadd.f32 %v1727_v45, %v594_v47  ;;  %v1114_v44 = vld [vmem:[%s2088_s0 + $0x68] sm:$0xff] }
 0x3d5   :  { %v555_v49 = vpop.f32.mrf.mxu0  ;;  %v1287_v50 = vpop.f32.mrf.mxu1 }
 0x3d6   :  { %v1110_v51 = vmul.f32 -1.442695, %v600_v48  ;;  %v607_v57 = vadd.f32 %v1108_v52, %v555_v49 }
 0x3d7   :  { %v557_v53 = vpop.f32.mrf.mxu0  ;;  %v597_v54 = vpop.f32.mrf.mxu1 }
 0x3d8   :  { %1434 = vpow2.f32 %v1110_v51  ;;  %v1111_v58 = vmul.f32 -1.442695, %v607_v57 }
 0x3d9   :  { %v558_v55 = vpop.f32.mrf.mxu0  ;;  %v1288_v56 = vpop.f32.mrf.mxu1 }
 0x3da   :  { %1436 = vpow2.f32 %v1111_v58  ;;  %v1115_v58 = vld [vmem:[%s2088_s0 + $0x70] sm:$0xff] }
 0x3e5   :  { %v1435_v59 = vpop.eup %1434 }
 0x3e6   :  { %v604_v60 = vadd.f32 1.0, %v1435_v59 }
 0x3e7   :  { %v1437_v61 = vpop.eup %1436 }
 0x3e8   :  { %1438 = vrcp.f32 %v604_v60  ;;  %v611_v62 = vadd.f32 1.0, %v1437_v61 }
 0x3ea   :  { %1440 = vrcp.f32 %v611_v62 }
 0x3f5   :  { %v1439_v23 = vpop.eup %1438 }
 0x3f6   :  { %v615_v28 = vmul.f32 %v1439_v23, %v614_v63 }
 0x3f7   :  { %v1441_v30 = vpop.eup %1440 }
 0x3f8   :  { %v616_v29 = vadd.f32 %v1109_v25, %v615_v28  ;;  %v618_v31 = vsub.f32 1.0, %v1441_v30  ;;  %v620_v34 = vmul.f32 %v1441_v30, %v1842_v42  ;;  %v1120_v30 = vld [vmem:[%s2088_s0 + $0x80] sm:$0xff] }
 0x3fa   :  { %1442 = vtanh.f32 %v616_v29 }
 0x407   :  { %v1443_v32 = vpop.eup %1442 }
 0x408   :  { %v619_v33 = vmul.f32 %v1443_v32, %v618_v31 }
 0x40a   :  { %v1896_v35 = vadd.f32 %v620_v34, %v619_v33 }
 0x40c   :  { %1112 = vst [vmem:[%s2090_s4 + $0x18] sm:$0xff] %v1896_v35  ;;  %v628_v36 = vpack.c.bf16 %v1896_v35, %v1896_v35 }
 0x40e   :  { %662 = vmatmul.mubr.bf16.vlgmr.msra.gmra.mxu0 %v628_v36  ;;  %1306 = vmatmul.mubr.bf16.vlgmr.msra.gmra.mxu1 %v628_v36 }
 0x40f   :  { %740 = vmatpush1.bf16.msra.mxu0 %v1529_v3  ;;  %1310 = vmatpush3.bf16.msra.mxu1 %v1566_v9 }
 0x410   :  { %741 = vmatprep.subr.bf16.mxu0 %v1537_v4  ;;  %1311 = vmatprep.subr.bf16.mxu1 %v1491_v1 }
 0x411   :  { %771 = vmatprep.mubr.bf16.mxu0 %v1492_v2  ;;  %1325 = vmatprep.mubr.msk.bf16.mxu1 %vm1493_vm0, %v1491_v1 }
 0x413   :  { %742 = vmatpush1.bf16.msra.mxu0 %v1543_v5  ;;  %1312 = vmatpush3.bf16.msra.mxu1 %v1584_v12 }
 0x414   :  { %743 = vmatprep.subr.bf16.mxu0 %v1549_v6  ;;  %1313 = vmatprep.subr.bf16.mxu1 %v1491_v1 }
 0x417   :  { %744 = vmatpush1.bf16.msra.mxu0 %v1555_v7  ;;  %1314 = vmatpush3.bf16.msra.mxu1 %v1603_v15 }
 0x418   :  { %745 = vmatprep.subr.bf16.mxu0 %v1561_v8  ;;  %1315 = vmatprep.subr.bf16.mxu1 %v1491_v1 }
 0x41b   :  { %746 = vmatpush1.bf16.msra.mxu0 %v1572_v10  ;;  %1316 = vmatpush3.bf16.msra.mxu1 %v1622_v18 }
 0x41c   :  { %747 = vmatprep.subr.bf16.mxu0 %v1578_v11  ;;  %1317 = vmatprep.subr.bf16.mxu1 %v1491_v1 }
 0x41f   :  { %748 = vmatpush1.bf16.msra.mxu0 %v1590_v13  ;;  %1318 = vmatpush3.bf16.msra.mxu1 %v1641_v21 }
 0x420   :  { %749 = vmatprep.subr.bf16.mxu0 %v1596_v14  ;;  %1319 = vmatprep.subr.bf16.mxu1 %v1491_v1 }
 0x423   :  { %750 = vmatpush1.bf16.msra.mxu0 %v1610_v16  ;;  %1320 = vmatpush3.bf16.msra.mxu1 %v1660_v24 }
 0x424   :  { %751 = vmatprep.subr.bf16.mxu0 %v1616_v17  ;;  %1321 = vmatprep.subr.bf16.mxu1 %v1491_v1 }
 0x427   :  { %752 = vmatpush1.bf16.msra.mxu0 %v1629_v19  ;;  %1322 = vmatpush3.bf16.msra.mxu1 %v1670_v26 }
 0x428   :  { %753 = vmatprep.subr.bf16.mxu0 %v1635_v20  ;;  %1323 = vmatprep.subr.bf16.mxu1 %v1491_v1 }
 0x42b   :  { %754 = vmatpush1.bf16.msra.mxu0 %v1648_v22  ;;  %1324 = vmatpush3.bf16.msra.mxu1 %v1680_v27 }
 0x42c   :  { %849 = vmatprep.subr.bf16.mxu0 %v1522_v0  ;;  %1329 = vmatprep.subr.bf16.mxu1 %v1491_v1 }
 0x4ce   :  { %v663_v38 = vpop.f32.mrf.mxu0  ;;  %v704_v39 = vpop.f32.mrf.mxu1 }
 0x4cf   :  { %v710_v40 = vadd.f32 %v1113_v37, %v663_v38  ;;  %v724_v56 = vadd.f32 %v1727_v45, %v704_v39 }
 0x4d0   :  { %v665_v41 = vpop.f32.mrf.mxu0  ;;  %v1307_v42 = vpop.f32.mrf.mxu1 }
 0x4d1   :  { %v1116_v43 = vmul.f32 -1.442695, %v710_v40  ;;  %v717_v50 = vadd.f32 %v1114_v44, %v665_v41  ;;  %v1121_v42 = vld [vmem:[%s2088_s0 + $0x88] sm:$0xff] }
 0x4d2   :  { %v667_v46 = vpop.f32.mrf.mxu0  ;;  %v707_v47 = vpop.f32.mrf.mxu1 }
 0x4d3   :  { %1444 = vpow2.f32 %v1116_v43  ;;  %v1117_v51 = vmul.f32 -1.442695, %v717_v50 }
 0x4d4   :  { %v668_v48 = vpop.f32.mrf.mxu0  ;;  %v1308_v49 = vpop.f32.mrf.mxu1 }
 0x4d5   :  { %1446 = vpow2.f32 %v1117_v51 }
 0x4e0   :  { %v1445_v52 = vpop.eup %1444 }
 0x4e1   :  { %v714_v53 = vadd.f32 1.0, %v1445_v52 }
 0x4e2   :  { %v1447_v54 = vpop.eup %1446 }
 0x4e3   :  { %1448 = vrcp.f32 %v714_v53  ;;  %v721_v55 = vadd.f32 1.0, %v1447_v54  ;;  %v1484_v53 = vld [vmem:[%s2086_s2 + $0xa8] ss:$12 sps:$4 sm:$0xff]  }
 0x4e4   :  { %v1485_v54 = vld [vmem:[%s2086_s2 + $0x94] ss:$12 sps:$4 sm:$0xff]  }
 0x4e5   :  { %1450 = vrcp.f32 %v721_v55  ;;  %v1486_v55 = vld [vmem:[%s2086_s2 + $0x90] ss:$12 sps:$4 sm:$0xff]  }
 0x4f0   :  { %v1449_v57 = vpop.eup %1448 }
 0x4f1   :  { %v725_v59 = vmul.f32 %v1449_v57, %v724_v56  ;;  %v1489_v56 = vld [vmem:[%s2086_s2 + $0x64] ss:$12 sps:$4 sm:$0xff]  }
 0x4f2   :  { %v1451_v61 = vpop.eup %1450 }
 0x4f3   :  { %v726_v60 = vadd.f32 %v1115_v58, %v725_v59  ;;  %v728_v62 = vsub.f32 1.0, %v1451_v61  ;;  %v730_v25 = vmul.f32 %v1451_v61, %v1896_v35 }
 0x4f5   :  { %1452 = vtanh.f32 %v726_v60 }
 0x502   :  { %v1453_v63 = vpop.eup %1452 }
 0x503   :  { %v729_v23 = vmul.f32 %v1453_v63, %v728_v62  ;;  %v1127_v62 = vld [vmem:[%s2088_s0 + $0xa0] sm:$0xff] }
 0x505   :  { %v1950_v28 = vadd.f32 %v730_v25, %v729_v23 }
 0x507   :  { %1118 = vst [vmem:[%s2090_s4 + $0x20] sm:$0xff] %v1950_v28  ;;  %v738_v29 = vpack.c.bf16 %v1950_v28, %v1950_v28 }
 0x509   :  { %772 = vmatmul.mubr.bf16.vlgmr.msra.gmra.mxu0 %v738_v29  ;;  %1326 = vmatmul.mubr.bf16.vlgmr.msra.gmra.mxu1 %v738_v29 }
 0x50a   :  { %850 = vmatpush1.bf16.msra.mxu0 %v1529_v3  ;;  %1330 = vmatpush3.bf16.msra.mxu1 %v1566_v9  ;;  %v1119_v3 = vld [vmem:[%s2088_s0 + $0x78] sm:$0xff] }
 0x50b   :  { %851 = vmatprep.subr.bf16.mxu0 %v1537_v4  ;;  %1331 = vmatprep.subr.bf16.mxu1 %v1491_v1 }
 0x50c   :  { %881 = vmatprep.mubr.bf16.mxu0 %v1492_v2  ;;  %1345 = vmatprep.mubr.msk.bf16.mxu1 %vm1493_vm0, %v1491_v1 }
 0x50e   :  { %852 = vmatpush1.bf16.msra.mxu0 %v1543_v5  ;;  %1332 = vmatpush3.bf16.msra.mxu1 %v1584_v12 }
 0x50f   :  { %853 = vmatprep.subr.bf16.mxu0 %v1549_v6  ;;  %1333 = vmatprep.subr.bf16.mxu1 %v1491_v1 }
 0x512   :  { %854 = vmatpush1.bf16.msra.mxu0 %v1555_v7  ;;  %1334 = vmatpush3.bf16.msra.mxu1 %v1603_v15 }
 0x513   :  { %855 = vmatprep.subr.bf16.mxu0 %v1561_v8  ;;  %1335 = vmatprep.subr.bf16.mxu1 %v1491_v1 }
 0x516   :  { %856 = vmatpush1.bf16.msra.mxu0 %v1572_v10  ;;  %1336 = vmatpush3.bf16.msra.mxu1 %v1622_v18 }
 0x517   :  { %857 = vmatprep.subr.bf16.mxu0 %v1578_v11  ;;  %1337 = vmatprep.subr.bf16.mxu1 %v1491_v1 }
 0x51a   :  { %858 = vmatpush1.bf16.msra.mxu0 %v1590_v13  ;;  %1338 = vmatpush3.bf16.msra.mxu1 %v1641_v21 }
 0x51b   :  { %859 = vmatprep.subr.bf16.mxu0 %v1596_v14  ;;  %1339 = vmatprep.subr.bf16.mxu1 %v1491_v1 }
 0x51e   :  { %860 = vmatpush1.bf16.msra.mxu0 %v1610_v16  ;;  %1340 = vmatpush3.bf16.msra.mxu1 %v1660_v24 }
 0x51f   :  { %861 = vmatprep.subr.bf16.mxu0 %v1616_v17  ;;  %1341 = vmatprep.subr.bf16.mxu1 %v1491_v1 }
 0x522   :  { %862 = vmatpush1.bf16.msra.mxu0 %v1629_v19  ;;  %1342 = vmatpush3.bf16.msra.mxu1 %v1670_v26 }
 0x523   :  { %863 = vmatprep.subr.bf16.mxu0 %v1635_v20  ;;  %1343 = vmatprep.subr.bf16.mxu1 %v1491_v1 }
 0x526   :  { %864 = vmatpush1.bf16.msra.mxu0 %v1648_v22  ;;  %1344 = vmatpush3.bf16.msra.mxu1 %v1680_v27 }
 0x527   :  { %959 = vmatprep.subr.bf16.mxu0 %v1522_v0  ;;  %1349 = vmatprep.subr.bf16.mxu1 %v1491_v1 }
 0x5c9   :  { %v773_v4 = vpop.f32.mrf.mxu0  ;;  %v814_v5 = vpop.f32.mrf.mxu1 }
 0x5ca   :  { %v820_v6 = vadd.f32 %v1119_v3, %v773_v4  ;;  %v834_v40 = vadd.f32 %v1727_v45, %v814_v5 }
 0x5cb   :  { %v775_v7 = vpop.f32.mrf.mxu0  ;;  %v1327_v8 = vpop.f32.mrf.mxu1 }
 0x5cc   :  { %v1122_v10 = vmul.f32 -1.442695, %v820_v6  ;;  %v827_v34 = vadd.f32 %v1120_v30, %v775_v7  ;;  %v1131_v7 = vld [vmem:[%s2088_s0 + $0xa8] sm:$0xff] }
 0x5cd   :  { %v777_v31 = vpop.f32.mrf.mxu0  ;;  %v817_v32 = vpop.f32.mrf.mxu1 }
 0x5ce   :  { %1454 = vpow2.f32 %v1122_v10  ;;  %v1123_v35 = vmul.f32 -1.442695, %v827_v34 }
 0x5cf   :  { %v778_v0 = vpop.f32.mrf.mxu0  ;;  %v1328_v33 = vpop.f32.mrf.mxu1 }
 0x5d0   :  { %1456 = vpow2.f32 %v1123_v35  ;;  %v1132_v33 = vld [vmem:[%s2088_s0 + $0xb0] sm:$0xff] }
 0x5db   :  { %v1455_v36 = vpop.eup %1454 }
 0x5dc   :  { %v824_v37 = vadd.f32 1.0, %v1455_v36 }
 0x5dd   :  { %v1457_v38 = vpop.eup %1456 }
 0x5de   :  { %1458 = vrcp.f32 %v824_v37  ;;  %v831_v39 = vadd.f32 1.0, %v1457_v38 }
 0x5e0   :  { %1460 = vrcp.f32 %v831_v39 }
 0x5eb   :  { %v1459_v41 = vpop.eup %1458 }
 0x5ec   :  { %v835_v43 = vmul.f32 %v1459_v41, %v834_v40 }
 0x5ed   :  { %v1461_v46 = vpop.eup %1460 }
 0x5ee   :  { %v836_v44 = vadd.f32 %v1121_v42, %v835_v43  ;;  %v838_v47 = vsub.f32 1.0, %v1461_v46  ;;  %v840_v50 = vmul.f32 %v1461_v46, %v1950_v28 }
 0x5f0   :  { %1462 = vtanh.f32 %v836_v44 }
 0x5fd   :  { %v1463_v48 = vpop.eup %1462 }
 0x5fe   :  { %v839_v49 = vmul.f32 %v1463_v48, %v838_v47  ;;  %v1133_v47 = vld [vmem:[%s2088_s0 + $0xb8] sm:$0xff] }
 0x600   :  { %v2004_v51 = vadd.f32 %v840_v50, %v839_v49 }
 0x602   :  { %1124 = vst [vmem:[%s2090_s4 + $0x28] sm:$0xff] %v2004_v51  ;;  %v848_v52 = vpack.c.bf16 %v2004_v51, %v2004_v51 }
 0x604   :  { %882 = vmatmul.mubr.bf16.vlgmr.msra.gmra.mxu0 %v848_v52  ;;  %1346 = vmatmul.mubr.bf16.vlgmr.msra.gmra.mxu1 %v848_v52 }
 0x605   :  { %960 = vmatpush1.bf16.msra.mxu0 %v1484_v53  ;;  %1350 = vmatpush3.bf16.msra.mxu1 %v1566_v9  ;;  %v1487_v9 = vld [vmem:[%s2086_s2 + $0x7c] ss:$12 sps:$4 sm:$0xff]  }
 0x606   :  { %961 = vmatprep.subr.bf16.mxu0 %v1485_v54  ;;  %1351 = vmatprep.subr.bf16.mxu1 %v1491_v1 }
 0x607   :  { %991 = vmatprep.mubr.bf16.mxu0 %v1492_v2  ;;  %1365 = vmatprep.mubr.msk.bf16.mxu1 %vm1493_vm0, %v1491_v1  ;;  %v1488_v2 = vld [vmem:[%s2086_s2 + $0x78] ss:$12 sps:$4 sm:$0xff]  }
 0x609   :  { %962 = vmatpush1.bf16.msra.mxu0 %v1486_v55  ;;  %1352 = vmatpush3.bf16.msra.mxu1 %v1584_v12  ;;  %v1490_v12 = vld [vmem:[%s2086_s2 + $0x60] ss:$12 sps:$4 sm:$0xff]  }
 0x60a   :  { %963 = vmatprep.subr.bf16.mxu0 %v1487_v9  ;;  %1353 = vmatprep.subr.bf16.mxu1 %v1491_v1 }
 0x60d   :  { %964 = vmatpush1.bf16.msra.mxu0 %v1488_v2  ;;  %1354 = vmatpush3.bf16.msra.mxu1 %v1603_v15 }
 0x60e   :  { %965 = vmatprep.subr.bf16.mxu0 %v1489_v56  ;;  %1355 = vmatprep.subr.bf16.mxu1 %v1491_v1 }
 0x611   :  { %966 = vmatpush1.bf16.msra.mxu0 %v1490_v12  ;;  %1356 = vmatpush3.bf16.msra.mxu1 %v1622_v18 }
 0x612   :  { %967 = vmatprep.subr.bf16.mxu0 %v1578_v11  ;;  %1357 = vmatprep.subr.bf16.mxu1 %v1491_v1  ;;  %v1125_v11 = vld [vmem:[%s2088_s0 + $0x90] sm:$0xff] }
 0x615   :  { %968 = vmatpush1.bf16.msra.mxu0 %v1590_v13  ;;  %1358 = vmatpush3.bf16.msra.mxu1 %v1641_v21 }
 0x616   :  { %969 = vmatprep.subr.bf16.mxu0 %v1596_v14  ;;  %1359 = vmatprep.subr.bf16.mxu1 %v1491_v1 }
 0x619   :  { %970 = vmatpush1.bf16.msra.mxu0 %v1610_v16  ;;  %1360 = vmatpush3.bf16.msra.mxu1 %v1660_v24 }
 0x61a   :  { %971 = vmatprep.subr.bf16.mxu0 %v1616_v17  ;;  %1361 = vmatprep.subr.bf16.mxu1 %v1491_v1 }
 0x61d   :  { %972 = vmatpush1.bf16.msra.mxu0 %v1629_v19  ;;  %1362 = vmatpush3.bf16.msra.mxu1 %v1670_v26  ;;  %v1126_v19 = vld [vmem:[%s2088_s0 + $0x98] sm:$0xff] }
 0x61e   :  { %973 = vmatprep.subr.bf16.mxu0 %v1635_v20  ;;  %1363 = vmatprep.subr.bf16.mxu1 %v1491_v1 }
 0x621   :  { %974 = vmatpush1.bf16.msra.mxu0 %v1648_v22  ;;  %1364 = vmatpush3.bf16.msra.mxu1 %v1680_v27 }
 0x6c4   :  { %v883_v13 = vpop.f32.mrf.mxu0  ;;  %v924_v14 = vpop.f32.mrf.mxu1 }
 0x6c5   :  { %v930_v15 = vadd.f32 %v1125_v11, %v883_v13  ;;  %v944_v60 = vadd.f32 %v1727_v45, %v924_v14 }
 0x6c6   :  { %v885_v16 = vpop.f32.mrf.mxu0  ;;  %v1347_v17 = vpop.f32.mrf.mxu1 }
 0x6c7   :  { %v1128_v18 = vmul.f32 -1.442695, %v930_v15  ;;  %v937_v24 = vadd.f32 %v1126_v19, %v885_v16 }
 0x6c8   :  { %v887_v20 = vpop.f32.mrf.mxu0  ;;  %v927_v1 = vpop.f32.mrf.mxu1 }
 0x6c9   :  { %1464 = vpow2.f32 %v1128_v18  ;;  %v1129_v26 = vmul.f32 -1.442695, %v937_v24 }
 0x6ca   :  { %v888_v21 = vpop.f32.mrf.mxu0  ;;  %v1348_v22 = vpop.f32.mrf.mxu1 }
 0x6cb   :  { %1466 = vpow2.f32 %v1129_v26 }
 0x6d6   :  { %v1465_v27 = vpop.eup %1464 }
 0x6d7   :  { %v934_v57 = vadd.f32 1.0, %v1465_v27 }
 0x6d8   :  { %v1467_v58 = vpop.eup %1466 }
 0x6d9   :  { %1468 = vrcp.f32 %v934_v57  ;;  %v941_v59 = vadd.f32 1.0, %v1467_v58 }
 0x6db   :  { %1470 = vrcp.f32 %v941_v59 }
 0x6e6   :  { %v1469_v61 = vpop.eup %1468 }
 0x6e7   :  { %v945_v63 = vmul.f32 %v1469_v61, %v944_v60 }
 0x6e8   :  { %v1471_v25 = vpop.eup %1470 }
 0x6e9   :  { %v946_v23 = vadd.f32 %v1127_v62, %v945_v63  ;;  %v948_v28 = vsub.f32 1.0, %v1471_v25  ;;  %v950_v4 = vmul.f32 %v1471_v25, %v2004_v51 }
 0x6eb   :  { %1472 = vtanh.f32 %v946_v23 }
 0x6f8   :  { %v1473_v29 = vpop.eup %1472 }
 0x6f9   :  { %v949_v3 = vmul.f32 %v1473_v29, %v948_v28 }
 0x6fb   :  { %v951_v5 = vadd.f32 %v950_v4, %v949_v3 }
 0x6fd   :  { %1130 = vst [vmem:[%s2090_s4 + $0x30] sm:$0xff] %v951_v5  ;;  %v958_v6 = vpack.c.bf16 %v951_v5, %v951_v5 }
 0x6ff   :  { %992 = vmatmul.mubr.bf16.vlgmr.msra.gmra.mxu0 %v958_v6  ;;  %1366 = vmatmul.mubr.bf16.vlgmr.msra.gmra.mxu1 %v958_v6 }
 0x7bf   :  { %v993_v8 = vpop.f32.mrf.mxu0  ;;  %v1034_v10 = vpop.f32.mrf.mxu1 }
 0x7c0   :  { %v1040_v30 = vadd.f32 %v1131_v7, %v993_v8  ;;  %v1054_v44 = vadd.f32 %v1727_v45, %v1034_v10 }
 0x7c1   :  { %v995_v31 = vpop.f32.mrf.mxu0  ;;  %v1367_v32 = vpop.f32.mrf.mxu1 }
 0x7c2   :  { %v1134_v0 = vmul.f32 -1.442695, %v1040_v30  ;;  %v1047_v38 = vadd.f32 %v1132_v33, %v995_v31 }
 0x7c3   :  { %v997_v34 = vpop.f32.mrf.mxu0  ;;  %v1037_v35 = vpop.f32.mrf.mxu1 }
 0x7c4   :  { %1474 = vpow2.f32 %v1134_v0  ;;  %v1135_v39 = vmul.f32 -1.442695, %v1047_v38 }
 0x7c5   :  { %v998_v36 = vpop.f32.mrf.mxu0  ;;  %v1368_v37 = vpop.f32.mrf.mxu1 }
 0x7c6   :  { %1476 = vpow2.f32 %v1135_v39 }
 0x7d1   :  { %v1475_v40 = vpop.eup %1474 }
 0x7d2   :  { %v1044_v41 = vadd.f32 1.0, %v1475_v40 }
 0x7d3   :  { %v1477_v42 = vpop.eup %1476 }
 0x7d4   :  { %1478 = vrcp.f32 %v1044_v41  ;;  %v1051_v43 = vadd.f32 1.0, %v1477_v42 }
 0x7d6   :  { %1480 = vrcp.f32 %v1051_v43 }
 0x7e1   :  { %v1479_v46 = vpop.eup %1478 }
 0x7e2   :  { %v1055_v48 = vmul.f32 %v1479_v46, %v1054_v44 }
 0x7e3   :  { %v1481_v50 = vpop.eup %1480 }
 0x7e4   :  { %v1056_v49 = vadd.f32 %v1133_v47, %v1055_v48  ;;  %v1058_v51 = vsub.f32 1.0, %v1481_v50  ;;  %v1060_v54 = vmul.f32 %v1481_v50, %v951_v5 }
 0x7e6   :  { %1482 = vtanh.f32 %v1056_v49 }
 0x7f3   :  { %v1483_v52 = vpop.eup %1482 }
 0x7f4   :  { %v1059_v53 = vmul.f32 %v1483_v52, %v1058_v51 }
 0x7f6   :  { %v1061_v55 = vadd.f32 %v1060_v54, %v1059_v53 }
 0x7f8   :  { %1136 = vst [vmem:[%s2090_s4 + $0x38] sm:$0xff] %v1061_v55 }

</bundles_post_ra>
